<compile_context>
chip_gen: v6e
topology: v6e:2x2x1
jax: 0.10.0
libtpu: 0.0.40
codegen_flags: <defaults>
</compile_context>

<pallas_src>
import numpy as np

import jax
import jax.numpy as jnp
from jax.experimental import pallas as pl
from jax.experimental.pallas import tpu as pltpu


# --------------------------------------------------------------------------
# In-kernel building block: stride-1 conv as a sum of per-tap 2D matmuls.
# The layer input lives in a flat [Hp*Wp, Cin] f32 VMEM scratch buffer (already
# zero-padded as required).  For tap (ty,tx) the needed rows are one contiguous
# slice [ty*Wp+tx : ty*Wp+tx + oh*Wp).  The returned "wide" value is
# [oh*Wp, Cout]; columns >= ow of each output row are garbage and are simply
# never copied onward.
# --------------------------------------------------------------------------
def _conv_block(buf_ref, w_ref, b_ref, *, taps, pitch, oh, act):
    T = taps
    M = oh * pitch
    acc = None
    for t in range(T * T):
        ty, tx = divmod(t, T)
        off = ty * pitch + tx
        lhs = buf_ref[off:off + M, :].astype(jnp.bfloat16)
        d = jnp.dot(lhs, w_ref[t], preferred_element_type=jnp.float32)
        acc = d if acc is None else acc + d
    acc = acc + b_ref[...]
    if act == "relu":
        acc = jnp.maximum(acc, 0.0)
    elif act == "sigmoid":
        acc = jax.nn.sigmoid(acc)
    return acc


# --------------------------------------------------------------------------
# Fused forward kernel (one grid step == one image).
#
# Packed layouts (per image):
#   input : 4x4 space-to-depth blocks  -> [7,7,16]   (flat [49,16])
#   a1    : 2x2-packed 14x14x32        -> [7,7,128]
#   a2    : 7x7x64, a3 : 3x3x128, a4 : 7x7x64 (plain)
#   a5    : 2x2-packed 14x14x32        -> [7,7,128]
#   output: 4x4-packed 28x28x1         -> [7,8,16] wide (valid cols 0..6)
# --------------------------------------------------------------------------
def _fused_kernel(x_ref,
                  w1_ref, b1_ref, w2_ref, b2_ref, w3_ref, b3_ref,
                  w4_ref, b4_ref, w5_ref, b5_ref, w6_ref, b6_ref,
                  o_ref,
                  buf1, buf2, buf3, buf4, buf5, buf6):
    # zero scratch -> provides every zero-padding region
    for buf in (buf1, buf2, buf3, buf4, buf5, buf6):
        buf[...] = jnp.zeros(buf.shape, buf.dtype)

    # L1: Conv(1->32, 3x3, s2, p1) on 4x4-packed image -> a1 (2x2-packed, 128ch)
    xv = x_ref[0]                                            # [49, 16] f32
    for v in range(7):                                       # low-side pad of 1 block
        buf1[(v + 1) * 8 + 1:(v + 1) * 8 + 8, :] = xv[v * 7:(v + 1) * 7, :]
    wide1 = _conv_block(buf1, w1_ref, b1_ref, taps=2, pitch=8, oh=7, act="relu")

    # L2: Conv(32->64, 3x3, s2, p1) on 2x2-packed a1 -> a2 [7,7,64]
    for m in range(7):
        buf2[(m + 1) * 8 + 1:(m + 1) * 8 + 8, :] = wide1[m * 8:m * 8 + 7, :]
    wide2 = _conv_block(buf2, w2_ref, b2_ref, taps=2, pitch=8, oh=7, act="relu")

    # L3: Conv(64->128, 5x5, valid) -> a3 [3,3,128]   (no activation)
    for r in range(7):
        buf3[r * 7:r * 7 + 7, :] = wide2[r * 8:r * 8 + 7, :]
    wide3 = _conv_block(buf3, w3_ref, b3_ref, taps=5, pitch=7, oh=3, act="none")

    # L4: ConvT(128->64, 5x5) == 5x5 conv on a3 zero-padded by 4 -> a4 [7,7,64]
    for r in range(3):
        buf4[(r + 4) * 11 + 4:(r + 4) * 11 + 7, :] = wide3[r * 7:r * 7 + 3, :]
    wide4 = _conv_block(buf4, w4_ref, b4_ref, taps=5, pitch=11, oh=7, act="relu")

    # L5: ConvT(64->32, 3x3, s2, p1, op1) -> a5 (2x2-packed, 128ch)
    for r in range(7):
        buf5[r * 8:r * 8 + 7, :] = wide4[r * 11:r * 11 + 7, :]
    wide5 = _conv_block(buf5, w5_ref, b5_ref, taps=2, pitch=8, oh=7, act="relu")

    # L6: ConvT(32->1, 3x3, s2, p1, op1) + sigmoid -> output (4x4-packed, 16ch)
    for r in range(7):
        buf6[r * 8:r * 8 + 7, :] = wide5[r * 8:r * 8 + 7, :]
    wide6 = _conv_block(buf6, w6_ref, b6_ref, taps=2, pitch=8, oh=7, act="sigmoid")

    o_ref[0] = wide6                                         # [56, 16] f32 (lane-dense-ish, tiny)


# --------------------------------------------------------------------------
# Host-side: rearrange PyTorch-layout weights ONCE into per-tap matmul form.
# --------------------------------------------------------------------------
def prepare_weights(params):
    w1 = np.asarray(params["e1_w"], np.float32); b1 = np.asarray(params["e1_b"], np.float32)
    w2 = np.asarray(params["e2_w"], np.float32); b2 = np.asarray(params["e2_b"], np.float32)
    w3 = np.asarray(params["e3_w"], np.float32); b3 = np.asarray(params["e3_b"], np.float32)
    w4 = np.asarray(params["d1_w"], np.float32); b4 = np.asarray(params["d1_b"], np.float32)
    w5 = np.asarray(params["d2_w"], np.float32); b5 = np.asarray(params["d2_b"], np.float32)
    w6 = np.asarray(params["d3_w"], np.float32); b6 = np.asarray(params["d3_b"], np.float32)

    # L1: input channel = image sub-pos (ry,rx) in 4x4 block; output = (a,b) phase x 32ch
    W1 = np.zeros((4, 16, 128), np.float32)
    for ty in range(2):
        for tx in range(2):
            for ry in range(4):
                for rx in range(4):
                    for a in range(2):
                        for b in range(2):
                            ky = 4 * ty + ry - 2 * a - 3
                            kx = 4 * tx + rx - 2 * b - 3
                            if 0 <= ky < 3 and 0 <= kx < 3:
                                W1[ty * 2 + tx, ry * 4 + rx,
                                   (a * 2 + b) * 32:(a * 2 + b + 1) * 32] = w1[:, 0, ky, kx]

    # L2: input channel = (a,b) phase x 32ch of a1; output = 64ch
    W2 = np.zeros((4, 128, 64), np.float32)
    for ty in range(2):
        for tx in range(2):
            for a in range(2):
                for b in range(2):
                    ky = 2 * ty + a - 1
                    kx = 2 * tx + b - 1
                    if 0 <= ky < 3 and 0 <= kx < 3:
                        W2[ty * 2 + tx, (a * 2 + b) * 32:(a * 2 + b + 1) * 32, :] = \
                            w2[:, :, ky, kx].T

    # L3: plain 5x5 conv
    W3 = np.zeros((25, 64, 128), np.float32)
    for ky in range(5):
        for kx in range(5):
            W3[ky * 5 + kx] = w3[:, :, ky, kx].T

    # L4: ConvT(s=1,p=0) == conv with spatially flipped kernel on 4-padded input
    W4 = np.zeros((25, 128, 64), np.float32)
    for ky in range(5):
        for kx in range(5):
            W4[ky * 5 + kx] = w4[:, :, 4 - ky, 4 - kx]

    # L5: ConvT(s=2,p=1,op=1), output written phase-packed (a,b) x 32ch
    W5 = np.zeros((4, 64, 128), np.float32)
    for ty in range(2):
        for tx in range(2):
            for a in range(2):
                for b in range(2):
                    ky = a + 1 - 2 * ty
                    kx = b + 1 - 2 * tx
                    if 0 <= ky < 3 and 0 <= kx < 3:
                        W5[ty * 2 + tx, :, (a * 2 + b) * 32:(a * 2 + b + 1) * 32] = \
                            w5[:, :, ky, kx]

    # L6: ConvT(s=2,p=1,op=1), input phase-packed a5, output 4x4 sub-positions of 28x28
    W6 = np.zeros((4, 128, 16), np.float32)
    for ty in range(2):
        for tx in range(2):
            for a in range(2):
                for b in range(2):
                    for ry in range(4):
                        for rx in range(4):
                            ky = ry + 1 - 4 * ty - 2 * a
                            kx = rx + 1 - 4 * tx - 2 * b
                            if 0 <= ky < 3 and 0 <= kx < 3:
                                W6[ty * 2 + tx, (a * 2 + b) * 32:(a * 2 + b + 1) * 32,
                                   ry * 4 + rx] = w6[:, 0, ky, kx]

    return {
        "W1": jnp.asarray(W1, jnp.bfloat16), "b1": jnp.asarray(np.tile(b1, 4)[None, :]),
        "W2": jnp.asarray(W2, jnp.bfloat16), "b2": jnp.asarray(b2[None, :]),
        "W3": jnp.asarray(W3, jnp.bfloat16), "b3": jnp.asarray(b3[None, :]),
        "W4": jnp.asarray(W4, jnp.bfloat16), "b4": jnp.asarray(b4[None, :]),
        "W5": jnp.asarray(W5, jnp.bfloat16), "b5": jnp.asarray(np.tile(b5, 4)[None, :]),
        "W6": jnp.asarray(W6, jnp.bfloat16),
        "b6": jnp.asarray(np.full((1, 16), b6[0], np.float32)),
    }


# --------------------------------------------------------------------------
# Wrapper: layout packing, single pallas_call, layout unpacking.
# --------------------------------------------------------------------------
def _forward_impl(w, x_nchw):
    N = x_nchw.shape[0]
    x = x_nchw.reshape(N, 28, 28)
    # 4x4 space-to-depth: [N,28,28] -> [N,49,16]   (row = v*7+u, chan = ry*4+rx)
    xp = jnp.transpose(x.reshape(N, 7, 4, 7, 4), (0, 1, 3, 2, 4)).reshape(N, 49, 16)

    const3 = lambda s: pl.BlockSpec(s, lambda n: (0, 0, 0))
    const2 = lambda s: pl.BlockSpec(s, lambda n: (0, 0))

    out = pl.pallas_call(
        _fused_kernel,
        out_shape=jax.ShapeDtypeStruct((N, 56, 16), jnp.float32),
        grid=(N,),
        in_specs=[
            pl.BlockSpec((1, 49, 16), lambda n: (n, 0, 0)),   # packed image
            const3((4, 16, 128)), const2((1, 128)),           # L1
            const3((4, 128, 64)), const2((1, 64)),            # L2
            const3((25, 64, 128)), const2((1, 128)),          # L3
            const3((25, 128, 64)), const2((1, 64)),           # L4
            const3((4, 64, 128)), const2((1, 128)),           # L5
            const3((4, 128, 16)), const2((1, 16)),            # L6
        ],
        out_specs=pl.BlockSpec((1, 56, 16), lambda n: (n, 0, 0)),
        scratch_shapes=[
            pltpu.VMEM((72, 16), jnp.float32),    # L1 padded input  (9*8 blocks)
            pltpu.VMEM((72, 128), jnp.float32),   # L2 padded input
            pltpu.VMEM((56, 64), jnp.float32),    # L3 input (8*7)
            pltpu.VMEM((132, 128), jnp.float32),  # L4 padded input (12*11)
            pltpu.VMEM((72, 64), jnp.float32),    # L5 padded input
            pltpu.VMEM((72, 128), jnp.float32),   # L6 padded input
        ],
        compiler_params=pltpu.CompilerParams(dimension_semantics=("parallel",)),
    )(xp, w["W1"], w["b1"], w["W2"], w["b2"], w["W3"], w["b3"],
      w["W4"], w["b4"], w["W5"], w["b5"], w["W6"], w["b6"])

    # drop the "wide" garbage column, un-pack 4x4 blocks back to 28x28
    y = out.reshape(N, 7, 8, 16)[:, :, :7, :]
    y = jnp.transpose(y.reshape(N, 7, 7, 4, 4), (0, 1, 3, 2, 4)).reshape(N, 28, 28)
    return y.reshape(N, 1, 28, 28)


autoencoder_forward = jax.jit(_forward_impl)


# --------------------------------------------------------------------------
# Parameters (deterministic init mirroring nn.Conv2d / nn.ConvTranspose2d)
# --------------------------------------------------------------------------
def init_params(key):
    def uniform(k, shape, fan_in):
        bound = 1.0 / np.sqrt(float(fan_in))
        return jax.random.uniform(k, shape, jnp.float32, -bound, bound)

    keys = jax.random.split(key, 12)
    return {
        "e1_w": uniform(keys[0], (32, 1, 3, 3), 1 * 9),   "e1_b": uniform(keys[1], (32,), 1 * 9),
        "e2_w": uniform(keys[2], (64, 32, 3, 3), 32 * 9), "e2_b": uniform(keys[3], (64,), 32 * 9),
        "e3_w": uniform(keys[4], (128, 64, 5, 5), 64 * 25), "e3_b": uniform(keys[5], (128,), 64 * 25),
        "d1_w": uniform(keys[6], (128, 64, 5, 5), 64 * 25), "d1_b": uniform(keys[7], (64,), 64 * 25),
        "d2_w": uniform(keys[8], (64, 32, 3, 3), 32 * 9),   "d2_b": uniform(keys[9], (32,), 32 * 9),
        "d3_w": uniform(keys[10], (32, 1, 3, 3), 1 * 9),    "d3_b": uniform(keys[11], (1,), 1 * 9),
    }


# --------------------------------------------------------------------------
# Pure-JAX reference (XLA convolutions) for numerical verification.
# --------------------------------------------------------------------------
def reference_forward(params, x):
    dn = ("NCHW", "OIHW", "NCHW")

    def conv(x, w, b, s, p):
        y = jax.lax.conv_general_dilated(x, w, (s, s), [(p, p), (p, p)],
                                         dimension_numbers=dn)
        return y + b.reshape(1, -1, 1, 1)

    def convT(x, w, b, s, p, op):
        k = w.shape[2]
        w_conv = jnp.transpose(jnp.flip(w, (2, 3)), (1, 0, 2, 3))
        y = jax.lax.conv_general_dilated(x, w_conv, (1, 1),
                                         [(k - 1 - p, k - 1 - p + op)] * 2,
                                         lhs_dilation=(s, s), dimension_numbers=dn)
        return y + b.reshape(1, -1, 1, 1)

    x = jax.nn.relu(conv(x, params["e1_w"], params["e1_b"], 2, 1))
    x = jax.nn.relu(conv(x, params["e2_w"], params["e2_b"], 2, 1))
    x = conv(x, params["e3_w"], params["e3_b"], 1, 0)
    x = jax.nn.relu(convT(x, params["d1_w"], params["d1_b"], 1, 0, 0))
    x = jax.nn.relu(convT(x, params["d2_w"], params["d2_b"], 2, 1, 1))
    x = jax.nn.sigmoid(convT(x, params["d3_w"], params["d3_b"], 2, 1, 1))
    return x


if __name__ == "__main__":
    key = jax.random.PRNGKey(0)
    k_param, k_input = jax.random.split(key)
    params = init_params(k_param)
    prep = prepare_weights(params)

    # MNIST-like input: batch=2, 1 channel, 28x28
    x = jax.random.uniform(k_input, (2, 1, 28, 28), jnp.float32)

    y = jax.block_until_ready(autoencoder_forward(prep, x))
    assert y.shape == (2, 1, 28, 28), y.shape
    assert y.dtype == jnp.float32
    assert bool(jnp.all((y >= 0.0) & (y <= 1.0)))

    y_ref = jax.block_until_ready(reference_forward(params, x))
    max_err = float(jnp.max(jnp.abs(y - y_ref)))
    assert max_err < 2e-2, f"mismatch vs reference: max|err|={max_err}"

    print("KERNEL_OK")
</pallas_src>

<mosaic_0001>
module attributes {stable_mosaic.version = 11 : i64} {
  func.func @_fused_kernel(%arg0: i32, %arg1: memref<1x49x16xf32, #tpu.memory_space<vmem>>, %arg2: memref<4x16x128xbf16, #tpu.memory_space<vmem>>, %arg3: memref<1x128xf32, #tpu.memory_space<vmem>>, %arg4: memref<4x128x64xbf16, #tpu.memory_space<vmem>>, %arg5: memref<1x64xf32, #tpu.memory_space<vmem>>, %arg6: memref<25x64x128xbf16, #tpu.memory_space<vmem>>, %arg7: memref<1x128xf32, #tpu.memory_space<vmem>>, %arg8: memref<25x128x64xbf16, #tpu.memory_space<vmem>>, %arg9: memref<1x64xf32, #tpu.memory_space<vmem>>, %arg10: memref<4x64x128xbf16, #tpu.memory_space<vmem>>, %arg11: memref<1x128xf32, #tpu.memory_space<vmem>>, %arg12: memref<4x128x16xbf16, #tpu.memory_space<vmem>>, %arg13: memref<1x16xf32, #tpu.memory_space<vmem>>, %arg14: memref<1x56x16xf32, #tpu.memory_space<vmem>>, %arg15: memref<72x16xf32, #tpu.memory_space<vmem>>, %arg16: memref<72x128xf32, #tpu.memory_space<vmem>>, %arg17: memref<56x64xf32, #tpu.memory_space<vmem>>, %arg18: memref<132x128xf32, #tpu.memory_space<vmem>>, %arg19: memref<72x64xf32, #tpu.memory_space<vmem>>, %arg20: memref<72x128xf32, #tpu.memory_space<vmem>>) attributes {dimension_semantics = [#tpu.dimension_semantics<parallel>], iteration_bounds = array<i64: 2>, scalar_prefetch = 0 : i64, scratch_operands = 6 : i64, tpu.core_type = #tpu.core_type<tc>, window_params = [{transform_indices = @transform_0, window_bounds = array<i64: 1, 49, 16>}, {pipeline_mode = #tpu.pipeline_mode<synchronous>, transform_indices = @transform_1, window_bounds = array<i64: 4, 16, 128>}, {pipeline_mode = #tpu.pipeline_mode<synchronous>, transform_indices = @transform_2, window_bounds = array<i64: 1, 128>}, {pipeline_mode = #tpu.pipeline_mode<synchronous>, transform_indices = @transform_3, window_bounds = array<i64: 4, 128, 64>}, {pipeline_mode = #tpu.pipeline_mode<synchronous>, transform_indices = @transform_4, window_bounds = array<i64: 1, 64>}, {pipeline_mode = #tpu.pipeline_mode<synchronous>, transform_indices = @transform_5, window_bounds = array<i64: 25, 64, 128>}, {pipeline_mode = #tpu.pipeline_mode<synchronous>, transform_indices = @transform_6, window_bounds = array<i64: 1, 128>}, {pipeline_mode = #tpu.pipeline_mode<synchronous>, transform_indices = @transform_7, window_bounds = array<i64: 25, 128, 64>}, {pipeline_mode = #tpu.pipeline_mode<synchronous>, transform_indices = @transform_8, window_bounds = array<i64: 1, 64>}, {pipeline_mode = #tpu.pipeline_mode<synchronous>, transform_indices = @transform_9, window_bounds = array<i64: 4, 64, 128>}, {pipeline_mode = #tpu.pipeline_mode<synchronous>, transform_indices = @transform_10, window_bounds = array<i64: 1, 128>}, {pipeline_mode = #tpu.pipeline_mode<synchronous>, transform_indices = @transform_11, window_bounds = array<i64: 4, 128, 16>}, {pipeline_mode = #tpu.pipeline_mode<synchronous>, transform_indices = @transform_12, window_bounds = array<i64: 1, 16>}, {transform_indices = @transform_13, window_bounds = array<i64: 1, 56, 16>}]} {
    %cst = arith.constant 0.000000e+00 : f32
    %0 = vector.broadcast %cst : f32 to vector<72x16xf32>
    %c0 = arith.constant 0 : index
    %c0_0 = arith.constant 0 : index
    %1 = vector.load %arg15[%c0, %c0_0] : memref<72x16xf32, #tpu.memory_space<vmem>>, vector<72x16xf32>
    tpu.vector_store %arg15[%c0, %c0_0], %0 {strides = array<i32>} : memref<72x16xf32, #tpu.memory_space<vmem>>, vector<72x16xf32>,
    %cst_1 = arith.constant 0.000000e+00 : f32
    %2 = vector.broadcast %cst_1 : f32 to vector<72x128xf32>
    %c0_2 = arith.constant 0 : index
    %c0_3 = arith.constant 0 : index
    %3 = vector.load %arg16[%c0_2, %c0_3] : memref<72x128xf32, #tpu.memory_space<vmem>>, vector<72x128xf32>
    tpu.vector_store %arg16[%c0_2, %c0_3], %2 {strides = array<i32>} : memref<72x128xf32, #tpu.memory_space<vmem>>, vector<72x128xf32>,
    %cst_4 = arith.constant 0.000000e+00 : f32
    %4 = vector.broadcast %cst_4 : f32 to vector<56x64xf32>
    %c0_5 = arith.constant 0 : index
    %c0_6 = arith.constant 0 : index
    %5 = vector.load %arg17[%c0_5, %c0_6] : memref<56x64xf32, #tpu.memory_space<vmem>>, vector<56x64xf32>
    tpu.vector_store %arg17[%c0_5, %c0_6], %4 {strides = array<i32>} : memref<56x64xf32, #tpu.memory_space<vmem>>, vector<56x64xf32>,
    %cst_7 = arith.constant 0.000000e+00 : f32
    %6 = vector.broadcast %cst_7 : f32 to vector<132x128xf32>
    %c0_8 = arith.constant 0 : index
    %c0_9 = arith.constant 0 : index
    %7 = vector.load %arg18[%c0_8, %c0_9] : memref<132x128xf32, #tpu.memory_space<vmem>>, vector<132x128xf32>
    tpu.vector_store %arg18[%c0_8, %c0_9], %6 {strides = array<i32>} : memref<132x128xf32, #tpu.memory_space<vmem>>, vector<132x128xf32>,
    %cst_10 = arith.constant 0.000000e+00 : f32
    %8 = vector.broadcast %cst_10 : f32 to vector<72x64xf32>
    %c0_11 = arith.constant 0 : index
    %c0_12 = arith.constant 0 : index
    %9 = vector.load %arg19[%c0_11, %c0_12] : memref<72x64xf32, #tpu.memory_space<vmem>>, vector<72x64xf32>
    tpu.vector_store %arg19[%c0_11, %c0_12], %8 {strides = array<i32>} : memref<72x64xf32, #tpu.memory_space<vmem>>, vector<72x64xf32>,
    %cst_13 = arith.constant 0.000000e+00 : f32
    %10 = vector.broadcast %cst_13 : f32 to vector<72x128xf32>
    %c0_14 = arith.constant 0 : index
    %c0_15 = arith.constant 0 : index
    %11 = vector.load %arg20[%c0_14, %c0_15] : memref<72x128xf32, #tpu.memory_space<vmem>>, vector<72x128xf32>
    tpu.vector_store %arg20[%c0_14, %c0_15], %10 {strides = array<i32>} : memref<72x128xf32, #tpu.memory_space<vmem>>, vector<72x128xf32>,
    %c0_16 = arith.constant 0 : index
    %c0_17 = arith.constant 0 : index
    %c0_18 = arith.constant 0 : index
    %12 = vector.load %arg1[%c0_16, %c0_17, %c0_18] : memref<1x49x16xf32, #tpu.memory_space<vmem>>, vector<1x49x16xf32>
    %13 = vector.shape_cast %12 : vector<1x49x16xf32> to vector<49x16xf32>
    %14 = vector.extract_strided_slice %13 {offsets = [0, 0], sizes = [7, 16], strides = [1, 1]} : vector<49x16xf32> to vector<7x16xf32>
    %c9 = arith.constant 9 : index
    %c0_19 = arith.constant 0 : index
    %15 = vector.load %arg15[%c9, %c0_19] : memref<72x16xf32, #tpu.memory_space<vmem>>, vector<7x16xf32>
    tpu.vector_store %arg15[%c9, %c0_19], %14 {strides = array<i32>} : memref<72x16xf32, #tpu.memory_space<vmem>>, vector<7x16xf32>,
    %16 = vector.extract_strided_slice %13 {offsets = [7, 0], sizes = [7, 16], strides = [1, 1]} : vector<49x16xf32> to vector<7x16xf32>
    %c17 = arith.constant 17 : index
    %c0_20 = arith.constant 0 : index
    %17 = vector.load %arg15[%c17, %c0_20] : memref<72x16xf32, #tpu.memory_space<vmem>>, vector<7x16xf32>
    tpu.vector_store %arg15[%c17, %c0_20], %16 {strides = array<i32>} : memref<72x16xf32, #tpu.memory_space<vmem>>, vector<7x16xf32>,
    %18 = vector.extract_strided_slice %13 {offsets = [14, 0], sizes = [7, 16], strides = [1, 1]} : vector<49x16xf32> to vector<7x16xf32>
    %c25 = arith.constant 25 : index
    %c0_21 = arith.constant 0 : index
    %19 = vector.load %arg15[%c25, %c0_21] : memref<72x16xf32, #tpu.memory_space<vmem>>, vector<7x16xf32>
    tpu.vector_store %arg15[%c25, %c0_21], %18 {strides = array<i32>} : memref<72x16xf32, #tpu.memory_space<vmem>>, vector<7x16xf32>,
    %20 = vector.extract_strided_slice %13 {offsets = [21, 0], sizes = [7, 16], strides = [1, 1]} : vector<49x16xf32> to vector<7x16xf32>
    %c33 = arith.constant 33 : index
    %c0_22 = arith.constant 0 : index
    %21 = vector.load %arg15[%c33, %c0_22] : memref<72x16xf32, #tpu.memory_space<vmem>>, vector<7x16xf32>
    tpu.vector_store %arg15[%c33, %c0_22], %20 {strides = array<i32>} : memref<72x16xf32, #tpu.memory_space<vmem>>, vector<7x16xf32>,
    %22 = vector.extract_strided_slice %13 {offsets = [28, 0], sizes = [7, 16], strides = [1, 1]} : vector<49x16xf32> to vector<7x16xf32>
    %c41 = arith.constant 41 : index
    %c0_23 = arith.constant 0 : index
    %23 = vector.load %arg15[%c41, %c0_23] : memref<72x16xf32, #tpu.memory_space<vmem>>, vector<7x16xf32>
    tpu.vector_store %arg15[%c41, %c0_23], %22 {strides = array<i32>} : memref<72x16xf32, #tpu.memory_space<vmem>>, vector<7x16xf32>,
    %24 = vector.extract_strided_slice %13 {offsets = [35, 0], sizes = [7, 16], strides = [1, 1]} : vector<49x16xf32> to vector<7x16xf32>
    %c49 = arith.constant 49 : index
    %c0_24 = arith.constant 0 : index
    %25 = vector.load %arg15[%c49, %c0_24] : memref<72x16xf32, #tpu.memory_space<vmem>>, vector<7x16xf32>
    tpu.vector_store %arg15[%c49, %c0_24], %24 {strides = array<i32>} : memref<72x16xf32, #tpu.memory_space<vmem>>, vector<7x16xf32>,
    %26 = vector.extract_strided_slice %13 {offsets = [42, 0], sizes = [7, 16], strides = [1, 1]} : vector<49x16xf32> to vector<7x16xf32>
    %c57 = arith.constant 57 : index
    %c0_25 = arith.constant 0 : index
    %27 = vector.load %arg15[%c57, %c0_25] : memref<72x16xf32, #tpu.memory_space<vmem>>, vector<7x16xf32>
    tpu.vector_store %arg15[%c57, %c0_25], %26 {strides = array<i32>} : memref<72x16xf32, #tpu.memory_space<vmem>>, vector<7x16xf32>,
    %c0_26 = arith.constant 0 : index
    %c0_27 = arith.constant 0 : index
    %28 = vector.load %arg15[%c0_26, %c0_27] : memref<72x16xf32, #tpu.memory_space<vmem>>, vector<56x16xf32>
    %29 = arith.truncf %28 : vector<56x16xf32> to vector<56x16xbf16>
    %c0_28 = arith.constant 0 : index
    %c0_29 = arith.constant 0 : index
    %c0_30 = arith.constant 0 : index
    %30 = vector.load %arg2[%c0_28, %c0_29, %c0_30] : memref<4x16x128xbf16, #tpu.memory_space<vmem>>, vector<1x16x128xbf16>
    %31 = vector.shape_cast %30 : vector<1x16x128xbf16> to vector<16x128xbf16>
    %cst_31 = arith.constant dense<0.000000e+00> : vector<56x128xf32>
    %32 = tpu.matmul %29, %31, %cst_31 {dimension_numbers = #tpu.dot_dimension_numbers<[1], [0], [0], [1], [0, 0, 1, 1], [], []>} : vector<56x16xbf16>, vector<16x128xbf16>, vector<56x128xf32> -> vector<56x128xf32>
    %c1 = arith.constant 1 : index
    %c0_32 = arith.constant 0 : index
    %33 = vector.load %arg15[%c1, %c0_32] : memref<72x16xf32, #tpu.memory_space<vmem>>, vector<56x16xf32>
    %34 = arith.truncf %33 : vector<56x16xf32> to vector<56x16xbf16>
    %c1_33 = arith.constant 1 : index
    %c0_34 = arith.constant 0 : index
    %c0_35 = arith.constant 0 : index
    %35 = vector.load %arg2[%c1_33, %c0_34, %c0_35] : memref<4x16x128xbf16, #tpu.memory_space<vmem>>, vector<1x16x128xbf16>
    %36 = vector.shape_cast %35 : vector<1x16x128xbf16> to vector<16x128xbf16>
    %cst_36 = arith.constant dense<0.000000e+00> : vector<56x128xf32>
    %37 = tpu.matmul %34, %36, %cst_36 {dimension_numbers = #tpu.dot_dimension_numbers<[1], [0], [0], [1], [0, 0, 1, 1], [], []>} : vector<56x16xbf16>, vector<16x128xbf16>, vector<56x128xf32> -> vector<56x128xf32>
    %38 = arith.addf %32, %37 : vector<56x128xf32>
    %c8 = arith.constant 8 : index
    %c0_37 = arith.constant 0 : index
    %39 = vector.load %arg15[%c8, %c0_37] : memref<72x16xf32, #tpu.memory_space<vmem>>, vector<56x16xf32>
    %40 = arith.truncf %39 : vector<56x16xf32> to vector<56x16xbf16>
    %c2 = arith.constant 2 : index
    %c0_38 = arith.constant 0 : index
    %c0_39 = arith.constant 0 : index
    %41 = vector.load %arg2[%c2, %c0_38, %c0_39] : memref<4x16x128xbf16, #tpu.memory_space<vmem>>, vector<1x16x128xbf16>
    %42 = vector.shape_cast %41 : vector<1x16x128xbf16> to vector<16x128xbf16>
    %cst_40 = arith.constant dense<0.000000e+00> : vector<56x128xf32>
    %43 = tpu.matmul %40, %42, %cst_40 {dimension_numbers = #tpu.dot_dimension_numbers<[1], [0], [0], [1], [0, 0, 1, 1], [], []>} : vector<56x16xbf16>, vector<16x128xbf16>, vector<56x128xf32> -> vector<56x128xf32>
    %44 = arith.addf %38, %43 : vector<56x128xf32>
    %c9_41 = arith.constant 9 : index
    %c0_42 = arith.constant 0 : index
    %45 = vector.load %arg15[%c9_41, %c0_42] : memref<72x16xf32, #tpu.memory_space<vmem>>, vector<56x16xf32>
    %46 = arith.truncf %45 : vector<56x16xf32> to vector<56x16xbf16>
    %c3 = arith.constant 3 : index
    %c0_43 = arith.constant 0 : index
    %c0_44 = arith.constant 0 : index
    %47 = vector.load %arg2[%c3, %c0_43, %c0_44] : memref<4x16x128xbf16, #tpu.memory_space<vmem>>, vector<1x16x128xbf16>
    %48 = vector.shape_cast %47 : vector<1x16x128xbf16> to vector<16x128xbf16>
    %cst_45 = arith.constant dense<0.000000e+00> : vector<56x128xf32>
    %49 = tpu.matmul %46, %48, %cst_45 {dimension_numbers = #tpu.dot_dimension_numbers<[1], [0], [0], [1], [0, 0, 1, 1], [], []>} : vector<56x16xbf16>, vector<16x128xbf16>, vector<56x128xf32> -> vector<56x128xf32>
    %50 = arith.addf %44, %49 : vector<56x128xf32>
    %c0_46 = arith.constant 0 : index
    %c0_47 = arith.constant 0 : index
    %51 = vector.load %arg3[%c0_46, %c0_47] : memref<1x128xf32, #tpu.memory_space<vmem>>, vector<1x128xf32>
    %52 = vector.broadcast %51 : vector<1x128xf32> to vector<56x128xf32>
    %53 = arith.addf %50, %52 : vector<56x128xf32>
    %cst_48 = arith.constant 0.000000e+00 : f32
    %54 = vector.broadcast %cst_48 : f32 to vector<56x128xf32>
    %55 = arith.maximumf %53, %54 : vector<56x128xf32>
    %56 = vector.extract_strided_slice %55 {offsets = [0, 0], sizes = [7, 128], strides = [1, 1]} : vector<56x128xf32> to vector<7x128xf32>
    %c9_49 = arith.constant 9 : index
    %c0_50 = arith.constant 0 : index
    %57 = vector.load %arg16[%c9_49, %c0_50] : memref<72x128xf32, #tpu.memory_space<vmem>>, vector<7x128xf32>
    tpu.vector_store %arg16[%c9_49, %c0_50], %56 {strides = array<i32>} : memref<72x128xf32, #tpu.memory_space<vmem>>, vector<7x128xf32>,
    %58 = vector.extract_strided_slice %55 {offsets = [8, 0], sizes = [7, 128], strides = [1, 1]} : vector<56x128xf32> to vector<7x128xf32>
    %c17_51 = arith.constant 17 : index
    %c0_52 = arith.constant 0 : index
    %59 = vector.load %arg16[%c17_51, %c0_52] : memref<72x128xf32, #tpu.memory_space<vmem>>, vector<7x128xf32>
    tpu.vector_store %arg16[%c17_51, %c0_52], %58 {strides = array<i32>} : memref<72x128xf32, #tpu.memory_space<vmem>>, vector<7x128xf32>,
    %60 = vector.extract_strided_slice %55 {offsets = [16, 0], sizes = [7, 128], strides = [1, 1]} : vector<56x128xf32> to vector<7x128xf32>
    %c25_53 = arith.constant 25 : index
    %c0_54 = arith.constant 0 : index
    %61 = vector.load %arg16[%c25_53, %c0_54] : memref<72x128xf32, #tpu.memory_space<vmem>>, vector<7x128xf32>
    tpu.vector_store %arg16[%c25_53, %c0_54], %60 {strides = array<i32>} : memref<72x128xf32, #tpu.memory_space<vmem>>, vector<7x128xf32>,
    %62 = vector.extract_strided_slice %55 {offsets = [24, 0], sizes = [7, 128], strides = [1, 1]} : vector<56x128xf32> to vector<7x128xf32>
    %c33_55 = arith.constant 33 : index
    %c0_56 = arith.constant 0 : index
    %63 = vector.load %arg16[%c33_55, %c0_56] : memref<72x128xf32, #tpu.memory_space<vmem>>, vector<7x128xf32>
    tpu.vector_store %arg16[%c33_55, %c0_56], %62 {strides = array<i32>} : memref<72x128xf32, #tpu.memory_space<vmem>>, vector<7x128xf32>,
    %64 = vector.extract_strided_slice %55 {offsets = [32, 0], sizes = [7, 128], strides = [1, 1]} : vector<56x128xf32> to vector<7x128xf32>
    %c41_57 = arith.constant 41 : index
    %c0_58 = arith.constant 0 : index
    %65 = vector.load %arg16[%c41_57, %c0_58] : memref<72x128xf32, #tpu.memory_space<vmem>>, vector<7x128xf32>
    tpu.vector_store %arg16[%c41_57, %c0_58], %64 {strides = array<i32>} : memref<72x128xf32, #tpu.memory_space<vmem>>, vector<7x128xf32>,
    %66 = vector.extract_strided_slice %55 {offsets = [40, 0], sizes = [7, 128], strides = [1, 1]} : vector<56x128xf32> to vector<7x128xf32>
    %c49_59 = arith.constant 49 : index
    %c0_60 = arith.constant 0 : index
    %67 = vector.load %arg16[%c49_59, %c0_60] : memref<72x128xf32, #tpu.memory_space<vmem>>, vector<7x128xf32>
    tpu.vector_store %arg16[%c49_59, %c0_60], %66 {strides = array<i32>} : memref<72x128xf32, #tpu.memory_space<vmem>>, vector<7x128xf32>,
    %68 = vector.extract_strided_slice %55 {offsets = [48, 0], sizes = [7, 128], strides = [1, 1]} : vector<56x128xf32> to vector<7x128xf32>
    %c57_61 = arith.constant 57 : index
    %c0_62 = arith.constant 0 : index
    %69 = vector.load %arg16[%c57_61, %c0_62] : memref<72x128xf32, #tpu.memory_space<vmem>>, vector<7x128xf32>
    tpu.vector_store %arg16[%c57_61, %c0_62], %68 {strides = array<i32>} : memref<72x128xf32, #tpu.memory_space<vmem>>, vector<7x128xf32>,
    %c0_63 = arith.constant 0 : index
    %c0_64 = arith.constant 0 : index
    %70 = vector.load %arg16[%c0_63, %c0_64] : memref<72x128xf32, #tpu.memory_space<vmem>>, vector<56x128xf32>
    %71 = arith.truncf %70 : vector<56x128xf32> to vector<56x128xbf16>
    %c0_65 = arith.constant 0 : index
    %c0_66 = arith.constant 0 : index
    %c0_67 = arith.constant 0 : index
    %72 = vector.load %arg4[%c0_65, %c0_66, %c0_67] : memref<4x128x64xbf16, #tpu.memory_space<vmem>>, vector<1x128x64xbf16>
    %73 = vector.shape_cast %72 : vector<1x128x64xbf16> to vector<128x64xbf16>
    %cst_68 = arith.constant dense<0.000000e+00> : vector<56x64xf32>
    %74 = tpu.matmul %71, %73, %cst_68 {dimension_numbers = #tpu.dot_dimension_numbers<[1], [0], [0], [1], [0, 0, 1, 1], [], []>} : vector<56x128xbf16>, vector<128x64xbf16>, vector<56x64xf32> -> vector<56x64xf32>
    %c1_69 = arith.constant 1 : index
    %c0_70 = arith.constant 0 : index
    %75 = vector.load %arg16[%c1_69, %c0_70] : memref<72x128xf32, #tpu.memory_space<vmem>>, vector<56x128xf32>
    %76 = arith.truncf %75 : vector<56x128xf32> to vector<56x128xbf16>
    %c1_71 = arith.constant 1 : index
    %c0_72 = arith.constant 0 : index
    %c0_73 = arith.constant 0 : index
    %77 = vector.load %arg4[%c1_71, %c0_72, %c0_73] : memref<4x128x64xbf16, #tpu.memory_space<vmem>>, vector<1x128x64xbf16>
    %78 = vector.shape_cast %77 : vector<1x128x64xbf16> to vector<128x64xbf16>
    %cst_74 = arith.constant dense<0.000000e+00> : vector<56x64xf32>
    %79 = tpu.matmul %76, %78, %cst_74 {dimension_numbers = #tpu.dot_dimension_numbers<[1], [0], [0], [1], [0, 0, 1, 1], [], []>} : vector<56x128xbf16>, vector<128x64xbf16>, vector<56x64xf32> -> vector<56x64xf32>
    %80 = arith.addf %74, %79 : vector<56x64xf32>
    %c8_75 = arith.constant 8 : index
    %c0_76 = arith.constant 0 : index
    %81 = vector.load %arg16[%c8_75, %c0_76] : memref<72x128xf32, #tpu.memory_space<vmem>>, vector<56x128xf32>
    %82 = arith.truncf %81 : vector<56x128xf32> to vector<56x128xbf16>
    %c2_77 = arith.constant 2 : index
    %c0_78 = arith.constant 0 : index
    %c0_79 = arith.constant 0 : index
    %83 = vector.load %arg4[%c2_77, %c0_78, %c0_79] : memref<4x128x64xbf16, #tpu.memory_space<vmem>>, vector<1x128x64xbf16>
    %84 = vector.shape_cast %83 : vector<1x128x64xbf16> to vector<128x64xbf16>
    %cst_80 = arith.constant dense<0.000000e+00> : vector<56x64xf32>
    %85 = tpu.matmul %82, %84, %cst_80 {dimension_numbers = #tpu.dot_dimension_numbers<[1], [0], [0], [1], [0, 0, 1, 1], [], []>} : vector<56x128xbf16>, vector<128x64xbf16>, vector<56x64xf32> -> vector<56x64xf32>
    %86 = arith.addf %80, %85 : vector<56x64xf32>
    %c9_81 = arith.constant 9 : index
    %c0_82 = arith.constant 0 : index
    %87 = vector.load %arg16[%c9_81, %c0_82] : memref<72x128xf32, #tpu.memory_space<vmem>>, vector<56x128xf32>
    %88 = arith.truncf %87 : vector<56x128xf32> to vector<56x128xbf16>
    %c3_83 = arith.constant 3 : index
    %c0_84 = arith.constant 0 : index
    %c0_85 = arith.constant 0 : index
    %89 = vector.load %arg4[%c3_83, %c0_84, %c0_85] : memref<4x128x64xbf16, #tpu.memory_space<vmem>>, vector<1x128x64xbf16>
    %90 = vector.shape_cast %89 : vector<1x128x64xbf16> to vector<128x64xbf16>
    %cst_86 = arith.constant dense<0.000000e+00> : vector<56x64xf32>
    %91 = tpu.matmul %88, %90, %cst_86 {dimension_numbers = #tpu.dot_dimension_numbers<[1], [0], [0], [1], [0, 0, 1, 1], [], []>} : vector<56x128xbf16>, vector<128x64xbf16>, vector<56x64xf32> -> vector<56x64xf32>
    %92 = arith.addf %86, %91 : vector<56x64xf32>
    %c0_87 = arith.constant 0 : index
    %c0_88 = arith.constant 0 : index
    %93 = vector.load %arg5[%c0_87, %c0_88] : memref<1x64xf32, #tpu.memory_space<vmem>>, vector<1x64xf32>
    %94 = vector.broadcast %93 : vector<1x64xf32> to vector<56x64xf32>
    %95 = arith.addf %92, %94 : vector<56x64xf32>
    %cst_89 = arith.constant 0.000000e+00 : f32
    %96 = vector.broadcast %cst_89 : f32 to vector<56x64xf32>
    %97 = arith.maximumf %95, %96 : vector<56x64xf32>
    %98 = vector.extract_strided_slice %97 {offsets = [0, 0], sizes = [7, 64], strides = [1, 1]} : vector<56x64xf32> to vector<7x64xf32>
    %c0_90 = arith.constant 0 : index
    %c0_91 = arith.constant 0 : index
    %99 = vector.load %arg17[%c0_90, %c0_91] : memref<56x64xf32, #tpu.memory_space<vmem>>, vector<7x64xf32>
    tpu.vector_store %arg17[%c0_90, %c0_91], %98 {strides = array<i32>} : memref<56x64xf32, #tpu.memory_space<vmem>>, vector<7x64xf32>,
    %100 = vector.extract_strided_slice %97 {offsets = [8, 0], sizes = [7, 64], strides = [1, 1]} : vector<56x64xf32> to vector<7x64xf32>
    %c7 = arith.constant 7 : index
    %c0_92 = arith.constant 0 : index
    %101 = vector.load %arg17[%c7, %c0_92] : memref<56x64xf32, #tpu.memory_space<vmem>>, vector<7x64xf32>
    tpu.vector_store %arg17[%c7, %c0_92], %100 {strides = array<i32>} : memref<56x64xf32, #tpu.memory_space<vmem>>, vector<7x64xf32>,
    %102 = vector.extract_strided_slice %97 {offsets = [16, 0], sizes = [7, 64], strides = [1, 1]} : vector<56x64xf32> to vector<7x64xf32>
    %c14 = arith.constant 14 : index
    %c0_93 = arith.constant 0 : index
    %103 = vector.load %arg17[%c14, %c0_93] : memref<56x64xf32, #tpu.memory_space<vmem>>, vector<7x64xf32>
    tpu.vector_store %arg17[%c14, %c0_93], %102 {strides = array<i32>} : memref<56x64xf32, #tpu.memory_space<vmem>>, vector<7x64xf32>,
    %104 = vector.extract_strided_slice %97 {offsets = [24, 0], sizes = [7, 64], strides = [1, 1]} : vector<56x64xf32> to vector<7x64xf32>
    %c21 = arith.constant 21 : index
    %c0_94 = arith.constant 0 : index
    %105 = vector.load %arg17[%c21, %c0_94] : memref<56x64xf32, #tpu.memory_space<vmem>>, vector<7x64xf32>
    tpu.vector_store %arg17[%c21, %c0_94], %104 {strides = array<i32>} : memref<56x64xf32, #tpu.memory_space<vmem>>, vector<7x64xf32>,
    %106 = vector.extract_strided_slice %97 {offsets = [32, 0], sizes = [7, 64], strides = [1, 1]} : vector<56x64xf32> to vector<7x64xf32>
    %c28 = arith.constant 28 : index
    %c0_95 = arith.constant 0 : index
    %107 = vector.load %arg17[%c28, %c0_95] : memref<56x64xf32, #tpu.memory_space<vmem>>, vector<7x64xf32>
    tpu.vector_store %arg17[%c28, %c0_95], %106 {strides = array<i32>} : memref<56x64xf32, #tpu.memory_space<vmem>>, vector<7x64xf32>,
    %108 = vector.extract_strided_slice %97 {offsets = [40, 0], sizes = [7, 64], strides = [1, 1]} : vector<56x64xf32> to vector<7x64xf32>
    %c35 = arith.constant 35 : index
    %c0_96 = arith.constant 0 : index
    %109 = vector.load %arg17[%c35, %c0_96] : memref<56x64xf32, #tpu.memory_space<vmem>>, vector<7x64xf32>
    tpu.vector_store %arg17[%c35, %c0_96], %108 {strides = array<i32>} : memref<56x64xf32, #tpu.memory_space<vmem>>, vector<7x64xf32>,
    %110 = vector.extract_strided_slice %97 {offsets = [48, 0], sizes = [7, 64], strides = [1, 1]} : vector<56x64xf32> to vector<7x64xf32>
    %c42 = arith.constant 42 : index
    %c0_97 = arith.constant 0 : index
    %111 = vector.load %arg17[%c42, %c0_97] : memref<56x64xf32, #tpu.memory_space<vmem>>, vector<7x64xf32>
    tpu.vector_store %arg17[%c42, %c0_97], %110 {strides = array<i32>} : memref<56x64xf32, #tpu.memory_space<vmem>>, vector<7x64xf32>,
    %c0_98 = arith.constant 0 : index
    %c0_99 = arith.constant 0 : index
    %112 = vector.load %arg17[%c0_98, %c0_99] : memref<56x64xf32, #tpu.memory_space<vmem>>, vector<21x64xf32>
    %113 = arith.truncf %112 : vector<21x64xf32> to vector<21x64xbf16>
    %c0_100 = arith.constant 0 : index
    %c0_101 = arith.constant 0 : index
    %c0_102 = arith.constant 0 : index
    %114 = vector.load %arg6[%c0_100, %c0_101, %c0_102] : memref<25x64x128xbf16, #tpu.memory_space<vmem>>, vector<1x64x128xbf16>
    %115 = vector.shape_cast %114 : vector<1x64x128xbf16> to vector<64x128xbf16>
    %cst_103 = arith.constant dense<0.000000e+00> : vector<21x128xf32>
    %116 = tpu.matmul %113, %115, %cst_103 {dimension_numbers = #tpu.dot_dimension_numbers<[1], [0], [0], [1], [0, 0, 1, 1], [], []>} : vector<21x64xbf16>, vector<64x128xbf16>, vector<21x128xf32> -> vector<21x128xf32>
    %c1_104 = arith.constant 1 : index
    %c0_105 = arith.constant 0 : index
    %117 = vector.load %arg17[%c1_104, %c0_105] : memref<56x64xf32, #tpu.memory_space<vmem>>, vector<21x64xf32>
    %118 = arith.truncf %117 : vector<21x64xf32> to vector<21x64xbf16>
    %c1_106 = arith.constant 1 : index
    %c0_107 = arith.constant 0 : index
    %c0_108 = arith.constant 0 : index
    %119 = vector.load %arg6[%c1_106, %c0_107, %c0_108] : memref<25x64x128xbf16, #tpu.memory_space<vmem>>, vector<1x64x128xbf16>
    %120 = vector.shape_cast %119 : vector<1x64x128xbf16> to vector<64x128xbf16>
    %cst_109 = arith.constant dense<0.000000e+00> : vector<21x128xf32>
    %121 = tpu.matmul %118, %120, %cst_109 {dimension_numbers = #tpu.dot_dimension_numbers<[1], [0], [0], [1], [0, 0, 1, 1], [], []>} : vector<21x64xbf16>, vector<64x128xbf16>, vector<21x128xf32> -> vector<21x128xf32>
    %122 = arith.addf %116, %121 : vector<21x128xf32>
    %c2_110 = arith.constant 2 : index
    %c0_111 = arith.constant 0 : index
    %123 = vector.load %arg17[%c2_110, %c0_111] : memref<56x64xf32, #tpu.memory_space<vmem>>, vector<21x64xf32>
    %124 = arith.truncf %123 : vector<21x64xf32> to vector<21x64xbf16>
    %c2_112 = arith.constant 2 : index
    %c0_113 = arith.constant 0 : index
    %c0_114 = arith.constant 0 : index
    %125 = vector.load %arg6[%c2_112, %c0_113, %c0_114] : memref<25x64x128xbf16, #tpu.memory_space<vmem>>, vector<1x64x128xbf16>
    %126 = vector.shape_cast %125 : vector<1x64x128xbf16> to vector<64x128xbf16>
    %cst_115 = arith.constant dense<0.000000e+00> : vector<21x128xf32>
    %127 = tpu.matmul %124, %126, %cst_115 {dimension_numbers = #tpu.dot_dimension_numbers<[1], [0], [0], [1], [0, 0, 1, 1], [], []>} : vector<21x64xbf16>, vector<64x128xbf16>, vector<21x128xf32> -> vector<21x128xf32>
    %128 = arith.addf %122, %127 : vector<21x128xf32>
    %c3_116 = arith.constant 3 : index
    %c0_117 = arith.constant 0 : index
    %129 = vector.load %arg17[%c3_116, %c0_117] : memref<56x64xf32, #tpu.memory_space<vmem>>, vector<21x64xf32>
    %130 = arith.truncf %129 : vector<21x64xf32> to vector<21x64xbf16>
    %c3_118 = arith.constant 3 : index
    %c0_119 = arith.constant 0 : index
    %c0_120 = arith.constant 0 : index
    %131 = vector.load %arg6[%c3_118, %c0_119, %c0_120] : memref<25x64x128xbf16, #tpu.memory_space<vmem>>, vector<1x64x128xbf16>
    %132 = vector.shape_cast %131 : vector<1x64x128xbf16> to vector<64x128xbf16>
    %cst_121 = arith.constant dense<0.000000e+00> : vector<21x128xf32>
    %133 = tpu.matmul %130, %132, %cst_121 {dimension_numbers = #tpu.dot_dimension_numbers<[1], [0], [0], [1], [0, 0, 1, 1], [], []>} : vector<21x64xbf16>, vector<64x128xbf16>, vector<21x128xf32> -> vector<21x128xf32>
    %134 = arith.addf %128, %133 : vector<21x128xf32>
    %c4 = arith.constant 4 : index
    %c0_122 = arith.constant 0 : index
    %135 = vector.load %arg17[%c4, %c0_122] : memref<56x64xf32, #tpu.memory_space<vmem>>, vector<21x64xf32>
    %136 = arith.truncf %135 : vector<21x64xf32> to vector<21x64xbf16>
    %c4_123 = arith.constant 4 : index
    %c0_124 = arith.constant 0 : index
    %c0_125 = arith.constant 0 : index
    %137 = vector.load %arg6[%c4_123, %c0_124, %c0_125] : memref<25x64x128xbf16, #tpu.memory_space<vmem>>, vector<1x64x128xbf16>
    %138 = vector.shape_cast %137 : vector<1x64x128xbf16> to vector<64x128xbf16>
    %cst_126 = arith.constant dense<0.000000e+00> : vector<21x128xf32>
    %139 = tpu.matmul %136, %138, %cst_126 {dimension_numbers = #tpu.dot_dimension_numbers<[1], [0], [0], [1], [0, 0, 1, 1], [], []>} : vector<21x64xbf16>, vector<64x128xbf16>, vector<21x128xf32> -> vector<21x128xf32>
    %140 = arith.addf %134, %139 : vector<21x128xf32>
    %c7_127 = arith.constant 7 : index
    %c0_128 = arith.constant 0 : index
    %141 = vector.load %arg17[%c7_127, %c0_128] : memref<56x64xf32, #tpu.memory_space<vmem>>, vector<21x64xf32>
    %142 = arith.truncf %141 : vector<21x64xf32> to vector<21x64xbf16>
    %c5 = arith.constant 5 : index
    %c0_129 = arith.constant 0 : index
    %c0_130 = arith.constant 0 : index
    %143 = vector.load %arg6[%c5, %c0_129, %c0_130] : memref<25x64x128xbf16, #tpu.memory_space<vmem>>, vector<1x64x128xbf16>
    %144 = vector.shape_cast %143 : vector<1x64x128xbf16> to vector<64x128xbf16>
    %cst_131 = arith.constant dense<0.000000e+00> : vector<21x128xf32>
    %145 = tpu.matmul %142, %144, %cst_131 {dimension_numbers = #tpu.dot_dimension_numbers<[1], [0], [0], [1], [0, 0, 1, 1], [], []>} : vector<21x64xbf16>, vector<64x128xbf16>, vector<21x128xf32> -> vector<21x128xf32>
    %146 = arith.addf %140, %145 : vector<21x128xf32>
    %c8_132 = arith.constant 8 : index
    %c0_133 = arith.constant 0 : index
    %147 = vector.load %arg17[%c8_132, %c0_133] : memref<56x64xf32, #tpu.memory_space<vmem>>, vector<21x64xf32>
    %148 = arith.truncf %147 : vector<21x64xf32> to vector<21x64xbf16>
    %c6 = arith.constant 6 : index
    %c0_134 = arith.constant 0 : index
    %c0_135 = arith.constant 0 : index
    %149 = vector.load %arg6[%c6, %c0_134, %c0_135] : memref<25x64x128xbf16, #tpu.memory_space<vmem>>, vector<1x64x128xbf16>
    %150 = vector.shape_cast %149 : vector<1x64x128xbf16> to vector<64x128xbf16>
    %cst_136 = arith.constant dense<0.000000e+00> : vector<21x128xf32>
    %151 = tpu.matmul %148, %150, %cst_136 {dimension_numbers = #tpu.dot_dimension_numbers<[1], [0], [0], [1], [0, 0, 1, 1], [], []>} : vector<21x64xbf16>, vector<64x128xbf16>, vector<21x128xf32> -> vector<21x128xf32>
    %152 = arith.addf %146, %151 : vector<21x128xf32>
    %c9_137 = arith.constant 9 : index
    %c0_138 = arith.constant 0 : index
    %153 = vector.load %arg17[%c9_137, %c0_138] : memref<56x64xf32, #tpu.memory_space<vmem>>, vector<21x64xf32>
    %154 = arith.truncf %153 : vector<21x64xf32> to vector<21x64xbf16>
    %c7_139 = arith.constant 7 : index
    %c0_140 = arith.constant 0 : index
    %c0_141 = arith.constant 0 : index
    %155 = vector.load %arg6[%c7_139, %c0_140, %c0_141] : memref<25x64x128xbf16, #tpu.memory_space<vmem>>, vector<1x64x128xbf16>
    %156 = vector.shape_cast %155 : vector<1x64x128xbf16> to vector<64x128xbf16>
    %cst_142 = arith.constant dense<0.000000e+00> : vector<21x128xf32>
    %157 = tpu.matmul %154, %156, %cst_142 {dimension_numbers = #tpu.dot_dimension_numbers<[1], [0], [0], [1], [0, 0, 1, 1], [], []>} : vector<21x64xbf16>, vector<64x128xbf16>, vector<21x128xf32> -> vector<21x128xf32>
    %158 = arith.addf %152, %157 : vector<21x128xf32>
    %c10 = arith.constant 10 : index
    %c0_143 = arith.constant 0 : index
    %159 = vector.load %arg17[%c10, %c0_143] : memref<56x64xf32, #tpu.memory_space<vmem>>, vector<21x64xf32>
    %160 = arith.truncf %159 : vector<21x64xf32> to vector<21x64xbf16>
    %c8_144 = arith.constant 8 : index
    %c0_145 = arith.constant 0 : index
    %c0_146 = arith.constant 0 : index
    %161 = vector.load %arg6[%c8_144, %c0_145, %c0_146] : memref<25x64x128xbf16, #tpu.memory_space<vmem>>, vector<1x64x128xbf16>
    %162 = vector.shape_cast %161 : vector<1x64x128xbf16> to vector<64x128xbf16>
    %cst_147 = arith.constant dense<0.000000e+00> : vector<21x128xf32>
    %163 = tpu.matmul %160, %162, %cst_147 {dimension_numbers = #tpu.dot_dimension_numbers<[1], [0], [0], [1], [0, 0, 1, 1], [], []>} : vector<21x64xbf16>, vector<64x128xbf16>, vector<21x128xf32> -> vector<21x128xf32>
    %164 = arith.addf %158, %163 : vector<21x128xf32>
    %c11 = arith.constant 11 : index
    %c0_148 = arith.constant 0 : index
    %165 = vector.load %arg17[%c11, %c0_148] : memref<56x64xf32, #tpu.memory_space<vmem>>, vector<21x64xf32>
    %166 = arith.truncf %165 : vector<21x64xf32> to vector<21x64xbf16>
    %c9_149 = arith.constant 9 : index
    %c0_150 = arith.constant 0 : index
    %c0_151 = arith.constant 0 : index
    %167 = vector.load %arg6[%c9_149, %c0_150, %c0_151] : memref<25x64x128xbf16, #tpu.memory_space<vmem>>, vector<1x64x128xbf16>
    %168 = vector.shape_cast %167 : vector<1x64x128xbf16> to vector<64x128xbf16>
    %cst_152 = arith.constant dense<0.000000e+00> : vector<21x128xf32>
    %169 = tpu.matmul %166, %168, %cst_152 {dimension_numbers = #tpu.dot_dimension_numbers<[1], [0], [0], [1], [0, 0, 1, 1], [], []>} : vector<21x64xbf16>, vector<64x128xbf16>, vector<21x128xf32> -> vector<21x128xf32>
    %170 = arith.addf %164, %169 : vector<21x128xf32>
    %c14_153 = arith.constant 14 : index
    %c0_154 = arith.constant 0 : index
    %171 = vector.load %arg17[%c14_153, %c0_154] : memref<56x64xf32, #tpu.memory_space<vmem>>, vector<21x64xf32>
    %172 = arith.truncf %171 : vector<21x64xf32> to vector<21x64xbf16>
    %c10_155 = arith.constant 10 : index
    %c0_156 = arith.constant 0 : index
    %c0_157 = arith.constant 0 : index
    %173 = vector.load %arg6[%c10_155, %c0_156, %c0_157] : memref<25x64x128xbf16, #tpu.memory_space<vmem>>, vector<1x64x128xbf16>
    %174 = vector.shape_cast %173 : vector<1x64x128xbf16> to vector<64x128xbf16>
    %cst_158 = arith.constant dense<0.000000e+00> : vector<21x128xf32>
    %175 = tpu.matmul %172, %174, %cst_158 {dimension_numbers = #tpu.dot_dimension_numbers<[1], [0], [0], [1], [0, 0, 1, 1], [], []>} : vector<21x64xbf16>, vector<64x128xbf16>, vector<21x128xf32> -> vector<21x128xf32>
    %176 = arith.addf %170, %175 : vector<21x128xf32>
    %c15 = arith.constant 15 : index
    %c0_159 = arith.constant 0 : index
    %177 = vector.load %arg17[%c15, %c0_159] : memref<56x64xf32, #tpu.memory_space<vmem>>, vector<21x64xf32>
    %178 = arith.truncf %177 : vector<21x64xf32> to vector<21x64xbf16>
    %c11_160 = arith.constant 11 : index
    %c0_161 = arith.constant 0 : index
    %c0_162 = arith.constant 0 : index
    %179 = vector.load %arg6[%c11_160, %c0_161, %c0_162] : memref<25x64x128xbf16, #tpu.memory_space<vmem>>, vector<1x64x128xbf16>
    %180 = vector.shape_cast %179 : vector<1x64x128xbf16> to vector<64x128xbf16>
    %cst_163 = arith.constant dense<0.000000e+00> : vector<21x128xf32>
    %181 = tpu.matmul %178, %180, %cst_163 {dimension_numbers = #tpu.dot_dimension_numbers<[1], [0], [0], [1], [0, 0, 1, 1], [], []>} : vector<21x64xbf16>, vector<64x128xbf16>, vector<21x128xf32> -> vector<21x128xf32>
    %182 = arith.addf %176, %181 : vector<21x128xf32>
    %c16 = arith.constant 16 : index
    %c0_164 = arith.constant 0 : index
    %183 = vector.load %arg17[%c16, %c0_164] : memref<56x64xf32, #tpu.memory_space<vmem>>, vector<21x64xf32>
    %184 = arith.truncf %183 : vector<21x64xf32> to vector<21x64xbf16>
    %c12 = arith.constant 12 : index
    %c0_165 = arith.constant 0 : index
    %c0_166 = arith.constant 0 : index
    %185 = vector.load %arg6[%c12, %c0_165, %c0_166] : memref<25x64x128xbf16, #tpu.memory_space<vmem>>, vector<1x64x128xbf16>
    %186 = vector.shape_cast %185 : vector<1x64x128xbf16> to vector<64x128xbf16>
    %cst_167 = arith.constant dense<0.000000e+00> : vector<21x128xf32>
    %187 = tpu.matmul %184, %186, %cst_167 {dimension_numbers = #tpu.dot_dimension_numbers<[1], [0], [0], [1], [0, 0, 1, 1], [], []>} : vector<21x64xbf16>, vector<64x128xbf16>, vector<21x128xf32> -> vector<21x128xf32>
    %188 = arith.addf %182, %187 : vector<21x128xf32>
    %c17_168 = arith.constant 17 : index
    %c0_169 = arith.constant 0 : index
    %189 = vector.load %arg17[%c17_168, %c0_169] : memref<56x64xf32, #tpu.memory_space<vmem>>, vector<21x64xf32>
    %190 = arith.truncf %189 : vector<21x64xf32> to vector<21x64xbf16>
    %c13 = arith.constant 13 : index
    %c0_170 = arith.constant 0 : index
    %c0_171 = arith.constant 0 : index
    %191 = vector.load %arg6[%c13, %c0_170, %c0_171] : memref<25x64x128xbf16, #tpu.memory_space<vmem>>, vector<1x64x128xbf16>
    %192 = vector.shape_cast %191 : vector<1x64x128xbf16> to vector<64x128xbf16>
    %cst_172 = arith.constant dense<0.000000e+00> : vector<21x128xf32>
    %193 = tpu.matmul %190, %192, %cst_172 {dimension_numbers = #tpu.dot_dimension_numbers<[1], [0], [0], [1], [0, 0, 1, 1], [], []>} : vector<21x64xbf16>, vector<64x128xbf16>, vector<21x128xf32> -> vector<21x128xf32>
    %194 = arith.addf %188, %193 : vector<21x128xf32>
    %c18 = arith.constant 18 : index
    %c0_173 = arith.constant 0 : index
    %195 = vector.load %arg17[%c18, %c0_173] : memref<56x64xf32, #tpu.memory_space<vmem>>, vector<21x64xf32>
    %196 = arith.truncf %195 : vector<21x64xf32> to vector<21x64xbf16>
    %c14_174 = arith.constant 14 : index
    %c0_175 = arith.constant 0 : index
    %c0_176 = arith.constant 0 : index
    %197 = vector.load %arg6[%c14_174, %c0_175, %c0_176] : memref<25x64x128xbf16, #tpu.memory_space<vmem>>, vector<1x64x128xbf16>
    %198 = vector.shape_cast %197 : vector<1x64x128xbf16> to vector<64x128xbf16>
    %cst_177 = arith.constant dense<0.000000e+00> : vector<21x128xf32>
    %199 = tpu.matmul %196, %198, %cst_177 {dimension_numbers = #tpu.dot_dimension_numbers<[1], [0], [0], [1], [0, 0, 1, 1], [], []>} : vector<21x64xbf16>, vector<64x128xbf16>, vector<21x128xf32> -> vector<21x128xf32>
    %200 = arith.addf %194, %199 : vector<21x128xf32>
    %c21_178 = arith.constant 21 : index
    %c0_179 = arith.constant 0 : index
    %201 = vector.load %arg17[%c21_178, %c0_179] : memref<56x64xf32, #tpu.memory_space<vmem>>, vector<21x64xf32>
    %202 = arith.truncf %201 : vector<21x64xf32> to vector<21x64xbf16>
    %c15_180 = arith.constant 15 : index
    %c0_181 = arith.constant 0 : index
    %c0_182 = arith.constant 0 : index
    %203 = vector.load %arg6[%c15_180, %c0_181, %c0_182] : memref<25x64x128xbf16, #tpu.memory_space<vmem>>, vector<1x64x128xbf16>
    %204 = vector.shape_cast %203 : vector<1x64x128xbf16> to vector<64x128xbf16>
    %cst_183 = arith.constant dense<0.000000e+00> : vector<21x128xf32>
    %205 = tpu.matmul %202, %204, %cst_183 {dimension_numbers = #tpu.dot_dimension_numbers<[1], [0], [0], [1], [0, 0, 1, 1], [], []>} : vector<21x64xbf16>, vector<64x128xbf16>, vector<21x128xf32> -> vector<21x128xf32>
    %206 = arith.addf %200, %205 : vector<21x128xf32>
    %c22 = arith.constant 22 : index
    %c0_184 = arith.constant 0 : index
    %207 = vector.load %arg17[%c22, %c0_184] : memref<56x64xf32, #tpu.memory_space<vmem>>, vector<21x64xf32>
    %208 = arith.truncf %207 : vector<21x64xf32> to vector<21x64xbf16>
    %c16_185 = arith.constant 16 : index
    %c0_186 = arith.constant 0 : index
    %c0_187 = arith.constant 0 : index
    %209 = vector.load %arg6[%c16_185, %c0_186, %c0_187] : memref<25x64x128xbf16, #tpu.memory_space<vmem>>, vector<1x64x128xbf16>
    %210 = vector.shape_cast %209 : vector<1x64x128xbf16> to vector<64x128xbf16>
    %cst_188 = arith.constant dense<0.000000e+00> : vector<21x128xf32>
    %211 = tpu.matmul %208, %210, %cst_188 {dimension_numbers = #tpu.dot_dimension_numbers<[1], [0], [0], [1], [0, 0, 1, 1], [], []>} : vector<21x64xbf16>, vector<64x128xbf16>, vector<21x128xf32> -> vector<21x128xf32>
    %212 = arith.addf %206, %211 : vector<21x128xf32>
    %c23 = arith.constant 23 : index
    %c0_189 = arith.constant 0 : index
    %213 = vector.load %arg17[%c23, %c0_189] : memref<56x64xf32, #tpu.memory_space<vmem>>, vector<21x64xf32>
    %214 = arith.truncf %213 : vector<21x64xf32> to vector<21x64xbf16>
    %c17_190 = arith.constant 17 : index
    %c0_191 = arith.constant 0 : index
    %c0_192 = arith.constant 0 : index
    %215 = vector.load %arg6[%c17_190, %c0_191, %c0_192] : memref<25x64x128xbf16, #tpu.memory_space<vmem>>, vector<1x64x128xbf16>
    %216 = vector.shape_cast %215 : vector<1x64x128xbf16> to vector<64x128xbf16>
    %cst_193 = arith.constant dense<0.000000e+00> : vector<21x128xf32>
    %217 = tpu.matmul %214, %216, %cst_193 {dimension_numbers = #tpu.dot_dimension_numbers<[1], [0], [0], [1], [0, 0, 1, 1], [], []>} : vector<21x64xbf16>, vector<64x128xbf16>, vector<21x128xf32> -> vector<21x128xf32>
    %218 = arith.addf %212, %217 : vector<21x128xf32>
    %c24 = arith.constant 24 : index
    %c0_194 = arith.constant 0 : index
    %219 = vector.load %arg17[%c24, %c0_194] : memref<56x64xf32, #tpu.memory_space<vmem>>, vector<21x64xf32>
    %220 = arith.truncf %219 : vector<21x64xf32> to vector<21x64xbf16>
    %c18_195 = arith.constant 18 : index
    %c0_196 = arith.constant 0 : index
    %c0_197 = arith.constant 0 : index
    %221 = vector.load %arg6[%c18_195, %c0_196, %c0_197] : memref<25x64x128xbf16, #tpu.memory_space<vmem>>, vector<1x64x128xbf16>
    %222 = vector.shape_cast %221 : vector<1x64x128xbf16> to vector<64x128xbf16>
    %cst_198 = arith.constant dense<0.000000e+00> : vector<21x128xf32>
    %223 = tpu.matmul %220, %222, %cst_198 {dimension_numbers = #tpu.dot_dimension_numbers<[1], [0], [0], [1], [0, 0, 1, 1], [], []>} : vector<21x64xbf16>, vector<64x128xbf16>, vector<21x128xf32> -> vector<21x128xf32>
    %224 = arith.addf %218, %223 : vector<21x128xf32>
    %c25_199 = arith.constant 25 : index
    %c0_200 = arith.constant 0 : index
    %225 = vector.load %arg17[%c25_199, %c0_200] : memref<56x64xf32, #tpu.memory_space<vmem>>, vector<21x64xf32>
    %226 = arith.truncf %225 : vector<21x64xf32> to vector<21x64xbf16>
    %c19 = arith.constant 19 : index
    %c0_201 = arith.constant 0 : index
    %c0_202 = arith.constant 0 : index
    %227 = vector.load %arg6[%c19, %c0_201, %c0_202] : memref<25x64x128xbf16, #tpu.memory_space<vmem>>, vector<1x64x128xbf16>
    %228 = vector.shape_cast %227 : vector<1x64x128xbf16> to vector<64x128xbf16>
    %cst_203 = arith.constant dense<0.000000e+00> : vector<21x128xf32>
    %229 = tpu.matmul %226, %228, %cst_203 {dimension_numbers = #tpu.dot_dimension_numbers<[1], [0], [0], [1], [0, 0, 1, 1], [], []>} : vector<21x64xbf16>, vector<64x128xbf16>, vector<21x128xf32> -> vector<21x128xf32>
    %230 = arith.addf %224, %229 : vector<21x128xf32>
    %c28_204 = arith.constant 28 : index
    %c0_205 = arith.constant 0 : index
    %231 = vector.load %arg17[%c28_204, %c0_205] : memref<56x64xf32, #tpu.memory_space<vmem>>, vector<21x64xf32>
    %232 = arith.truncf %231 : vector<21x64xf32> to vector<21x64xbf16>
    %c20 = arith.constant 20 : index
    %c0_206 = arith.constant 0 : index
    %c0_207 = arith.constant 0 : index
    %233 = vector.load %arg6[%c20, %c0_206, %c0_207] : memref<25x64x128xbf16, #tpu.memory_space<vmem>>, vector<1x64x128xbf16>
    %234 = vector.shape_cast %233 : vector<1x64x128xbf16> to vector<64x128xbf16>
    %cst_208 = arith.constant dense<0.000000e+00> : vector<21x128xf32>
    %235 = tpu.matmul %232, %234, %cst_208 {dimension_numbers = #tpu.dot_dimension_numbers<[1], [0], [0], [1], [0, 0, 1, 1], [], []>} : vector<21x64xbf16>, vector<64x128xbf16>, vector<21x128xf32> -> vector<21x128xf32>
    %236 = arith.addf %230, %235 : vector<21x128xf32>
    %c29 = arith.constant 29 : index
    %c0_209 = arith.constant 0 : index
    %237 = vector.load %arg17[%c29, %c0_209] : memref<56x64xf32, #tpu.memory_space<vmem>>, vector<21x64xf32>
    %238 = arith.truncf %237 : vector<21x64xf32> to vector<21x64xbf16>
    %c21_210 = arith.constant 21 : index
    %c0_211 = arith.constant 0 : index
    %c0_212 = arith.constant 0 : index
    %239 = vector.load %arg6[%c21_210, %c0_211, %c0_212] : memref<25x64x128xbf16, #tpu.memory_space<vmem>>, vector<1x64x128xbf16>
    %240 = vector.shape_cast %239 : vector<1x64x128xbf16> to vector<64x128xbf16>
    %cst_213 = arith.constant dense<0.000000e+00> : vector<21x128xf32>
    %241 = tpu.matmul %238, %240, %cst_213 {dimension_numbers = #tpu.dot_dimension_numbers<[1], [0], [0], [1], [0, 0, 1, 1], [], []>} : vector<21x64xbf16>, vector<64x128xbf16>, vector<21x128xf32> -> vector<21x128xf32>
    %242 = arith.addf %236, %241 : vector<21x128xf32>
    %c30 = arith.constant 30 : index
    %c0_214 = arith.constant 0 : index
    %243 = vector.load %arg17[%c30, %c0_214] : memref<56x64xf32, #tpu.memory_space<vmem>>, vector<21x64xf32>
    %244 = arith.truncf %243 : vector<21x64xf32> to vector<21x64xbf16>
    %c22_215 = arith.constant 22 : index
    %c0_216 = arith.constant 0 : index
    %c0_217 = arith.constant 0 : index
    %245 = vector.load %arg6[%c22_215, %c0_216, %c0_217] : memref<25x64x128xbf16, #tpu.memory_space<vmem>>, vector<1x64x128xbf16>
    %246 = vector.shape_cast %245 : vector<1x64x128xbf16> to vector<64x128xbf16>
    %cst_218 = arith.constant dense<0.000000e+00> : vector<21x128xf32>
    %247 = tpu.matmul %244, %246, %cst_218 {dimension_numbers = #tpu.dot_dimension_numbers<[1], [0], [0], [1], [0, 0, 1, 1], [], []>} : vector<21x64xbf16>, vector<64x128xbf16>, vector<21x128xf32> -> vector<21x128xf32>
    %248 = arith.addf %242, %247 : vector<21x128xf32>
    %c31 = arith.constant 31 : index
    %c0_219 = arith.constant 0 : index
    %249 = vector.load %arg17[%c31, %c0_219] : memref<56x64xf32, #tpu.memory_space<vmem>>, vector<21x64xf32>
    %250 = arith.truncf %249 : vector<21x64xf32> to vector<21x64xbf16>
    %c23_220 = arith.constant 23 : index
    %c0_221 = arith.constant 0 : index
    %c0_222 = arith.constant 0 : index
    %251 = vector.load %arg6[%c23_220, %c0_221, %c0_222] : memref<25x64x128xbf16, #tpu.memory_space<vmem>>, vector<1x64x128xbf16>
    %252 = vector.shape_cast %251 : vector<1x64x128xbf16> to vector<64x128xbf16>
    %cst_223 = arith.constant dense<0.000000e+00> : vector<21x128xf32>
    %253 = tpu.matmul %250, %252, %cst_223 {dimension_numbers = #tpu.dot_dimension_numbers<[1], [0], [0], [1], [0, 0, 1, 1], [], []>} : vector<21x64xbf16>, vector<64x128xbf16>, vector<21x128xf32> -> vector<21x128xf32>
    %254 = arith.addf %248, %253 : vector<21x128xf32>
    %c32 = arith.constant 32 : index
    %c0_224 = arith.constant 0 : index
    %255 = vector.load %arg17[%c32, %c0_224] : memref<56x64xf32, #tpu.memory_space<vmem>>, vector<21x64xf32>
    %256 = arith.truncf %255 : vector<21x64xf32> to vector<21x64xbf16>
    %c24_225 = arith.constant 24 : index
    %c0_226 = arith.constant 0 : index
    %c0_227 = arith.constant 0 : index
    %257 = vector.load %arg6[%c24_225, %c0_226, %c0_227] : memref<25x64x128xbf16, #tpu.memory_space<vmem>>, vector<1x64x128xbf16>
    %258 = vector.shape_cast %257 : vector<1x64x128xbf16> to vector<64x128xbf16>
    %cst_228 = arith.constant dense<0.000000e+00> : vector<21x128xf32>
    %259 = tpu.matmul %256, %258, %cst_228 {dimension_numbers = #tpu.dot_dimension_numbers<[1], [0], [0], [1], [0, 0, 1, 1], [], []>} : vector<21x64xbf16>, vector<64x128xbf16>, vector<21x128xf32> -> vector<21x128xf32>
    %260 = arith.addf %254, %259 : vector<21x128xf32>
    %c0_229 = arith.constant 0 : index
    %c0_230 = arith.constant 0 : index
    %261 = vector.load %arg7[%c0_229, %c0_230] : memref<1x128xf32, #tpu.memory_space<vmem>>, vector<1x128xf32>
    %262 = vector.broadcast %261 : vector<1x128xf32> to vector<21x128xf32>
    %263 = arith.addf %260, %262 : vector<21x128xf32>
    %264 = vector.extract_strided_slice %263 {offsets = [0, 0], sizes = [3, 128], strides = [1, 1]} : vector<21x128xf32> to vector<3x128xf32>
    %c48 = arith.constant 48 : index
    %c0_231 = arith.constant 0 : index
    %265 = vector.load %arg18[%c48, %c0_231] : memref<132x128xf32, #tpu.memory_space<vmem>>, vector<3x128xf32>
    tpu.vector_store %arg18[%c48, %c0_231], %264 {strides = array<i32>} : memref<132x128xf32, #tpu.memory_space<vmem>>, vector<3x128xf32>,
    %266 = vector.extract_strided_slice %263 {offsets = [7, 0], sizes = [3, 128], strides = [1, 1]} : vector<21x128xf32> to vector<3x128xf32>
    %c59 = arith.constant 59 : index
    %c0_232 = arith.constant 0 : index
    %267 = vector.load %arg18[%c59, %c0_232] : memref<132x128xf32, #tpu.memory_space<vmem>>, vector<3x128xf32>
    tpu.vector_store %arg18[%c59, %c0_232], %266 {strides = array<i32>} : memref<132x128xf32, #tpu.memory_space<vmem>>, vector<3x128xf32>,
    %268 = vector.extract_strided_slice %263 {offsets = [14, 0], sizes = [3, 128], strides = [1, 1]} : vector<21x128xf32> to vector<3x128xf32>
    %c70 = arith.constant 70 : index
    %c0_233 = arith.constant 0 : index
    %269 = vector.load %arg18[%c70, %c0_233] : memref<132x128xf32, #tpu.memory_space<vmem>>, vector<3x128xf32>
    tpu.vector_store %arg18[%c70, %c0_233], %268 {strides = array<i32>} : memref<132x128xf32, #tpu.memory_space<vmem>>, vector<3x128xf32>,
    %c0_234 = arith.constant 0 : index
    %c0_235 = arith.constant 0 : index
    %270 = vector.load %arg18[%c0_234, %c0_235] : memref<132x128xf32, #tpu.memory_space<vmem>>, vector<77x128xf32>
    %271 = arith.truncf %270 : vector<77x128xf32> to vector<77x128xbf16>
    %c0_236 = arith.constant 0 : index
    %c0_237 = arith.constant 0 : index
    %c0_238 = arith.constant 0 : index
    %272 = vector.load %arg8[%c0_236, %c0_237, %c0_238] : memref<25x128x64xbf16, #tpu.memory_space<vmem>>, vector<1x128x64xbf16>
    %273 = vector.shape_cast %272 : vector<1x128x64xbf16> to vector<128x64xbf16>
    %cst_239 = arith.constant dense<0.000000e+00> : vector<77x64xf32>
    %274 = tpu.matmul %271, %273, %cst_239 {dimension_numbers = #tpu.dot_dimension_numbers<[1], [0], [0], [1], [0, 0, 1, 1], [], []>} : vector<77x128xbf16>, vector<128x64xbf16>, vector<77x64xf32> -> vector<77x64xf32>
    %c1_240 = arith.constant 1 : index
    %c0_241 = arith.constant 0 : index
    %275 = vector.load %arg18[%c1_240, %c0_241] : memref<132x128xf32, #tpu.memory_space<vmem>>, vector<77x128xf32>
    %276 = arith.truncf %275 : vector<77x128xf32> to vector<77x128xbf16>
    %c1_242 = arith.constant 1 : index
    %c0_243 = arith.constant 0 : index
    %c0_244 = arith.constant 0 : index
    %277 = vector.load %arg8[%c1_242, %c0_243, %c0_244] : memref<25x128x64xbf16, #tpu.memory_space<vmem>>, vector<1x128x64xbf16>
    %278 = vector.shape_cast %277 : vector<1x128x64xbf16> to vector<128x64xbf16>
    %cst_245 = arith.constant dense<0.000000e+00> : vector<77x64xf32>
    %279 = tpu.matmul %276, %278, %cst_245 {dimension_numbers = #tpu.dot_dimension_numbers<[1], [0], [0], [1], [0, 0, 1, 1], [], []>} : vector<77x128xbf16>, vector<128x64xbf16>, vector<77x64xf32> -> vector<77x64xf32>
    %280 = arith.addf %274, %279 : vector<77x64xf32>
    %c2_246 = arith.constant 2 : index
    %c0_247 = arith.constant 0 : index
    %281 = vector.load %arg18[%c2_246, %c0_247] : memref<132x128xf32, #tpu.memory_space<vmem>>, vector<77x128xf32>
    %282 = arith.truncf %281 : vector<77x128xf32> to vector<77x128xbf16>
    %c2_248 = arith.constant 2 : index
    %c0_249 = arith.constant 0 : index
    %c0_250 = arith.constant 0 : index
    %283 = vector.load %arg8[%c2_248, %c0_249, %c0_250] : memref<25x128x64xbf16, #tpu.memory_space<vmem>>, vector<1x128x64xbf16>
    %284 = vector.shape_cast %283 : vector<1x128x64xbf16> to vector<128x64xbf16>
    %cst_251 = arith.constant dense<0.000000e+00> : vector<77x64xf32>
    %285 = tpu.matmul %282, %284, %cst_251 {dimension_numbers = #tpu.dot_dimension_numbers<[1], [0], [0], [1], [0, 0, 1, 1], [], []>} : vector<77x128xbf16>, vector<128x64xbf16>, vector<77x64xf32> -> vector<77x64xf32>
    %286 = arith.addf %280, %285 : vector<77x64xf32>
    %c3_252 = arith.constant 3 : index
    %c0_253 = arith.constant 0 : index
    %287 = vector.load %arg18[%c3_252, %c0_253] : memref<132x128xf32, #tpu.memory_space<vmem>>, vector<77x128xf32>
    %288 = arith.truncf %287 : vector<77x128xf32> to vector<77x128xbf16>
    %c3_254 = arith.constant 3 : index
    %c0_255 = arith.constant 0 : index
    %c0_256 = arith.constant 0 : index
    %289 = vector.load %arg8[%c3_254, %c0_255, %c0_256] : memref<25x128x64xbf16, #tpu.memory_space<vmem>>, vector<1x128x64xbf16>
    %290 = vector.shape_cast %289 : vector<1x128x64xbf16> to vector<128x64xbf16>
    %cst_257 = arith.constant dense<0.000000e+00> : vector<77x64xf32>
    %291 = tpu.matmul %288, %290, %cst_257 {dimension_numbers = #tpu.dot_dimension_numbers<[1], [0], [0], [1], [0, 0, 1, 1], [], []>} : vector<77x128xbf16>, vector<128x64xbf16>, vector<77x64xf32> -> vector<77x64xf32>
    %292 = arith.addf %286, %291 : vector<77x64xf32>
    %c4_258 = arith.constant 4 : index
    %c0_259 = arith.constant 0 : index
    %293 = vector.load %arg18[%c4_258, %c0_259] : memref<132x128xf32, #tpu.memory_space<vmem>>, vector<77x128xf32>
    %294 = arith.truncf %293 : vector<77x128xf32> to vector<77x128xbf16>
    %c4_260 = arith.constant 4 : index
    %c0_261 = arith.constant 0 : index
    %c0_262 = arith.constant 0 : index
    %295 = vector.load %arg8[%c4_260, %c0_261, %c0_262] : memref<25x128x64xbf16, #tpu.memory_space<vmem>>, vector<1x128x64xbf16>
    %296 = vector.shape_cast %295 : vector<1x128x64xbf16> to vector<128x64xbf16>
    %cst_263 = arith.constant dense<0.000000e+00> : vector<77x64xf32>
    %297 = tpu.matmul %294, %296, %cst_263 {dimension_numbers = #tpu.dot_dimension_numbers<[1], [0], [0], [1], [0, 0, 1, 1], [], []>} : vector<77x128xbf16>, vector<128x64xbf16>, vector<77x64xf32> -> vector<77x64xf32>
    %298 = arith.addf %292, %297 : vector<77x64xf32>
    %c11_264 = arith.constant 11 : index
    %c0_265 = arith.constant 0 : index
    %299 = vector.load %arg18[%c11_264, %c0_265] : memref<132x128xf32, #tpu.memory_space<vmem>>, vector<77x128xf32>
    %300 = arith.truncf %299 : vector<77x128xf32> to vector<77x128xbf16>
    %c5_266 = arith.constant 5 : index
    %c0_267 = arith.constant 0 : index
    %c0_268 = arith.constant 0 : index
    %301 = vector.load %arg8[%c5_266, %c0_267, %c0_268] : memref<25x128x64xbf16, #tpu.memory_space<vmem>>, vector<1x128x64xbf16>
    %302 = vector.shape_cast %301 : vector<1x128x64xbf16> to vector<128x64xbf16>
    %cst_269 = arith.constant dense<0.000000e+00> : vector<77x64xf32>
    %303 = tpu.matmul %300, %302, %cst_269 {dimension_numbers = #tpu.dot_dimension_numbers<[1], [0], [0], [1], [0, 0, 1, 1], [], []>} : vector<77x128xbf16>, vector<128x64xbf16>, vector<77x64xf32> -> vector<77x64xf32>
    %304 = arith.addf %298, %303 : vector<77x64xf32>
    %c12_270 = arith.constant 12 : index
    %c0_271 = arith.constant 0 : index
    %305 = vector.load %arg18[%c12_270, %c0_271] : memref<132x128xf32, #tpu.memory_space<vmem>>, vector<77x128xf32>
    %306 = arith.truncf %305 : vector<77x128xf32> to vector<77x128xbf16>
    %c6_272 = arith.constant 6 : index
    %c0_273 = arith.constant 0 : index
    %c0_274 = arith.constant 0 : index
    %307 = vector.load %arg8[%c6_272, %c0_273, %c0_274] : memref<25x128x64xbf16, #tpu.memory_space<vmem>>, vector<1x128x64xbf16>
    %308 = vector.shape_cast %307 : vector<1x128x64xbf16> to vector<128x64xbf16>
    %cst_275 = arith.constant dense<0.000000e+00> : vector<77x64xf32>
    %309 = tpu.matmul %306, %308, %cst_275 {dimension_numbers = #tpu.dot_dimension_numbers<[1], [0], [0], [1], [0, 0, 1, 1], [], []>} : vector<77x128xbf16>, vector<128x64xbf16>, vector<77x64xf32> -> vector<77x64xf32>
    %310 = arith.addf %304, %309 : vector<77x64xf32>
    %c13_276 = arith.constant 13 : index
    %c0_277 = arith.constant 0 : index
    %311 = vector.load %arg18[%c13_276, %c0_277] : memref<132x128xf32, #tpu.memory_space<vmem>>, vector<77x128xf32>
    %312 = arith.truncf %311 : vector<77x128xf32> to vector<77x128xbf16>
    %c7_278 = arith.constant 7 : index
    %c0_279 = arith.constant 0 : index
    %c0_280 = arith.constant 0 : index
    %313 = vector.load %arg8[%c7_278, %c0_279, %c0_280] : memref<25x128x64xbf16, #tpu.memory_space<vmem>>, vector<1x128x64xbf16>
    %314 = vector.shape_cast %313 : vector<1x128x64xbf16> to vector<128x64xbf16>
    %cst_281 = arith.constant dense<0.000000e+00> : vector<77x64xf32>
    %315 = tpu.matmul %312, %314, %cst_281 {dimension_numbers = #tpu.dot_dimension_numbers<[1], [0], [0], [1], [0, 0, 1, 1], [], []>} : vector<77x128xbf16>, vector<128x64xbf16>, vector<77x64xf32> -> vector<77x64xf32>
    %316 = arith.addf %310, %315 : vector<77x64xf32>
    %c14_282 = arith.constant 14 : index
    %c0_283 = arith.constant 0 : index
    %317 = vector.load %arg18[%c14_282, %c0_283] : memref<132x128xf32, #tpu.memory_space<vmem>>, vector<77x128xf32>
    %318 = arith.truncf %317 : vector<77x128xf32> to vector<77x128xbf16>
    %c8_284 = arith.constant 8 : index
    %c0_285 = arith.constant 0 : index
    %c0_286 = arith.constant 0 : index
    %319 = vector.load %arg8[%c8_284, %c0_285, %c0_286] : memref<25x128x64xbf16, #tpu.memory_space<vmem>>, vector<1x128x64xbf16>
    %320 = vector.shape_cast %319 : vector<1x128x64xbf16> to vector<128x64xbf16>
    %cst_287 = arith.constant dense<0.000000e+00> : vector<77x64xf32>
    %321 = tpu.matmul %318, %320, %cst_287 {dimension_numbers = #tpu.dot_dimension_numbers<[1], [0], [0], [1], [0, 0, 1, 1], [], []>} : vector<77x128xbf16>, vector<128x64xbf16>, vector<77x64xf32> -> vector<77x64xf32>
    %322 = arith.addf %316, %321 : vector<77x64xf32>
    %c15_288 = arith.constant 15 : index
    %c0_289 = arith.constant 0 : index
    %323 = vector.load %arg18[%c15_288, %c0_289] : memref<132x128xf32, #tpu.memory_space<vmem>>, vector<77x128xf32>
    %324 = arith.truncf %323 : vector<77x128xf32> to vector<77x128xbf16>
    %c9_290 = arith.constant 9 : index
    %c0_291 = arith.constant 0 : index
    %c0_292 = arith.constant 0 : index
    %325 = vector.load %arg8[%c9_290, %c0_291, %c0_292] : memref<25x128x64xbf16, #tpu.memory_space<vmem>>, vector<1x128x64xbf16>
    %326 = vector.shape_cast %325 : vector<1x128x64xbf16> to vector<128x64xbf16>
    %cst_293 = arith.constant dense<0.000000e+00> : vector<77x64xf32>
    %327 = tpu.matmul %324, %326, %cst_293 {dimension_numbers = #tpu.dot_dimension_numbers<[1], [0], [0], [1], [0, 0, 1, 1], [], []>} : vector<77x128xbf16>, vector<128x64xbf16>, vector<77x64xf32> -> vector<77x64xf32>
    %328 = arith.addf %322, %327 : vector<77x64xf32>
    %c22_294 = arith.constant 22 : index
    %c0_295 = arith.constant 0 : index
    %329 = vector.load %arg18[%c22_294, %c0_295] : memref<132x128xf32, #tpu.memory_space<vmem>>, vector<77x128xf32>
    %330 = arith.truncf %329 : vector<77x128xf32> to vector<77x128xbf16>
    %c10_296 = arith.constant 10 : index
    %c0_297 = arith.constant 0 : index
    %c0_298 = arith.constant 0 : index
    %331 = vector.load %arg8[%c10_296, %c0_297, %c0_298] : memref<25x128x64xbf16, #tpu.memory_space<vmem>>, vector<1x128x64xbf16>
    %332 = vector.shape_cast %331 : vector<1x128x64xbf16> to vector<128x64xbf16>
    %cst_299 = arith.constant dense<0.000000e+00> : vector<77x64xf32>
    %333 = tpu.matmul %330, %332, %cst_299 {dimension_numbers = #tpu.dot_dimension_numbers<[1], [0], [0], [1], [0, 0, 1, 1], [], []>} : vector<77x128xbf16>, vector<128x64xbf16>, vector<77x64xf32> -> vector<77x64xf32>
    %334 = arith.addf %328, %333 : vector<77x64xf32>
    %c23_300 = arith.constant 23 : index
    %c0_301 = arith.constant 0 : index
    %335 = vector.load %arg18[%c23_300, %c0_301] : memref<132x128xf32, #tpu.memory_space<vmem>>, vector<77x128xf32>
    %336 = arith.truncf %335 : vector<77x128xf32> to vector<77x128xbf16>
    %c11_302 = arith.constant 11 : index
    %c0_303 = arith.constant 0 : index
    %c0_304 = arith.constant 0 : index
    %337 = vector.load %arg8[%c11_302, %c0_303, %c0_304] : memref<25x128x64xbf16, #tpu.memory_space<vmem>>, vector<1x128x64xbf16>
    %338 = vector.shape_cast %337 : vector<1x128x64xbf16> to vector<128x64xbf16>
    %cst_305 = arith.constant dense<0.000000e+00> : vector<77x64xf32>
    %339 = tpu.matmul %336, %338, %cst_305 {dimension_numbers = #tpu.dot_dimension_numbers<[1], [0], [0], [1], [0, 0, 1, 1], [], []>} : vector<77x128xbf16>, vector<128x64xbf16>, vector<77x64xf32> -> vector<77x64xf32>
    %340 = arith.addf %334, %339 : vector<77x64xf32>
    %c24_306 = arith.constant 24 : index
    %c0_307 = arith.constant 0 : index
    %341 = vector.load %arg18[%c24_306, %c0_307] : memref<132x128xf32, #tpu.memory_space<vmem>>, vector<77x128xf32>
    %342 = arith.truncf %341 : vector<77x128xf32> to vector<77x128xbf16>
    %c12_308 = arith.constant 12 : index
    %c0_309 = arith.constant 0 : index
    %c0_310 = arith.constant 0 : index
    %343 = vector.load %arg8[%c12_308, %c0_309, %c0_310] : memref<25x128x64xbf16, #tpu.memory_space<vmem>>, vector<1x128x64xbf16>
    %344 = vector.shape_cast %343 : vector<1x128x64xbf16> to vector<128x64xbf16>
    %cst_311 = arith.constant dense<0.000000e+00> : vector<77x64xf32>
    %345 = tpu.matmul %342, %344, %cst_311 {dimension_numbers = #tpu.dot_dimension_numbers<[1], [0], [0], [1], [0, 0, 1, 1], [], []>} : vector<77x128xbf16>, vector<128x64xbf16>, vector<77x64xf32> -> vector<77x64xf32>
    %346 = arith.addf %340, %345 : vector<77x64xf32>
    %c25_312 = arith.constant 25 : index
    %c0_313 = arith.constant 0 : index
    %347 = vector.load %arg18[%c25_312, %c0_313] : memref<132x128xf32, #tpu.memory_space<vmem>>, vector<77x128xf32>
    %348 = arith.truncf %347 : vector<77x128xf32> to vector<77x128xbf16>
    %c13_314 = arith.constant 13 : index
    %c0_315 = arith.constant 0 : index
    %c0_316 = arith.constant 0 : index
    %349 = vector.load %arg8[%c13_314, %c0_315, %c0_316] : memref<25x128x64xbf16, #tpu.memory_space<vmem>>, vector<1x128x64xbf16>
    %350 = vector.shape_cast %349 : vector<1x128x64xbf16> to vector<128x64xbf16>
    %cst_317 = arith.constant dense<0.000000e+00> : vector<77x64xf32>
    %351 = tpu.matmul %348, %350, %cst_317 {dimension_numbers = #tpu.dot_dimension_numbers<[1], [0], [0], [1], [0, 0, 1, 1], [], []>} : vector<77x128xbf16>, vector<128x64xbf16>, vector<77x64xf32> -> vector<77x64xf32>
    %352 = arith.addf %346, %351 : vector<77x64xf32>
    %c26 = arith.constant 26 : index
    %c0_318 = arith.constant 0 : index
    %353 = vector.load %arg18[%c26, %c0_318] : memref<132x128xf32, #tpu.memory_space<vmem>>, vector<77x128xf32>
    %354 = arith.truncf %353 : vector<77x128xf32> to vector<77x128xbf16>
    %c14_319 = arith.constant 14 : index
    %c0_320 = arith.constant 0 : index
    %c0_321 = arith.constant 0 : index
    %355 = vector.load %arg8[%c14_319, %c0_320, %c0_321] : memref<25x128x64xbf16, #tpu.memory_space<vmem>>, vector<1x128x64xbf16>
    %356 = vector.shape_cast %355 : vector<1x128x64xbf16> to vector<128x64xbf16>
    %cst_322 = arith.constant dense<0.000000e+00> : vector<77x64xf32>
    %357 = tpu.matmul %354, %356, %cst_322 {dimension_numbers = #tpu.dot_dimension_numbers<[1], [0], [0], [1], [0, 0, 1, 1], [], []>} : vector<77x128xbf16>, vector<128x64xbf16>, vector<77x64xf32> -> vector<77x64xf32>
    %358 = arith.addf %352, %357 : vector<77x64xf32>
    %c33_323 = arith.constant 33 : index
    %c0_324 = arith.constant 0 : index
    %359 = vector.load %arg18[%c33_323, %c0_324] : memref<132x128xf32, #tpu.memory_space<vmem>>, vector<77x128xf32>
    %360 = arith.truncf %359 : vector<77x128xf32> to vector<77x128xbf16>
    %c15_325 = arith.constant 15 : index
    %c0_326 = arith.constant 0 : index
    %c0_327 = arith.constant 0 : index
    %361 = vector.load %arg8[%c15_325, %c0_326, %c0_327] : memref<25x128x64xbf16, #tpu.memory_space<vmem>>, vector<1x128x64xbf16>
    %362 = vector.shape_cast %361 : vector<1x128x64xbf16> to vector<128x64xbf16>
    %cst_328 = arith.constant dense<0.000000e+00> : vector<77x64xf32>
    %363 = tpu.matmul %360, %362, %cst_328 {dimension_numbers = #tpu.dot_dimension_numbers<[1], [0], [0], [1], [0, 0, 1, 1], [], []>} : vector<77x128xbf16>, vector<128x64xbf16>, vector<77x64xf32> -> vector<77x64xf32>
    %364 = arith.addf %358, %363 : vector<77x64xf32>
    %c34 = arith.constant 34 : index
    %c0_329 = arith.constant 0 : index
    %365 = vector.load %arg18[%c34, %c0_329] : memref<132x128xf32, #tpu.memory_space<vmem>>, vector<77x128xf32>
    %366 = arith.truncf %365 : vector<77x128xf32> to vector<77x128xbf16>
    %c16_330 = arith.constant 16 : index
    %c0_331 = arith.constant 0 : index
    %c0_332 = arith.constant 0 : index
    %367 = vector.load %arg8[%c16_330, %c0_331, %c0_332] : memref<25x128x64xbf16, #tpu.memory_space<vmem>>, vector<1x128x64xbf16>
    %368 = vector.shape_cast %367 : vector<1x128x64xbf16> to vector<128x64xbf16>
    %cst_333 = arith.constant dense<0.000000e+00> : vector<77x64xf32>
    %369 = tpu.matmul %366, %368, %cst_333 {dimension_numbers = #tpu.dot_dimension_numbers<[1], [0], [0], [1], [0, 0, 1, 1], [], []>} : vector<77x128xbf16>, vector<128x64xbf16>, vector<77x64xf32> -> vector<77x64xf32>
    %370 = arith.addf %364, %369 : vector<77x64xf32>
    %c35_334 = arith.constant 35 : index
    %c0_335 = arith.constant 0 : index
    %371 = vector.load %arg18[%c35_334, %c0_335] : memref<132x128xf32, #tpu.memory_space<vmem>>, vector<77x128xf32>
    %372 = arith.truncf %371 : vector<77x128xf32> to vector<77x128xbf16>
    %c17_336 = arith.constant 17 : index
    %c0_337 = arith.constant 0 : index
    %c0_338 = arith.constant 0 : index
    %373 = vector.load %arg8[%c17_336, %c0_337, %c0_338] : memref<25x128x64xbf16, #tpu.memory_space<vmem>>, vector<1x128x64xbf16>
    %374 = vector.shape_cast %373 : vector<1x128x64xbf16> to vector<128x64xbf16>
    %cst_339 = arith.constant dense<0.000000e+00> : vector<77x64xf32>
    %375 = tpu.matmul %372, %374, %cst_339 {dimension_numbers = #tpu.dot_dimension_numbers<[1], [0], [0], [1], [0, 0, 1, 1], [], []>} : vector<77x128xbf16>, vector<128x64xbf16>, vector<77x64xf32> -> vector<77x64xf32>
    %376 = arith.addf %370, %375 : vector<77x64xf32>
    %c36 = arith.constant 36 : index
    %c0_340 = arith.constant 0 : index
    %377 = vector.load %arg18[%c36, %c0_340] : memref<132x128xf32, #tpu.memory_space<vmem>>, vector<77x128xf32>
    %378 = arith.truncf %377 : vector<77x128xf32> to vector<77x128xbf16>
    %c18_341 = arith.constant 18 : index
    %c0_342 = arith.constant 0 : index
    %c0_343 = arith.constant 0 : index
    %379 = vector.load %arg8[%c18_341, %c0_342, %c0_343] : memref<25x128x64xbf16, #tpu.memory_space<vmem>>, vector<1x128x64xbf16>
    %380 = vector.shape_cast %379 : vector<1x128x64xbf16> to vector<128x64xbf16>
    %cst_344 = arith.constant dense<0.000000e+00> : vector<77x64xf32>
    %381 = tpu.matmul %378, %380, %cst_344 {dimension_numbers = #tpu.dot_dimension_numbers<[1], [0], [0], [1], [0, 0, 1, 1], [], []>} : vector<77x128xbf16>, vector<128x64xbf16>, vector<77x64xf32> -> vector<77x64xf32>
    %382 = arith.addf %376, %381 : vector<77x64xf32>
    %c37 = arith.constant 37 : index
    %c0_345 = arith.constant 0 : index
    %383 = vector.load %arg18[%c37, %c0_345] : memref<132x128xf32, #tpu.memory_space<vmem>>, vector<77x128xf32>
    %384 = arith.truncf %383 : vector<77x128xf32> to vector<77x128xbf16>
    %c19_346 = arith.constant 19 : index
    %c0_347 = arith.constant 0 : index
    %c0_348 = arith.constant 0 : index
    %385 = vector.load %arg8[%c19_346, %c0_347, %c0_348] : memref<25x128x64xbf16, #tpu.memory_space<vmem>>, vector<1x128x64xbf16>
    %386 = vector.shape_cast %385 : vector<1x128x64xbf16> to vector<128x64xbf16>
    %cst_349 = arith.constant dense<0.000000e+00> : vector<77x64xf32>
    %387 = tpu.matmul %384, %386, %cst_349 {dimension_numbers = #tpu.dot_dimension_numbers<[1], [0], [0], [1], [0, 0, 1, 1], [], []>} : vector<77x128xbf16>, vector<128x64xbf16>, vector<77x64xf32> -> vector<77x64xf32>
    %388 = arith.addf %382, %387 : vector<77x64xf32>
    %c44 = arith.constant 44 : index
    %c0_350 = arith.constant 0 : index
    %389 = vector.load %arg18[%c44, %c0_350] : memref<132x128xf32, #tpu.memory_space<vmem>>, vector<77x128xf32>
    %390 = arith.truncf %389 : vector<77x128xf32> to vector<77x128xbf16>
    %c20_351 = arith.constant 20 : index
    %c0_352 = arith.constant 0 : index
    %c0_353 = arith.constant 0 : index
    %391 = vector.load %arg8[%c20_351, %c0_352, %c0_353] : memref<25x128x64xbf16, #tpu.memory_space<vmem>>, vector<1x128x64xbf16>
    %392 = vector.shape_cast %391 : vector<1x128x64xbf16> to vector<128x64xbf16>
    %cst_354 = arith.constant dense<0.000000e+00> : vector<77x64xf32>
    %393 = tpu.matmul %390, %392, %cst_354 {dimension_numbers = #tpu.dot_dimension_numbers<[1], [0], [0], [1], [0, 0, 1, 1], [], []>} : vector<77x128xbf16>, vector<128x64xbf16>, vector<77x64xf32> -> vector<77x64xf32>
    %394 = arith.addf %388, %393 : vector<77x64xf32>
    %c45 = arith.constant 45 : index
    %c0_355 = arith.constant 0 : index
    %395 = vector.load %arg18[%c45, %c0_355] : memref<132x128xf32, #tpu.memory_space<vmem>>, vector<77x128xf32>
    %396 = arith.truncf %395 : vector<77x128xf32> to vector<77x128xbf16>
    %c21_356 = arith.constant 21 : index
    %c0_357 = arith.constant 0 : index
    %c0_358 = arith.constant 0 : index
    %397 = vector.load %arg8[%c21_356, %c0_357, %c0_358] : memref<25x128x64xbf16, #tpu.memory_space<vmem>>, vector<1x128x64xbf16>
    %398 = vector.shape_cast %397 : vector<1x128x64xbf16> to vector<128x64xbf16>
    %cst_359 = arith.constant dense<0.000000e+00> : vector<77x64xf32>
    %399 = tpu.matmul %396, %398, %cst_359 {dimension_numbers = #tpu.dot_dimension_numbers<[1], [0], [0], [1], [0, 0, 1, 1], [], []>} : vector<77x128xbf16>, vector<128x64xbf16>, vector<77x64xf32> -> vector<77x64xf32>
    %400 = arith.addf %394, %399 : vector<77x64xf32>
    %c46 = arith.constant 46 : index
    %c0_360 = arith.constant 0 : index
    %401 = vector.load %arg18[%c46, %c0_360] : memref<132x128xf32, #tpu.memory_space<vmem>>, vector<77x128xf32>
    %402 = arith.truncf %401 : vector<77x128xf32> to vector<77x128xbf16>
    %c22_361 = arith.constant 22 : index
    %c0_362 = arith.constant 0 : index
    %c0_363 = arith.constant 0 : index
    %403 = vector.load %arg8[%c22_361, %c0_362, %c0_363] : memref<25x128x64xbf16, #tpu.memory_space<vmem>>, vector<1x128x64xbf16>
    %404 = vector.shape_cast %403 : vector<1x128x64xbf16> to vector<128x64xbf16>
    %cst_364 = arith.constant dense<0.000000e+00> : vector<77x64xf32>
    %405 = tpu.matmul %402, %404, %cst_364 {dimension_numbers = #tpu.dot_dimension_numbers<[1], [0], [0], [1], [0, 0, 1, 1], [], []>} : vector<77x128xbf16>, vector<128x64xbf16>, vector<77x64xf32> -> vector<77x64xf32>
    %406 = arith.addf %400, %405 : vector<77x64xf32>
    %c47 = arith.constant 47 : index
    %c0_365 = arith.constant 0 : index
    %407 = vector.load %arg18[%c47, %c0_365] : memref<132x128xf32, #tpu.memory_space<vmem>>, vector<77x128xf32>
    %408 = arith.truncf %407 : vector<77x128xf32> to vector<77x128xbf16>
    %c23_366 = arith.constant 23 : index
    %c0_367 = arith.constant 0 : index
    %c0_368 = arith.constant 0 : index
    %409 = vector.load %arg8[%c23_366, %c0_367, %c0_368] : memref<25x128x64xbf16, #tpu.memory_space<vmem>>, vector<1x128x64xbf16>
    %410 = vector.shape_cast %409 : vector<1x128x64xbf16> to vector<128x64xbf16>
    %cst_369 = arith.constant dense<0.000000e+00> : vector<77x64xf32>
    %411 = tpu.matmul %408, %410, %cst_369 {dimension_numbers = #tpu.dot_dimension_numbers<[1], [0], [0], [1], [0, 0, 1, 1], [], []>} : vector<77x128xbf16>, vector<128x64xbf16>, vector<77x64xf32> -> vector<77x64xf32>
    %412 = arith.addf %406, %411 : vector<77x64xf32>
    %c48_370 = arith.constant 48 : index
    %c0_371 = arith.constant 0 : index
    %413 = vector.load %arg18[%c48_370, %c0_371] : memref<132x128xf32, #tpu.memory_space<vmem>>, vector<77x128xf32>
    %414 = arith.truncf %413 : vector<77x128xf32> to vector<77x128xbf16>
    %c24_372 = arith.constant 24 : index
    %c0_373 = arith.constant 0 : index
    %c0_374 = arith.constant 0 : index
    %415 = vector.load %arg8[%c24_372, %c0_373, %c0_374] : memref<25x128x64xbf16, #tpu.memory_space<vmem>>, vector<1x128x64xbf16>
    %416 = vector.shape_cast %415 : vector<1x128x64xbf16> to vector<128x64xbf16>
    %cst_375 = arith.constant dense<0.000000e+00> : vector<77x64xf32>
    %417 = tpu.matmul %414, %416, %cst_375 {dimension_numbers = #tpu.dot_dimension_numbers<[1], [0], [0], [1], [0, 0, 1, 1], [], []>} : vector<77x128xbf16>, vector<128x64xbf16>, vector<77x64xf32> -> vector<77x64xf32>
    %418 = arith.addf %412, %417 : vector<77x64xf32>
    %c0_376 = arith.constant 0 : index
    %c0_377 = arith.constant 0 : index
    %419 = vector.load %arg9[%c0_376, %c0_377] : memref<1x64xf32, #tpu.memory_space<vmem>>, vector<1x64xf32>
    %420 = vector.broadcast %419 : vector<1x64xf32> to vector<77x64xf32>
    %421 = arith.addf %418, %420 : vector<77x64xf32>
    %cst_378 = arith.constant 0.000000e+00 : f32
    %422 = vector.broadcast %cst_378 : f32 to vector<77x64xf32>
    %423 = arith.maximumf %421, %422 : vector<77x64xf32>
    %424 = vector.extract_strided_slice %423 {offsets = [0, 0], sizes = [7, 64], strides = [1, 1]} : vector<77x64xf32> to vector<7x64xf32>
    %c0_379 = arith.constant 0 : index
    %c0_380 = arith.constant 0 : index
    %425 = vector.load %arg19[%c0_379, %c0_380] : memref<72x64xf32, #tpu.memory_space<vmem>>, vector<7x64xf32>
    tpu.vector_store %arg19[%c0_379, %c0_380], %424 {strides = array<i32>} : memref<72x64xf32, #tpu.memory_space<vmem>>, vector<7x64xf32>,
    %426 = vector.extract_strided_slice %423 {offsets = [11, 0], sizes = [7, 64], strides = [1, 1]} : vector<77x64xf32> to vector<7x64xf32>
    %c8_381 = arith.constant 8 : index
    %c0_382 = arith.constant 0 : index
    %427 = vector.load %arg19[%c8_381, %c0_382] : memref<72x64xf32, #tpu.memory_space<vmem>>, vector<7x64xf32>
    tpu.vector_store %arg19[%c8_381, %c0_382], %426 {strides = array<i32>} : memref<72x64xf32, #tpu.memory_space<vmem>>, vector<7x64xf32>,
    %428 = vector.extract_strided_slice %423 {offsets = [22, 0], sizes = [7, 64], strides = [1, 1]} : vector<77x64xf32> to vector<7x64xf32>
    %c16_383 = arith.constant 16 : index
    %c0_384 = arith.constant 0 : index
    %429 = vector.load %arg19[%c16_383, %c0_384] : memref<72x64xf32, #tpu.memory_space<vmem>>, vector<7x64xf32>
    tpu.vector_store %arg19[%c16_383, %c0_384], %428 {strides = array<i32>} : memref<72x64xf32, #tpu.memory_space<vmem>>, vector<7x64xf32>,
    %430 = vector.extract_strided_slice %423 {offsets = [33, 0], sizes = [7, 64], strides = [1, 1]} : vector<77x64xf32> to vector<7x64xf32>
    %c24_385 = arith.constant 24 : index
    %c0_386 = arith.constant 0 : index
    %431 = vector.load %arg19[%c24_385, %c0_386] : memref<72x64xf32, #tpu.memory_space<vmem>>, vector<7x64xf32>
    tpu.vector_store %arg19[%c24_385, %c0_386], %430 {strides = array<i32>} : memref<72x64xf32, #tpu.memory_space<vmem>>, vector<7x64xf32>,
    %432 = vector.extract_strided_slice %423 {offsets = [44, 0], sizes = [7, 64], strides = [1, 1]} : vector<77x64xf32> to vector<7x64xf32>
    %c32_387 = arith.constant 32 : index
    %c0_388 = arith.constant 0 : index
    %433 = vector.load %arg19[%c32_387, %c0_388] : memref<72x64xf32, #tpu.memory_space<vmem>>, vector<7x64xf32>
    tpu.vector_store %arg19[%c32_387, %c0_388], %432 {strides = array<i32>} : memref<72x64xf32, #tpu.memory_space<vmem>>, vector<7x64xf32>,
    %434 = vector.extract_strided_slice %423 {offsets = [55, 0], sizes = [7, 64], strides = [1, 1]} : vector<77x64xf32> to vector<7x64xf32>
    %c40 = arith.constant 40 : index
    %c0_389 = arith.constant 0 : index
    %435 = vector.load %arg19[%c40, %c0_389] : memref<72x64xf32, #tpu.memory_space<vmem>>, vector<7x64xf32>
    tpu.vector_store %arg19[%c40, %c0_389], %434 {strides = array<i32>} : memref<72x64xf32, #tpu.memory_space<vmem>>, vector<7x64xf32>,
    %436 = vector.extract_strided_slice %423 {offsets = [66, 0], sizes = [7, 64], strides = [1, 1]} : vector<77x64xf32> to vector<7x64xf32>
    %c48_390 = arith.constant 48 : index
    %c0_391 = arith.constant 0 : index
    %437 = vector.load %arg19[%c48_390, %c0_391] : memref<72x64xf32, #tpu.memory_space<vmem>>, vector<7x64xf32>
    tpu.vector_store %arg19[%c48_390, %c0_391], %436 {strides = array<i32>} : memref<72x64xf32, #tpu.memory_space<vmem>>, vector<7x64xf32>,
    %c0_392 = arith.constant 0 : index
    %c0_393 = arith.constant 0 : index
    %438 = vector.load %arg19[%c0_392, %c0_393] : memref<72x64xf32, #tpu.memory_space<vmem>>, vector<56x64xf32>
    %439 = arith.truncf %438 : vector<56x64xf32> to vector<56x64xbf16>
    %c0_394 = arith.constant 0 : index
    %c0_395 = arith.constant 0 : index
    %c0_396 = arith.constant 0 : index
    %440 = vector.load %arg10[%c0_394, %c0_395, %c0_396] : memref<4x64x128xbf16, #tpu.memory_space<vmem>>, vector<1x64x128xbf16>
    %441 = vector.shape_cast %440 : vector<1x64x128xbf16> to vector<64x128xbf16>
    %cst_397 = arith.constant dense<0.000000e+00> : vector<56x128xf32>
    %442 = tpu.matmul %439, %441, %cst_397 {dimension_numbers = #tpu.dot_dimension_numbers<[1], [0], [0], [1], [0, 0, 1, 1], [], []>} : vector<56x64xbf16>, vector<64x128xbf16>, vector<56x128xf32> -> vector<56x128xf32>
    %c1_398 = arith.constant 1 : index
    %c0_399 = arith.constant 0 : index
    %443 = vector.load %arg19[%c1_398, %c0_399] : memref<72x64xf32, #tpu.memory_space<vmem>>, vector<56x64xf32>
    %444 = arith.truncf %443 : vector<56x64xf32> to vector<56x64xbf16>
    %c1_400 = arith.constant 1 : index
    %c0_401 = arith.constant 0 : index
    %c0_402 = arith.constant 0 : index
    %445 = vector.load %arg10[%c1_400, %c0_401, %c0_402] : memref<4x64x128xbf16, #tpu.memory_space<vmem>>, vector<1x64x128xbf16>
    %446 = vector.shape_cast %445 : vector<1x64x128xbf16> to vector<64x128xbf16>
    %cst_403 = arith.constant dense<0.000000e+00> : vector<56x128xf32>
    %447 = tpu.matmul %444, %446, %cst_403 {dimension_numbers = #tpu.dot_dimension_numbers<[1], [0], [0], [1], [0, 0, 1, 1], [], []>} : vector<56x64xbf16>, vector<64x128xbf16>, vector<56x128xf32> -> vector<56x128xf32>
    %448 = arith.addf %442, %447 : vector<56x128xf32>
    %c8_404 = arith.constant 8 : index
    %c0_405 = arith.constant 0 : index
    %449 = vector.load %arg19[%c8_404, %c0_405] : memref<72x64xf32, #tpu.memory_space<vmem>>, vector<56x64xf32>
    %450 = arith.truncf %449 : vector<56x64xf32> to vector<56x64xbf16>
    %c2_406 = arith.constant 2 : index
    %c0_407 = arith.constant 0 : index
    %c0_408 = arith.constant 0 : index
    %451 = vector.load %arg10[%c2_406, %c0_407, %c0_408] : memref<4x64x128xbf16, #tpu.memory_space<vmem>>, vector<1x64x128xbf16>
    %452 = vector.shape_cast %451 : vector<1x64x128xbf16> to vector<64x128xbf16>
    %cst_409 = arith.constant dense<0.000000e+00> : vector<56x128xf32>
    %453 = tpu.matmul %450, %452, %cst_409 {dimension_numbers = #tpu.dot_dimension_numbers<[1], [0], [0], [1], [0, 0, 1, 1], [], []>} : vector<56x64xbf16>, vector<64x128xbf16>, vector<56x128xf32> -> vector<56x128xf32>
    %454 = arith.addf %448, %453 : vector<56x128xf32>
    %c9_410 = arith.constant 9 : index
    %c0_411 = arith.constant 0 : index
    %455 = vector.load %arg19[%c9_410, %c0_411] : memref<72x64xf32, #tpu.memory_space<vmem>>, vector<56x64xf32>
    %456 = arith.truncf %455 : vector<56x64xf32> to vector<56x64xbf16>
    %c3_412 = arith.constant 3 : index
    %c0_413 = arith.constant 0 : index
    %c0_414 = arith.constant 0 : index
    %457 = vector.load %arg10[%c3_412, %c0_413, %c0_414] : memref<4x64x128xbf16, #tpu.memory_space<vmem>>, vector<1x64x128xbf16>
    %458 = vector.shape_cast %457 : vector<1x64x128xbf16> to vector<64x128xbf16>
    %cst_415 = arith.constant dense<0.000000e+00> : vector<56x128xf32>
    %459 = tpu.matmul %456, %458, %cst_415 {dimension_numbers = #tpu.dot_dimension_numbers<[1], [0], [0], [1], [0, 0, 1, 1], [], []>} : vector<56x64xbf16>, vector<64x128xbf16>, vector<56x128xf32> -> vector<56x128xf32>
    %460 = arith.addf %454, %459 : vector<56x128xf32>
    %c0_416 = arith.constant 0 : index
    %c0_417 = arith.constant 0 : index
    %461 = vector.load %arg11[%c0_416, %c0_417] : memref<1x128xf32, #tpu.memory_space<vmem>>, vector<1x128xf32>
    %462 = vector.broadcast %461 : vector<1x128xf32> to vector<56x128xf32>
    %463 = arith.addf %460, %462 : vector<56x128xf32>
    %cst_418 = arith.constant 0.000000e+00 : f32
    %464 = vector.broadcast %cst_418 : f32 to vector<56x128xf32>
    %465 = arith.maximumf %463, %464 : vector<56x128xf32>
    %466 = vector.extract_strided_slice %465 {offsets = [0, 0], sizes = [7, 128], strides = [1, 1]} : vector<56x128xf32> to vector<7x128xf32>
    %c0_419 = arith.constant 0 : index
    %c0_420 = arith.constant 0 : index
    %467 = vector.load %arg20[%c0_419, %c0_420] : memref<72x128xf32, #tpu.memory_space<vmem>>, vector<7x128xf32>
    tpu.vector_store %arg20[%c0_419, %c0_420], %466 {strides = array<i32>} : memref<72x128xf32, #tpu.memory_space<vmem>>, vector<7x128xf32>,
    %468 = vector.extract_strided_slice %465 {offsets = [8, 0], sizes = [7, 128], strides = [1, 1]} : vector<56x128xf32> to vector<7x128xf32>
    %c8_421 = arith.constant 8 : index
    %c0_422 = arith.constant 0 : index
    %469 = vector.load %arg20[%c8_421, %c0_422] : memref<72x128xf32, #tpu.memory_space<vmem>>, vector<7x128xf32>
    tpu.vector_store %arg20[%c8_421, %c0_422], %468 {strides = array<i32>} : memref<72x128xf32, #tpu.memory_space<vmem>>, vector<7x128xf32>,
    %470 = vector.extract_strided_slice %465 {offsets = [16, 0], sizes = [7, 128], strides = [1, 1]} : vector<56x128xf32> to vector<7x128xf32>
    %c16_423 = arith.constant 16 : index
    %c0_424 = arith.constant 0 : index
    %471 = vector.load %arg20[%c16_423, %c0_424] : memref<72x128xf32, #tpu.memory_space<vmem>>, vector<7x128xf32>
    tpu.vector_store %arg20[%c16_423, %c0_424], %470 {strides = array<i32>} : memref<72x128xf32, #tpu.memory_space<vmem>>, vector<7x128xf32>,
    %472 = vector.extract_strided_slice %465 {offsets = [24, 0], sizes = [7, 128], strides = [1, 1]} : vector<56x128xf32> to vector<7x128xf32>
    %c24_425 = arith.constant 24 : index
    %c0_426 = arith.constant 0 : index
    %473 = vector.load %arg20[%c24_425, %c0_426] : memref<72x128xf32, #tpu.memory_space<vmem>>, vector<7x128xf32>
    tpu.vector_store %arg20[%c24_425, %c0_426], %472 {strides = array<i32>} : memref<72x128xf32, #tpu.memory_space<vmem>>, vector<7x128xf32>,
    %474 = vector.extract_strided_slice %465 {offsets = [32, 0], sizes = [7, 128], strides = [1, 1]} : vector<56x128xf32> to vector<7x128xf32>
    %c32_427 = arith.constant 32 : index
    %c0_428 = arith.constant 0 : index
    %475 = vector.load %arg20[%c32_427, %c0_428] : memref<72x128xf32, #tpu.memory_space<vmem>>, vector<7x128xf32>
    tpu.vector_store %arg20[%c32_427, %c0_428], %474 {strides = array<i32>} : memref<72x128xf32, #tpu.memory_space<vmem>>, vector<7x128xf32>,
    %476 = vector.extract_strided_slice %465 {offsets = [40, 0], sizes = [7, 128], strides = [1, 1]} : vector<56x128xf32> to vector<7x128xf32>
    %c40_429 = arith.constant 40 : index
    %c0_430 = arith.constant 0 : index
    %477 = vector.load %arg20[%c40_429, %c0_430] : memref<72x128xf32, #tpu.memory_space<vmem>>, vector<7x128xf32>
    tpu.vector_store %arg20[%c40_429, %c0_430], %476 {strides = array<i32>} : memref<72x128xf32, #tpu.memory_space<vmem>>, vector<7x128xf32>,
    %478 = vector.extract_strided_slice %465 {offsets = [48, 0], sizes = [7, 128], strides = [1, 1]} : vector<56x128xf32> to vector<7x128xf32>
    %c48_431 = arith.constant 48 : index
    %c0_432 = arith.constant 0 : index
    %479 = vector.load %arg20[%c48_431, %c0_432] : memref<72x128xf32, #tpu.memory_space<vmem>>, vector<7x128xf32>
    tpu.vector_store %arg20[%c48_431, %c0_432], %478 {strides = array<i32>} : memref<72x128xf32, #tpu.memory_space<vmem>>, vector<7x128xf32>,
    %c0_433 = arith.constant 0 : index
    %c0_434 = arith.constant 0 : index
    %480 = vector.load %arg20[%c0_433, %c0_434] : memref<72x128xf32, #tpu.memory_space<vmem>>, vector<56x128xf32>
    %481 = arith.truncf %480 : vector<56x128xf32> to vector<56x128xbf16>
    %c0_435 = arith.constant 0 : index
    %c0_436 = arith.constant 0 : index
    %c0_437 = arith.constant 0 : index
    %482 = vector.load %arg12[%c0_435, %c0_436, %c0_437] : memref<4x128x16xbf16, #tpu.memory_space<vmem>>, vector<1x128x16xbf16>
    %483 = vector.shape_cast %482 : vector<1x128x16xbf16> to vector<128x16xbf16>
    %cst_438 = arith.constant dense<0.000000e+00> : vector<56x16xf32>
    %484 = tpu.matmul %481, %483, %cst_438 {dimension_numbers = #tpu.dot_dimension_numbers<[1], [0], [0], [1], [0, 0, 1, 1], [], []>} : vector<56x128xbf16>, vector<128x16xbf16>, vector<56x16xf32> -> vector<56x16xf32>
    %c1_439 = arith.constant 1 : index
    %c0_440 = arith.constant 0 : index
    %485 = vector.load %arg20[%c1_439, %c0_440] : memref<72x128xf32, #tpu.memory_space<vmem>>, vector<56x128xf32>
    %486 = arith.truncf %485 : vector<56x128xf32> to vector<56x128xbf16>
    %c1_441 = arith.constant 1 : index
    %c0_442 = arith.constant 0 : index
    %c0_443 = arith.constant 0 : index
    %487 = vector.load %arg12[%c1_441, %c0_442, %c0_443] : memref<4x128x16xbf16, #tpu.memory_space<vmem>>, vector<1x128x16xbf16>
    %488 = vector.shape_cast %487 : vector<1x128x16xbf16> to vector<128x16xbf16>
    %cst_444 = arith.constant dense<0.000000e+00> : vector<56x16xf32>
    %489 = tpu.matmul %486, %488, %cst_444 {dimension_numbers = #tpu.dot_dimension_numbers<[1], [0], [0], [1], [0, 0, 1, 1], [], []>} : vector<56x128xbf16>, vector<128x16xbf16>, vector<56x16xf32> -> vector<56x16xf32>
    %490 = arith.addf %484, %489 : vector<56x16xf32>
    %c8_445 = arith.constant 8 : index
    %c0_446 = arith.constant 0 : index
    %491 = vector.load %arg20[%c8_445, %c0_446] : memref<72x128xf32, #tpu.memory_space<vmem>>, vector<56x128xf32>
    %492 = arith.truncf %491 : vector<56x128xf32> to vector<56x128xbf16>
    %c2_447 = arith.constant 2 : index
    %c0_448 = arith.constant 0 : index
    %c0_449 = arith.constant 0 : index
    %493 = vector.load %arg12[%c2_447, %c0_448, %c0_449] : memref<4x128x16xbf16, #tpu.memory_space<vmem>>, vector<1x128x16xbf16>
    %494 = vector.shape_cast %493 : vector<1x128x16xbf16> to vector<128x16xbf16>
    %cst_450 = arith.constant dense<0.000000e+00> : vector<56x16xf32>
    %495 = tpu.matmul %492, %494, %cst_450 {dimension_numbers = #tpu.dot_dimension_numbers<[1], [0], [0], [1], [0, 0, 1, 1], [], []>} : vector<56x128xbf16>, vector<128x16xbf16>, vector<56x16xf32> -> vector<56x16xf32>
    %496 = arith.addf %490, %495 : vector<56x16xf32>
    %c9_451 = arith.constant 9 : index
    %c0_452 = arith.constant 0 : index
    %497 = vector.load %arg20[%c9_451, %c0_452] : memref<72x128xf32, #tpu.memory_space<vmem>>, vector<56x128xf32>
    %498 = arith.truncf %497 : vector<56x128xf32> to vector<56x128xbf16>
    %c3_453 = arith.constant 3 : index
    %c0_454 = arith.constant 0 : index
    %c0_455 = arith.constant 0 : index
    %499 = vector.load %arg12[%c3_453, %c0_454, %c0_455] : memref<4x128x16xbf16, #tpu.memory_space<vmem>>, vector<1x128x16xbf16>
    %500 = vector.shape_cast %499 : vector<1x128x16xbf16> to vector<128x16xbf16>
    %cst_456 = arith.constant dense<0.000000e+00> : vector<56x16xf32>
    %501 = tpu.matmul %498, %500, %cst_456 {dimension_numbers = #tpu.dot_dimension_numbers<[1], [0], [0], [1], [0, 0, 1, 1], [], []>} : vector<56x128xbf16>, vector<128x16xbf16>, vector<56x16xf32> -> vector<56x16xf32>
    %502 = arith.addf %496, %501 : vector<56x16xf32>
    %c0_457 = arith.constant 0 : index
    %c0_458 = arith.constant 0 : index
    %503 = vector.load %arg13[%c0_457, %c0_458] : memref<1x16xf32, #tpu.memory_space<vmem>>, vector<1x16xf32>
    %504 = vector.broadcast %503 : vector<1x16xf32> to vector<56x16xf32>
    %505 = arith.addf %502, %504 : vector<56x16xf32>
    %506 = arith.negf %505 : vector<56x16xf32>
    %507 = math.exp %506 : vector<56x16xf32>
    %cst_459 = arith.constant 1.000000e+00 : f32
    %508 = vector.broadcast %cst_459 : f32 to vector<56x16xf32>
    %509 = arith.addf %508, %507 : vector<56x16xf32>
    %510 = arith.divf %508, %509 : vector<56x16xf32>
    %c0_460 = arith.constant 0 : index
    %c0_461 = arith.constant 0 : index
    %c0_462 = arith.constant 0 : index
    %511 = vector.load %arg14[%c0_460, %c0_461, %c0_462] : memref<1x56x16xf32, #tpu.memory_space<vmem>>, vector<1x56x16xf32>
    %512 = vector.shape_cast %511 : vector<1x56x16xf32> to vector<56x16xf32>
    %513 = vector.shape_cast %510 : vector<56x16xf32> to vector<1x56x16xf32>
    tpu.vector_store %arg14[%c0_460, %c0_461, %c0_462], %513 {strides = array<i32>} : memref<1x56x16xf32, #tpu.memory_space<vmem>>, vector<1x56x16xf32>,
    return
  }
  func.func @transform_0(%arg0: i32) -> (i32, i32, i32) {
    %c0_i32 = arith.constant 0 : i32
    %c0_i32_0 = arith.constant 0 : i32
    %c0_i32_1 = arith.constant 0 : i32
    return %arg0, %c0_i32, %c0_i32_0 : i32, i32, i32
  }
  func.func @transform_1(%arg0: i32) -> (i32, i32, i32) {
    %c0_i32 = arith.constant 0 : i32
    %c0_i32_0 = arith.constant 0 : i32
    %c0_i32_1 = arith.constant 0 : i32
    %c0_i32_2 = arith.constant 0 : i32
    return %c0_i32, %c0_i32_0, %c0_i32_1 : i32, i32, i32
  }
  func.func @transform_2(%arg0: i32) -> (i32, i32) {
    %c0_i32 = arith.constant 0 : i32
    %c0_i32_0 = arith.constant 0 : i32
    %c0_i32_1 = arith.constant 0 : i32
    return %c0_i32, %c0_i32_0 : i32, i32
  }
  func.func @transform_3(%arg0: i32) -> (i32, i32, i32) {
    %c0_i32 = arith.constant 0 : i32
    %c0_i32_0 = arith.constant 0 : i32
    %c0_i32_1 = arith.constant 0 : i32
    %c0_i32_2 = arith.constant 0 : i32
    return %c0_i32, %c0_i32_0, %c0_i32_1 : i32, i32, i32
  }
  func.func @transform_4(%arg0: i32) -> (i32, i32) {
    %c0_i32 = arith.constant 0 : i32
    %c0_i32_0 = arith.constant 0 : i32
    %c0_i32_1 = arith.constant 0 : i32
    return %c0_i32, %c0_i32_0 : i32, i32
  }
  func.func @transform_5(%arg0: i32) -> (i32, i32, i32) {
    %c0_i32 = arith.constant 0 : i32
    %c0_i32_0 = arith.constant 0 : i32
    %c0_i32_1 = arith.constant 0 : i32
    %c0_i32_2 = arith.constant 0 : i32
    return %c0_i32, %c0_i32_0, %c0_i32_1 : i32, i32, i32
  }
  func.func @transform_6(%arg0: i32) -> (i32, i32) {
    %c0_i32 = arith.constant 0 : i32
    %c0_i32_0 = arith.constant 0 : i32
    %c0_i32_1 = arith.constant 0 : i32
    return %c0_i32, %c0_i32_0 : i32, i32
  }
  func.func @transform_7(%arg0: i32) -> (i32, i32, i32) {
    %c0_i32 = arith.constant 0 : i32
    %c0_i32_0 = arith.constant 0 : i32
    %c0_i32_1 = arith.constant 0 : i32
    %c0_i32_2 = arith.constant 0 : i32
    return %c0_i32, %c0_i32_0, %c0_i32_1 : i32, i32, i32
  }
  func.func @transform_8(%arg0: i32) -> (i32, i32) {
    %c0_i32 = arith.constant 0 : i32
    %c0_i32_0 = arith.constant 0 : i32
    %c0_i32_1 = arith.constant 0 : i32
    return %c0_i32, %c0_i32_0 : i32, i32
  }
  func.func @transform_9(%arg0: i32) -> (i32, i32, i32) {
    %c0_i32 = arith.constant 0 : i32
    %c0_i32_0 = arith.constant 0 : i32
    %c0_i32_1 = arith.constant 0 : i32
    %c0_i32_2 = arith.constant 0 : i32
    return %c0_i32, %c0_i32_0, %c0_i32_1 : i32, i32, i32
  }
  func.func @transform_10(%arg0: i32) -> (i32, i32) {
    %c0_i32 = arith.constant 0 : i32
    %c0_i32_0 = arith.constant 0 : i32
    %c0_i32_1 = arith.constant 0 : i32
    return %c0_i32, %c0_i32_0 : i32, i32
  }
  func.func @transform_11(%arg0: i32) -> (i32, i32, i32) {
    %c0_i32 = arith.constant 0 : i32
    %c0_i32_0 = arith.constant 0 : i32
    %c0_i32_1 = arith.constant 0 : i32
    %c0_i32_2 = arith.constant 0 : i32
    return %c0_i32, %c0_i32_0, %c0_i32_1 : i32, i32, i32
  }
  func.func @transform_12(%arg0: i32) -> (i32, i32) {
    %c0_i32 = arith.constant 0 : i32
    %c0_i32_0 = arith.constant 0 : i32
    %c0_i32_1 = arith.constant 0 : i32
    return %c0_i32, %c0_i32_0 : i32, i32
  }
  func.func @transform_13(%arg0: i32) -> (i32, i32, i32) {
    %c0_i32 = arith.constant 0 : i32
    %c0_i32_0 = arith.constant 0 : i32
    %c0_i32_1 = arith.constant 0 : i32
    return %arg0, %c0_i32, %c0_i32_0 : i32, i32, i32
  }
}

</mosaic_0001>

<bundles_post_ra>
// kernel: _forward_impl.1
= control target key start
LH: loop header
LB: loop body
LE: loop exit
PB: predicated region body
PF: predicated region fallthrough
CT: control target
= control target key end

     0   :  { %s13081_s25 = smov 0   ;;  %s15670_s0 = inlined_call_operand.vmem [shape: f32[2,49,16], index: 0, kind: input, shape index: {}]   ;;  %s15671_s1 = inlined_call_operand.vmem [shape: bf16[4,16,128], index: 1, kind: input, shape index: {}]   ;;  %s15672_s2 = inlined_call_operand.vmem [shape: f32[1,128], index: 2, kind: input, shape index: {}]   ;;  %s15673_s3 = inlined_call_operand.vmem [shape: bf16[4,128,64], index: 3, kind: input, shape index: {}]   ;;  %s15674_s4 = inlined_call_operand.vmem [shape: f32[1,64], index: 4, kind: input, shape index: {}]   ;;  %s15675_s5 = inlined_call_operand.vmem [shape: bf16[25,64,128], index: 5, kind: input, shape index: {}]   ;;  %s15676_s6 = inlined_call_operand.vmem [shape: f32[1,128], index: 6, kind: input, shape index: {}]   ;;  %s15677_s7 = inlined_call_operand.vmem [shape: bf16[25,128,64], index: 7, kind: input, shape index: {}]   ;;  %s15678_s8 = inlined_call_operand.vmem [shape: f32[1,64], index: 8, kind: input, shape index: {}]   ;;  %s15679_s9 = inlined_call_operand.vmem [shape: bf16[4,64,128], index: 9, kind: input, shape index: {}]   ;;  %s15680_s10 = inlined_call_operand.vmem [shape: f32[1,128], index: 10, kind: input, shape index: {}]   ;;  %s15681_s11 = inlined_call_operand.vmem [shape: bf16[4,128,16], index: 11, kind: input, shape index: {}]   ;;  %s15682_s12 = inlined_call_operand.vmem [shape: f32[1,16], index: 12, kind: input, shape index: {}]   ;;  %s15683_s13 = inlined_call_operand.vmem [shape: f32[2,56,16], index: 13, kind: output, shape index: {}]  }
   0x1 LB: > { %s9263_s26 = sadd.s32 4294967295, %s13007_s25   ;;  %p9267_p0 = scmp.ge.s32.totalorder %s13007_s25, 1  ;;  %s13007_s25 = sphi %s13081_s25, %s23_s25  }
   0x2   : > { %p387_p1 = scmp.lt.s32.totalorder %s13007_s25, 3 }
   0x4   : > { %p388_p2 = pnand %p9267_p0, %p387_p1 }
   0x5   : > { %p431_p3 = scmp.lt.s32.totalorder (!%p388_p2), %s9263_s26, 1 }
   0x6   : > { %391 = sbr.rel (%p388_p2) target bundleno = 2161 (0x871), region = 72 }
   0xb   : > { %v12583_v0 = vld [vmem:[%s15671_s1 + $0x8] sm:$0xff]   ;;  %v12584_v1 = vld [vmem:[%s15671_s1] sm:$0xff]   ;;  %vm442_vm0 = vcmask 130048   ;;  %s15685_s26 = smov (!%p431_p3, %s9263_s26), 1  ;;  %vm511_vm1 = vcmask 129024   ;;  %v13009_v2 = vmov 0.0  }
   0xc   : > { %11076 = vmatprep.subr.bf16.mxu0 %v12583_v0  ;;  %11086 = vmatprep.subr.bf16.mxu1 %v12584_v1  ;;  %443 = vst.msk [vmem:[#allocation2] sm:$0xff] %vm442_vm0, %v13009_v2  ;;  %444 = vst.msk [vmem:[#allocation2 + $0x8] sm:$0xff] %vm442_vm0, %v13009_v2  ;;  %vm513_vm2 = vcmask 130055   ;;  %v12585_v3 = vld [vmem:[%s15671_s1 + $0x10] sm:$0xff]   ;;  %vm515_vm3 = vcmask 128000   ;;  %vm517_vm4 = vcmask 130054  }
   0xd   : > { %11077 = vmatpush3.bf16.msra.mxu0 %v12583_v0  ;;  %445 = vst.msk [vmem:[#allocation2 + $0x10] sm:$0xff] %vm442_vm0, %v13009_v2  ;;  %446 = vst.msk [vmem:[#allocation2 + $0x18] sm:$0xff] %vm442_vm0, %v13009_v2  ;;  %11087 = vmatpush3.bf16.msra.mxu1 %v12584_v1  ;;  %s12572_s16 = smul.u32 56, %s15685_s26  ;;  %v12586_v4 = vld [vmem:[%s15671_s1 + $0x18] sm:$0xff]   ;;  %vm519_vm5 = vcmask 126976   ;;  %vm521_vm6 = vcmask 130053  }
   0xe   : > { %447 = vst.msk [vmem:[#allocation2 + $0x20] sm:$0xff] %vm442_vm0, %v13009_v2  ;;  %448 = vst.msk [vmem:[#allocation2 + $0x28] sm:$0xff] %vm442_vm0, %v13009_v2  ;;  %11096 = vmatprep.subr.bf16.mxu0 %v12585_v3  ;;  %vm523_vm7 = vcmask 125952   ;;  %vm525_vm8 = vcmask 130052   ;;  %11106 = vmatprep.subr.bf16.mxu1 %v12586_v4  ;;  %vm527_vm9 = vcmask 124928   ;;  %vm529_vm10 = vcmask 130051  }
   0xf   : > { %449 = vst.msk [vmem:[#allocation2 + $0x30] sm:$0xff] %vm442_vm0, %v13009_v2  ;;  %450 = vst.msk [vmem:[#allocation2 + $0x38] sm:$0xff] %vm442_vm0, %v13009_v2  ;;  %s435_s21 = scalar_lea.vmem %s15670_s0, %s12572_s16  ;;  %vm531_vm11 = vcmask 123904   ;;  %vm533_vm12 = vcmask 130050   ;;  %vm535_vm13 = vcmask 122880   ;;  %v12587_v44 = vld [vmem:[%s15673_s3 + $0x78] sm:$0xff]   ;;  %s440_s28 = scalar_lea.vmem %s15683_s13, %s12572_s16 }
  0x10   : > { %451 = vst.msk [vmem:[#allocation2 + $0x40] sm:$0xff] %vm442_vm0, %v13009_v2  ;;  %452 = vst [vmem:[#allocation3] sm:$0xff] %v13009_v2  ;;  %v504_v5 = vld [vmem:[%s435_s21] sm:$0xff]  ;;  %v505_v6 = vld [vmem:[%s435_s21 + $0x8] sm:$0xff]  ;;  %vm461_vm14 = vcmask 523264   ;;  %vm1556_vm15 = vcmask 522240  }
  0x11   : > { %453 = vst [vmem:[#allocation3 + $0x8] sm:$0xff] %v13009_v2  ;;  %454 = vst [vmem:[#allocation3 + $0x10] sm:$0xff] %v13009_v2  ;;  %v506_v7 = vld [vmem:[%s435_s21 + $0x10] sm:$0xff]  ;;  %v507_v8 = vld [vmem:[%s435_s21 + $0x18] sm:$0xff] }
  0x12   : > { %455 = vst [vmem:[#allocation3 + $0x18] sm:$0xff] %v13009_v2  ;;  %456 = vst [vmem:[#allocation3 + $0x20] sm:$0xff] %v13009_v2  ;;  %v508_v9 = vld [vmem:[%s435_s21 + $0x20] sm:$0xff]  ;;  %v509_v10 = vld [vmem:[%s435_s21 + $0x28] sm:$0xff] }
  0x13   : > { %457 = vst [vmem:[#allocation3 + $0x28] sm:$0xff] %v13009_v2  ;;  %458 = vst [vmem:[#allocation3 + $0x30] sm:$0xff] %v13009_v2  ;;  %v510_v11 = vld [vmem:[%s435_s21 + $0x30] sm:$0x1]  ;;  %v550_v12 = vld [vmem:[#allocation2 + $0x1] sm:$0xff] }
  0x14   : > { %459 = vst [vmem:[#allocation3 + $0x38] sm:$0xff] %v13009_v2  ;;  %460 = vst [vmem:[#allocation3 + $0x40] sm:$0xff] %v13009_v2  ;;  %v537_v13 = vld [vmem:[#allocation2] sm:$0xff]  ;;  %v12588_v45 = vld [vmem:[%s15673_s3 + $0x38] sm:$0xff]  }
  0x15   : > { %469 = vst [vmem:[#allocation5] sm:$0xff] %v13009_v2  ;;  %470 = vst [vmem:[#allocation5 + $0x8] sm:$0xff] %v13009_v2  ;;  %v12589_v46 = vld [vmem:[%s15673_s3 + $0x70] sm:$0xff]   ;;  %v12591_v48 = vld [vmem:[%s15673_s3 + $0x68] sm:$0xff]  }
  0x16   : > { %471 = vst [vmem:[#allocation5 + $0x10] sm:$0xff] %v13009_v2  ;;  %472 = vst [vmem:[#allocation5 + $0x18] sm:$0xff] %v13009_v2  ;;  %v12590_v47 = vld [vmem:[%s15673_s3 + $0x30] sm:$0xff]   ;;  %v12592_v49 = vld [vmem:[%s15673_s3 + $0x28] sm:$0xff]  }
  0x17   : > { %473 = vst [vmem:[#allocation5 + $0x20] sm:$0xff] %v13009_v2  ;;  %474 = vst [vmem:[#allocation5 + $0x28] sm:$0xff] %v13009_v2  ;;  %v12593_v50 = vld [vmem:[%s15673_s3 + $0x60] sm:$0xff]   ;;  %v12595_v52 = vld [vmem:[%s15673_s3 + $0x58] sm:$0xff]  }
  0x18   : > { %475 = vst [vmem:[#allocation5 + $0x30] sm:$0xff] %v13009_v2  ;;  %476 = vst [vmem:[#allocation5 + $0x38] sm:$0xff] %v13009_v2  ;;  %v12594_v51 = vld [vmem:[%s15673_s3 + $0x20] sm:$0xff]   ;;  %v12596_v53 = vld [vmem:[%s15673_s3 + $0x18] sm:$0xff]  }
  0x19   : > { %477 = vst [vmem:[#allocation5 + $0x40] sm:$0xff] %v13009_v2  ;;  %478 = vst [vmem:[#allocation5 + $0x48] sm:$0xff] %v13009_v2  ;;  %v12597_v54 = vld [vmem:[%s15673_s3 + $0x50] sm:$0xff]   ;;  %v12599_v56 = vld [vmem:[%s15673_s3 + $0x48] sm:$0xff]  }
  0x1a   : > { %479 = vst [vmem:[#allocation5 + $0x50] sm:$0xff] %v13009_v2  ;;  %480 = vst [vmem:[#allocation5 + $0x58] sm:$0xff] %v13009_v2  ;;  %v12598_v55 = vld [vmem:[%s15673_s3 + $0x10] sm:$0xff]   ;;  %v12600_v57 = vld [vmem:[%s15673_s3 + $0x8] sm:$0xff]  }
  0x1b   : > { %481 = vst [vmem:[#allocation5 + $0x60] sm:$0xff] %v13009_v2  ;;  %482 = vst [vmem:[#allocation5 + $0x68] sm:$0xff] %v13009_v2  ;;  %v12601_v58 = vld [vmem:[%s15673_s3 + $0x40] sm:$0xff]   ;;  %v13198_v60 = vld [vmem:[%s15673_s3 + $0xb8] sm:$0xff]  }
  0x1c   : > { %483 = vst [vmem:[#allocation5 + $0x70] sm:$0xff] %v13009_v2  ;;  %484 = vst [vmem:[#allocation5 + $0x78] sm:$0xff] %v13009_v2  ;;  %v12602_v59 = vld [vmem:[%s15673_s3] sm:$0xff]   ;;  %v13203_v61 = vld [vmem:[%s15673_s3 + $0xf8] sm:$0xff]  }
  0x1d   : > { %495 = vst [vmem:[#allocation7] sm:$0xff] %v13009_v2  ;;  %496 = vst [vmem:[#allocation7 + $0x8] sm:$0xff] %v13009_v2 }
  0x1e   : > { %497 = vst [vmem:[#allocation7 + $0x10] sm:$0xff] %v13009_v2  ;;  %498 = vst [vmem:[#allocation7 + $0x18] sm:$0xff] %v13009_v2 }
  0x1f   : > { %499 = vst [vmem:[#allocation7 + $0x20] sm:$0xff] %v13009_v2  ;;  %500 = vst [vmem:[#allocation7 + $0x28] sm:$0xff] %v13009_v2 }
  0x20   : > { %501 = vst [vmem:[#allocation7 + $0x30] sm:$0xff] %v13009_v2  ;;  %502 = vst [vmem:[#allocation7 + $0x38] sm:$0xff] %v13009_v2 }
  0x21   : > { %503 = vst [vmem:[#allocation7 + $0x40] sm:$0xff] %v13009_v2  ;;  %512 = vst.msk [vmem:[#allocation2 + $0x9] sm:$0x7f] %vm511_vm1, %v504_v5  ;;  %vm13010_vm1 = vmmov 0  }
  0x22   : > { %514 = vst.msk [vmem:[#allocation2 + $0xa] sm:$0x80] %vm513_vm2, %v504_v5  ;;  %vm8029_vm2 = vcmask 523267  }
  0x23   : > { %516 = vst.msk [vmem:[#allocation2 + $0x12] sm:$0x3f] %vm515_vm3, %v505_v6  ;;  %vm8031_vm3 = vcmask 517120  }
  0x24   : > { %518 = vst.msk [vmem:[#allocation2 + $0x13] sm:$0xc0] %vm517_vm4, %v505_v6  ;;  %vm8033_vm4 = vcmask 523270  }
  0x25   : > { %520 = vst.msk [vmem:[#allocation2 + $0x1b] sm:$0x1f] %vm519_vm5, %v506_v7  ;;  %vm8035_vm5 = vcmask 520192  }
  0x26   : > { %522 = vst.msk [vmem:[#allocation2 + $0x1c] sm:$0xe0] %vm521_vm6, %v506_v7  ;;  %vm8037_vm6 = vcmask 523265  }
  0x27   : > { %524 = vst.msk [vmem:[#allocation2 + $0x24] sm:$0xf] %vm523_vm7, %v507_v8  ;;  %vm8039_vm7 = vcmask 523268  }
  0x28   : > { %526 = vst.msk [vmem:[#allocation2 + $0x25] sm:$0xf0] %vm525_vm8, %v507_v8  ;;  %v551_v14 = vld [vmem:[#allocation2 + $0x9] sm:$0xff]  ;;  %vm8041_vm8 = vcmask 518144  }
  0x29   : > { %528 = vst.msk [vmem:[#allocation2 + $0x2d] sm:$0x7] %vm527_vm9, %v508_v9  ;;  %v538_v15 = vld [vmem:[#allocation2 + $0x8] sm:$0xff]  ;;  %v557_v17 = vpack.c.bf16 %v551_v14, %v550_v12  ;;  %vm8043_vm9 = vcmask 523271  }
  0x2a   : > { %530 = vst.msk [vmem:[#allocation2 + $0x2e] sm:$0xf8] %vm529_vm10, %v508_v9  ;;  %v552_v16 = vld [vmem:[#allocation2 + $0x11] sm:$0xff]  ;;  %v544_v18 = vpack.c.bf16 %v538_v15, %v537_v13  ;;  %vm8045_vm10 = vcmask 521216  }
  0x2b   : > { %532 = vst.msk [vmem:[#allocation2 + $0x36] sm:$0x3] %vm531_vm11, %v509_v10  ;;  %v539_v20 = vld [vmem:[#allocation2 + $0x10] sm:$0xff]  ;;  %11078 = vmatprep.mubr.msk.bf16.mxu0 %vm442_vm0, %v557_v17  ;;  %v838_v35 = vpack.c.bf16 %v552_v16, %v551_v14  ;;  %v9296_v17 = vld [vmem:[%s15672_s2] ss:$0 sm:$0xff]  ;;  %vm8047_vm11 = vcmask 523266  }
  0x2c   : > { %534 = vst.msk [vmem:[#allocation2 + $0x37] sm:$0xfc] %vm533_vm12, %v509_v10  ;;  %v553_v19 = vld [vmem:[#allocation2 + $0x19] sm:$0xff]  ;;  %11088 = vmatprep.mubr.msk.bf16.mxu1 %vm442_vm0, %v544_v18  ;;  %v735_v34 = vpack.c.bf16 %v539_v20, %v538_v15  ;;  %vm8049_vm12 = vcmask 516096  }
  0x2d   : > { %536 = vst.msk [vmem:[#allocation2 + $0x3f] sm:$0x1] %vm535_vm13, %v510_v11  ;;  %v540_v21 = vld [vmem:[#allocation2 + $0x18] sm:$0xff]  ;;  %v558_v22 = vpack.c.bf16 %v553_v19, %v552_v16 }
  0x2e   : > { %v545_v23 = vpack.c.bf16 %v540_v21, %v539_v20  ;;  %v554_v24 = vld [vmem:[#allocation2 + $0x21] sm:$0xff] }
  0x2f   : > { %v541_v26 = vld [vmem:[#allocation2 + $0x20] sm:$0xff]  ;;  %11079 = vmatmul.mubr.msk.bf16.vlgmr.msra.gmra.mxu0 %vm442_vm0, %v558_v22  ;;  %v839_v37 = vpack.c.bf16 %v554_v24, %v553_v19 }
  0x30   : > { %v555_v25 = vld [vmem:[#allocation2 + $0x29] sm:$0xff]  ;;  %11089 = vmatmul.mubr.msk.bf16.vlgmr.msra.gmra.mxu1 %vm442_vm0, %v545_v23  ;;  %11097 = vmatpush3.bf16.msra.mxu0 %v12585_v3  ;;  %v736_v36 = vpack.c.bf16 %v541_v26, %v540_v21 }
  0x31   : > { %v559_v27 = vpack.c.bf16 %v555_v25, %v554_v24  ;;  %v542_v28 = vld [vmem:[#allocation2 + $0x28] sm:$0xff]  ;;  %11107 = vmatpush3.bf16.msra.mxu1 %v12586_v4  ;;  %11116 = vmatprep.subr.bf16.mxu0 %v12587_v44 }
  0x32   : > { %v546_v29 = vpack.c.bf16 %v542_v28, %v541_v26  ;;  %v556_v30 = vld [vmem:[#allocation2 + $0x31] sm:$0xff]  ;;  %11140 = vmatprep.subr.bf16.mxu1 %v12588_v45 }
  0x33   : > { %v543_v31 = vld [vmem:[#allocation2 + $0x30] sm:$0xff]  ;;  %11082 = vmatprep.mubr.msk.bf16.mxu0 %vm442_vm0, %v559_v27  ;;  %v560_v32 = vpack.c.bf16 %v556_v30, %v556_v30  ;;  %v840_v39 = vpack.c.bf16 %v556_v30, %v555_v25 }
  0x34   : > { %11092 = vmatprep.mubr.msk.bf16.mxu1 %vm442_vm0, %v546_v29  ;;  %v547_v33 = vpack.c.bf16 %v543_v31, %v543_v31  ;;  %v737_v38 = vpack.c.bf16 %v543_v31, %v542_v28  ;;  %v734_v40 = vld [vmem:[#allocation2 + $0x38] sm:$0xff] }
  0x35   : > { %v837_v41 = vld [vmem:[#allocation2 + $0x39] sm:$0xff]  ;;  %v738_v42 = vpack.c.bf16 %v734_v40, %v734_v40 }
  0x36   : > { %v841_v43 = vpack.c.bf16 %v837_v41, %v837_v41 }
  0x37   : > { %11083 = vmatmul.mubr.msk.bf16.gmra.mxu0 %vm442_vm0, %v560_v32 }
  0x38   : > { %11093 = vmatmul.mubr.msk.bf16.gmra.mxu1 %vm442_vm0, %v547_v33  ;;  %11098 = vmatprep.mubr.msk.bf16.mxu0 %vm442_vm0, %v735_v34 }
  0x39   : > { %11108 = vmatprep.mubr.msk.bf16.mxu1 %vm442_vm0, %v838_v35 }
  0x3f   : > { %11099 = vmatmul.mubr.msk.bf16.vlgmr.msra.gmra.mxu0 %vm442_vm0, %v736_v36 }
  0x40   : > { %11109 = vmatmul.mubr.msk.bf16.vlgmr.msra.gmra.mxu1 %vm442_vm0, %v839_v37  ;;  %11102 = vmatprep.mubr.msk.bf16.mxu0 %vm442_vm0, %v737_v38 }
  0x41   : > { %11112 = vmatprep.mubr.msk.bf16.mxu1 %vm442_vm0, %v840_v39  ;;  %11117 = vmatpush3.bf16.msra.mxu0 %v12587_v44 }
  0x42   : > { %11141 = vmatpush3.bf16.msra.mxu1 %v12588_v45  ;;  %11118 = vmatprep.subr.bf16.mxu0 %v12589_v46 }
  0x43   : > { %11142 = vmatprep.subr.bf16.mxu1 %v12590_v47 }
  0x45   : > { %11119 = vmatpush3.bf16.msra.mxu0 %v12589_v46 }
  0x46   : > { %11143 = vmatpush3.bf16.msra.mxu1 %v12590_v47  ;;  %11120 = vmatprep.subr.bf16.mxu0 %v12591_v48 }
  0x47   : > { %11103 = vmatmul.mubr.msk.bf16.gmra.mxu0 %vm442_vm0, %v738_v42  ;;  %11144 = vmatprep.subr.bf16.mxu1 %v12592_v49 }
  0x48   : > { %11113 = vmatmul.mubr.msk.bf16.gmra.mxu1 %vm442_vm0, %v841_v43 }
  0x49   : > { %11121 = vmatpush3.bf16.msra.mxu0 %v12591_v48 }
  0x4a   : > { %11145 = vmatpush3.bf16.msra.mxu1 %v12592_v49  ;;  %11122 = vmatprep.subr.bf16.mxu0 %v12593_v50 }
  0x4b   : > { %11146 = vmatprep.subr.bf16.mxu1 %v12594_v51 }
  0x4d   : > { %11123 = vmatpush3.bf16.msra.mxu0 %v12593_v50 }
  0x4e   : > { %11147 = vmatpush3.bf16.msra.mxu1 %v12594_v51  ;;  %11124 = vmatprep.subr.bf16.mxu0 %v12595_v52 }
  0x4f   : > { %11148 = vmatprep.subr.bf16.mxu1 %v12596_v53 }
  0x51   : > { %11125 = vmatpush3.bf16.msra.mxu0 %v12595_v52 }
  0x52   : > { %11149 = vmatpush3.bf16.msra.mxu1 %v12596_v53  ;;  %11126 = vmatprep.subr.bf16.mxu0 %v12597_v54 }
  0x53   : > { %11150 = vmatprep.subr.bf16.mxu1 %v12598_v55 }
  0x55   : > { %11127 = vmatpush3.bf16.msra.mxu0 %v12597_v54 }
  0x56   : > { %11151 = vmatpush3.bf16.msra.mxu1 %v12598_v55  ;;  %11128 = vmatprep.subr.bf16.mxu0 %v12599_v56 }
  0x57   : > { %11152 = vmatprep.subr.bf16.mxu1 %v12600_v57 }
  0x59   : > { %11129 = vmatpush3.bf16.msra.mxu0 %v12599_v56 }
  0x5a   : > { %11153 = vmatpush3.bf16.msra.mxu1 %v12600_v57  ;;  %11130 = vmatprep.subr.bf16.mxu0 %v12601_v58 }
  0x5b   : > { %11154 = vmatprep.subr.bf16.mxu1 %v12602_v59 }
  0x5d   : > { %11131 = vmatpush3.bf16.msra.mxu0 %v12601_v58 }
  0x5e   : > { %11155 = vmatpush3.bf16.msra.mxu1 %v12602_v59  ;;  %11164 = vmatprep.subr.bf16.mxu0 %v13198_v60 }
  0x5f   : > { %11188 = vmatprep.subr.bf16.mxu1 %v13203_v61 }
  0xef   : > { %v11080_v62 = vpop.f32.mrf.mxu0 }
  0xf0   : > { %v11090_v63 = vpop.f32.mrf.mxu1 }
  0xf1   : > { %v616_v0 = vpop.f32.mrf.mxu0  ;;  %v707_v14 = vadd.f32 %v11090_v63, %v11080_v62 }
  0xf2   : > { %v698_v1 = vpop.f32.mrf.mxu1 }
  0xf3   : > { %v11081_v2 = vpop.f32.mrf.mxu0  ;;  %v699_v18 = vadd.f32 %v698_v1, %v616_v0  ;;  %v989_v0 = vld [vmem:[#allocation3 + $0x1] sm:$0xff] }
  0xf4   : > { %v11091_v3 = vpop.f32.mrf.mxu1 }
  0xf5   : > { %v619_v4 = vpop.f32.mrf.mxu0  ;;  %v710_v22 = vadd.f32 %v11091_v3, %v11081_v2 }
  0xf6   : > { %v701_v5 = vpop.f32.mrf.mxu1 }
  0xf7   : > { %v11084_v6 = vpop.f32.mrf.mxu0  ;;  %v702_v27 = vadd.f32 %v701_v5, %v619_v4 }
  0xf8   : > { %v11094_v7 = vpop.f32.mrf.mxu1 }
  0xf9   : > { %v632_v8 = vpop.f32.mrf.mxu0  ;;  %v723_v31 = vadd.f32 %v11094_v7, %v11084_v6  ;;  %v13210_v7 = vld [vmem:[#allocation3] sm:$0xff] }
  0xfa   : > { %v714_v9 = vpop.f32.mrf.mxu1  ;;  %463 = vst.msk [vmem:[#allocation4 + $0x8] sm:$0xff] %vm461_vm14, %v13210_v7  ;;  %464 = vst.msk [vmem:[#allocation4 + $0x10] sm:$0xff] %vm461_vm14, %v13210_v7 }
  0xfb   : > { %v11085_v10 = vpop.f32.mrf.mxu0  ;;  %v715_v38 = vadd.f32 %v714_v9, %v632_v8  ;;  %462 = vst.msk [vmem:[#allocation4] sm:$0xff] %vm461_vm14, %v13210_v7  ;;  %465 = vst.msk [vmem:[#allocation4 + $0x18] sm:$0xff] %vm461_vm14, %v13210_v7 }
  0xfc   : > { %v11095_v11 = vpop.f32.mrf.mxu1  ;;  %466 = vst.msk [vmem:[#allocation4 + $0x20] sm:$0xff] %vm461_vm14, %v13210_v7  ;;  %467 = vst.msk [vmem:[#allocation4 + $0x28] sm:$0xff] %vm461_vm14, %v13210_v7 }
  0xfd   : > { %v635_v12 = vpop.f32.mrf.mxu0  ;;  %468 = vst.msk [vmem:[#allocation4 + $0x30] sm:$0xff] %vm461_vm14, %v13210_v7  ;;  %486 = vst.msk [vmem:[#allocation6] sm:$0xff] %vm461_vm14, %v13210_v7 }
  0xfe   : > { %v717_v13 = vpop.f32.mrf.mxu1  ;;  %487 = vst.msk [vmem:[#allocation6 + $0x8] sm:$0xff] %vm461_vm14, %v13210_v7  ;;  %488 = vst.msk [vmem:[#allocation6 + $0x10] sm:$0xff] %vm461_vm14, %v13210_v7 }
  0xff   : > { %v11100_v15 = vpop.f32.mrf.mxu0  ;;  %v718_v53 = vadd.f32 %v717_v13, %v635_v12  ;;  %v12605_v12 = vld [vmem:[%s15673_s3 + $0xb0] sm:$0xff]   ;;  %489 = vst.msk [vmem:[#allocation6 + $0x18] sm:$0xff] %vm461_vm14, %v13210_v7  ;;  %490 = vst.msk [vmem:[#allocation6 + $0x20] sm:$0xff] %vm461_vm14, %v13210_v7 }
 0x100   : > { %v11110_v16 = vpop.f32.mrf.mxu1  ;;  %v826_v19 = vadd.f32 %v11100_v15, %v707_v14  ;;  %v12606_v13 = vld [vmem:[%s15673_s3 + $0xf0] sm:$0xff]   ;;  %491 = vst.msk [vmem:[#allocation6 + $0x28] sm:$0xff] %vm461_vm14, %v13210_v7  ;;  %492 = vst.msk [vmem:[#allocation6 + $0x30] sm:$0xff] %vm461_vm14, %v13210_v7 }
 0x101   : > { %v794_v20 = vpop.f32.mrf.mxu0  ;;  %493 = vst.msk [vmem:[#allocation6 + $0x38] sm:$0xff] %vm461_vm14, %v13210_v7  ;;  %494 = vst.msk [vmem:[#allocation6 + $0x40] sm:$0xff] %vm461_vm14, %v13210_v7 }
 0x102   : > { %v897_v21 = vpop.f32.mrf.mxu1  ;;  %v929_v23 = vadd.f32 %v11110_v16, %v826_v19  ;;  %v824_v24 = vadd.f32 %v794_v20, %v699_v18  ;;  %v12607_v20 = vld [vmem:[%s15673_s3 + $0xa8] sm:$0xff]  }
 0x103   : > { %v11101_v25 = vpop.f32.mrf.mxu0 }
 0x104   : > { %v11111_v26 = vpop.f32.mrf.mxu1  ;;  %v943_v28 = vadd.f32 %v9296_v17, %v929_v23  ;;  %v927_v29 = vadd.f32 %v897_v21, %v824_v24  ;;  %v827_v30 = vadd.f32 %v11101_v25, %v710_v22  ;;  %v12608_v21 = vld [vmem:[%s15673_s3 + $0xe8] sm:$0xff]  }
 0x105   : > { %v797_v32 = vpop.f32.mrf.mxu0 }
 0x106   : > { %v900_v33 = vpop.f32.mrf.mxu1  ;;  %v950_v34 = vmax.f32 %v943_v28, 0.0  ;;  %v941_v35 = vadd.f32 %v9296_v17, %v927_v29  ;;  %v930_v36 = vadd.f32 %v11111_v26, %v827_v30  ;;  %v825_v37 = vadd.f32 %v797_v32, %v702_v27  ;;  %v12611_v32 = vld [vmem:[%s15673_s3 + $0x98] sm:$0xff]  }
 0x107   : > { %v11104_v39 = vpop.f32.mrf.mxu0 }
 0x108   : > { %v11114_v40 = vpop.f32.mrf.mxu1  ;;  %957 = vst [vmem:[#allocation3 + $0x19] sm:$0x7f] %v950_v34  ;;  %v948_v41 = vmax.f32 %v941_v35, 0.0  ;;  %v944_v42 = vadd.f32 %v9296_v17, %v930_v36  ;;  %v928_v43 = vadd.f32 %v900_v33, %v825_v37  ;;  %v830_v44 = vadd.f32 %v11104_v39, %v723_v31  ;;  %v12612_v33 = vld [vmem:[%s15673_s3 + $0xd8] sm:$0xff]   ;;  %v12613_v34 = vld [vmem:[%s15673_s3 + $0x90] sm:$0xff]   ;;  %v12615_v36 = vld [vmem:[%s15673_s3 + $0x88] sm:$0xff]  }
 0x109   : > { %v810_v45 = vpop.f32.mrf.mxu0  ;;  %v12614_v35 = vld [vmem:[%s15673_s3 + $0xd0] sm:$0xff]   ;;  %v12616_v37 = vld [vmem:[%s15673_s3 + $0xc8] sm:$0xff]   ;;  %v12618_v39 = vld [vmem:[%s15673_s3 + $0xc0] sm:$0xff]  }
 0x10a   : > { %v913_v46 = vpop.f32.mrf.mxu1  ;;  %955 = vst [vmem:[#allocation3 + $0x9] sm:$0x7f] %v948_v41  ;;  %v951_v47 = vmax.f32 %v944_v42, 0.0  ;;  %v942_v48 = vadd.f32 %v9296_v17, %v928_v43  ;;  %v828_v49 = vadd.f32 %v810_v45, %v715_v38  ;;  %v933_v50 = vadd.f32 %v11114_v40, %v830_v44  ;;  %v12617_v38 = vld [vmem:[%s15673_s3 + $0x80] sm:$0xff]  }
 0x10b   : > { %v11105_v51 = vpop.f32.mrf.mxu0 }
 0x10c   : > { %v11115_v52 = vpop.f32.mrf.mxu1  ;;  %958 = vst [vmem:[#allocation3 + $0x21] sm:$0x7f] %v951_v47  ;;  %v949_v54 = vmax.f32 %v942_v48, 0.0  ;;  %v947_v55 = vadd.f32 %v9296_v17, %v933_v50  ;;  %v931_v56 = vadd.f32 %v913_v46, %v828_v49  ;;  %v12619_v48 = vld [vmem:[%s15675_s5 + $0x38] sm:$0xff]   ;;  %v12621_v50 = vld [vmem:[%s15675_s5 + $0x30] sm:$0xff]  }
 0x10d   : > { %v813_v57 = vpop.f32.mrf.mxu0  ;;  %v12620_v49 = vld [vmem:[%s15675_s5 + $0x18] sm:$0xff]   ;;  %v12622_v51 = vld [vmem:[%s15675_s5 + $0x10] sm:$0xff]   ;;  %v12623_v52 = vld [vmem:[%s15675_s5 + $0x28] sm:$0xff]  }
 0x10e   : > { %v916_v58 = vpop.f32.mrf.mxu1  ;;  %956 = vst [vmem:[#allocation3 + $0x11] sm:$0x7f] %v949_v54  ;;  %v954_v59 = vmax.f32 %v947_v55, 0.0  ;;  %v945_v62 = vadd.f32 %v9296_v17, %v931_v56  ;;  %v829_v63 = vadd.f32 %v813_v57, %v718_v53  ;;  %v12624_v53 = vld [vmem:[%s15675_s5 + $0x8] sm:$0xff]   ;;  %v12625_v54 = vld [vmem:[%s15675_s5 + $0x20] sm:$0xff]   ;;  %v13332_v56 = vld [vmem:[%s15675_s5 + $0x58] sm:$0xff]  }
 0x10f   : > { %v13213_v9 = vld [vmem:[#allocation3 + $0x19] sm:$0xff]  ;;  %v13337_v57 = vld [vmem:[%s15675_s5 + $0x78] sm:$0xff]  }
 0x110   : > { %961 = vst [vmem:[#allocation3 + $0x39] sm:$0x7f] %v954_v59  ;;  %v952_v1 = vmax.f32 %v945_v62, 0.0  ;;  %v932_v2 = vadd.f32 %v916_v58, %v829_v63  ;;  %v13215_v11 = vld [vmem:[#allocation3 + $0x18] sm:$0xff] }
 0x111   : > { %v990_v3 = vld [vmem:[#allocation3 + $0x9] sm:$0xff]  ;;  %v12626_v55 = vld [vmem:[%s15675_s5] sm:$0xff]  }
 0x112   : > { %v963_v4 = vld [vmem:[#allocation3 + $0x8] sm:$0xff]  ;;  %959 = vst [vmem:[#allocation3 + $0x29] sm:$0x7f] %v952_v1  ;;  %v946_v5 = vadd.f32 %v9296_v17, %v932_v2  ;;  %v996_v6 = vpack.c.bf16 %v990_v3, %v989_v0 }
 0x113   : > { %v969_v8 = vpack.c.bf16 %v963_v4, %v13210_v7  ;;  %v13225_v18 = vld [vmem:[#allocation3 + $0x21] sm:$0xff] }
 0x114   : > { %v953_v10 = vmax.f32 %v946_v5, 0.0  ;;  %11132 = vmatprep.mubr.bf16.mxu0 %v996_v6  ;;  %v13227_v19 = vld [vmem:[#allocation3 + $0x20] sm:$0xff]  ;;  %v1396_v41 = vpack.c.bf16 %v13225_v18, %v13213_v9 }
 0x115   : > { %11156 = vmatprep.mubr.bf16.mxu1 %v969_v8  ;;  %v991_v14 = vld [vmem:[#allocation3 + $0x11] sm:$0xff]  ;;  %v1249_v40 = vpack.c.bf16 %v13227_v19, %v13215_v11 }
 0x116   : > { %v964_v15 = vld [vmem:[#allocation3 + $0x10] sm:$0xff]  ;;  %960 = vst [vmem:[#allocation3 + $0x31] sm:$0x7f] %v953_v10  ;;  %v997_v16 = vpack.c.bf16 %v13213_v9, %v991_v14  ;;  %v1395_v31 = vpack.c.bf16 %v991_v14, %v990_v3 }
 0x117   : > { %v970_v17 = vpack.c.bf16 %v13215_v11, %v964_v15  ;;  %v1248_v30 = vpack.c.bf16 %v964_v15, %v963_v4  ;;  %v1247_v44 = vld [vmem:[#allocation3 + $0x38] sm:$0xff] }
 0x118   : > { %11133 = vmatmul.mubr.bf16.vlgmr.msra.gmra.mxu0 %v997_v16  ;;  %v1394_v45 = vld [vmem:[#allocation3 + $0x39] sm:$0xff]  ;;  %v1251_v46 = vpack.c.bf16 %v1247_v44, %v1247_v44 }
 0x119   : > { %11157 = vmatmul.mubr.bf16.vlgmr.msra.gmra.mxu1 %v970_v17  ;;  %11165 = vmatpush3.bf16.msra.mxu0 %v13198_v60  ;;  %v994_v22 = vld [vmem:[#allocation3 + $0x29] sm:$0xff]  ;;  %v12609_v60 = vld [vmem:[%s15673_s3 + $0xa0] sm:$0xff]   ;;  %v1398_v47 = vpack.c.bf16 %v1394_v45, %v1394_v45 }
 0x11a   : > { %11189 = vmatpush3.bf16.msra.mxu1 %v13203_v61  ;;  %v967_v23 = vld [vmem:[#allocation3 + $0x28] sm:$0xff]  ;;  %11166 = vmatprep.subr.bf16.mxu0 %v12605_v12  ;;  %v998_v24 = vpack.c.bf16 %v994_v22, %v13225_v18  ;;  %v12610_v61 = vld [vmem:[%s15673_s3 + $0xe0] sm:$0xff]  }
 0x11b   : > { %11190 = vmatprep.subr.bf16.mxu1 %v12606_v13  ;;  %v971_v25 = vpack.c.bf16 %v967_v23, %v13227_v19  ;;  %v9377_v17 = vld [vmem:[%s15674_s4] ss:$0 sm:$0xff] }
 0x11c   : > { %11136 = vmatprep.mubr.bf16.mxu0 %v998_v24 }
 0x11d   : > { %11160 = vmatprep.mubr.bf16.mxu1 %v971_v25  ;;  %11167 = vmatpush3.bf16.msra.mxu0 %v12605_v12  ;;  %v995_v26 = vld [vmem:[#allocation3 + $0x31] sm:$0xff] }
 0x11e   : > { %11191 = vmatpush3.bf16.msra.mxu1 %v12606_v13  ;;  %v968_v27 = vld [vmem:[#allocation3 + $0x30] sm:$0xff]  ;;  %11168 = vmatprep.subr.bf16.mxu0 %v12607_v20  ;;  %v999_v28 = vpack.c.bf16 %v995_v26, %v995_v26  ;;  %v1397_v43 = vpack.c.bf16 %v995_v26, %v994_v22 }
 0x11f   : > { %11192 = vmatprep.subr.bf16.mxu1 %v12608_v21  ;;  %v972_v29 = vpack.c.bf16 %v968_v27, %v968_v27  ;;  %v1250_v42 = vpack.c.bf16 %v968_v27, %v967_v23 }
 0x120   : > { %11137 = vmatmul.mubr.bf16.gmra.mxu0 %v999_v28 }
 0x121   : > { %11161 = vmatmul.mubr.bf16.gmra.mxu1 %v972_v29  ;;  %11169 = vmatpush3.bf16.msra.mxu0 %v12607_v20 }
 0x122   : > { %11193 = vmatpush3.bf16.msra.mxu1 %v12608_v21  ;;  %11180 = vmatprep.mubr.bf16.mxu0 %v1248_v30 }
 0x123   : > { %11204 = vmatprep.mubr.bf16.mxu1 %v1395_v31  ;;  %11170 = vmatprep.subr.bf16.mxu0 %v12609_v60 }
 0x124   : > { %11194 = vmatprep.subr.bf16.mxu1 %v12610_v61 }
 0x125   : > { %11171 = vmatpush3.bf16.msra.mxu0 %v12609_v60 }
 0x126   : > { %11195 = vmatpush3.bf16.msra.mxu1 %v12610_v61  ;;  %11172 = vmatprep.subr.bf16.mxu0 %v12611_v32 }
 0x127   : > { %11196 = vmatprep.subr.bf16.mxu1 %v12612_v33 }
 0x129   : > { %11173 = vmatpush3.bf16.msra.mxu0 %v12611_v32 }
 0x12a   : > { %11197 = vmatpush3.bf16.msra.mxu1 %v12612_v33  ;;  %11174 = vmatprep.subr.bf16.mxu0 %v12613_v34 }
 0x12b   : > { %11198 = vmatprep.subr.bf16.mxu1 %v12614_v35 }
 0x12d   : > { %11175 = vmatpush3.bf16.msra.mxu0 %v12613_v34 }
 0x12e   : > { %11199 = vmatpush3.bf16.msra.mxu1 %v12614_v35  ;;  %11176 = vmatprep.subr.bf16.mxu0 %v12615_v36 }
 0x12f   : > { %11200 = vmatprep.subr.bf16.mxu1 %v12616_v37 }
 0x131   : > { %11177 = vmatpush3.bf16.msra.mxu0 %v12615_v36 }
 0x132   : > { %11201 = vmatpush3.bf16.msra.mxu1 %v12616_v37  ;;  %11178 = vmatprep.subr.bf16.mxu0 %v12617_v38 }
 0x133   : > { %11202 = vmatprep.subr.bf16.mxu1 %v12618_v39 }
 0x135   : > { %11179 = vmatpush3.bf16.msra.mxu0 %v12617_v38 }
 0x136   : > { %11203 = vmatpush3.bf16.msra.mxu1 %v12618_v39  ;;  %11212 = vmatprep.subr.bf16.mxu0 %v12619_v48 }
 0x137   : > { %11224 = vmatprep.subr.bf16.mxu1 %v12620_v49 }
 0x138   : > { %11181 = vmatmul.mubr.bf16.vlgmr.msra.gmra.mxu0 %v1249_v40 }
 0x139   : > { %11205 = vmatmul.mubr.bf16.vlgmr.msra.gmra.mxu1 %v1396_v41  ;;  %11184 = vmatprep.mubr.bf16.mxu0 %v1250_v42 }
 0x13a   : > { %11208 = vmatprep.mubr.bf16.mxu1 %v1397_v43  ;;  %11213 = vmatpush3.bf16.msra.mxu0 %v12619_v48 }
 0x13b   : > { %11225 = vmatpush3.bf16.msra.mxu1 %v12620_v49  ;;  %11214 = vmatprep.subr.bf16.mxu0 %v12621_v50 }
 0x13c   : > { %11226 = vmatprep.subr.bf16.mxu1 %v12622_v51 }
 0x13e   : > { %11215 = vmatpush3.bf16.msra.mxu0 %v12621_v50 }
 0x13f   : > { %11227 = vmatpush3.bf16.msra.mxu1 %v12622_v51  ;;  %11216 = vmatprep.subr.bf16.mxu0 %v12623_v52 }
 0x140   : > { %11185 = vmatmul.mubr.bf16.gmra.mxu0 %v1251_v46  ;;  %11228 = vmatprep.subr.bf16.mxu1 %v12624_v53 }
 0x141   : > { %11209 = vmatmul.mubr.bf16.gmra.mxu1 %v1398_v47 }
 0x142   : > { %11217 = vmatpush3.bf16.msra.mxu0 %v12623_v52 }
 0x143   : > { %11229 = vmatpush3.bf16.msra.mxu1 %v12624_v53  ;;  %11218 = vmatprep.subr.bf16.mxu0 %v12625_v54 }
 0x144   : > { %11230 = vmatprep.subr.bf16.mxu1 %v12626_v55 }
 0x146   : > { %11219 = vmatpush3.bf16.msra.mxu0 %v12625_v54 }
 0x147   : > { %11231 = vmatpush3.bf16.msra.mxu1 %v12626_v55  ;;  %11236 = vmatprep.subr.bf16.mxu0 %v13332_v56 }
 0x148   : > { %11248 = vmatprep.subr.bf16.mxu1 %v13337_v57 }
 0x1d8   : > { %v11134_v58 = vpop.f32.mrf.mxu0 }
 0x1d9   : > { %v11158_v59 = vpop.f32.mrf.mxu1 }
 0x1da   : > { %v1099_v62 = vpop.f32.mrf.mxu0  ;;  %v1220_v12 = vadd.f32 %v11158_v59, %v11134_v58 }
 0x1db   : > { %v1211_v63 = vpop.f32.mrf.mxu1 }
 0x1dc   : > { %v11135_v0 = vpop.f32.mrf.mxu0  ;;  %v1212_v15 = vadd.f32 %v1211_v63, %v1099_v62 }
 0x1dd   : > { %v11159_v1 = vpop.f32.mrf.mxu1 }
 0x1de   : > { %v1102_v2 = vpop.f32.mrf.mxu0  ;;  %v1223_v20 = vadd.f32 %v11159_v1, %v11135_v0 }
 0x1df   : > { %v1214_v3 = vpop.f32.mrf.mxu1 }
 0x1e0   : > { %v11138_v4 = vpop.f32.mrf.mxu0  ;;  %v1215_v25 = vadd.f32 %v1214_v3, %v1102_v2 }
 0x1e1   : > { %v11162_v5 = vpop.f32.mrf.mxu1 }
 0x1e2   : > { %v1115_v6 = vpop.f32.mrf.mxu0  ;;  %v1236_v61 = vadd.f32 %v11162_v5, %v11138_v4 }
 0x1e3   : > { %v1227_v7 = vpop.f32.mrf.mxu1 }
 0x1e4   : > { %v11139_v8 = vpop.f32.mrf.mxu0  ;;  %v1228_v34 = vadd.f32 %v1227_v7, %v1115_v6 }
 0x1e5   : > { %v11163_v9 = vpop.f32.mrf.mxu1 }
 0x1e6   : > { %v1118_v10 = vpop.f32.mrf.mxu0 }
 0x1e7   : > { %v1230_v11 = vpop.f32.mrf.mxu1 }
 0x1e8   : > { %v1231_v49 = vadd.f32 %v1230_v11, %v1118_v10 }
 0x1f8   : > { %v11182_v13 = vpop.f32.mrf.mxu0 }
 0x1f9   : > { %v11206_v14 = vpop.f32.mrf.mxu1  ;;  %v1383_v16 = vadd.f32 %v11182_v13, %v1220_v12 }
 0x1fa   : > { %v1351_v18 = vpop.f32.mrf.mxu0 }
 0x1fb   : > { %v1498_v19 = vpop.f32.mrf.mxu1  ;;  %v1530_v21 = vadd.f32 %v11206_v14, %v1383_v16  ;;  %v1381_v22 = vadd.f32 %v1351_v18, %v1212_v15  ;;  %v12629_v16 = vld [vmem:[%s15675_s5 + $0x50] sm:$0xff]  }
 0x1fc   : > { %v11183_v23 = vpop.f32.mrf.mxu0  ;;  %v12630_v18 = vld [vmem:[%s15675_s5 + $0x70] sm:$0xff]  }
 0x1fd   : > { %v11207_v24 = vpop.f32.mrf.mxu1  ;;  %v1544_v26 = vadd.f32 %v9377_v17, %v1530_v21  ;;  %v1528_v27 = vadd.f32 %v1498_v19, %v1381_v22  ;;  %v1384_v60 = vadd.f32 %v11183_v23, %v1223_v20  ;;  %v12631_v20 = vld [vmem:[%s15675_s5 + $0x48] sm:$0xff]   ;;  %v12635_v22 = vld [vmem:[%s15675_s5 + $0x98] sm:$0xff]  }
 0x1fe   : > { %v1354_v28 = vpop.f32.mrf.mxu0  ;;  %v12632_v21 = vld [vmem:[%s15675_s5 + $0x68] sm:$0xff]  }
 0x1ff   : > { %v1501_v29 = vpop.f32.mrf.mxu1  ;;  %v1551_v30 = vmax.f32 %v1544_v26, 0.0  ;;  %v1542_v31 = vadd.f32 %v9377_v17, %v1528_v27  ;;  %v1531_v32 = vadd.f32 %v11207_v24, %v1384_v60  ;;  %v1382_v33 = vadd.f32 %v1354_v28, %v1215_v25  ;;  %v12636_v24 = vld [vmem:[%s15675_s5 + $0xb8] sm:$0xff]  }
 0x200   : > { %v11186_v35 = vpop.f32.mrf.mxu0 }
 0x201   : > { %v11210_v36 = vpop.f32.mrf.mxu1  ;;  %1559 = vst.msk [vmem:[#allocation4 + $0xe] sm:$0x7f] %vm1556_vm15, %v1551_v30  ;;  %v1549_v37 = vmax.f32 %v1542_v31, 0.0  ;;  %v1545_v38 = vadd.f32 %v9377_v17, %v1531_v32  ;;  %v1529_v39 = vadd.f32 %v1501_v29, %v1382_v33  ;;  %v1387_v40 = vadd.f32 %v11186_v35, %v1236_v61  ;;  %v12637_v29 = vld [vmem:[%s15675_s5 + $0x90] sm:$0xff]   ;;  %v12640_v35 = vld [vmem:[%s15675_s5 + $0xa8] sm:$0xff]  }
 0x202   : > { %v1367_v41 = vpop.f32.mrf.mxu0  ;;  %v12638_v32 = vld [vmem:[%s15675_s5 + $0xb0] sm:$0xff]  }
 0x203   : > { %v1514_v42 = vpop.f32.mrf.mxu1  ;;  %1557 = vst.msk [vmem:[#allocation4] sm:$0x7f] %vm1556_vm15, %v1549_v37  ;;  %v1552_v43 = vmax.f32 %v1545_v38, 0.0  ;;  %v1543_v44 = vadd.f32 %v9377_v17, %v1529_v39  ;;  %v1534_v45 = vadd.f32 %v11210_v36, %v1387_v40  ;;  %v1385_v46 = vadd.f32 %v1367_v41, %v1228_v34  ;;  %v12639_v34 = vld [vmem:[%s15675_s5 + $0x88] sm:$0xff]   ;;  %v12641_v36 = vld [vmem:[%s15675_s5 + $0x80] sm:$0xff]   ;;  %v12643_v38 = vld [vmem:[%s15675_s5 + $0xd8] sm:$0xff]  }
 0x204   : > { %v11187_v47 = vpop.f32.mrf.mxu0  ;;  %v12642_v37 = vld [vmem:[%s15675_s5 + $0xa0] sm:$0xff]   ;;  %v12644_v40 = vld [vmem:[%s15675_s5 + $0xf8] sm:$0xff]  }
 0x205   : > { %v11211_v48 = vpop.f32.mrf.mxu1  ;;  %1560 = vst.msk [vmem:[#allocation4 + $0x15] sm:$0x7f] %vm1556_vm15, %v1552_v43  ;;  %v1550_v50 = vmax.f32 %v1543_v44, 0.0  ;;  %v1548_v51 = vadd.f32 %v9377_v17, %v1534_v45  ;;  %v1532_v52 = vadd.f32 %v1514_v42, %v1385_v46  ;;  %v12645_v45 = vld [vmem:[%s15675_s5 + $0xd0] sm:$0xff]  }
 0x206   : > { %v1370_v53 = vpop.f32.mrf.mxu0  ;;  %v12646_v48 = vld [vmem:[%s15675_s5 + $0xf0] sm:$0xff]  }
 0x207   : > { %1558 = vst.msk [vmem:[#allocation4 + $0x7] sm:$0x7f] %vm1556_vm15, %v1550_v50  ;;  %v1555_v54 = vmax.f32 %v1548_v51, 0.0  ;;  %v1546_v55 = vadd.f32 %v9377_v17, %v1532_v52  ;;  %v1386_v58 = vadd.f32 %v1370_v53, %v1231_v49  ;;  %v1517_v59 = vpop.f32.mrf.mxu1  ;;  %v12647_v50 = vld [vmem:[%s15675_s5 + $0xc8] sm:$0xff]   ;;  %v12649_v52 = vld [vmem:[%s15675_s5 + $0xc0] sm:$0xff]  }
 0x208   : > { %v1566_v3 = vld [vmem:[#allocation4 + $0x10] sm:$0x1f]  ;;  %v12648_v51 = vld [vmem:[%s15675_s5 + $0xe8] sm:$0xff]  }
 0x209   : > { %1563 = vst.msk [vmem:[#allocation4 + $0x2a] sm:$0x7f] %vm1556_vm15, %v1555_v54  ;;  %v1553_v62 = vmax.f32 %v1546_v55, 0.0  ;;  %v1533_v63 = vadd.f32 %v1517_v59, %v1386_v58  ;;  %v1568_v15 = vpack.c.bf16 %v1566_v3, %v1566_v3  ;;  %v12650_v53 = vld [vmem:[%s15675_s5 + $0xe0] sm:$0xff]   ;;  %v12651_v54 = vld [vmem:[%s15675_s5 + $0x118] sm:$0xff]  }
 0x20a   : > { %v12652_v58 = vld [vmem:[%s15675_s5 + $0x138] sm:$0xff]  }
 0x20b   : > { %1561 = vst.msk [vmem:[#allocation4 + $0x1c] sm:$0x7f] %vm1556_vm15, %v1553_v62  ;;  %v1547_v0 = vadd.f32 %v9377_v17, %v1533_v63 }
 0x20c   : > { %v1579_v2 = vld [vmem:[#allocation4 + $0x11] sm:$0x1f]  ;;  %v2034_v41 = vld [vmem:[#allocation4 + $0x17] sm:$0x1f] }
 0x20d   : > { %v1554_v1 = vmax.f32 %v1547_v0, 0.0  ;;  %v1581_v12 = vpack.c.bf16 %v1579_v2, %v1579_v2  ;;  %v1749_v23 = vld [vmem:[#allocation4 + $0x12] sm:$0x1f]  ;;  %v2036_v43 = vpack.c.bf16 %v2034_v41, %v2034_v41  ;;  %v12676_v41 = vld [vmem:[%s15675_s5 + $0x1f8] sm:$0xff]  }
 0x20e   : > { %v1577_v4 = vld [vmem:[#allocation4 + $0x1] sm:$0xff]  ;;  %v13350_v5 = vld [vmem:[#allocation4 + $0x9] sm:$0xff]  ;;  %v1844_v25 = vld [vmem:[#allocation4 + $0x13] sm:$0x1f]  ;;  %v1751_v60 = vpack.c.bf16 %v1749_v23, %v1749_v23 }
 0x20f   : > { %v1564_v6 = vld [vmem:[#allocation4] sm:$0xff]  ;;  %1562 = vst.msk [vmem:[#allocation4 + $0x23] sm:$0x7f] %vm1556_vm15, %v1554_v1  ;;  %v1580_v7 = vpack.c.bf16 %v13350_v5, %v1577_v4  ;;  %v13354_v8 = vld [vmem:[#allocation4 + $0x8] sm:$0xff]  ;;  %v1846_v28 = vpack.c.bf16 %v1844_v25, %v1844_v25  ;;  %v1939_v39 = vld [vmem:[#allocation4 + $0x14] sm:$0x1f] }
 0x210   : > { %v1747_v9 = vld [vmem:[#allocation4 + $0x2] sm:$0xff]  ;;  %v13356_v10 = vld [vmem:[#allocation4 + $0xa] sm:$0xff]  ;;  %v1567_v11 = vpack.c.bf16 %v13354_v8, %v1564_v6  ;;  %v1941_v42 = vpack.c.bf16 %v1939_v39, %v1939_v39  ;;  %v13462_v0 = vld [vmem:[#allocation4 + $0x12] sm:$0xff] }
 0x211   : > { %v1842_v13 = vld [vmem:[#allocation4 + $0x3] sm:$0xff]  ;;  %v13359_v14 = vld [vmem:[#allocation4 + $0xb] sm:$0xff]  ;;  %11220 = vmatprep.mubr.msk.bf16.mxu0 %vm461_vm14, %v1580_v7  ;;  %v1750_v17 = vpack.c.bf16 %v13356_v10, %v1747_v9  ;;  %v2320_v2 = vpack.c.bf16 %v13462_v0, %v13356_v10  ;;  %v2413_v3 = vld [vmem:[#allocation4 + $0x13] sm:$0xff] }
 0x212   : > { %11232 = vmatprep.mubr.msk.bf16.mxu1 %vm461_vm14, %v1567_v11  ;;  %11221 = vmatmul.mubr.msk.bf16.vlgmr.msra.gmra.mxu0 %vm461_vm14, %v1581_v12  ;;  %v1845_v19 = vpack.c.bf16 %v13359_v14, %v1842_v13  ;;  %v1937_v26 = vld [vmem:[#allocation4 + $0x4] sm:$0xff]  ;;  %v1938_v27 = vld [vmem:[#allocation4 + $0xc] sm:$0xff]  ;;  %v2129_v55 = vld [vmem:[#allocation4 + $0x18] sm:$0x1f] }
 0x213   : > { %11233 = vmatmul.mubr.msk.bf16.vlgmr.msra.gmra.mxu1 %vm461_vm14, %v1568_v15  ;;  %11237 = vmatpush3.bf16.msra.mxu0 %v13332_v56  ;;  %v12633_v56 = vld [vmem:[%s15675_s5 + $0x40] sm:$0xff]   ;;  %v2032_v61 = vld [vmem:[#allocation4 + $0x7] sm:$0xff]  ;;  %v1940_v30 = vpack.c.bf16 %v1938_v27, %v1937_v26  ;;  %v2224_v59 = vld [vmem:[#allocation4 + $0x19] sm:$0x1f]  ;;  %v2131_v62 = vpack.c.bf16 %v2129_v55, %v2129_v55 }
 0x214   : > { %11249 = vmatpush3.bf16.msra.mxu1 %v13337_v57  ;;  %11244 = vmatprep.mubr.msk.bf16.mxu0 %vm461_vm14, %v1750_v17  ;;  %v12634_v57 = vld [vmem:[%s15675_s5 + $0x60] sm:$0xff]   ;;  %v2226_v63 = vpack.c.bf16 %v2224_v59, %v2224_v59  ;;  %v12653_v1 = vld [vmem:[%s15675_s5 + $0x110] sm:$0xff]   ;;  %v12655_v6 = vld [vmem:[%s15675_s5 + $0x108] sm:$0xff]  }
 0x215   : > { %11256 = vmatprep.mubr.msk.bf16.mxu1 %vm461_vm14, %v1845_v19  ;;  %11238 = vmatprep.subr.bf16.mxu0 %v12629_v16  ;;  %v13399_v31 = vld [vmem:[#allocation4 + $0xf] sm:$0xff]  ;;  %v12654_v4 = vld [vmem:[%s15675_s5 + $0x130] sm:$0xff]   ;;  %v12656_v7 = vld [vmem:[%s15675_s5 + $0x128] sm:$0xff]  }
 0x216   : > { %11250 = vmatprep.subr.bf16.mxu1 %v12630_v18  ;;  %v2035_v33 = vpack.c.bf16 %v13399_v31, %v2032_v61  ;;  %v13426_v44 = vld [vmem:[#allocation4 + $0x10] sm:$0xff]  ;;  %v12659_v10 = vld [vmem:[%s15675_s5 + $0x158] sm:$0xff]   ;;  %v2319_v11 = vld [vmem:[#allocation4 + $0x1a] sm:$0x1f] }
 0x217   : > { %11239 = vmatpush3.bf16.msra.mxu0 %v12629_v16  ;;  %v2130_v46 = vpack.c.bf16 %v13426_v44, %v13354_v8  ;;  %v13434_v47 = vld [vmem:[#allocation4 + $0x11] sm:$0xff]  ;;  %v12660_v12 = vld [vmem:[%s15675_s5 + $0x178] sm:$0xff]   ;;  %v2414_v13 = vld [vmem:[#allocation4 + $0x1b] sm:$0x1f]  ;;  %v2321_v15 = vpack.c.bf16 %v2319_v11, %v2319_v11 }
 0x218   : > { %11251 = vmatpush3.bf16.msra.mxu1 %v12630_v18  ;;  %11240 = vmatprep.subr.bf16.mxu0 %v12631_v20  ;;  %v2225_v49 = vpack.c.bf16 %v13434_v47, %v13350_v5  ;;  %v2415_v5 = vpack.c.bf16 %v2413_v3, %v13359_v14  ;;  %v12657_v8 = vld [vmem:[%s15675_s5 + $0x100] sm:$0xff]   ;;  %v2416_v17 = vpack.c.bf16 %v2414_v13, %v2414_v13  ;;  %v12661_v19 = vld [vmem:[%s15675_s5 + $0x150] sm:$0xff]   ;;  %v12667_v25 = vld [vmem:[%s15675_s5 + $0x198] sm:$0xff]  }
 0x219   : > { %11252 = vmatprep.subr.bf16.mxu1 %v12632_v21  ;;  %v12658_v9 = vld [vmem:[%s15675_s5 + $0x120] sm:$0xff]   ;;  %v2509_v26 = vld [vmem:[#allocation4 + $0x1e] sm:$0x1f]  ;;  %v12668_v27 = vld [vmem:[%s15675_s5 + $0x1b8] sm:$0xff]  }
 0x21a   : > { %v13495_v14 = vld [vmem:[#allocation4 + $0x16] sm:$0xff]  ;;  %v2507_v18 = vld [vmem:[#allocation4 + $0xe] sm:$0xff]  ;;  %v2889_v59 = vld [vmem:[#allocation4 + $0x22] sm:$0x1f] }
 0x21b   : > { %11241 = vmatpush3.bf16.msra.mxu0 %v12631_v20  ;;  %v13497_v16 = vld [vmem:[#allocation4 + $0x17] sm:$0xff]  ;;  %v2510_v20 = vpack.c.bf16 %v13495_v14, %v2507_v18  ;;  %v12675_v39 = vld [vmem:[%s15675_s5 + $0x1d8] sm:$0xff]  }
 0x21c   : > { %11253 = vmatpush3.bf16.msra.mxu1 %v12632_v21  ;;  %11242 = vmatprep.subr.bf16.mxu0 %v12633_v56  ;;  %v12662_v21 = vld [vmem:[%s15675_s5 + $0x170] sm:$0xff]   ;;  %v12665_v23 = vld [vmem:[%s15675_s5 + $0x140] sm:$0xff]   ;;  %v13530_v61 = vld [vmem:[#allocation4 + $0x18] sm:$0xff] }
 0x21d   : > { %11254 = vmatprep.subr.bf16.mxu1 %v12634_v57  ;;  %v12682_v55 = vld [vmem:[%s15675_s5 + $0x1e0] sm:$0xff]   ;;  %v3079_v13 = vld [vmem:[#allocation4 + $0x26] sm:$0x1f] }
 0x21e   : > { %v12690_v11 = vld [vmem:[%s15675_s5 + $0x220] sm:$0xff]   ;;  %v3363_v18 = vld [vmem:[#allocation4 + $0x21] sm:$0xff] }
 0x21f   : > { %11243 = vmatpush3.bf16.msra.mxu0 %v12633_v56  ;;  %v2605_v56 = vpack.c.bf16 %v13497_v16, %v13399_v31  ;;  %v12669_v31 = vld [vmem:[%s15675_s5 + $0x190] sm:$0xff]  }
 0x220   : > { %11255 = vmatpush3.bf16.msra.mxu1 %v12634_v57  ;;  %11260 = vmatprep.subr.bf16.mxu0 %v12635_v22  ;;  %v12663_v57 = vld [vmem:[%s15675_s5 + $0x148] sm:$0xff]  }
 0x221   : > { %11272 = vmatprep.subr.bf16.mxu1 %v12636_v24 }
 0x222   : > { %11245 = vmatmul.mubr.msk.bf16.vlgmr.msra.gmra.mxu0 %vm461_vm14, %v1751_v60  ;;  %v2604_v60 = vld [vmem:[#allocation4 + $0x1f] sm:$0x1f] }
 0x223   : > { %11257 = vmatmul.mubr.msk.bf16.vlgmr.msra.gmra.mxu1 %vm461_vm14, %v1846_v28  ;;  %11261 = vmatpush3.bf16.msra.mxu0 %v12635_v22  ;;  %v12664_v22 = vld [vmem:[%s15675_s5 + $0x168] sm:$0xff]   ;;  %v2511_v28 = vpack.c.bf16 %v2509_v26, %v2509_v26  ;;  %v12699_v26 = vld [vmem:[%s15675_s5 + $0x298] sm:$0xff]  }
 0x224   : > { %11268 = vmatprep.mubr.msk.bf16.mxu0 %vm461_vm14, %v1940_v30  ;;  %11273 = vmatpush3.bf16.msra.mxu1 %v12636_v24  ;;  %v12666_v24 = vld [vmem:[%s15675_s5 + $0x160] sm:$0xff]   ;;  %v2606_v30 = vpack.c.bf16 %v2604_v60, %v2604_v60  ;;  %v12700_v60 = vld [vmem:[%s15675_s5 + $0x2b8] sm:$0xff]  }
 0x225   : > { %11280 = vmatprep.mubr.msk.bf16.mxu1 %vm461_vm14, %v2035_v33  ;;  %11262 = vmatprep.subr.bf16.mxu0 %v12637_v29  ;;  %v12670_v33 = vld [vmem:[%s15675_s5 + $0x1b0] sm:$0xff]  }
 0x226   : > { %11274 = vmatprep.subr.bf16.mxu1 %v12638_v32 }
 0x227   : > { %11263 = vmatpush3.bf16.msra.mxu0 %v12637_v29  ;;  %v13532_v29 = vld [vmem:[#allocation4 + $0x19] sm:$0xff] }
 0x228   : > { %11275 = vmatpush3.bf16.msra.mxu1 %v12638_v32  ;;  %11264 = vmatprep.subr.bf16.mxu0 %v12639_v34  ;;  %v2700_v32 = vpack.c.bf16 %v13530_v61, %v13426_v44 }
 0x229   : > { %11276 = vmatprep.subr.bf16.mxu1 %v12640_v35 }
 0x22b   : > { %11265 = vmatpush3.bf16.msra.mxu0 %v12639_v34  ;;  %v2795_v34 = vpack.c.bf16 %v13532_v29, %v13434_v47  ;;  %v12677_v47 = vld [vmem:[%s15675_s5 + $0x1d0] sm:$0xff]  }
 0x22c   : > { %11277 = vmatpush3.bf16.msra.mxu1 %v12640_v35  ;;  %11266 = vmatprep.subr.bf16.mxu0 %v12641_v36  ;;  %v12671_v35 = vld [vmem:[%s15675_s5 + $0x188] sm:$0xff]  }
 0x22d   : > { %11278 = vmatprep.subr.bf16.mxu1 %v12642_v37 }
 0x22f   : > { %11267 = vmatpush3.bf16.msra.mxu0 %v12641_v36  ;;  %v12672_v36 = vld [vmem:[%s15675_s5 + $0x1a8] sm:$0xff]  }
 0x230   : > { %11279 = vmatpush3.bf16.msra.mxu1 %v12642_v37  ;;  %11284 = vmatprep.subr.bf16.mxu0 %v12643_v38  ;;  %v12673_v37 = vld [vmem:[%s15675_s5 + $0x180] sm:$0xff]  }
 0x231   : > { %11296 = vmatprep.subr.bf16.mxu1 %v12644_v40 }
 0x232   : > { %11269 = vmatmul.mubr.msk.bf16.vlgmr.msra.gmra.mxu0 %vm461_vm14, %v1941_v42  ;;  %v2794_v42 = vld [vmem:[#allocation4 + $0x21] sm:$0x1f] }
 0x233   : > { %11281 = vmatmul.mubr.msk.bf16.vlgmr.msra.gmra.mxu1 %vm461_vm14, %v2036_v43  ;;  %11285 = vmatpush3.bf16.msra.mxu0 %v12643_v38  ;;  %v12674_v38 = vld [vmem:[%s15675_s5 + $0x1a0] sm:$0xff]   ;;  %v2888_v43 = vld [vmem:[#allocation4 + $0x1a] sm:$0xff] }
 0x234   : > { %11292 = vmatprep.mubr.msk.bf16.mxu0 %vm461_vm14, %v2130_v46  ;;  %11297 = vmatpush3.bf16.msra.mxu1 %v12644_v40  ;;  %v2699_v40 = vld [vmem:[#allocation4 + $0x20] sm:$0x1f]  ;;  %v2796_v46 = vpack.c.bf16 %v2794_v42, %v2794_v42  ;;  %v3459_v42 = vld [vmem:[#allocation4 + $0x2c] sm:$0x1f] }
 0x235   : > { %11304 = vmatprep.mubr.msk.bf16.mxu1 %vm461_vm14, %v2225_v49  ;;  %11286 = vmatprep.subr.bf16.mxu0 %v12645_v45  ;;  %v2701_v44 = vpack.c.bf16 %v2699_v40, %v2699_v40  ;;  %v2982_v49 = vld [vmem:[#allocation4 + $0x15] sm:$0xff] }
 0x236   : > { %11298 = vmatprep.subr.bf16.mxu1 %v12646_v48  ;;  %v12706_v40 = vld [vmem:[%s15675_s5 + $0x2a0] sm:$0xff]  }
 0x237   : > { %11287 = vmatpush3.bf16.msra.mxu0 %v12645_v45  ;;  %v13566_v45 = vld [vmem:[#allocation4 + $0x1d] sm:$0xff] }
 0x238   : > { %11299 = vmatpush3.bf16.msra.mxu1 %v12646_v48  ;;  %11288 = vmatprep.subr.bf16.mxu0 %v12647_v50  ;;  %v2890_v48 = vpack.c.bf16 %v2888_v43, %v13462_v0  ;;  %v13598_v0 = vld [vmem:[#allocation4 + $0x1e] sm:$0xff]  ;;  %v12708_v43 = vld [vmem:[%s15675_s5 + $0x2f8] sm:$0xff]  }
 0x239   : > { %11300 = vmatprep.subr.bf16.mxu1 %v12648_v51 }
 0x23b   : > { %11289 = vmatpush3.bf16.msra.mxu0 %v12647_v50  ;;  %v12678_v50 = vld [vmem:[%s15675_s5 + $0x1f0] sm:$0xff]  }
 0x23c   : > { %11301 = vmatpush3.bf16.msra.mxu1 %v12648_v51  ;;  %11290 = vmatprep.subr.bf16.mxu0 %v12649_v52  ;;  %v2985_v51 = vpack.c.bf16 %v13566_v45, %v2982_v49  ;;  %v12709_v49 = vld [vmem:[%s15675_s5 + $0x2d0] sm:$0xff]  }
 0x23d   : > { %11302 = vmatprep.subr.bf16.mxu1 %v12650_v53 }
 0x23f   : > { %11291 = vmatpush3.bf16.msra.mxu0 %v12649_v52  ;;  %v12679_v52 = vld [vmem:[%s15675_s5 + $0x1c8] sm:$0xff]  }
 0x240   : > { %11303 = vmatpush3.bf16.msra.mxu1 %v12650_v53  ;;  %11308 = vmatprep.subr.bf16.mxu0 %v12651_v54  ;;  %v12680_v53 = vld [vmem:[%s15675_s5 + $0x1e8] sm:$0xff]  }
 0x241   : > { %11320 = vmatprep.subr.bf16.mxu1 %v12652_v58 }
 0x242   : > { %11293 = vmatmul.mubr.msk.bf16.vlgmr.msra.gmra.mxu0 %vm461_vm14, %v2131_v62  ;;  %v12684_v62 = vld [vmem:[%s15675_s5 + $0x238] sm:$0xff]  }
 0x243   : > { %11305 = vmatmul.mubr.msk.bf16.vlgmr.msra.gmra.mxu1 %vm461_vm14, %v2226_v63  ;;  %11309 = vmatpush3.bf16.msra.mxu0 %v12651_v54  ;;  %v12681_v54 = vld [vmem:[%s15675_s5 + $0x1c0] sm:$0xff]   ;;  %v2984_v63 = vld [vmem:[#allocation4 + $0x25] sm:$0x1f] }
 0x244   : > { %11316 = vmatprep.mubr.msk.bf16.mxu0 %vm461_vm14, %v2320_v2  ;;  %11321 = vmatpush3.bf16.msra.mxu1 %v12652_v58  ;;  %v12683_v58 = vld [vmem:[%s15675_s5 + $0x218] sm:$0xff]   ;;  %v13600_v2 = vld [vmem:[#allocation4 + $0x1f] sm:$0xff]  ;;  %v2986_v3 = vpack.c.bf16 %v2984_v63, %v2984_v63 }
 0x245   : > { %11328 = vmatprep.mubr.msk.bf16.mxu1 %vm461_vm14, %v2415_v5  ;;  %11310 = vmatprep.subr.bf16.mxu0 %v12653_v1  ;;  %v3080_v5 = vpack.c.bf16 %v13598_v0, %v13495_v14  ;;  %v12692_v14 = vld [vmem:[%s15675_s5 + $0x278] sm:$0xff]  }
 0x246   : > { %11322 = vmatprep.subr.bf16.mxu1 %v12654_v4  ;;  %v3744_v63 = vld [vmem:[#allocation4 + $0x2f] sm:$0x1f] }
 0x247   : > { %11311 = vmatpush3.bf16.msra.mxu0 %v12653_v1  ;;  %v2891_v1 = vpack.c.bf16 %v2889_v59, %v2889_v59  ;;  %v12715_v59 = vld [vmem:[%s15675_s5 + $0x318] sm:$0xff]  }
 0x248   : > { %11323 = vmatpush3.bf16.msra.mxu1 %v12654_v4  ;;  %11312 = vmatprep.subr.bf16.mxu0 %v12655_v6  ;;  %v12685_v4 = vld [vmem:[%s15675_s5 + $0x210] sm:$0xff]  }
 0x249   : > { %11324 = vmatprep.subr.bf16.mxu1 %v12656_v7 }
 0x24b   : > { %11313 = vmatpush3.bf16.msra.mxu0 %v12655_v6  ;;  %v12686_v6 = vld [vmem:[%s15675_s5 + $0x230] sm:$0xff]  }
 0x24c   : > { %11325 = vmatpush3.bf16.msra.mxu1 %v12656_v7  ;;  %11314 = vmatprep.subr.bf16.mxu0 %v12657_v8  ;;  %v3175_v7 = vpack.c.bf16 %v13600_v2, %v13497_v16  ;;  %v13634_v16 = vld [vmem:[#allocation4 + $0x20] sm:$0xff] }
 0x24d   : > { %11326 = vmatprep.subr.bf16.mxu1 %v12658_v9 }
 0x24f   : > { %11315 = vmatpush3.bf16.msra.mxu0 %v12657_v8  ;;  %v12687_v8 = vld [vmem:[%s15675_s5 + $0x208] sm:$0xff]  }
 0x250   : > { %11327 = vmatpush3.bf16.msra.mxu1 %v12658_v9  ;;  %11332 = vmatprep.subr.bf16.mxu0 %v12659_v10  ;;  %v12688_v9 = vld [vmem:[%s15675_s5 + $0x228] sm:$0xff]  }
 0x251   : > { %11344 = vmatprep.subr.bf16.mxu1 %v12660_v12 }
 0x252   : > { %11317 = vmatmul.mubr.msk.bf16.vlgmr.msra.gmra.mxu0 %vm461_vm14, %v2321_v15  ;;  %v3174_v15 = vld [vmem:[#allocation4 + $0x27] sm:$0x1f] }
 0x253   : > { %11329 = vmatmul.mubr.msk.bf16.vlgmr.msra.gmra.mxu1 %vm461_vm14, %v2416_v17  ;;  %11333 = vmatpush3.bf16.msra.mxu0 %v12659_v10  ;;  %v12689_v10 = vld [vmem:[%s15675_s5 + $0x200] sm:$0xff]   ;;  %v3081_v17 = vpack.c.bf16 %v3079_v13, %v3079_v13 }
 0x254   : > { %11340 = vmatprep.mubr.msk.bf16.mxu0 %vm461_vm14, %v2510_v20  ;;  %11345 = vmatpush3.bf16.msra.mxu1 %v12660_v12  ;;  %v12691_v12 = vld [vmem:[%s15675_s5 + $0x258] sm:$0xff]   ;;  %v12693_v20 = vld [vmem:[%s15675_s5 + $0x250] sm:$0xff]  }
 0x255   : > { %11352 = vmatprep.mubr.msk.bf16.mxu1 %vm461_vm14, %v2605_v56  ;;  %11334 = vmatprep.subr.bf16.mxu0 %v12661_v19  ;;  %v12694_v56 = vld [vmem:[%s15675_s5 + $0x270] sm:$0xff]  }
 0x256   : > { %11346 = vmatprep.subr.bf16.mxu1 %v12662_v21 }
 0x257   : > { %11335 = vmatpush3.bf16.msra.mxu0 %v12661_v19  ;;  %v3176_v19 = vpack.c.bf16 %v3174_v15, %v3174_v15 }
 0x258   : > { %11347 = vmatpush3.bf16.msra.mxu1 %v12662_v21  ;;  %11336 = vmatprep.subr.bf16.mxu0 %v12663_v57  ;;  %v3270_v21 = vpack.c.bf16 %v13634_v16, %v13530_v61  ;;  %v3364_v61 = vld [vmem:[#allocation4 + $0x29] sm:$0x1f] }
 0x259   : > { %11348 = vmatprep.subr.bf16.mxu1 %v12664_v22 }
 0x25b   : > { %11337 = vmatpush3.bf16.msra.mxu0 %v12663_v57  ;;  %v3365_v57 = vpack.c.bf16 %v3363_v18, %v13532_v29  ;;  %v3458_v29 = vld [vmem:[#allocation4 + $0x24] sm:$0xff] }
 0x25c   : > { %11349 = vmatpush3.bf16.msra.mxu1 %v12664_v22  ;;  %11338 = vmatprep.subr.bf16.mxu0 %v12665_v23  ;;  %v12695_v22 = vld [vmem:[%s15675_s5 + $0x248] sm:$0xff]  }
 0x25d   : > { %11350 = vmatprep.subr.bf16.mxu1 %v12666_v24 }
 0x25f   : > { %11339 = vmatpush3.bf16.msra.mxu0 %v12665_v23  ;;  %v12696_v23 = vld [vmem:[%s15675_s5 + $0x268] sm:$0xff]  }
 0x260   : > { %11351 = vmatpush3.bf16.msra.mxu1 %v12666_v24  ;;  %11356 = vmatprep.subr.bf16.mxu0 %v12667_v25  ;;  %v12697_v24 = vld [vmem:[%s15675_s5 + $0x240] sm:$0xff]  }
 0x261   : > { %11368 = vmatprep.subr.bf16.mxu1 %v12668_v27 }
 0x262   : > { %11341 = vmatmul.mubr.msk.bf16.vlgmr.msra.gmra.mxu0 %vm461_vm14, %v2511_v28  ;;  %v3457_v28 = vld [vmem:[#allocation4 + $0x1c] sm:$0xff] }
 0x263   : > { %11353 = vmatmul.mubr.msk.bf16.vlgmr.msra.gmra.mxu1 %vm461_vm14, %v2606_v30  ;;  %11357 = vmatpush3.bf16.msra.mxu0 %v12667_v25  ;;  %v12698_v25 = vld [vmem:[%s15675_s5 + $0x260] sm:$0xff]  }
 0x264   : > { %11364 = vmatprep.mubr.msk.bf16.mxu0 %vm461_vm14, %v2700_v32  ;;  %11369 = vmatpush3.bf16.msra.mxu1 %v12668_v27  ;;  %v3269_v27 = vld [vmem:[#allocation4 + $0x28] sm:$0x1f]  ;;  %v3366_v32 = vpack.c.bf16 %v3364_v61, %v3364_v61 }
 0x265   : > { %11376 = vmatprep.mubr.msk.bf16.mxu1 %vm461_vm14, %v2795_v34  ;;  %11358 = vmatprep.subr.bf16.mxu0 %v12669_v31  ;;  %v3271_v30 = vpack.c.bf16 %v3269_v27, %v3269_v27  ;;  %v3460_v34 = vpack.c.bf16 %v3458_v29, %v3457_v28  ;;  %v12720_v61 = vld [vmem:[%s15677_s7 + $0x38] sm:$0xff]  }
 0x266   : > { %11370 = vmatprep.subr.bf16.mxu1 %v12670_v33 }
 0x267   : > { %11359 = vmatpush3.bf16.msra.mxu0 %v12669_v31  ;;  %v3553_v31 = vld [vmem:[#allocation4 + $0x25] sm:$0xff] }
 0x268   : > { %11371 = vmatpush3.bf16.msra.mxu1 %v12670_v33  ;;  %11360 = vmatprep.subr.bf16.mxu0 %v12671_v35  ;;  %v12701_v33 = vld [vmem:[%s15675_s5 + $0x290] sm:$0xff]  }
 0x269   : > { %11372 = vmatprep.subr.bf16.mxu1 %v12672_v36 }
 0x26b   : > { %11361 = vmatpush3.bf16.msra.mxu0 %v12671_v35  ;;  %v12702_v35 = vld [vmem:[%s15675_s5 + $0x2b0] sm:$0xff]  }
 0x26c   : > { %11373 = vmatpush3.bf16.msra.mxu1 %v12672_v36  ;;  %11362 = vmatprep.subr.bf16.mxu0 %v12673_v37  ;;  %v3555_v36 = vpack.c.bf16 %v3553_v31, %v13566_v45  ;;  %v3648_v45 = vld [vmem:[#allocation4 + $0x26] sm:$0xff] }
 0x26d   : > { %11374 = vmatprep.subr.bf16.mxu1 %v12674_v38 }
 0x26f   : > { %11363 = vmatpush3.bf16.msra.mxu0 %v12673_v37  ;;  %v12703_v37 = vld [vmem:[%s15675_s5 + $0x288] sm:$0xff]  }
 0x270   : > { %11375 = vmatpush3.bf16.msra.mxu1 %v12674_v38  ;;  %11380 = vmatprep.subr.bf16.mxu0 %v12675_v39  ;;  %v12704_v38 = vld [vmem:[%s15675_s5 + $0x2a8] sm:$0xff]  }
 0x271   : > { %11392 = vmatprep.subr.bf16.mxu1 %v12676_v41 }
 0x272   : > { %11365 = vmatmul.mubr.msk.bf16.vlgmr.msra.gmra.mxu0 %vm461_vm14, %v2701_v44  ;;  %v3554_v44 = vld [vmem:[#allocation4 + $0x2d] sm:$0x1f] }
 0x273   : > { %11377 = vmatmul.mubr.msk.bf16.vlgmr.msra.gmra.mxu1 %vm461_vm14, %v2796_v46  ;;  %11381 = vmatpush3.bf16.msra.mxu0 %v12675_v39  ;;  %v12705_v39 = vld [vmem:[%s15675_s5 + $0x280] sm:$0xff]   ;;  %v3461_v46 = vpack.c.bf16 %v3459_v42, %v3459_v42  ;;  %v12723_v42 = vld [vmem:[%s15677_s7 + $0x68] sm:$0xff]  }
 0x274   : > { %11388 = vmatprep.mubr.msk.bf16.mxu0 %vm461_vm14, %v2890_v48  ;;  %11393 = vmatpush3.bf16.msra.mxu1 %v12676_v41  ;;  %v12707_v41 = vld [vmem:[%s15675_s5 + $0x2d8] sm:$0xff]   ;;  %v3556_v48 = vpack.c.bf16 %v3554_v44, %v3554_v44  ;;  %v12725_v44 = vld [vmem:[%s15677_s7 + $0x60] sm:$0xff]  }
 0x275   : > { %11400 = vmatprep.mubr.msk.bf16.mxu1 %vm461_vm14, %v2985_v51  ;;  %11382 = vmatprep.subr.bf16.mxu0 %v12677_v47  ;;  %v12710_v51 = vld [vmem:[%s15675_s5 + $0x2f0] sm:$0xff]  }
 0x276   : > { %11394 = vmatprep.subr.bf16.mxu1 %v12678_v50 }
 0x277   : > { %11383 = vmatpush3.bf16.msra.mxu0 %v12677_v47  ;;  %v3743_v47 = vld [vmem:[#allocation4 + $0x27] sm:$0xff] }
 0x278   : > { %11395 = vmatpush3.bf16.msra.mxu1 %v12678_v50  ;;  %11384 = vmatprep.subr.bf16.mxu0 %v12679_v52  ;;  %v3650_v50 = vpack.c.bf16 %v3648_v45, %v13598_v0  ;;  %v3838_v0 = vld [vmem:[#allocation4 + $0x28] sm:$0xff]  ;;  %v12726_v45 = vld [vmem:[%s15677_s7 + $0x20] sm:$0xff]  }
 0x279   : > { %11396 = vmatprep.subr.bf16.mxu1 %v12680_v53 }
 0x27b   : > { %11385 = vmatpush3.bf16.msra.mxu0 %v12679_v52  ;;  %v3745_v52 = vpack.c.bf16 %v3743_v47, %v13600_v2  ;;  %v12716_v2 = vld [vmem:[%s15675_s5 + $0x310] sm:$0xff]  }
 0x27c   : > { %11397 = vmatpush3.bf16.msra.mxu1 %v12680_v53  ;;  %11386 = vmatprep.subr.bf16.mxu0 %v12681_v54  ;;  %v12711_v53 = vld [vmem:[%s15675_s5 + $0x2c8] sm:$0xff]  }
 0x27d   : > { %11398 = vmatprep.subr.bf16.mxu1 %v12682_v55 }
 0x27f   : > { %11387 = vmatpush3.bf16.msra.mxu0 %v12681_v54  ;;  %v12712_v54 = vld [vmem:[%s15675_s5 + $0x2e8] sm:$0xff]  }
 0x280   : > { %11399 = vmatpush3.bf16.msra.mxu1 %v12682_v55  ;;  %11404 = vmatprep.subr.bf16.mxu0 %v12683_v58  ;;  %v12713_v55 = vld [vmem:[%s15675_s5 + $0x2c0] sm:$0xff]  }
 0x281   : > { %11416 = vmatprep.subr.bf16.mxu1 %v12684_v62 }
 0x282   : > { %11389 = vmatmul.mubr.msk.bf16.vlgmr.msra.gmra.mxu0 %vm461_vm14, %v2891_v1 }
 0x283   : > { %11401 = vmatmul.mubr.msk.bf16.vlgmr.msra.gmra.mxu1 %vm461_vm14, %v2986_v3  ;;  %11405 = vmatpush3.bf16.msra.mxu0 %v12683_v58  ;;  %v12714_v58 = vld [vmem:[%s15675_s5 + $0x2e0] sm:$0xff]   ;;  %v3746_v3 = vpack.c.bf16 %v3744_v63, %v3744_v63 }
 0x284   : > { %11412 = vmatprep.mubr.msk.bf16.mxu0 %vm461_vm14, %v3080_v5  ;;  %11417 = vmatpush3.bf16.msra.mxu1 %v12684_v62  ;;  %v3649_v62 = vld [vmem:[#allocation4 + $0x2e] sm:$0x1f]  ;;  %v3840_v5 = vpack.c.bf16 %v3838_v0, %v13634_v16 }
 0x285   : > { %11424 = vmatprep.mubr.msk.bf16.mxu1 %vm461_vm14, %v3175_v7  ;;  %11406 = vmatprep.subr.bf16.mxu0 %v12685_v4  ;;  %v3651_v1 = vpack.c.bf16 %v3649_v62, %v3649_v62  ;;  %v12718_v7 = vld [vmem:[%s15675_s5 + $0x300] sm:$0xff]  }
 0x286   : > { %11418 = vmatprep.subr.bf16.mxu1 %v12686_v6 }
 0x287   : > { %11407 = vmatpush3.bf16.msra.mxu0 %v12685_v4  ;;  %v13726_v4 = vld [vmem:[#allocation3] sm:$0xff] }
 0x288   : > { %11419 = vmatpush3.bf16.msra.mxu1 %v12686_v6  ;;  %11408 = vmatprep.subr.bf16.mxu0 %v12687_v8  ;;  %v12717_v6 = vld [vmem:[%s15675_s5 + $0x308] sm:$0xff]  }
 0x289   : > { %11420 = vmatprep.subr.bf16.mxu1 %v12688_v9 }
 0x28b   : > { %11409 = vmatpush3.bf16.msra.mxu0 %v12687_v8  ;;  %v3839_v8 = vld [vmem:[#allocation4 + $0x30] sm:$0x1f] }
 0x28c   : > { %11421 = vmatpush3.bf16.msra.mxu1 %v12688_v9  ;;  %11410 = vmatprep.subr.bf16.mxu0 %v12689_v10  ;;  %v3841_v9 = vpack.c.bf16 %v3839_v8, %v3839_v8  ;;  %v12734_v8 = vld [vmem:[%s15677_s7] sm:$0xff]  }
 0x28d   : > { %11422 = vmatprep.subr.bf16.mxu1 %v12690_v11 }
 0x28f   : > { %11411 = vmatpush3.bf16.msra.mxu0 %v12689_v10 }
 0x290   : > { %11423 = vmatpush3.bf16.msra.mxu1 %v12690_v11  ;;  %11428 = vmatprep.subr.bf16.mxu0 %v12691_v12 }
 0x291   : > { %11440 = vmatprep.subr.bf16.mxu1 %v12692_v14 }
 0x292   : > { %11413 = vmatmul.mubr.msk.bf16.vlgmr.msra.gmra.mxu0 %vm461_vm14, %v3081_v17 }
 0x293   : > { %11425 = vmatmul.mubr.msk.bf16.vlgmr.msra.gmra.mxu1 %vm461_vm14, %v3176_v19  ;;  %11429 = vmatpush3.bf16.msra.mxu0 %v12691_v12 }
 0x294   : > { %11436 = vmatprep.mubr.msk.bf16.mxu0 %vm461_vm14, %v3270_v21  ;;  %11441 = vmatpush3.bf16.msra.mxu1 %v12692_v14 }
 0x295   : > { %11448 = vmatprep.mubr.msk.bf16.mxu1 %vm461_vm14, %v3365_v57  ;;  %11430 = vmatprep.subr.bf16.mxu0 %v12693_v20 }
 0x296   : > { %11442 = vmatprep.subr.bf16.mxu1 %v12694_v56 }
 0x297   : > { %11431 = vmatpush3.bf16.msra.mxu0 %v12693_v20 }
 0x298   : > { %11443 = vmatpush3.bf16.msra.mxu1 %v12694_v56  ;;  %11432 = vmatprep.subr.bf16.mxu0 %v12695_v22 }
 0x299   : > { %11444 = vmatprep.subr.bf16.mxu1 %v12696_v23 }
 0x29b   : > { %11433 = vmatpush3.bf16.msra.mxu0 %v12695_v22 }
 0x29c   : > { %11445 = vmatpush3.bf16.msra.mxu1 %v12696_v23  ;;  %11434 = vmatprep.subr.bf16.mxu0 %v12697_v24 }
 0x29d   : > { %11446 = vmatprep.subr.bf16.mxu1 %v12698_v25 }
 0x29f   : > { %11435 = vmatpush3.bf16.msra.mxu0 %v12697_v24 }
 0x2a0   : > { %11447 = vmatpush3.bf16.msra.mxu1 %v12698_v25  ;;  %11452 = vmatprep.subr.bf16.mxu0 %v12699_v26 }
 0x2a1   : > { %11464 = vmatprep.subr.bf16.mxu1 %v12700_v60 }
 0x2a2   : > { %11437 = vmatmul.mubr.msk.bf16.vlgmr.msra.gmra.mxu0 %vm461_vm14, %v3271_v30 }
 0x2a3   : > { %11449 = vmatmul.mubr.msk.bf16.vlgmr.msra.gmra.mxu1 %vm461_vm14, %v3366_v32  ;;  %11453 = vmatpush3.bf16.msra.mxu0 %v12699_v26 }
 0x2a4   : > { %11460 = vmatprep.mubr.msk.bf16.mxu0 %vm461_vm14, %v3460_v34  ;;  %11465 = vmatpush3.bf16.msra.mxu1 %v12700_v60  ;;  %v12719_v60 = vld [vmem:[%s15677_s7 + $0x78] sm:$0xff]  }
 0x2a5   : > { %11472 = vmatprep.mubr.msk.bf16.mxu1 %vm461_vm14, %v3555_v36  ;;  %11454 = vmatprep.subr.bf16.mxu0 %v12701_v33 }
 0x2a6   : > { %11466 = vmatprep.subr.bf16.mxu1 %v12702_v35 }
 0x2a7   : > { %11455 = vmatpush3.bf16.msra.mxu0 %v12701_v33 }
 0x2a8   : > { %11467 = vmatpush3.bf16.msra.mxu1 %v12702_v35  ;;  %11456 = vmatprep.subr.bf16.mxu0 %v12703_v37 }
 0x2a9   : > { %11468 = vmatprep.subr.bf16.mxu1 %v12704_v38 }
 0x2ab   : > { %11457 = vmatpush3.bf16.msra.mxu0 %v12703_v37  ;;  %v12721_v37 = vld [vmem:[%s15677_s7 + $0x70] sm:$0xff]  }
 0x2ac   : > { %11469 = vmatpush3.bf16.msra.mxu1 %v12704_v38  ;;  %11458 = vmatprep.subr.bf16.mxu0 %v12705_v39 }
 0x2ad   : > { %11470 = vmatprep.subr.bf16.mxu1 %v12706_v40 }
 0x2af   : > { %11459 = vmatpush3.bf16.msra.mxu0 %v12705_v39 }
 0x2b0   : > { %11471 = vmatpush3.bf16.msra.mxu1 %v12706_v40  ;;  %11476 = vmatprep.subr.bf16.mxu0 %v12707_v41 }
 0x2b1   : > { %11488 = vmatprep.subr.bf16.mxu1 %v12708_v43 }
 0x2b2   : > { %11461 = vmatmul.mubr.msk.bf16.vlgmr.msra.gmra.mxu0 %vm461_vm14, %v3461_v46  ;;  %v12727_v46 = vld [vmem:[%s15677_s7 + $0x58] sm:$0xff]  }
 0x2b3   : > { %11473 = vmatmul.mubr.msk.bf16.vlgmr.msra.gmra.mxu1 %vm461_vm14, %v3556_v48  ;;  %11477 = vmatpush3.bf16.msra.mxu0 %v12707_v41  ;;  %v12722_v41 = vld [vmem:[%s15677_s7 + $0x30] sm:$0xff]  }
 0x2b4   : > { %11484 = vmatprep.mubr.msk.bf16.mxu0 %vm461_vm14, %v3650_v50  ;;  %11489 = vmatpush3.bf16.msra.mxu1 %v12708_v43  ;;  %v12724_v43 = vld [vmem:[%s15677_s7 + $0x28] sm:$0xff]  }
 0x2b5   : > { %11496 = vmatprep.mubr.msk.bf16.mxu1 %vm461_vm14, %v3745_v52  ;;  %11478 = vmatprep.subr.bf16.mxu0 %v12709_v49 }
 0x2b6   : > { %11490 = vmatprep.subr.bf16.mxu1 %v12710_v51 }
 0x2b7   : > { %11479 = vmatpush3.bf16.msra.mxu0 %v12709_v49  ;;  %v12728_v49 = vld [vmem:[%s15677_s7 + $0x18] sm:$0xff]  }
 0x2b8   : > { %11491 = vmatpush3.bf16.msra.mxu1 %v12710_v51  ;;  %11480 = vmatprep.subr.bf16.mxu0 %v12711_v53 }
 0x2b9   : > { %11492 = vmatprep.subr.bf16.mxu1 %v12712_v54 }
 0x2bb   : > { %11481 = vmatpush3.bf16.msra.mxu0 %v12711_v53 }
 0x2bc   : > { %11493 = vmatpush3.bf16.msra.mxu1 %v12712_v54  ;;  %11482 = vmatprep.subr.bf16.mxu0 %v12713_v55 }
 0x2bd   : > { %11494 = vmatprep.subr.bf16.mxu1 %v12714_v58 }
 0x2bf   : > { %11483 = vmatpush3.bf16.msra.mxu0 %v12713_v55 }
 0x2c0   : > { %11495 = vmatpush3.bf16.msra.mxu1 %v12714_v58  ;;  %11500 = vmatprep.subr.bf16.mxu0 %v12715_v59 }
 0x2c1   : > { %11512 = vmatprep.subr.bf16.mxu1 %v13726_v4 }
 0x2c2   : > { %11485 = vmatmul.mubr.msk.bf16.vlgmr.msra.gmra.mxu0 %vm461_vm14, %v3651_v1  ;;  %v12730_v1 = vld [vmem:[%s15677_s7 + $0x10] sm:$0xff]  }
 0x2c3   : > { %11497 = vmatmul.mubr.msk.bf16.vlgmr.msra.gmra.mxu1 %vm461_vm14, %v3746_v3  ;;  %11501 = vmatpush3.bf16.msra.mxu0 %v12715_v59  ;;  %v12729_v59 = vld [vmem:[%s15677_s7 + $0x50] sm:$0xff]   ;;  %v12732_v3 = vld [vmem:[%s15677_s7 + $0x8] sm:$0xff]  }
 0x2c4   : > { %11508 = vmatprep.mubr.msk.bf16.mxu0 %vm461_vm14, %v3840_v5  ;;  %11502 = vmatprep.subr.bf16.mxu0 %v12716_v2  ;;  %v12733_v5 = vld [vmem:[%s15677_s7 + $0x40] sm:$0xff]  }
 0x2c5   : > { %11513 = vmatpush3.bf16.msra.mxu1 %v12719_v60  ;;  %11528 = vmatprep.mubr.msk.bf16.mxu1 %vm13010_vm1, %v13726_v4  ;;  %v12737_v60 = vld [vmem:[%s15677_s7 + $0xf8] sm:$0xff]  }
 0x2c6   : > { %11514 = vmatprep.subr.bf16.mxu1 %v13726_v4 }
 0x2c7   : > { %11503 = vmatpush3.bf16.msra.mxu0 %v12716_v2  ;;  %v12731_v2 = vld [vmem:[%s15677_s7 + $0x48] sm:$0xff]  }
 0x2c8   : > { %11504 = vmatprep.subr.bf16.mxu0 %v12717_v6 }
 0x2c9   : > { %11515 = vmatpush3.bf16.msra.mxu1 %v12721_v37  ;;  %v12741_v37 = vld [vmem:[%s15677_s7 + $0xa0] sm:$0xff]  }
 0x2ca   : > { %11516 = vmatprep.subr.bf16.mxu1 %v13726_v4 }
 0x2cb   : > { %11505 = vmatpush3.bf16.msra.mxu0 %v12717_v6  ;;  %v3978_v6 = vld [vmem:[#allocation5 + $0x1] sm:$0xff] }
 0x2cc   : > { %11506 = vmatprep.subr.bf16.mxu0 %v12718_v7 }
 0x2cd   : > { %11517 = vmatpush3.bf16.msra.mxu1 %v12723_v42 }
 0x2ce   : > { %11518 = vmatprep.subr.bf16.mxu1 %v13726_v4 }
 0x2cf   : > { %11507 = vmatpush3.bf16.msra.mxu0 %v12718_v7  ;;  %v3979_v7 = vld [vmem:[#allocation5 + $0x9] sm:$0xff] }
 0x2d0   : > { %11548 = vmatprep.subr.bf16.mxu0 %v13726_v4 }
 0x2d1   : > { %11519 = vmatpush3.bf16.msra.mxu1 %v12725_v44 }
 0x2d2   : > { %11509 = vmatmul.mubr.msk.bf16.vlgmr.msra.gmra.mxu0 %vm461_vm14, %v3841_v9  ;;  %v11222_v10 = vpop.f32.mrf.mxu0  ;;  %11520 = vmatprep.subr.bf16.mxu1 %v13726_v4  ;;  %v3988_v9 = vpack.c.bf16 %v3979_v7, %v3978_v6 }
 0x2d3   : > { %v11234_v11 = vpop.f32.mrf.mxu1  ;;  %11549 = vmatpush3.bf16.msra.mxu0 %v12720_v61  ;;  %11564 = vmatprep.mubr.msk.bf16.mxu0 %vm13010_vm1, %v13726_v4  ;;  %v12738_v61 = vld [vmem:[%s15677_s7 + $0xf0] sm:$0xff]  }
 0x2d4   : > { %v1742_v12 = vadd.f32 %v11234_v11, %v11222_v10  ;;  %v1655_v13 = vpop.f32.mrf.mxu0  ;;  %11550 = vmatprep.subr.bf16.mxu0 %v13726_v4  ;;  %v3957_v11 = vpack.c.bf16 %v13726_v4, %v13726_v4 }
 0x2d5   : > { %v1733_v14 = vpop.f32.mrf.mxu1  ;;  %11521 = vmatpush3.bf16.msra.mxu1 %v12727_v46  ;;  %v12743_v46 = vld [vmem:[%s15677_s7 + $0x98] sm:$0xff]  }
 0x2d6   : > { %v1734_v15 = vadd.f32 %v1733_v14, %v1655_v13  ;;  %v11223_v16 = vpop.f32.mrf.mxu0  ;;  %11522 = vmatprep.subr.bf16.mxu1 %v13726_v4 }
 0x2d7   : > { %v11235_v17 = vpop.f32.mrf.mxu1  ;;  %11551 = vmatpush3.bf16.msra.mxu0 %v12722_v41 }
 0x2d8   : > { %v13741_v18 = vpop.f32.mrf.mxu0  ;;  %11552 = vmatprep.subr.bf16.mxu0 %v13726_v4 }
 0x2d9   : > { %v13743_v19 = vpop.f32.mrf.mxu1  ;;  %11523 = vmatpush3.bf16.msra.mxu1 %v12729_v59 }
 0x2da   : > { %11524 = vmatprep.subr.bf16.mxu1 %v13726_v4 }
 0x2db   : > { %11553 = vmatpush3.bf16.msra.mxu0 %v12724_v43 }
 0x2dc   : > { %11554 = vmatprep.subr.bf16.mxu0 %v13726_v4 }
 0x2dd   : > { %11525 = vmatpush3.bf16.msra.mxu1 %v12731_v2 }
 0x2de   : > { %11526 = vmatprep.subr.bf16.mxu1 %v13726_v4 }
 0x2df   : > { %11555 = vmatpush3.bf16.msra.mxu0 %v12726_v45  ;;  %v12742_v45 = vld [vmem:[%s15677_s7 + $0xe0] sm:$0xff]  }
 0x2e0   : > { %11556 = vmatprep.subr.bf16.mxu0 %v13726_v4 }
 0x2e1   : > { %11527 = vmatpush3.bf16.msra.mxu1 %v12733_v5 }
 0x2e2   : > { %v11246_v20 = vpop.f32.mrf.mxu0  ;;  %11584 = vmatprep.subr.bf16.mxu1 %v13726_v4 }
 0x2e3   : > { %v1841_v21 = vadd.f32 %v11246_v20, %v1742_v12  ;;  %v11258_v56 = vpop.f32.mrf.mxu1  ;;  %11557 = vmatpush3.bf16.msra.mxu0 %v12728_v49  ;;  %v12744_v49 = vld [vmem:[%s15677_s7 + $0xd8] sm:$0xff]  }
 0x2e4   : > { %v1825_v57 = vpop.f32.mrf.mxu0  ;;  %11558 = vmatprep.subr.bf16.mxu0 %v13726_v4  ;;  %11529 = vmatmul.mubr.bf16.vlgmr.msra.gmra.mxu1 %v3988_v9 }
 0x2e5   : > { %v1936_v22 = vadd.f32 %v11258_v56, %v1841_v21  ;;  %v1839_v23 = vadd.f32 %v1825_v57, %v1734_v15  ;;  %v1920_v24 = vpop.f32.mrf.mxu1  ;;  %11532 = vmatprep.mubr.msk.bf16.mxu1 %vm13010_vm1, %v13726_v4 }
 0x2e6   : > { %v11247_v25 = vpop.f32.mrf.mxu0 }
 0x2e7   : > { %v1934_v26 = vadd.f32 %v1920_v24, %v1839_v23  ;;  %v11259_v27 = vpop.f32.mrf.mxu1  ;;  %11559 = vmatpush3.bf16.msra.mxu0 %v12730_v1  ;;  %v12735_v23 = vld [vmem:[%s15677_s7 + $0xb8] sm:$0xff]   ;;  %v3981_v25 = vld [vmem:[#allocation5 + $0x19] sm:$0xff] }
 0x2e8   : > { %v13753_v28 = vpop.f32.mrf.mxu0  ;;  %11560 = vmatprep.subr.bf16.mxu0 %v13726_v4  ;;  %11585 = vmatpush3.bf16.msra.mxu1 %v12735_v23  ;;  %v3980_v24 = vld [vmem:[#allocation5 + $0x11] sm:$0xff]  ;;  %v12736_v27 = vld [vmem:[%s15677_s7 + $0xb0] sm:$0xff]  }
 0x2e9   : > { %v13755_v29 = vpop.f32.mrf.mxu1  ;;  %11586 = vmatprep.subr.bf16.mxu1 %v13726_v4 }
 0x2eb   : > { %11561 = vmatpush3.bf16.msra.mxu0 %v12732_v3 }
 0x2ec   : > { %11562 = vmatprep.subr.bf16.mxu0 %v13726_v4  ;;  %11587 = vmatpush3.bf16.msra.mxu1 %v12736_v27 }
 0x2ed   : > { %11588 = vmatprep.subr.bf16.mxu1 %v13726_v4 }
 0x2ef   : > { %11563 = vmatpush3.bf16.msra.mxu0 %v12734_v8  ;;  %v12749_v8 = vld [vmem:[%s15677_s7 + $0xc0] sm:$0xff]  }
 0x2f0   : > { %11620 = vmatprep.subr.bf16.mxu0 %v13726_v4 }
 0x2f2   : > { %v11270_v30 = vpop.f32.mrf.mxu0  ;;  %11565 = vmatmul.mubr.bf16.vlgmr.msra.gmra.mxu0 %v3957_v11 }
 0x2f3   : > { %v2031_v31 = vadd.f32 %v11270_v30, %v1936_v22  ;;  %v11282_v32 = vpop.f32.mrf.mxu1  ;;  %11568 = vmatprep.mubr.msk.bf16.mxu0 %vm13010_vm1, %v13726_v4  ;;  %11621 = vmatpush3.bf16.msra.mxu0 %v12737_v60  ;;  %v12739_v30 = vld [vmem:[%s15677_s7 + $0xa8] sm:$0xff]  }
 0x2f4   : > { %v2015_v33 = vpop.f32.mrf.mxu0  ;;  %11622 = vmatprep.subr.bf16.mxu0 %v13726_v4  ;;  %11589 = vmatpush3.bf16.msra.mxu1 %v12739_v30 }
 0x2f5   : > { %v2126_v34 = vadd.f32 %v11282_v32, %v2031_v31  ;;  %v2029_v35 = vadd.f32 %v2015_v33, %v1934_v26  ;;  %v2110_v36 = vpop.f32.mrf.mxu1  ;;  %v3989_v26 = vpack.c.bf16 %v3981_v25, %v3980_v24  ;;  %11590 = vmatprep.subr.bf16.mxu1 %v13726_v4  ;;  %v1737_v24 = vadd.f32 %v13743_v19, %v13741_v18 }
 0x2f6   : > { %v11271_v38 = vpop.f32.mrf.mxu0 }
 0x2f7   : > { %v2124_v39 = vadd.f32 %v2110_v36, %v2029_v35  ;;  %v11283_v40 = vpop.f32.mrf.mxu1  ;;  %11533 = vmatmul.mubr.bf16.gmra.mxu1 %v3989_v26  ;;  %11623 = vmatpush3.bf16.msra.mxu0 %v12738_v61  ;;  %v12740_v36 = vld [vmem:[%s15677_s7 + $0xe8] sm:$0xff]   ;;  %v1840_v27 = vadd.f32 %v13753_v28, %v1737_v24 }
 0x2f8   : > { %v13782_v47 = vpop.f32.mrf.mxu0  ;;  %11536 = vmatprep.mubr.msk.bf16.mxu1 %vm13010_vm1, %v13726_v4  ;;  %11624 = vmatprep.subr.bf16.mxu0 %v13726_v4 }
 0x2f9   : > { %v13785_v48 = vpop.f32.mrf.mxu1  ;;  %11591 = vmatpush3.bf16.msra.mxu1 %v12741_v37  ;;  %v1935_v61 = vadd.f32 %v13755_v29, %v1840_v27 }
 0x2fa   : > { %11569 = vmatmul.mubr.bf16.gmra.mxu0 %v3957_v11  ;;  %11592 = vmatprep.subr.bf16.mxu1 %v13726_v4 }
 0x2fb   : > { %11572 = vmatprep.mubr.msk.bf16.mxu0 %vm13010_vm1, %v13726_v4  ;;  %11625 = vmatpush3.bf16.msra.mxu0 %v12740_v36  ;;  %v2030_v30 = vadd.f32 %v13782_v47, %v1935_v61 }
 0x2fc   : > { %11626 = vmatprep.subr.bf16.mxu0 %v13726_v4 }
 0x2fd   : > { %11593 = vmatpush3.bf16.msra.mxu1 %v12743_v46 }
 0x2fe   : > { %11594 = vmatprep.subr.bf16.mxu1 %v13726_v4 }
 0x2ff   : > { %11627 = vmatpush3.bf16.msra.mxu0 %v12742_v45 }
 0x300   : > { %11628 = vmatprep.subr.bf16.mxu0 %v13726_v4 }
 0x302   : > { %v11294_v50 = vpop.f32.mrf.mxu0  ;;  %11573 = vmatmul.mubr.bf16.gmra.mxu0 %v3957_v11 }
 0x303   : > { %v2221_v51 = vadd.f32 %v11294_v50, %v2126_v34  ;;  %v11306_v52 = vpop.f32.mrf.mxu1  ;;  %11576 = vmatprep.mubr.msk.bf16.mxu0 %vm13010_vm1, %v13726_v4  ;;  %v12745_v50 = vld [vmem:[%s15677_s7 + $0x90] sm:$0xff]   ;;  %11629 = vmatpush3.bf16.msra.mxu0 %v12744_v49 }
 0x304   : > { %v2205_v53 = vpop.f32.mrf.mxu0  ;;  %11595 = vmatpush3.bf16.msra.mxu1 %v12745_v50  ;;  %11630 = vmatprep.subr.bf16.mxu0 %v13726_v4 }
 0x305   : > { %v2316_v54 = vadd.f32 %v11306_v52, %v2221_v51  ;;  %v2219_v55 = vadd.f32 %v2205_v53, %v2124_v39  ;;  %v2300_v58 = vpop.f32.mrf.mxu1  ;;  %v12746_v51 = vld [vmem:[%s15677_s7 + $0xd0] sm:$0xff]   ;;  %v12748_v52 = vld [vmem:[%s15677_s7 + $0x88] sm:$0xff]   ;;  %11596 = vmatprep.subr.bf16.mxu1 %v13726_v4 }
 0x306   : > { %v11295_v62 = vpop.f32.mrf.mxu0 }
 0x307   : > { %v2314_v63 = vadd.f32 %v2300_v58, %v2219_v55  ;;  %v11307_v0 = vpop.f32.mrf.mxu1  ;;  %11631 = vmatpush3.bf16.msra.mxu0 %v12746_v51  ;;  %v12747_v62 = vld [vmem:[%s15677_s7 + $0xc8] sm:$0xff]  }
 0x308   : > { %v13819_v10 = vpop.f32.mrf.mxu0  ;;  %11597 = vmatpush3.bf16.msra.mxu1 %v12748_v52  ;;  %11632 = vmatprep.subr.bf16.mxu0 %v13726_v4 }
 0x309   : > { %v13824_v12 = vpop.f32.mrf.mxu1  ;;  %11598 = vmatprep.subr.bf16.mxu1 %v13726_v4 }
 0x30b   : > { %11633 = vmatpush3.bf16.msra.mxu0 %v12747_v62 }
 0x30c   : > { %11634 = vmatprep.subr.bf16.mxu0 %v13726_v4 }
 0x30f   : > { %11635 = vmatpush3.bf16.msra.mxu0 %v12749_v8 }
 0x310   : > { %11692 = vmatprep.subr.bf16.mxu0 %v13726_v4 }
 0x312   : > { %v11318_v13 = vpop.f32.mrf.mxu0 }
 0x313   : > { %v2411_v14 = vadd.f32 %v11318_v13, %v2316_v54  ;;  %v11330_v15 = vpop.f32.mrf.mxu1 }
 0x314   : > { %v2395_v16 = vpop.f32.mrf.mxu0 }
 0x315   : > { %v2506_v17 = vadd.f32 %v11330_v15, %v2411_v14  ;;  %v2409_v20 = vadd.f32 %v2395_v16, %v2314_v63  ;;  %v2490_v21 = vpop.f32.mrf.mxu1  ;;  %v12750_v63 = vld [vmem:[%s15677_s7 + $0x80] sm:$0xff]  }
 0x316   : > { %v11319_v56 = vpop.f32.mrf.mxu0  ;;  %11599 = vmatpush3.bf16.msra.mxu1 %v12750_v63 }
 0x317   : > { %v2504_v57 = vadd.f32 %v2490_v21, %v2409_v20  ;;  %v11331_v22 = vpop.f32.mrf.mxu1  ;;  %11656 = vmatprep.subr.bf16.mxu1 %v13726_v4 }
 0x318   : > { %v13851_v31 = vpop.f32.mrf.mxu0 }
 0x319   : > { %v13855_v32 = vpop.f32.mrf.mxu1 }
 0x322   : > { %v11342_v33 = vpop.f32.mrf.mxu0 }
 0x323   : > { %v2601_v34 = vadd.f32 %v11342_v33, %v2506_v17  ;;  %v11354_v35 = vpop.f32.mrf.mxu1 }
 0x324   : > { %v2585_v38 = vpop.f32.mrf.mxu0 }
 0x325   : > { %v2696_v39 = vadd.f32 %v11354_v35, %v2601_v34  ;;  %v2599_v40 = vadd.f32 %v2585_v38, %v2504_v57  ;;  %v2680_v41 = vpop.f32.mrf.mxu1  ;;  %v2125_v34 = vadd.f32 %v13785_v48, %v2030_v30  ;;  %v9720_v30 = vld [vmem:[%s15676_s6] ss:$0 sm:$0xff] }
 0x326   : > { %v11343_v42 = vpop.f32.mrf.mxu0 }
 0x327   : > { %v2694_v43 = vadd.f32 %v2680_v41, %v2599_v40  ;;  %v11355_v44 = vpop.f32.mrf.mxu1  ;;  %v2220_v37 = vadd.f32 %v13819_v10, %v2125_v34 }
 0x328   : > { %v2588_v53 = vpop.f32.mrf.mxu0 }
 0x329   : > { %v2683_v54 = vpop.f32.mrf.mxu1  ;;  %v2315_v19 = vadd.f32 %v13824_v12, %v2220_v37 }
 0x32b   : > { %v2410_v28 = vadd.f32 %v13851_v31, %v2315_v19 }
 0x32d   : > { %v2505_v29 = vadd.f32 %v13855_v32, %v2410_v28 }
 0x32f   : > { %v2600_v42 = vadd.f32 %v2588_v53, %v2505_v29 }
 0x331   : > { %v2695_v48 = vadd.f32 %v2683_v54, %v2600_v42  ;;  %v3982_v42 = vld [vmem:[#allocation5 + $0x21] sm:$0xff] }
 0x332   : > { %v11366_v55 = vpop.f32.mrf.mxu0 }
 0x333   : > { %v2791_v58 = vadd.f32 %v11366_v55, %v2696_v39  ;;  %v11378_v59 = vpop.f32.mrf.mxu1 }
 0x334   : > { %v2775_v0 = vpop.f32.mrf.mxu0 }
 0x335   : > { %v2886_v1 = vadd.f32 %v11378_v59, %v2791_v58  ;;  %v2789_v2 = vadd.f32 %v2775_v0, %v2694_v43  ;;  %v2870_v3 = vpop.f32.mrf.mxu1 }
 0x336   : > { %v11367_v5 = vpop.f32.mrf.mxu0 }
 0x337   : > { %v2884_v6 = vadd.f32 %v2870_v3, %v2789_v2  ;;  %v11379_v7 = vpop.f32.mrf.mxu1 }
 0x338   : > { %v2778_v9 = vpop.f32.mrf.mxu0 }
 0x339   : > { %v2873_v11 = vpop.f32.mrf.mxu1  ;;  %v2790_v49 = vadd.f32 %v2778_v9, %v2695_v48 }
 0x33b   : > { %v2885_v58 = vadd.f32 %v2873_v11, %v2790_v49 }
 0x342   : > { %v11390_v13 = vpop.f32.mrf.mxu0 }
 0x343   : > { %v11402_v14 = vpop.f32.mrf.mxu1  ;;  %v2981_v10 = vadd.f32 %v11390_v13, %v2886_v1 }
 0x344   : > { %v2965_v15 = vpop.f32.mrf.mxu0 }
 0x345   : > { %v3060_v16 = vpop.f32.mrf.mxu1  ;;  %v2979_v52 = vadd.f32 %v2965_v15, %v2884_v6  ;;  %v3076_v12 = vadd.f32 %v11402_v14, %v2981_v10 }
 0x346   : > { %v11391_v17 = vpop.f32.mrf.mxu0 }
 0x347   : > { %v11403_v20 = vpop.f32.mrf.mxu1  ;;  %v3074_v59 = vadd.f32 %v3060_v16, %v2979_v52 }
 0x348   : > { %v2968_v21 = vpop.f32.mrf.mxu0 }
 0x349   : > { %v3063_v56 = vpop.f32.mrf.mxu1  ;;  %v2980_v62 = vadd.f32 %v2968_v21, %v2885_v58  ;;  %v3987_v58 = vld [vmem:[#allocation5 + $0x49] sm:$0x1f] }
 0x34b   : > { %v3075_v32 = vadd.f32 %v3063_v56, %v2980_v62 }
 0x352   : > { %v11414_v57 = vpop.f32.mrf.mxu0 }
 0x353   : > { %v11426_v22 = vpop.f32.mrf.mxu1  ;;  %v3171_v31 = vadd.f32 %v11414_v57, %v3076_v12  ;;  %v4415_v12 = vld [vmem:[#allocation5 + $0x3] sm:$0xff] }
 0x354   : > { %v3155_v23 = vpop.f32.mrf.mxu0 }
 0x355   : > { %v3250_v25 = vpop.f32.mrf.mxu1  ;;  %v3169_v63 = vadd.f32 %v3155_v23, %v3074_v59  ;;  %v3266_v53 = vadd.f32 %v11426_v22, %v3171_v31  ;;  %v13926_v59 = vld [vmem:[#allocation5 + $0xb] sm:$0xff] }
 0x356   : > { %v11415_v26 = vpop.f32.mrf.mxu0  ;;  %v4425_v31 = vpack.c.bf16 %v13926_v59, %v4415_v12 }
 0x357   : > { %v11427_v60 = vpop.f32.mrf.mxu1  ;;  %v3264_v2 = vadd.f32 %v3250_v25, %v3169_v63  ;;  %v4252_v63 = vld [vmem:[#allocation5 + $0x2] sm:$0xff] }
 0x358   : > { %v3158_v33 = vpop.f32.mrf.mxu0 }
 0x359   : > { %v3253_v35 = vpop.f32.mrf.mxu1  ;;  %v3170_v3 = vadd.f32 %v3158_v33, %v3075_v32  ;;  %v4253_v32 = vld [vmem:[#allocation5 + $0xa] sm:$0xff] }
 0x35b   : > { %v3265_v13 = vadd.f32 %v3253_v35, %v3170_v3  ;;  %v13939_v3 = vld [vmem:[#allocation5 + $0x13] sm:$0xff] }
 0x362   : > { %v11438_v36 = vpop.f32.mrf.mxu0 }
 0x363   : > { %v11450_v38 = vpop.f32.mrf.mxu1  ;;  %v3361_v54 = vadd.f32 %v11438_v36, %v3266_v53  ;;  %v12753_v53 = vld [vmem:[%s15677_s7 + $0x178] sm:$0xff]  }
 0x364   : > { %v3345_v39 = vpop.f32.mrf.mxu0 }
 0x365   : > { %v3440_v40 = vpop.f32.mrf.mxu1  ;;  %v3359_v8 = vadd.f32 %v3345_v39, %v3264_v2  ;;  %v3456_v6 = vadd.f32 %v11450_v38, %v3361_v54  ;;  %v12751_v2 = vld [vmem:[%s15677_s7 + $0x138] sm:$0xff]   ;;  %v13941_v54 = vld [vmem:[#allocation5 + $0x1b] sm:$0xff] }
 0x366   : > { %v11439_v18 = vpop.f32.mrf.mxu0 }
 0x367   : > { %v11451_v41 = vpop.f32.mrf.mxu1  ;;  %v3454_v14 = vadd.f32 %v3440_v40, %v3359_v8  ;;  %v12752_v8 = vld [vmem:[%s15677_s7 + $0x130] sm:$0xff]  }
 0x368   : > { %v3348_v47 = vpop.f32.mrf.mxu0 }
 0x369   : > { %v3443_v43 = vpop.f32.mrf.mxu1  ;;  %v3360_v16 = vadd.f32 %v3348_v47, %v3265_v13  ;;  %v12756_v13 = vld [vmem:[%s15677_s7 + $0x168] sm:$0xff]  }
 0x36b   : > { %v3455_v56 = vadd.f32 %v3443_v43, %v3360_v16 }
 0x372   : > { %v11462_v44 = vpop.f32.mrf.mxu0 }
 0x373   : > { %v11474_v45 = vpop.f32.mrf.mxu1  ;;  %v3551_v17 = vadd.f32 %v11462_v44, %v3456_v6 }
 0x374   : > { %v3535_v46 = vpop.f32.mrf.mxu0 }
 0x375   : > { %v3630_v50 = vpop.f32.mrf.mxu1  ;;  %v3549_v21 = vadd.f32 %v3535_v46, %v3454_v14  ;;  %v3646_v57 = vadd.f32 %v11474_v45, %v3551_v17  ;;  %v13968_v14 = vld [vmem:[#allocation5 + $0x23] sm:$0xff]  ;;  %v12757_v17 = vld [vmem:[%s15677_s7 + $0x120] sm:$0xff]  }
 0x376   : > { %v11463_v51 = vpop.f32.mrf.mxu0 }
 0x377   : > { %v11475_v55 = vpop.f32.mrf.mxu1  ;;  %v3644_v22 = vadd.f32 %v3630_v50, %v3549_v21  ;;  %v12760_v21 = vld [vmem:[%s15677_s7 + $0x158] sm:$0xff]  }
 0x378   : > { %v3538_v0 = vpop.f32.mrf.mxu0 }
 0x379   : > { %v3633_v5 = vpop.f32.mrf.mxu1  ;;  %v3550_v23 = vadd.f32 %v3538_v0, %v3455_v56  ;;  %v4262_v0 = vpack.c.bf16 %v4253_v32, %v4252_v63  ;;  %v4256_v56 = vld [vmem:[#allocation5 + $0x22] sm:$0xff] }
 0x37b   : > { %v3645_v27 = vadd.f32 %v3633_v5, %v3550_v23  ;;  %v12754_v5 = vld [vmem:[%s15677_s7 + $0x170] sm:$0xff]  }
 0x382   : > { %v11486_v7 = vpop.f32.mrf.mxu0 }
 0x383   : > { %v11498_v1 = vpop.f32.mrf.mxu1  ;;  %v3741_v24 = vadd.f32 %v11486_v7, %v3646_v57  ;;  %v4426_v7 = vpack.c.bf16 %v13941_v54, %v13939_v3 }
 0x384   : > { %v3725_v9 = vpop.f32.mrf.mxu0 }
 0x385   : > { %v3820_v15 = vpop.f32.mrf.mxu1  ;;  %v3739_v25 = vadd.f32 %v3725_v9, %v3644_v22  ;;  %v3836_v60 = vadd.f32 %v11498_v1, %v3741_v24  ;;  %v4254_v1 = vld [vmem:[#allocation5 + $0x12] sm:$0xff]  ;;  %v4255_v9 = vld [vmem:[#allocation5 + $0x1a] sm:$0xff]  ;;  %v12762_v24 = vld [vmem:[%s15677_s7 + $0x150] sm:$0xff]  }
 0x386   : > { %v11487_v11 = vpop.f32.mrf.mxu0  ;;  %v4263_v6 = vpack.c.bf16 %v4255_v9, %v4254_v1  ;;  %v12759_v22 = vld [vmem:[%s15677_s7 + $0x118] sm:$0xff]   ;;  %v14070_v9 = vld [vmem:[#allocation5 + $0x1c] sm:$0xff] }
 0x387   : > { %v11499_v20 = vpop.f32.mrf.mxu1  ;;  %v3834_v33 = vadd.f32 %v3820_v15, %v3739_v25  ;;  %v12755_v15 = vld [vmem:[%s15677_s7 + $0x128] sm:$0xff]   ;;  %v12758_v11 = vld [vmem:[%s15677_s7 + $0x160] sm:$0xff]  }
 0x388   : > { %v3728_v26 = vpop.f32.mrf.mxu0  ;;  %v14068_v1 = vld [vmem:[#allocation5 + $0x14] sm:$0xff] }
 0x389   : > { %v3740_v34 = vadd.f32 %v3728_v26, %v3645_v27  ;;  %v3823_v39 = vpop.f32.mrf.mxu1  ;;  %v13997_v26 = vld [vmem:[#allocation5 + $0x33] sm:$0xff]  ;;  %v12761_v27 = vld [vmem:[%s15677_s7 + $0x110] sm:$0xff]  }
 0x38b   : > { %v3835_v18 = vadd.f32 %v3823_v39, %v3740_v34  ;;  %v12764_v34 = vld [vmem:[%s15677_s7 + $0x108] sm:$0xff]  }
 0x392   : > { %v11510_v61 = vpop.f32.mrf.mxu0 }
 0x393   : > { %v3931_v35 = vadd.f32 %v11510_v61, %v3836_v60  ;;  %v12763_v61 = vld [vmem:[%s15677_s7 + $0x148] sm:$0xff]  }
 0x394   : > { %v3915_v36 = vpop.f32.mrf.mxu0 }
 0x395   : > { %v3941_v37 = vadd.f32 %v9720_v30, %v3931_v35  ;;  %v3929_v38 = vadd.f32 %v3915_v36, %v3834_v33  ;;  %v12765_v36 = vld [vmem:[%s15677_s7 + $0x140] sm:$0xff]  }
 0x396   : > { %v11511_v40 = vpop.f32.mrf.mxu0 }
 0x397   : > { %3946 = vst [vmem:[#allocation5 + $0x48] sm:$0x1] %v3941_v37  ;;  %v3939_v19 = vadd.f32 %v9720_v30, %v3929_v38  ;;  %v4424_v38 = vld [vmem:[#allocation5 + $0x4b] sm:$0x1f]  ;;  %v12766_v40 = vld [vmem:[%s15677_s7 + $0x100] sm:$0xff]  }
 0x398   : > { %v3918_v41 = vpop.f32.mrf.mxu0 }
 0x399   : > { %3942 = vst [vmem:[#allocation5 + $0x30] ss:$8 sps:$4 sm:$0x87] %v3939_v19   ;;  %v3930_v28 = vadd.f32 %v3918_v41, %v3835_v18 }
 0x39b   : > { %v3940_v29 = vadd.f32 %v9720_v30, %v3930_v28 }
 0x39d   : > { %3944 = vst [vmem:[#allocation5 + $0x3c] ss:$8 sps:$4 sm:$0xc3] %v3940_v29  }
 0x39e   : > { %v3956_v51 = vld [vmem:[#allocation5 + $0x48] sm:$0x1f] }
 0x3a0   : > { %v3983_v47 = vld [vmem:[#allocation5 + $0x29] sm:$0xff]  ;;  %v3984_v49 = vld [vmem:[#allocation5 + $0x31] sm:$0xff] }
 0x3a1   : > { %v3990_v43 = vpack.c.bf16 %v3983_v47, %v3982_v42  ;;  %v3953_v44 = vld [vmem:[#allocation5 + $0x30] sm:$0xff]  ;;  %v4261_v42 = vld [vmem:[#allocation5 + $0x4a] sm:$0x1f] }
 0x3a2   : > { %v13970_v16 = vld [vmem:[#allocation5 + $0x2b] sm:$0xff] }
 0x3a3   : > { %11537 = vmatmul.mubr.bf16.gmra.mxu1 %v3990_v43  ;;  %v4427_v20 = vpack.c.bf16 %v13970_v16, %v13968_v14  ;;  %v4257_v57 = vld [vmem:[#allocation5 + $0x2a] sm:$0xff]  ;;  %v4258_v33 = vld [vmem:[#allocation5 + $0x32] sm:$0xff] }
 0x3a4   : > { %v3954_v48 = vld [vmem:[#allocation5 + $0x38] sm:$0xff]  ;;  %11540 = vmatprep.mubr.msk.bf16.mxu1 %vm13010_vm1, %v13726_v4  ;;  %v3955_v50 = vld [vmem:[#allocation5 + $0x40] sm:$0xff]  ;;  %v4264_v23 = vpack.c.bf16 %v4257_v57, %v4256_v56  ;;  %v4092_v39 = vpop.f32.mrf.mxu1  ;;  %v4753_v56 = vpack.c.bf16 %v13997_v26, %v13970_v16  ;;  %v12776_v57 = vld [vmem:[%s15677_s7 + $0x1d8] sm:$0xff]  }
 0x3a5   : > { %v3960_v45 = vpack.c.bf16 %v3954_v48, %v3953_v44  ;;  %v3985_v46 = vld [vmem:[#allocation5 + $0x39] sm:$0xff]  ;;  %v3961_v52 = vpack.c.bf16 %v3956_v51, %v3955_v50  ;;  %v3986_v55 = vld [vmem:[#allocation5 + $0x41] sm:$0xff]  ;;  %v14042_v51 = vld [vmem:[#allocation5 + $0xc] sm:$0xff] }
 0x3a6   : > { %v3991_v10 = vpack.c.bf16 %v3985_v46, %v3984_v49  ;;  %v3992_v62 = vpack.c.bf16 %v3987_v58, %v3986_v55  ;;  %v13994_v25 = vld [vmem:[#allocation5 + $0x3b] sm:$0xff]  ;;  %v14020_v37 = vld [vmem:[#allocation5 + $0x43] sm:$0xff]  ;;  %v11530_v18 = vpop.f32.mrf.mxu1  ;;  %v12775_v16 = vld [vmem:[%s15677_s7 + $0x198] sm:$0xff]  }
 0x3a7   : > { %11577 = vmatmul.mubr.bf16.gmra.mxu0 %v3960_v45  ;;  %v4428_v60 = vpack.c.bf16 %v13994_v25, %v13997_v26  ;;  %v4259_v30 = vld [vmem:[#allocation5 + $0x3a] sm:$0xff]  ;;  %v4429_v41 = vpack.c.bf16 %v4424_v38, %v14020_v37  ;;  %v4260_v29 = vld [vmem:[#allocation5 + $0x42] sm:$0xff]  ;;  %v4587_v18 = vld [vmem:[#allocation5 + $0x4c] sm:$0x1f] }
 0x3a8   : > { %11580 = vmatprep.mubr.msk.bf16.mxu0 %vm13010_vm1, %v13726_v4  ;;  %v4265_v35 = vpack.c.bf16 %v4259_v30, %v4258_v33  ;;  %v4095_v47 = vpop.f32.mrf.mxu1  ;;  %v4266_v45 = vpack.c.bf16 %v4261_v42, %v4260_v29  ;;  %v4578_v50 = vld [vmem:[#allocation5 + $0x4] sm:$0xff]  ;;  %v14134_v30 = vld [vmem:[#allocation5 + $0x3c] sm:$0xff] }
 0x3a9   : > { %v4588_v63 = vpack.c.bf16 %v14042_v51, %v4578_v50  ;;  %v12778_v26 = vld [vmem:[%s15677_s7 + $0x1d0] sm:$0xff]  }
 0x3aa   : > { %v11531_v44 = vpop.f32.mrf.mxu1  ;;  %v4749_v33 = vld [vmem:[#allocation5 + $0x4b] sm:$0xff] }
 0x3ab   : > { %11541 = vmatmul.mubr.bf16.gmra.mxu1 %v3991_v10  ;;  %v4751_v10 = vpack.c.bf16 %v13939_v3, %v13926_v59  ;;  %v12767_v59 = vld [vmem:[%s15677_s7 + $0x1b8] sm:$0xff]   ;;  %v12784_v50 = vld [vmem:[%s15677_s7 + $0x230] sm:$0xff]  }
 0x3ac   : > { %11544 = vmatprep.mubr.msk.bf16.mxu1 %vm13010_vm1, %v13726_v4  ;;  %v12783_v44 = vld [vmem:[%s15677_s7 + $0x238] sm:$0xff]  }
 0x3af   : > { %11581 = vmatmul.mubr.bf16.gmra.mxu0 %v3961_v52  ;;  %v12769_v52 = vld [vmem:[%s15677_s7 + $0x1f8] sm:$0xff]  }
 0x3b0   : > { %11636 = vmatprep.mubr.msk.bf16.mxu0 %vm13010_vm1, %v13726_v4 }
 0x3b2   : > { %v4213_v19 = vpop.f32.mrf.mxu0 }
 0x3b3   : > { %11545 = vmatmul.mubr.bf16.gmra.mxu1 %v3992_v62  ;;  %v14030_v28 = vadd.f32 %v4213_v19, %v4092_v39  ;;  %v12782_v39 = vld [vmem:[%s15677_s7 + $0x180] sm:$0xff]   ;;  %v5067_v19 = vld [vmem:[#allocation5 + $0xd] sm:$0xff] }
 0x3b4   : > { %11600 = vmatprep.mubr.msk.bf16.mxu1 %vm13010_vm1, %v13726_v4  ;;  %v11566_v43 = vpop.f32.mrf.mxu0 }
 0x3b5   : > { %v4914_v43 = vpack.c.bf16 %v14068_v1, %v14042_v51  ;;  %v12788_v51 = vld [vmem:[%s15677_s7 + $0x268] sm:$0xff]  }
 0x3b6   : > { %v4216_v48 = vpop.f32.mrf.mxu0 }
 0x3b7   : > { %11637 = vmatmul.mubr.bf16.vlgmr.msra.gmra.mxu0 %v4425_v31  ;;  %v14036_v46 = vadd.f32 %v4216_v48, %v4095_v47  ;;  %v4100_v55 = vpop.f32.mrf.mxu1  ;;  %v12785_v47 = vld [vmem:[%s15677_s7 + $0x278] sm:$0xff]   ;;  %v5069_v48 = vld [vmem:[#allocation5 + $0x1d] sm:$0xff] }
 0x3b8   : > { %11640 = vmatprep.mubr.msk.bf16.mxu0 %vm13010_vm1, %v13726_v4  ;;  %11693 = vmatpush3.bf16.msra.mxu0 %v12753_v53  ;;  %v11567_v49 = vpop.f32.mrf.mxu0 }
 0x3b9   : > { %11694 = vmatprep.subr.bf16.mxu0 %v13726_v4  ;;  %v11534_v62 = vpop.f32.mrf.mxu1  ;;  %v12786_v49 = vld [vmem:[%s15677_s7 + $0x270] sm:$0xff]  }
 0x3ba   : > { %v4221_v58 = vpop.f32.mrf.mxu0  ;;  %v5072_v62 = vld [vmem:[#allocation5 + $0x35] sm:$0xff] }
 0x3bb   : > { %11601 = vmatmul.mubr.bf16.vlgmr.msra.gmra.mxu1 %v4262_v0  ;;  %v14047_v12 = vadd.f32 %v4221_v58, %v4100_v55  ;;  %v4103_v32 = vpop.f32.mrf.mxu1  ;;  %v12770_v0 = vld [vmem:[%s15677_s7 + $0x1f0] sm:$0xff]   ;;  %v12787_v55 = vld [vmem:[%s15677_s7 + $0x228] sm:$0xff]   ;;  %v12790_v58 = vld [vmem:[%s15677_s7 + $0x260] sm:$0xff]  }
 0x3bc   : > { %11657 = vmatpush3.bf16.msra.mxu1 %v12751_v2  ;;  %11604 = vmatprep.mubr.msk.bf16.mxu1 %vm13010_vm1, %v13726_v4  ;;  %v11570_v31 = vpop.f32.mrf.mxu0 }
 0x3bd   : > { %11658 = vmatprep.subr.bf16.mxu1 %v13726_v4  ;;  %11695 = vmatpush3.bf16.msra.mxu0 %v12754_v5  ;;  %v11535_v3 = vpop.f32.mrf.mxu1  ;;  %v5071_v31 = vld [vmem:[#allocation5 + $0x2d] sm:$0xff] }
 0x3be   : > { %11696 = vmatprep.subr.bf16.mxu0 %v13726_v4  ;;  %v4224_v53 = vpop.f32.mrf.mxu0  ;;  %v12794_v3 = vld [vmem:[%s15677_s7 + $0x250] sm:$0xff]  }
 0x3bf   : > { %11641 = vmatmul.mubr.bf16.gmra.mxu0 %v4426_v7  ;;  %v14059_v2 = vadd.f32 %v4224_v53, %v4103_v32  ;;  %v4752_v7 = vpack.c.bf16 %v13968_v14, %v13941_v54  ;;  %v12772_v54 = vld [vmem:[%s15677_s7 + $0x1e8] sm:$0xff]   ;;  %v12792_v32 = vld [vmem:[%s15677_s7 + $0x258] sm:$0xff]  }
 0x3c0   : > { %11659 = vmatpush3.bf16.msra.mxu1 %v12752_v8  ;;  %11644 = vmatprep.mubr.msk.bf16.mxu0 %vm13010_vm1, %v13726_v4  ;;  %v11571_v5 = vpop.f32.mrf.mxu0  ;;  %v12768_v8 = vld [vmem:[%s15677_s7 + $0x1b0] sm:$0xff]   ;;  %v12791_v53 = vld [vmem:[%s15677_s7 + $0x218] sm:$0xff]  }
 0x3c1   : > { %11660 = vmatprep.subr.bf16.mxu1 %v13726_v4  ;;  %11697 = vmatpush3.bf16.msra.mxu0 %v12756_v13  ;;  %v5073_v5 = vld [vmem:[#allocation5 + $0x3d] sm:$0xff] }
 0x3c2   : > { %11698 = vmatprep.subr.bf16.mxu0 %v13726_v4  ;;  %v14072_v13 = vpop.f32.mrf.mxu0 }
 0x3c3   : > { %11605 = vmatmul.mubr.bf16.gmra.mxu1 %v4263_v6 }
 0x3c4   : > { %11661 = vmatpush3.bf16.msra.mxu1 %v12755_v15  ;;  %11608 = vmatprep.mubr.msk.bf16.mxu1 %vm13010_vm1, %v13726_v4  ;;  %v11574_v6 = vpop.f32.mrf.mxu0  ;;  %v4589_v15 = vpack.c.bf16 %v14070_v9, %v14068_v1 }
 0x3c5   : > { %11662 = vmatprep.subr.bf16.mxu1 %v13726_v4  ;;  %11699 = vmatpush3.bf16.msra.mxu0 %v12758_v11  ;;  %v12771_v11 = vld [vmem:[%s15677_s7 + $0x1a8] sm:$0xff]   ;;  %v5076_v6 = vld [vmem:[#allocation5 + $0x55] sm:$0x1f] }
 0x3c6   : > { %11700 = vmatprep.subr.bf16.mxu0 %v13726_v4  ;;  %v14086_v14 = vpop.f32.mrf.mxu0 }
 0x3c7   : > { %11645 = vmatmul.mubr.bf16.gmra.mxu0 %v4427_v20 }
 0x3c8   : > { %11663 = vmatpush3.bf16.msra.mxu1 %v12757_v17  ;;  %11648 = vmatprep.mubr.msk.bf16.mxu0 %vm13010_vm1, %v13726_v4  ;;  %v12774_v17 = vld [vmem:[%s15677_s7 + $0x1e0] sm:$0xff]   ;;  %v11575_v20 = vpop.f32.mrf.mxu0 }
 0x3c9   : > { %11664 = vmatprep.subr.bf16.mxu1 %v13726_v4  ;;  %11701 = vmatpush3.bf16.msra.mxu0 %v12760_v21  ;;  %v12773_v21 = vld [vmem:[%s15677_s7 + $0x1a0] sm:$0xff]  }
 0x3ca   : > { %11702 = vmatprep.subr.bf16.mxu0 %v13726_v4 }
 0x3cb   : > { %11609 = vmatmul.mubr.bf16.gmra.mxu1 %v4264_v23  ;;  %v14106_v23 = vld [vmem:[#allocation5 + $0x2c] sm:$0xff] }
 0x3cc   : > { %11665 = vmatpush3.bf16.msra.mxu1 %v12759_v22  ;;  %11612 = vmatprep.mubr.msk.bf16.mxu1 %vm13010_vm1, %v13726_v4  ;;  %v14104_v22 = vld [vmem:[#allocation5 + $0x24] sm:$0xff] }
 0x3cd   : > { %11666 = vmatprep.subr.bf16.mxu1 %v13726_v4  ;;  %11703 = vmatpush3.bf16.msra.mxu0 %v12762_v24  ;;  %v4590_v24 = vpack.c.bf16 %v14106_v23, %v14104_v22 }
 0x3ce   : > { %11704 = vmatprep.subr.bf16.mxu0 %v13726_v4 }
 0x3cf   : > { %11649 = vmatmul.mubr.bf16.gmra.mxu0 %v4428_v60  ;;  %v12777_v60 = vld [vmem:[%s15677_s7 + $0x190] sm:$0xff]  }
 0x3d0   : > { %11667 = vmatpush3.bf16.msra.mxu1 %v12761_v27  ;;  %11652 = vmatprep.mubr.msk.bf16.mxu0 %vm13010_vm1, %v13726_v4  ;;  %v14121_v27 = vld [vmem:[#allocation3] sm:$0xff] }
 0x3d1   : > { %11668 = vmatprep.subr.bf16.mxu1 %v13726_v4  ;;  %11705 = vmatpush3.bf16.msra.mxu0 %v12763_v61  ;;  %v4754_v61 = vpack.c.bf16 %v14020_v37, %v13994_v25  ;;  %v4750_v25 = vld [vmem:[#allocation5 + $0x53] sm:$0x1f]  ;;  %v12781_v37 = vld [vmem:[%s15677_s7 + $0x1c0] sm:$0xff]  }
 0x3d2   : > { %11706 = vmatprep.subr.bf16.mxu0 %v13726_v4  ;;  %v4755_v38 = vpack.c.bf16 %v4750_v25, %v4749_v33  ;;  %v14272_v33 = vld [vmem:[#allocation5 + $0x1f] sm:$0xff]  ;;  %v14278_v25 = vld [vmem:[#allocation5 + $0x27] sm:$0xff] }
 0x3d3   : > { %11613 = vmatmul.mubr.bf16.gmra.mxu1 %v4265_v35  ;;  %v12780_v35 = vld [vmem:[%s15677_s7 + $0x188] sm:$0xff]  }
 0x3d4   : > { %11669 = vmatpush3.bf16.msra.mxu1 %v12764_v34  ;;  %11616 = vmatprep.mubr.msk.bf16.mxu1 %vm13010_vm1, %v13726_v4  ;;  %v14137_v34 = vld [vmem:[#allocation5 + $0x34] sm:$0xff] }
 0x3d5   : > { %11707 = vmatpush3.bf16.msra.mxu0 %v12765_v36  ;;  %11670 = vmatprep.subr.bf16.mxu1 %v13726_v4  ;;  %v4591_v36 = vpack.c.bf16 %v14134_v30, %v14137_v34 }
 0x3d6   : > { %11764 = vmatprep.subr.bf16.mxu0 %v13726_v4 }
 0x3d7   : > { %11653 = vmatmul.mubr.bf16.gmra.mxu0 %v4429_v41  ;;  %v5068_v41 = vld [vmem:[#allocation5 + $0x15] sm:$0xff] }
 0x3d8   : > { %11671 = vmatpush3.bf16.msra.mxu1 %v12766_v40  ;;  %11708 = vmatprep.mubr.msk.bf16.mxu0 %vm13010_vm1, %v13726_v4  ;;  %v14157_v40 = vld [vmem:[#allocation5 + $0x44] sm:$0xff]  ;;  %v5077_v42 = vpack.c.bf16 %v5068_v41, %v5067_v19  ;;  %v12806_v19 = vld [vmem:[%s15677_s7 + $0x2e0] sm:$0xff]  }
 0x3d9   : > { %11728 = vmatprep.subr.bf16.mxu1 %v13726_v4  ;;  %v4592_v29 = vpack.c.bf16 %v4587_v18, %v14157_v40  ;;  %v12803_v18 = vld [vmem:[%s15677_s7 + $0x2a8] sm:$0xff]   ;;  %v14307_v41 = vld [vmem:[#allocation5 + $0x37] sm:$0xff] }
 0x3db   : > { %11617 = vmatmul.mubr.bf16.gmra.mxu1 %v4266_v45  ;;  %v5070_v45 = vld [vmem:[#allocation5 + $0x25] sm:$0xff] }
 0x3dc   : > { %11672 = vmatprep.mubr.msk.bf16.mxu1 %vm13010_vm1, %v13726_v4 }
 0x3df   : > { %11709 = vmatmul.mubr.bf16.vlgmr.msra.gmra.mxu0 %v4751_v10  ;;  %v5078_v10 = vpack.c.bf16 %v5070_v45, %v5069_v48  ;;  %v14326_v48 = vld [vmem:[#allocation5 + $0x2e] sm:$0xff] }
 0x3e0   : > { %11712 = vmatprep.mubr.msk.bf16.mxu0 %vm13010_vm1, %v13726_v4  ;;  %11765 = vmatpush3.bf16.msra.mxu0 %v12769_v52  ;;  %v4915_v52 = vpack.c.bf16 %v14104_v22, %v14070_v9  ;;  %v12795_v9 = vld [vmem:[%s15677_s7 + $0x248] sm:$0xff]   ;;  %v12807_v45 = vld [vmem:[%s15677_s7 + $0x298] sm:$0xff]  }
 0x3e1   : > { %11766 = vmatprep.subr.bf16.mxu0 %v13726_v4 }
 0x3e3   : > { %11673 = vmatmul.mubr.bf16.vlgmr.msra.gmra.mxu1 %v4588_v63  ;;  %v12789_v63 = vld [vmem:[%s15677_s7 + $0x220] sm:$0xff]  }
 0x3e4   : > { %11729 = vmatpush3.bf16.msra.mxu1 %v12767_v59  ;;  %11676 = vmatprep.mubr.msk.bf16.mxu1 %vm13010_vm1, %v13726_v4  ;;  %v5079_v59 = vpack.c.bf16 %v5072_v62, %v5071_v31  ;;  %v14355_v62 = vld [vmem:[#allocation5 + $0x3e] sm:$0xff]  ;;  %v14357_v31 = vld [vmem:[#allocation5 + $0x46] sm:$0xff] }
 0x3e5   : > { %11730 = vmatprep.subr.bf16.mxu1 %v13726_v4  ;;  %11767 = vmatpush3.bf16.msra.mxu0 %v12770_v0  ;;  %v4916_v0 = vpack.c.bf16 %v14137_v34, %v14106_v23  ;;  %v5393_v23 = vld [vmem:[#allocation5 + $0xf] sm:$0xff] }
 0x3e6   : > { %11768 = vmatprep.subr.bf16.mxu0 %v13726_v4  ;;  %v12802_v34 = vld [vmem:[%s15677_s7 + $0x2f0] sm:$0xff]  }
 0x3e7   : > { %11713 = vmatmul.mubr.bf16.gmra.mxu0 %v4752_v7  ;;  %v5074_v7 = vld [vmem:[#allocation5 + $0x45] sm:$0xff] }
 0x3e8   : > { %11731 = vmatpush3.bf16.msra.mxu1 %v12768_v8  ;;  %11716 = vmatprep.mubr.msk.bf16.mxu0 %vm13010_vm1, %v13726_v4  ;;  %v12793_v8 = vld [vmem:[%s15677_s7 + $0x210] sm:$0xff]   ;;  %v5080_v1 = vpack.c.bf16 %v5074_v7, %v5073_v5  ;;  %v5239_v5 = vld [vmem:[#allocation5 + $0x56] sm:$0x1f] }
 0x3e9   : > { %11732 = vmatprep.subr.bf16.mxu1 %v13726_v4  ;;  %11769 = vmatpush3.bf16.msra.mxu0 %v12772_v54  ;;  %v5075_v54 = vld [vmem:[#allocation5 + $0x4d] sm:$0xff]  ;;  %v12814_v7 = vld [vmem:[%s15677_s7 + $0x280] sm:$0xff]  }
 0x3ea   : > { %11770 = vmatprep.subr.bf16.mxu0 %v13726_v4  ;;  %v5081_v20 = vpack.c.bf16 %v5076_v6, %v5075_v54  ;;  %v12817_v54 = vld [vmem:[%s15677_s7 + $0x378] sm:$0xff]  }
 0x3eb   : > { %11677 = vmatmul.mubr.bf16.gmra.mxu1 %v4589_v15  ;;  %v12796_v15 = vld [vmem:[%s15677_s7 + $0x208] sm:$0xff]  }
 0x3ec   : > { %11733 = vmatpush3.bf16.msra.mxu1 %v12771_v11  ;;  %11680 = vmatprep.mubr.msk.bf16.mxu1 %vm13010_vm1, %v13726_v4  ;;  %v4917_v11 = vpack.c.bf16 %v14157_v40, %v14134_v30  ;;  %v12799_v30 = vld [vmem:[%s15677_s7 + $0x2b8] sm:$0xff]  }
 0x3ed   : > { %11734 = vmatprep.subr.bf16.mxu1 %v13726_v4  ;;  %11771 = vmatpush3.bf16.msra.mxu0 %v12774_v17  ;;  %v12797_v17 = vld [vmem:[%s15677_s7 + $0x240] sm:$0xff]  }
 0x3ee   : > { %11772 = vmatprep.subr.bf16.mxu0 %v13726_v4 }
 0x3ef   : > { %11717 = vmatmul.mubr.bf16.gmra.mxu0 %v4753_v56  ;;  %v4913_v56 = vld [vmem:[#allocation5 + $0x54] sm:$0x1f] }
 0x3f0   : > { %11735 = vmatpush3.bf16.msra.mxu1 %v12773_v21  ;;  %11720 = vmatprep.mubr.msk.bf16.mxu0 %vm13010_vm1, %v13726_v4  ;;  %v4912_v21 = vld [vmem:[#allocation5 + $0x4c] sm:$0xff] }
 0x3f1   : > { %11736 = vmatprep.subr.bf16.mxu1 %v13726_v4  ;;  %11773 = vmatpush3.bf16.msra.mxu0 %v12776_v57  ;;  %v12798_v57 = vld [vmem:[%s15677_s7 + $0x200] sm:$0xff]   ;;  %v4918_v22 = vpack.c.bf16 %v4913_v56, %v4912_v21  ;;  %v12820_v21 = vld [vmem:[%s15677_s7 + $0x368] sm:$0xff]  }
 0x3f2   : > { %11774 = vmatprep.subr.bf16.mxu0 %v13726_v4  ;;  %v12779_v4 = vld [vmem:[%s15677_s7 + $0x1c8] sm:$0xff]  }
 0x3f3   : > { %11681 = vmatmul.mubr.bf16.gmra.mxu1 %v4590_v24  ;;  %v12819_v56 = vld [vmem:[%s15677_s7 + $0x328] sm:$0xff]  }
 0x3f4   : > { %11737 = vmatpush3.bf16.msra.mxu1 %v12775_v16  ;;  %11684 = vmatprep.mubr.msk.bf16.mxu1 %vm13010_vm1, %v14121_v27  ;;  %v14255_v16 = vld [vmem:[#allocation5 + $0x17] sm:$0xff] }
 0x3f5   : > { %11738 = vmatprep.subr.bf16.mxu1 %v14121_v27  ;;  %11775 = vmatpush3.bf16.msra.mxu0 %v12778_v26  ;;  %v5403_v24 = vpack.c.bf16 %v14255_v16, %v5393_v23  ;;  %v5230_v26 = vld [vmem:[#allocation5 + $0xe] sm:$0xff] }
 0x3f6   : > { %11776 = vmatprep.subr.bf16.mxu0 %v14121_v27 }
 0x3f7   : > { %11721 = vmatmul.mubr.bf16.gmra.mxu0 %v4754_v61  ;;  %v12801_v61 = vld [vmem:[%s15677_s7 + $0x2f8] sm:$0xff]  }
 0x3f8   : > { %11739 = vmatpush3.bf16.msra.mxu1 %v12777_v60  ;;  %11724 = vmatprep.mubr.msk.bf16.mxu0 %vm13010_vm1, %v14121_v27  ;;  %v14261_v60 = vld [vmem:[#allocation5 + $0x16] sm:$0xff] }
 0x3f9   : > { %11740 = vmatprep.subr.bf16.mxu1 %v14121_v27  ;;  %11777 = vmatpush3.bf16.msra.mxu0 %v12779_v4  ;;  %v5240_v4 = vpack.c.bf16 %v14261_v60, %v5230_v26 }
 0x3fa   : > { %11778 = vmatprep.subr.bf16.mxu0 %v14121_v27 }
 0x3fb   : > { %11685 = vmatmul.mubr.bf16.gmra.mxu1 %v4591_v36  ;;  %v12800_v36 = vld [vmem:[%s15677_s7 + $0x2b0] sm:$0xff]  }
 0x3fc   : > { %11741 = vmatpush3.bf16.msra.mxu1 %v12780_v35  ;;  %11688 = vmatprep.mubr.msk.bf16.mxu1 %vm13010_vm1, %v14121_v27  ;;  %v5404_v35 = vpack.c.bf16 %v14278_v25, %v14272_v33 }
 0x3fd   : > { %11779 = vmatpush3.bf16.msra.mxu0 %v12781_v37  ;;  %11742 = vmatprep.subr.bf16.mxu1 %v14121_v27  ;;  %v14287_v37 = vld [vmem:[#allocation5 + $0x1e] sm:$0xff] }
 0x3fe   : > { %11836 = vmatprep.subr.bf16.mxu0 %v14121_v27  ;;  %v5566_v6 = vpack.c.bf16 %v14287_v37, %v14261_v60  ;;  %v12824_v60 = vld [vmem:[%s15677_s7 + $0x358] sm:$0xff]  }
 0x3ff   : > { %11725 = vmatmul.mubr.bf16.gmra.mxu0 %v4755_v38  ;;  %v12804_v38 = vld [vmem:[%s15677_s7 + $0x2e8] sm:$0xff]  }
 0x400   : > { %11743 = vmatpush3.bf16.msra.mxu1 %v12782_v39  ;;  %11780 = vmatprep.mubr.msk.bf16.mxu0 %vm13010_vm1, %v14121_v27  ;;  %v14293_v39 = vld [vmem:[#allocation5 + $0x26] sm:$0xff] }
 0x401   : > { %11800 = vmatprep.subr.bf16.mxu1 %v14121_v27  ;;  %v5241_v40 = vpack.c.bf16 %v14293_v39, %v14287_v37 }
 0x403   : > { %11689 = vmatmul.mubr.bf16.gmra.mxu1 %v4592_v29  ;;  %v14310_v29 = vld [vmem:[#allocation5 + $0x2f] sm:$0xff] }
 0x404   : > { %11744 = vmatprep.mubr.msk.bf16.mxu1 %vm13010_vm1, %v14121_v27 }
 0x407   : > { %11781 = vmatmul.mubr.bf16.vlgmr.msra.gmra.mxu0 %v5077_v42  ;;  %v12805_v42 = vld [vmem:[%s15677_s7 + $0x2a0] sm:$0xff]  }
 0x408   : > { %11784 = vmatprep.mubr.msk.bf16.mxu0 %vm13010_vm1, %v14121_v27  ;;  %11837 = vmatpush3.bf16.msra.mxu0 %v12785_v47  ;;  %v5405_v47 = vpack.c.bf16 %v14307_v41, %v14310_v29 }
 0x409   : > { %11838 = vmatprep.subr.bf16.mxu0 %v14121_v27 }
 0x40b   : > { %11745 = vmatmul.mubr.bf16.vlgmr.msra.gmra.mxu1 %v4914_v43  ;;  %v12808_v43 = vld [vmem:[%s15677_s7 + $0x2d8] sm:$0xff]  }
 0x40c   : > { %11801 = vmatpush3.bf16.msra.mxu1 %v12783_v44  ;;  %11748 = vmatprep.mubr.msk.bf16.mxu1 %vm13010_vm1, %v14121_v27  ;;  %v14323_v44 = vld [vmem:[#allocation5 + $0x36] sm:$0xff] }
 0x40d   : > { %11802 = vmatprep.subr.bf16.mxu1 %v14121_v27  ;;  %11839 = vmatpush3.bf16.msra.mxu0 %v12786_v49  ;;  %v5242_v49 = vpack.c.bf16 %v14323_v44, %v14326_v48 }
 0x40e   : > { %11840 = vmatprep.subr.bf16.mxu0 %v14121_v27 }
 0x40f   : > { %11785 = vmatmul.mubr.bf16.gmra.mxu0 %v5078_v10  ;;  %v12810_v10 = vld [vmem:[%s15677_s7 + $0x2d0] sm:$0xff]  }
 0x410   : > { %11803 = vmatpush3.bf16.msra.mxu1 %v12784_v50  ;;  %11788 = vmatprep.mubr.msk.bf16.mxu0 %vm13010_vm1, %v14121_v27  ;;  %v14339_v50 = vld [vmem:[#allocation5 + $0x3f] sm:$0xff] }
 0x411   : > { %11804 = vmatprep.subr.bf16.mxu1 %v14121_v27  ;;  %11841 = vmatpush3.bf16.msra.mxu0 %v12788_v51  ;;  %v14341_v51 = vld [vmem:[#allocation5 + $0x47] sm:$0xff]  ;;  %v5731_v26 = vpack.c.bf16 %v14339_v50, %v14307_v41 }
 0x412   : > { %11842 = vmatprep.subr.bf16.mxu0 %v14121_v27  ;;  %v12827_v41 = vld [vmem:[%s15677_s7 + $0x348] sm:$0xff]  }
 0x413   : > { %11749 = vmatmul.mubr.bf16.gmra.mxu1 %v4915_v52  ;;  %v12809_v52 = vld [vmem:[%s15677_s7 + $0x290] sm:$0xff]  }
 0x414   : > { %11805 = vmatpush3.bf16.msra.mxu1 %v12787_v55  ;;  %11752 = vmatprep.mubr.msk.bf16.mxu1 %vm13010_vm1, %v14121_v27  ;;  %v5406_v55 = vpack.c.bf16 %v14341_v51, %v14339_v50  ;;  %v12829_v50 = vld [vmem:[%s15677_s7 + $0x340] sm:$0xff]  }
 0x415   : > { %11806 = vmatprep.subr.bf16.mxu1 %v14121_v27  ;;  %11843 = vmatpush3.bf16.msra.mxu0 %v12790_v58  ;;  %v12811_v58 = vld [vmem:[%s15677_s7 + $0x2c8] sm:$0xff]  }
 0x416   : > { %11844 = vmatprep.subr.bf16.mxu0 %v14121_v27 }
 0x417   : > { %11789 = vmatmul.mubr.bf16.gmra.mxu0 %v5079_v59  ;;  %v12812_v59 = vld [vmem:[%s15677_s7 + $0x288] sm:$0xff]  }
 0x418   : > { %11807 = vmatpush3.bf16.msra.mxu1 %v12789_v63  ;;  %11792 = vmatprep.mubr.msk.bf16.mxu0 %vm13010_vm1, %v14121_v27  ;;  %v5402_v63 = vld [vmem:[#allocation5 + $0x57] sm:$0x1f] }
 0x419   : > { %11808 = vmatprep.subr.bf16.mxu1 %v14121_v27  ;;  %11845 = vmatpush3.bf16.msra.mxu0 %v12792_v32  ;;  %v5243_v32 = vpack.c.bf16 %v14357_v31, %v14355_v62 }
 0x41a   : > { %11846 = vmatprep.subr.bf16.mxu0 %v14121_v27 }
 0x41b   : > { %11753 = vmatmul.mubr.bf16.gmra.mxu1 %v4916_v0  ;;  %v14371_v0 = vld [vmem:[#allocation5 + $0x4f] sm:$0xff] }
 0x41c   : > { %11809 = vmatpush3.bf16.msra.mxu1 %v12791_v53  ;;  %11756 = vmatprep.mubr.msk.bf16.mxu1 %vm13010_vm1, %v14121_v27  ;;  %v12813_v53 = vld [vmem:[%s15677_s7 + $0x2c0] sm:$0xff]  }
 0x41d   : > { %11810 = vmatprep.subr.bf16.mxu1 %v14121_v27  ;;  %11847 = vmatpush3.bf16.msra.mxu0 %v12794_v3  ;;  %v5407_v3 = vpack.c.bf16 %v5402_v63, %v14371_v0  ;;  %v12830_v63 = vld [vmem:[%s15677_s7 + $0x300] sm:$0xff]  }
 0x41e   : > { %11848 = vmatprep.subr.bf16.mxu0 %v14121_v27 }
 0x41f   : > { %11793 = vmatmul.mubr.bf16.gmra.mxu0 %v5080_v1 }
 0x420   : > { %11811 = vmatpush3.bf16.msra.mxu1 %v12793_v8  ;;  %11796 = vmatprep.mubr.msk.bf16.mxu0 %vm13010_vm1, %v14121_v27  ;;  %v14381_v8 = vld [vmem:[#allocation5 + $0x4e] sm:$0xff] }
 0x421   : > { %11812 = vmatprep.subr.bf16.mxu1 %v14121_v27  ;;  %11849 = vmatpush3.bf16.msra.mxu0 %v12795_v9  ;;  %v5244_v1 = vpack.c.bf16 %v5239_v5, %v14381_v8  ;;  %v5729_v9 = vpack.c.bf16 %v14272_v33, %v14255_v16  ;;  %v12821_v16 = vld [vmem:[%s15677_s7 + $0x320] sm:$0xff]  }
 0x422   : > { %11850 = vmatprep.subr.bf16.mxu0 %v14121_v27 }
 0x423   : > { %11757 = vmatmul.mubr.bf16.gmra.mxu1 %v4917_v11  ;;  %v12818_v11 = vld [vmem:[%s15677_s7 + $0x370] sm:$0xff]  }
 0x424   : > { %11813 = vmatpush3.bf16.msra.mxu1 %v12796_v15  ;;  %11760 = vmatprep.mubr.msk.bf16.mxu1 %vm13010_vm1, %v14121_v27  ;;  %v12815_v15 = vld [vmem:[%s15677_s7 + $0x338] sm:$0xff]  }
 0x425   : > { %11851 = vmatpush3.bf16.msra.mxu0 %v12797_v17  ;;  %11814 = vmatprep.subr.bf16.mxu1 %v14121_v27  ;;  %v12816_v17 = vld [vmem:[%s15677_s7 + $0x330] sm:$0xff]  }
 0x426   : > { %11908 = vmatprep.subr.bf16.mxu0 %v14121_v27 }
 0x427   : > { %11797 = vmatmul.mubr.bf16.gmra.mxu0 %v5081_v20  ;;  %v5730_v20 = vpack.c.bf16 %v14310_v29, %v14278_v25  ;;  %v5568_v25 = vpack.c.bf16 %v14355_v62, %v14323_v44  ;;  %v5728_v44 = vld [vmem:[#allocation5 + $0x5f] sm:$0x1f]  ;;  %v5564_v62 = vld [vmem:[#allocation5 + $0x56] sm:$0xff] }
 0x428   : > { %11815 = vmatpush3.bf16.msra.mxu1 %v12798_v57  ;;  %11852 = vmatprep.mubr.msk.bf16.mxu0 %vm13010_vm1, %v14121_v27  ;;  %v5567_v57 = vpack.c.bf16 %v14326_v48, %v14293_v39  ;;  %v12825_v39 = vld [vmem:[%s15677_s7 + $0x310] sm:$0xff]   ;;  %v12828_v48 = vld [vmem:[%s15677_s7 + $0x308] sm:$0xff]  }
 0x429   : > { %11872 = vmatprep.subr.bf16.mxu1 %v14121_v27 }
 0x42b   : > { %11761 = vmatmul.mubr.bf16.gmra.mxu1 %v4918_v22  ;;  %v12822_v22 = vld [vmem:[%s15677_s7 + $0x360] sm:$0xff]  }
 0x42c   : > { %11816 = vmatprep.mubr.msk.bf16.mxu1 %vm13010_vm1, %v14121_v27 }
 0x42f   : > { %11853 = vmatmul.mubr.bf16.vlgmr.msra.gmra.mxu0 %v5403_v24 }
 0x430   : > { %11856 = vmatprep.mubr.msk.bf16.mxu0 %vm13010_vm1, %v14121_v27  ;;  %11909 = vmatpush3.bf16.msra.mxu0 %v12801_v61 }
 0x431   : > { %11910 = vmatprep.subr.bf16.mxu0 %v14121_v27 }
 0x433   : > { %11817 = vmatmul.mubr.bf16.vlgmr.msra.gmra.mxu1 %v5240_v4 }
 0x434   : > { %11873 = vmatpush3.bf16.msra.mxu1 %v12799_v30  ;;  %11820 = vmatprep.mubr.msk.bf16.mxu1 %vm13010_vm1, %v14121_v27  ;;  %v12823_v30 = vld [vmem:[%s15677_s7 + $0x318] sm:$0xff]  }
 0x435   : > { %11874 = vmatprep.subr.bf16.mxu1 %v14121_v27  ;;  %11911 = vmatpush3.bf16.msra.mxu0 %v12802_v34 }
 0x436   : > { %11912 = vmatprep.subr.bf16.mxu0 %v14121_v27 }
 0x437   : > { %11857 = vmatmul.mubr.bf16.gmra.mxu0 %v5404_v35  ;;  %v12826_v35 = vld [vmem:[%s15677_s7 + $0x350] sm:$0xff]  }
 0x438   : > { %11875 = vmatpush3.bf16.msra.mxu1 %v12800_v36  ;;  %11860 = vmatprep.mubr.msk.bf16.mxu0 %vm13010_vm1, %v14121_v27 }
 0x439   : > { %11876 = vmatprep.subr.bf16.mxu1 %v14121_v27  ;;  %11913 = vmatpush3.bf16.msra.mxu0 %v12804_v38 }
 0x43a   : > { %11914 = vmatprep.subr.bf16.mxu0 %v14121_v27 }
 0x43b   : > { %11821 = vmatmul.mubr.bf16.gmra.mxu1 %v5241_v40 }
 0x43c   : > { %11877 = vmatpush3.bf16.msra.mxu1 %v12803_v18  ;;  %11824 = vmatprep.mubr.msk.bf16.mxu1 %vm13010_vm1, %v14121_v27 }
 0x43d   : > { %11878 = vmatprep.subr.bf16.mxu1 %v14121_v27  ;;  %11915 = vmatpush3.bf16.msra.mxu0 %v12806_v19  ;;  %v5732_v19 = vpack.c.bf16 %v14371_v0, %v14341_v51 }
 0x43e   : > { %11916 = vmatprep.subr.bf16.mxu0 %v14121_v27 }
 0x43f   : > { %11861 = vmatmul.mubr.bf16.gmra.mxu0 %v5405_v47 }
 0x440   : > { %11879 = vmatpush3.bf16.msra.mxu1 %v12805_v42  ;;  %11864 = vmatprep.mubr.msk.bf16.mxu0 %vm13010_vm1, %v14121_v27 }
 0x441   : > { %11880 = vmatprep.subr.bf16.mxu1 %v14121_v27  ;;  %11917 = vmatpush3.bf16.msra.mxu0 %v12808_v43  ;;  %v5727_v43 = vld [vmem:[#allocation5 + $0x57] sm:$0xff] }
 0x442   : > { %11918 = vmatprep.subr.bf16.mxu0 %v14121_v27 }
 0x443   : > { %11825 = vmatmul.mubr.bf16.gmra.mxu1 %v5242_v49 }
 0x444   : > { %11881 = vmatpush3.bf16.msra.mxu1 %v12807_v45  ;;  %11828 = vmatprep.mubr.msk.bf16.mxu1 %vm13010_vm1, %v14121_v27 }
 0x445   : > { %11882 = vmatprep.subr.bf16.mxu1 %v14121_v27  ;;  %11919 = vmatpush3.bf16.msra.mxu0 %v12810_v10  ;;  %v5569_v10 = vpack.c.bf16 %v14381_v8, %v14357_v31  ;;  %v5565_v31 = vld [vmem:[#allocation5 + $0x5e] sm:$0x1f] }
 0x446   : > { %11920 = vmatprep.subr.bf16.mxu0 %v14121_v27 }
 0x447   : > { %11865 = vmatmul.mubr.bf16.gmra.mxu0 %v5406_v55  ;;  %v5733_v55 = vpack.c.bf16 %v5728_v44, %v5727_v43  ;;  %v12835_v43 = vld [vmem:[%s15677_s7 + $0x3a8] sm:$0xff]  }
 0x448   : > { %11883 = vmatpush3.bf16.msra.mxu1 %v12809_v52  ;;  %11868 = vmatprep.mubr.msk.bf16.mxu0 %vm13010_vm1, %v14121_v27 }
 0x449   : > { %11884 = vmatprep.subr.bf16.mxu1 %v14121_v27  ;;  %11921 = vmatpush3.bf16.msra.mxu0 %v12811_v58 }
 0x44a   : > { %11922 = vmatprep.subr.bf16.mxu0 %v14121_v27 }
 0x44b   : > { %11829 = vmatmul.mubr.bf16.gmra.mxu1 %v5243_v32 }
 0x44c   : > { %11885 = vmatpush3.bf16.msra.mxu1 %v12812_v59  ;;  %11832 = vmatprep.mubr.msk.bf16.mxu1 %vm13010_vm1, %v14121_v27 }
 0x44d   : > { %11923 = vmatpush3.bf16.msra.mxu0 %v12813_v53  ;;  %11886 = vmatprep.subr.bf16.mxu1 %v14121_v27 }
 0x44e   : > { %11980 = vmatprep.subr.bf16.mxu0 %v14121_v27 }
 0x44f   : > { %11869 = vmatmul.mubr.bf16.gmra.mxu0 %v5407_v3  ;;  %v5570_v3 = vpack.c.bf16 %v5565_v31, %v5564_v62 }
 0x450   : > { %11887 = vmatpush3.bf16.msra.mxu1 %v12814_v7  ;;  %11924 = vmatprep.mubr.msk.bf16.mxu0 %vm13010_vm1, %v14121_v27  ;;  %v6045_v7 = vld [vmem:[#allocation5 + $0x19] sm:$0xff] }
 0x451   : > { %11944 = vmatprep.subr.bf16.mxu1 %v14121_v27 }
 0x453   : > { %11833 = vmatmul.mubr.bf16.gmra.mxu1 %v5244_v1 }
 0x454   : > { %11888 = vmatprep.mubr.msk.bf16.mxu1 %vm13010_vm1, %v14121_v27 }
 0x457   : > { %11925 = vmatmul.mubr.bf16.vlgmr.msra.gmra.mxu0 %v5729_v9  ;;  %v14500_v9 = vld [vmem:[#allocation5 + $0x21] sm:$0xff] }
 0x458   : > { %11928 = vmatprep.mubr.msk.bf16.mxu0 %vm13010_vm1, %v14121_v27  ;;  %11981 = vmatpush3.bf16.msra.mxu0 %v12817_v54 }
 0x459   : > { %11982 = vmatprep.subr.bf16.mxu0 %v14121_v27 }
 0x45b   : > { %11889 = vmatmul.mubr.bf16.vlgmr.msra.gmra.mxu1 %v5566_v6 }
 0x45c   : > { %11945 = vmatpush3.bf16.msra.mxu1 %v12815_v15  ;;  %11892 = vmatprep.mubr.msk.bf16.mxu1 %vm13010_vm1, %v14121_v27  ;;  %v6055_v15 = vpack.c.bf16 %v14500_v9, %v6045_v7 }
 0x45d   : > { %11946 = vmatprep.subr.bf16.mxu1 %v14121_v27  ;;  %11983 = vmatpush3.bf16.msra.mxu0 %v12818_v11 }
 0x45e   : > { %11984 = vmatprep.subr.bf16.mxu0 %v14121_v27 }
 0x45f   : > { %11929 = vmatmul.mubr.bf16.gmra.mxu0 %v5730_v20 }
 0x460   : > { %11947 = vmatpush3.bf16.msra.mxu1 %v12816_v17  ;;  %11932 = vmatprep.mubr.msk.bf16.mxu0 %vm13010_vm1, %v14121_v27  ;;  %v12833_v17 = vld [vmem:[%s15677_s7 + $0x3f8] sm:$0xff]  }
 0x461   : > { %11948 = vmatprep.subr.bf16.mxu1 %v14121_v27  ;;  %11985 = vmatpush3.bf16.msra.mxu0 %v12820_v21 }
 0x462   : > { %11986 = vmatprep.subr.bf16.mxu0 %v14121_v27 }
 0x463   : > { %v14430_v23 = vpop.f32.mrf.mxu1  ;;  %11893 = vmatmul.mubr.bf16.gmra.mxu1 %v5567_v57 }
 0x464   : > { %11949 = vmatpush3.bf16.msra.mxu1 %v12819_v56  ;;  %11896 = vmatprep.mubr.msk.bf16.mxu1 %vm13010_vm1, %v14121_v27 }
 0x465   : > { %v11538_v24 = vpop.f32.mrf.mxu1  ;;  %11950 = vmatprep.subr.bf16.mxu1 %v14121_v27  ;;  %11987 = vmatpush3.bf16.msra.mxu0 %v12822_v22 }
 0x466   : > { %11988 = vmatprep.subr.bf16.mxu0 %v14121_v27 }
 0x467   : > { %v14444_v61 = vpop.f32.mrf.mxu1  ;;  %v4237_v4 = vpop.f32.mrf.mxu0  ;;  %11933 = vmatmul.mubr.bf16.gmra.mxu0 %v5731_v26 }
 0x468   : > { %11951 = vmatpush3.bf16.msra.mxu1 %v12821_v16  ;;  %11936 = vmatprep.mubr.msk.bf16.mxu0 %vm13010_vm1, %v14121_v27  ;;  %v5892_v16 = vpack.c.bf16 %v14121_v27, %v14121_v27 }
 0x469   : > { %v11539_v33 = vpop.f32.mrf.mxu1  ;;  %v11578_v34 = vpop.f32.mrf.mxu0  ;;  %11952 = vmatprep.subr.bf16.mxu1 %v14121_v27  ;;  %11989 = vmatpush3.bf16.msra.mxu0 %v12824_v60 }
 0x46a   : > { %11990 = vmatprep.subr.bf16.mxu0 %v14121_v27  ;;  %v14525_v33 = vld [vmem:[#allocation5 + $0x31] sm:$0xff] }
 0x46b   : > { %v4116_v36 = vpop.f32.mrf.mxu1  ;;  %v4240_v37 = vpop.f32.mrf.mxu0  ;;  %11897 = vmatmul.mubr.bf16.gmra.mxu1 %v5568_v25 }
 0x46c   : > { %v14458_v38 = vadd.f32 %v4237_v4, %v4116_v36  ;;  %11953 = vmatpush3.bf16.msra.mxu1 %v12823_v30  ;;  %11900 = vmatprep.mubr.msk.bf16.mxu1 %vm13010_vm1, %v14121_v27  ;;  %v12834_v4 = vld [vmem:[%s15677_s7 + $0x3f0] sm:$0xff]  }
 0x46d   : > { %v11542_v40 = vpop.f32.mrf.mxu1  ;;  %v11579_v18 = vpop.f32.mrf.mxu0  ;;  %11954 = vmatprep.subr.bf16.mxu1 %v14121_v27  ;;  %11991 = vmatpush3.bf16.msra.mxu0 %v12826_v35  ;;  %v14523_v30 = vld [vmem:[#allocation5 + $0x29] sm:$0xff] }
 0x46e   : > { %11992 = vmatprep.subr.bf16.mxu0 %v14121_v27  ;;  %v12832_v36 = vld [vmem:[%s15677_s7 + $0x3b0] sm:$0xff]   ;;  %v6056_v40 = vpack.c.bf16 %v14525_v33, %v14523_v30  ;;  %v5885_v18 = vld [vmem:[#allocation5 + $0x30] sm:$0xff] }
 0x46f   : > { %v4119_v29 = vpop.f32.mrf.mxu1  ;;  %v4245_v42 = vpop.f32.mrf.mxu0  ;;  %11937 = vmatmul.mubr.bf16.gmra.mxu0 %v5732_v19 }
 0x470   : > { %v14472_v47 = vadd.f32 %v4240_v37, %v4119_v29  ;;  %11955 = vmatpush3.bf16.msra.mxu1 %v12825_v39  ;;  %11940 = vmatprep.mubr.msk.bf16.mxu0 %vm13010_vm1, %v14121_v27 }
 0x471   : > { %v11543_v45 = vpop.f32.mrf.mxu1  ;;  %v11582_v49 = vpop.f32.mrf.mxu0  ;;  %11956 = vmatprep.subr.bf16.mxu1 %v14121_v27  ;;  %11993 = vmatpush3.bf16.msra.mxu0 %v12827_v41 }
 0x472   : > { %11994 = vmatprep.subr.bf16.mxu0 %v14121_v27  ;;  %v5893_v45 = vpack.c.bf16 %v5885_v18, %v14121_v27  ;;  %v12838_v49 = vld [vmem:[%s15677_s7 + $0x3e0] sm:$0xff]  }
 0x473   : > { %v4124_v51 = vpop.f32.mrf.mxu1  ;;  %v4248_v52 = vpop.f32.mrf.mxu0  ;;  %11901 = vmatmul.mubr.bf16.gmra.mxu1 %v5569_v10  ;;  %v14557_v10 = vld [vmem:[#allocation5 + $0x39] sm:$0xff] }
 0x474   : > { %v14486_v58 = vadd.f32 %v4245_v42, %v4124_v51  ;;  %11957 = vmatpush3.bf16.msra.mxu1 %v12828_v48  ;;  %11904 = vmatprep.mubr.msk.bf16.mxu1 %vm13010_vm1, %v14121_v27 }
 0x475   : > { %v11546_v59 = vpop.f32.mrf.mxu1  ;;  %v11583_v32 = vpop.f32.mrf.mxu0  ;;  %11995 = vmatpush3.bf16.msra.mxu0 %v12829_v50  ;;  %11958 = vmatprep.subr.bf16.mxu1 %v14121_v27  ;;  %v14559_v50 = vld [vmem:[#allocation5 + $0x41] sm:$0xff] }
 0x476   : > { %12052 = vmatprep.subr.bf16.mxu0 %v14121_v27  ;;  %v12840_v59 = vld [vmem:[%s15677_s7 + $0x3d8] sm:$0xff]   ;;  %v4233_v32 = vadd.f32 %v14086_v14, %v14444_v61 }
 0x477   : > { %v4127_v53 = vpop.f32.mrf.mxu1  ;;  %v4529_v0 = vpop.f32.mrf.mxu0  ;;  %11941 = vmatmul.mubr.bf16.gmra.mxu0 %v5733_v55  ;;  %v12839_v14 = vld [vmem:[%s15677_s7 + $0x398] sm:$0xff]  }
 0x478   : > { %v14495_v5 = vadd.f32 %v4248_v52, %v4127_v53  ;;  %11959 = vmatpush3.bf16.msra.mxu1 %v12830_v63  ;;  %11996 = vmatprep.mubr.msk.bf16.mxu0 %vm13010_vm1, %v14121_v27  ;;  %v6057_v63 = vpack.c.bf16 %v14559_v50, %v14557_v10  ;;  %v5886_v53 = vld [vmem:[#allocation5 + $0x38] sm:$0xff] }
 0x479   : > { %v11547_v8 = vpop.f32.mrf.mxu1  ;;  %v11638_v1 = vpop.f32.mrf.mxu0  ;;  %12016 = vmatprep.subr.bf16.mxu1 %v14121_v27 }
 0x47b   : > { %v4366_v54 = vpop.f32.mrf.mxu1  ;;  %v4532_v6 = vpop.f32.mrf.mxu0  ;;  %11905 = vmatmul.mubr.bf16.gmra.mxu1 %v5570_v3 }
 0x47c   : > { %v4405_v11 = vadd.f32 %v4366_v54, %v14030_v28  ;;  %11960 = vmatprep.mubr.msk.bf16.mxu1 %vm13010_vm1, %v14121_v27  ;;  %v12831_v28 = vld [vmem:[%s15677_s7 + $0x3b8] sm:$0xff]  }
 0x47d   : > { %v11602_v20 = vpop.f32.mrf.mxu1  ;;  %v11639_v21 = vpop.f32.mrf.mxu0  ;;  %v14582_v54 = vld [vmem:[#allocation5 + $0x51] sm:$0xff] }
 0x47e   : > { %v14509_v56 = vadd.f32 %v4529_v0, %v4405_v11  ;;  %v5887_v0 = vld [vmem:[#allocation5 + $0x40] sm:$0xff]  ;;  %v12842_v11 = vld [vmem:[%s15677_s7 + $0x3d0] sm:$0xff]  }
 0x47f   : > { %v4369_v57 = vpop.f32.mrf.mxu1  ;;  %v4537_v22 = vpop.f32.mrf.mxu0  ;;  %11997 = vmatmul.mubr.bf16.vlgmr.msra.gmra.mxu0 %v6055_v15  ;;  %v5894_v15 = vpack.c.bf16 %v5887_v0, %v5886_v53  ;;  %v6208_v0 = vld [vmem:[#allocation5 + $0x1a] sm:$0xff] }
 0x480   : > { %v4406_v24 = vadd.f32 %v4369_v57, %v14036_v46  ;;  %12000 = vmatprep.mubr.msk.bf16.mxu0 %vm13010_vm1, %v14121_v27  ;;  %12053 = vmatpush3.bf16.msra.mxu0 %v12833_v17  ;;  %v14591_v17 = vld [vmem:[#allocation5 + $0x49] sm:$0xff] }
 0x481   : > { %v11603_v26 = vpop.f32.mrf.mxu1  ;;  %v11642_v60 = vpop.f32.mrf.mxu0  ;;  %12054 = vmatprep.subr.bf16.mxu0 %v14121_v27 }
 0x482   : > { %v14527_v46 = vadd.f32 %v4532_v6, %v4406_v24  ;;  %v12841_v24 = vld [vmem:[%s15677_s7 + $0x390] sm:$0xff]   ;;  %v12843_v60 = vld [vmem:[%s15677_s7 + $0x3c8] sm:$0xff]  }
 0x483   : > { %v4374_v34 = vpop.f32.mrf.mxu1  ;;  %v4540_v25 = vpop.f32.mrf.mxu0  ;;  %11961 = vmatmul.mubr.bf16.vlgmr.msra.gmra.mxu1 %v5892_v16 }
 0x484   : > { %v4407_v35 = vadd.f32 %v4374_v34, %v14047_v12  ;;  %12017 = vmatpush3.bf16.msra.mxu1 %v12831_v28  ;;  %11964 = vmatprep.mubr.msk.bf16.mxu1 %vm13010_vm1, %v14121_v27  ;;  %v12836_v12 = vld [vmem:[%s15677_s7 + $0x3e8] sm:$0xff]  }
 0x485   : > { %v11606_v37 = vpop.f32.mrf.mxu1  ;;  %v11643_v39 = vpop.f32.mrf.mxu0  ;;  %12018 = vmatprep.subr.bf16.mxu1 %v14121_v27  ;;  %12055 = vmatpush3.bf16.msra.mxu0 %v12834_v4  ;;  %v5888_v4 = vld [vmem:[#allocation5 + $0x48] sm:$0xff] }
 0x486   : > { %12056 = vmatprep.subr.bf16.mxu0 %v14121_v27  ;;  %v14542_v19 = vadd.f32 %v4537_v22, %v4407_v35  ;;  %v6058_v22 = vpack.c.bf16 %v14582_v54, %v14591_v17  ;;  %v6054_v37 = vld [vmem:[#allocation5 + $0x61] sm:$0x1f]  ;;  %v5895_v18 = vpack.c.bf16 %v14121_v27, %v5888_v4  ;;  %v6382_v4 = vpack.c.bf16 %v14557_v10, %v14525_v33 }
 0x487   : > { %v4377_v41 = vpop.f32.mrf.mxu1  ;;  %v4545_v29 = vpop.f32.mrf.mxu0  ;;  %12001 = vmatmul.mubr.bf16.gmra.mxu0 %v6056_v40  ;;  %v12844_v39 = vld [vmem:[%s15677_s7 + $0x388] sm:$0xff]  }
 0x488   : > { %v4408_v42 = vadd.f32 %v4377_v41, %v14059_v2  ;;  %12019 = vmatpush3.bf16.msra.mxu1 %v12832_v36  ;;  %12004 = vmatprep.mubr.msk.bf16.mxu0 %vm13010_vm1, %v14121_v27  ;;  %v4230_v2 = vadd.f32 %v14072_v13, %v14430_v23  ;;  %v12837_v13 = vld [vmem:[%s15677_s7 + $0x3a0] sm:$0xff]   ;;  %v12851_v10 = vld [vmem:[%s15677_s7 + $0x428] sm:$0xff]  }
 0x489   : > { %v11607_v44 = vpop.f32.mrf.mxu1  ;;  %v11646_v48 = vpop.f32.mrf.mxu0  ;;  %12020 = vmatprep.subr.bf16.mxu1 %v14121_v27  ;;  %12057 = vmatpush3.bf16.msra.mxu0 %v12836_v12  ;;  %v14614_v36 = vld [vmem:[#allocation5 + $0x59] sm:$0xff] }
 0x48a   : > { %12058 = vmatprep.subr.bf16.mxu0 %v14121_v27  ;;  %v14562_v51 = vadd.f32 %v4540_v25, %v4408_v42  ;;  %v5891_v48 = vld [vmem:[#allocation5 + $0x60] sm:$0x1f] }
 0x48b   : > { %v4382_v52 = vpop.f32.mrf.mxu1  ;;  %v4548_v55 = vpop.f32.mrf.mxu0  ;;  %11965 = vmatmul.mubr.bf16.gmra.mxu1 %v5893_v45  ;;  %v12846_v45 = vld [vmem:[%s15677_s7 + $0x380] sm:$0xff]  }
 0x48c   : > { %v4409_v62 = vadd.f32 %v4382_v52, %v4230_v2  ;;  %12021 = vmatpush3.bf16.msra.mxu1 %v12835_v43  ;;  %11968 = vmatprep.mubr.msk.bf16.mxu1 %vm13010_vm1, %v14121_v27  ;;  %v6059_v43 = vpack.c.bf16 %v6054_v37, %v14614_v36 }
 0x48d   : > { %v11610_v23 = vpop.f32.mrf.mxu1  ;;  %v11647_v31 = vpop.f32.mrf.mxu0  ;;  %12022 = vmatprep.subr.bf16.mxu1 %v14121_v27  ;;  %12059 = vmatpush3.bf16.msra.mxu0 %v12838_v49 }
 0x48e   : > { %12060 = vmatprep.subr.bf16.mxu0 %v14121_v27  ;;  %v14578_v3 = vadd.f32 %v4545_v29, %v4409_v62  ;;  %v5896_v62 = vpack.c.bf16 %v5891_v48, %v14121_v27 }
 0x48f   : > { %v4385_v7 = vpop.f32.mrf.mxu1  ;;  %v4553_v8 = vpop.f32.mrf.mxu0  ;;  %12005 = vmatmul.mubr.bf16.gmra.mxu0 %v6057_v63 }
 0x490   : > { %v4410_v1 = vadd.f32 %v4385_v7, %v4233_v32  ;;  %12023 = vmatpush3.bf16.msra.mxu1 %v12837_v13  ;;  %12008 = vmatprep.mubr.msk.bf16.mxu0 %vm13010_vm1, %v14121_v27 }
 0x491   : > { %v11611_v61 = vpop.f32.mrf.mxu1  ;;  %v11650_v6 = vpop.f32.mrf.mxu0  ;;  %12024 = vmatprep.subr.bf16.mxu1 %v14121_v27  ;;  %12061 = vmatpush3.bf16.msra.mxu0 %v12840_v59 }
 0x492   : > { %12062 = vmatprep.subr.bf16.mxu0 %v14121_v27  ;;  %v14594_v20 = vadd.f32 %v4548_v55, %v4410_v1  ;;  %v6381_v1 = vpack.c.bf16 %v14523_v30, %v14500_v9 }
 0x493   : > { %v4390_v21 = vpop.f32.mrf.mxu1  ;;  %v4556_v57 = vpop.f32.mrf.mxu0  ;;  %11969 = vmatmul.mubr.bf16.gmra.mxu1 %v5894_v15 }
 0x494   : > { %v4411_v16 = vadd.f32 %v4390_v21, %v14458_v38  ;;  %12025 = vmatpush3.bf16.msra.mxu1 %v12839_v14  ;;  %11972 = vmatprep.mubr.msk.bf16.mxu1 %vm13010_vm1, %v14121_v27  ;;  %v14653_v14 = vld [vmem:[#allocation5 + $0x22] sm:$0xff]  ;;  %v12847_v21 = vld [vmem:[%s15677_s7 + $0x438] sm:$0xff]  }
 0x495   : > { %v11614_v28 = vpop.f32.mrf.mxu1  ;;  %v11651_v26 = vpop.f32.mrf.mxu0  ;;  %12026 = vmatprep.subr.bf16.mxu1 %v14121_v27  ;;  %12063 = vmatpush3.bf16.msra.mxu0 %v12842_v11 }
 0x496   : > { %12064 = vmatprep.subr.bf16.mxu0 %v14121_v27  ;;  %v14609_v38 = vadd.f32 %v4553_v8, %v4411_v16  ;;  %v12848_v28 = vld [vmem:[%s15677_s7 + $0x430] sm:$0xff]   ;;  %v14674_v26 = vld [vmem:[#allocation3] sm:$0xff] }
 0x497   : > { %v4393_v34 = vpop.f32.mrf.mxu1  ;;  %v4561_v25 = vpop.f32.mrf.mxu0  ;;  %12009 = vmatmul.mubr.bf16.gmra.mxu0 %v6058_v22 }
 0x498   : > { %v4412_v35 = vadd.f32 %v4393_v34, %v14472_v47  ;;  %12027 = vmatpush3.bf16.msra.mxu1 %v12841_v24  ;;  %12012 = vmatprep.mubr.msk.bf16.mxu0 %vm13010_vm1, %v14121_v27  ;;  %v12845_v47 = vld [vmem:[%s15677_s7 + $0x3c0] sm:$0xff]   ;;  %v14684_v34 = vld [vmem:[#allocation5 + $0x2a] sm:$0xff] }
 0x499   : > { %v11615_v40 = vpop.f32.mrf.mxu1  ;;  %v11654_v12 = vpop.f32.mrf.mxu0  ;;  %12028 = vmatprep.subr.bf16.mxu1 %v14121_v27  ;;  %12065 = vmatpush3.bf16.msra.mxu0 %v12843_v60 }
 0x49a   : > { %12066 = vmatprep.subr.bf16.mxu0 %v14121_v27  ;;  %v14625_v41 = vadd.f32 %v4556_v57, %v4412_v35  ;;  %v12850_v57 = vld [vmem:[%s15677_s7 + $0x470] sm:$0xff]  }
 0x49b   : > { %v4398_v29 = vpop.f32.mrf.mxu1  ;;  %v4564_v42 = vpop.f32.mrf.mxu0  ;;  %11973 = vmatmul.mubr.bf16.gmra.mxu1 %v5895_v18 }
 0x49c   : > { %v4413_v44 = vadd.f32 %v4398_v29, %v14486_v58  ;;  %12029 = vmatpush3.bf16.msra.mxu1 %v12844_v39  ;;  %11976 = vmatprep.mubr.msk.bf16.mxu1 %vm13010_vm1, %v14121_v27 }
 0x49d   : > { %v11618_v49 = vpop.f32.mrf.mxu1  ;;  %v11655_v2 = vpop.f32.mrf.mxu0  ;;  %12067 = vmatpush3.bf16.msra.mxu0 %v12845_v47  ;;  %12030 = vmatprep.subr.bf16.mxu1 %v14121_v27 }
 0x49e   : > { %12124 = vmatprep.subr.bf16.mxu0 %v14121_v27  ;;  %v14636_v52 = vadd.f32 %v4561_v25, %v4413_v44  ;;  %v14686_v25 = vld [vmem:[#allocation5 + $0x32] sm:$0xff]  ;;  %v6383_v49 = vpack.c.bf16 %v14591_v17, %v14559_v50  ;;  %v14718_v2 = vld [vmem:[#allocation5 + $0x3a] sm:$0xff] }
 0x49f   : > { %v4401_v55 = vpop.f32.mrf.mxu1  ;;  %v4855_v58 = vpop.f32.mrf.mxu0  ;;  %12013 = vmatmul.mubr.bf16.gmra.mxu0 %v6059_v43  ;;  %v6219_v18 = vpack.c.bf16 %v14686_v25, %v14684_v34  ;;  %v12853_v44 = vld [vmem:[%s15677_s7 + $0x420] sm:$0xff]   ;;  %v12855_v17 = vld [vmem:[%s15677_s7 + $0x418] sm:$0xff]  }
 0x4a0   : > { %v4414_v13 = vadd.f32 %v4401_v55, %v14495_v5  ;;  %12031 = vmatpush3.bf16.msra.mxu1 %v12846_v45  ;;  %12068 = vmatprep.mubr.msk.bf16.mxu0 %vm13010_vm1, %v14121_v27  ;;  %v12849_v5 = vld [vmem:[%s15677_s7 + $0x478] sm:$0xff]   ;;  %v14720_v55 = vld [vmem:[#allocation5 + $0x42] sm:$0xff] }
 0x4a1   : > { %v11619_v23 = vpop.f32.mrf.mxu1  ;;  %v11710_v31 = vpop.f32.mrf.mxu0  ;;  %12088 = vmatprep.subr.bf16.mxu1 %v14121_v27 }
 0x4a2   : > { %v14643_v63 = vadd.f32 %v4564_v42, %v4414_v13 }
 0x4a3   : > { %v4692_v59 = vpop.f32.mrf.mxu1  ;;  %v4858_v32 = vpop.f32.mrf.mxu0  ;;  %11977 = vmatmul.mubr.bf16.gmra.mxu1 %v5896_v62 }
 0x4a4   : > { %v4731_v53 = vadd.f32 %v4692_v59, %v14509_v56  ;;  %12032 = vmatprep.mubr.msk.bf16.mxu1 %vm13010_vm1, %v14121_v27  ;;  %v6218_v56 = vpack.c.bf16 %v14653_v14, %v6208_v0  ;;  %v6220_v59 = vpack.c.bf16 %v14720_v55, %v14718_v2 }
 0x4a5   : > { %v11674_v7 = vpop.f32.mrf.mxu1  ;;  %v11711_v8 = vpop.f32.mrf.mxu0 }
 0x4a6   : > { %v14655_v61 = vadd.f32 %v4855_v58, %v4731_v53  ;;  %v14745_v8 = vld [vmem:[#allocation5 + $0x52] sm:$0xff] }
 0x4a7   : > { %v4695_v6 = vpop.f32.mrf.mxu1  ;;  %v4863_v15 = vpop.f32.mrf.mxu0  ;;  %12069 = vmatmul.mubr.bf16.vlgmr.msra.gmra.mxu0 %v6381_v1  ;;  %v12857_v1 = vld [vmem:[%s15677_s7 + $0x410] sm:$0xff]  }
 0x4a8   : > { %v4732_v11 = vadd.f32 %v4695_v6, %v14527_v46  ;;  %12072 = vmatprep.mubr.msk.bf16.mxu0 %vm13010_vm1, %v14121_v27  ;;  %12125 = vmatpush3.bf16.msra.mxu0 %v12849_v5  ;;  %v6384_v5 = vpack.c.bf16 %v14614_v36, %v14582_v54  ;;  %v12859_v54 = vld [vmem:[%s15677_s7 + $0x448] sm:$0xff]  }
 0x4a9   : > { %v11675_v9 = vpop.f32.mrf.mxu1  ;;  %v11714_v30 = vpop.f32.mrf.mxu0  ;;  %12126 = vmatprep.subr.bf16.mxu0 %v14121_v27 }
 0x4aa   : > { %v14668_v22 = vadd.f32 %v4858_v32, %v4732_v11  ;;  %v6379_v30 = vld [vmem:[#allocation5 + $0x61] sm:$0xff] }
 0x4ab   : > { %v4700_v16 = vpop.f32.mrf.mxu1  ;;  %v4866_v46 = vpop.f32.mrf.mxu0  ;;  %12033 = vmatmul.mubr.bf16.vlgmr.msra.gmra.mxu1 %v6218_v56 }
 0x4ac   : > { %v4733_v24 = vadd.f32 %v4700_v16, %v14542_v19  ;;  %12089 = vmatpush3.bf16.msra.mxu1 %v12847_v21  ;;  %12036 = vmatprep.mubr.msk.bf16.mxu1 %vm13010_vm1, %v14674_v26  ;;  %v12852_v19 = vld [vmem:[%s15677_s7 + $0x468] sm:$0xff]  }
 0x4ad   : > { %v11678_v27 = vpop.f32.mrf.mxu1  ;;  %v11715_v60 = vpop.f32.mrf.mxu0  ;;  %12090 = vmatprep.subr.bf16.mxu1 %v14674_v26  ;;  %12127 = vmatpush3.bf16.msra.mxu0 %v12850_v57  ;;  %v6380_v57 = vld [vmem:[#allocation5 + $0x69] sm:$0x1f]  ;;  %v12860_v16 = vld [vmem:[%s15677_s7 + $0x408] sm:$0xff]  }
 0x4ae   : > { %12128 = vmatprep.subr.bf16.mxu0 %v14674_v26  ;;  %v14689_v35 = vadd.f32 %v4863_v15, %v4733_v24 }
 0x4af   : > { %v4703_v37 = vpop.f32.mrf.mxu1  ;;  %v4871_v39 = vpop.f32.mrf.mxu0  ;;  %12073 = vmatmul.mubr.bf16.gmra.mxu0 %v6382_v4  ;;  %v6385_v4 = vpack.c.bf16 %v6380_v57, %v6379_v30 }
 0x4b0   : > { %v4734_v33 = vadd.f32 %v4703_v37, %v14562_v51  ;;  %12091 = vmatpush3.bf16.msra.mxu1 %v12848_v28  ;;  %12076 = vmatprep.mubr.msk.bf16.mxu0 %vm13010_vm1, %v14674_v26  ;;  %v12854_v51 = vld [vmem:[%s15677_s7 + $0x460] sm:$0xff]  }
 0x4b1   : > { %v11679_v40 = vpop.f32.mrf.mxu1  ;;  %v11718_v12 = vpop.f32.mrf.mxu0  ;;  %12092 = vmatprep.subr.bf16.mxu1 %v14674_v26  ;;  %12129 = vmatpush3.bf16.msra.mxu0 %v12852_v19  ;;  %v12861_v28 = vld [vmem:[%s15677_s7 + $0x440] sm:$0xff]  }
 0x4b2   : > { %12130 = vmatprep.subr.bf16.mxu0 %v14674_v26  ;;  %v14704_v47 = vadd.f32 %v4866_v46, %v4734_v33  ;;  %v14777_v37 = vld [vmem:[#allocation5 + $0x5a] sm:$0xff] }
 0x4b3   : > { %v4708_v29 = vpop.f32.mrf.mxu1  ;;  %v4874_v42 = vpop.f32.mrf.mxu0  ;;  %12037 = vmatmul.mubr.bf16.gmra.mxu1 %v6219_v18  ;;  %v12862_v33 = vld [vmem:[%s15677_s7 + $0x400] sm:$0xff]  }
 0x4b4   : > { %v4735_v43 = vadd.f32 %v4708_v29, %v14578_v3  ;;  %12093 = vmatpush3.bf16.msra.mxu1 %v12851_v10  ;;  %12040 = vmatprep.mubr.msk.bf16.mxu1 %vm13010_vm1, %v14674_v26  ;;  %v12856_v3 = vld [vmem:[%s15677_s7 + $0x458] sm:$0xff]  }
 0x4b5   : > { %v11682_v48 = vpop.f32.mrf.mxu1  ;;  %v11719_v45 = vpop.f32.mrf.mxu0  ;;  %12094 = vmatprep.subr.bf16.mxu1 %v14674_v26  ;;  %12131 = vmatpush3.bf16.msra.mxu0 %v12854_v51 }
 0x4b6   : > { %12132 = vmatprep.subr.bf16.mxu0 %v14674_v26  ;;  %v14723_v58 = vadd.f32 %v4871_v39, %v4735_v43  ;;  %v6217_v39 = vld [vmem:[#allocation5 + $0x62] sm:$0x1f]  ;;  %v6698_v48 = vld [vmem:[#allocation5 + $0x2b] sm:$0xff] }
 0x4b7   : > { %v4711_v62 = vpop.f32.mrf.mxu1  ;;  %v4879_v13 = vpop.f32.mrf.mxu0  ;;  %12077 = vmatmul.mubr.bf16.gmra.mxu0 %v6383_v49  ;;  %v6222_v51 = vpack.c.bf16 %v6217_v39, %v14777_v37 }
 0x4b8   : > { %v4736_v50 = vadd.f32 %v4711_v62, %v14594_v20  ;;  %12095 = vmatpush3.bf16.msra.mxu1 %v12853_v44  ;;  %12080 = vmatprep.mubr.msk.bf16.mxu0 %vm13010_vm1, %v14674_v26  ;;  %v12858_v20 = vld [vmem:[%s15677_s7 + $0x450] sm:$0xff]  }
 0x4b9   : > { %v11683_v23 = vpop.f32.mrf.mxu1  ;;  %v11722_v31 = vpop.f32.mrf.mxu0  ;;  %12096 = vmatprep.subr.bf16.mxu1 %v14674_v26  ;;  %12133 = vmatpush3.bf16.msra.mxu0 %v12856_v3  ;;  %v6697_v44 = vld [vmem:[#allocation5 + $0x23] sm:$0xff] }
 0x4ba   : > { %12134 = vmatprep.subr.bf16.mxu0 %v14674_v26  ;;  %v14738_v32 = vadd.f32 %v4874_v42, %v4736_v50 }
 0x4bb   : > { %v4716_v53 = vpop.f32.mrf.mxu1  ;;  %v4882_v0 = vpop.f32.mrf.mxu0  ;;  %12041 = vmatmul.mubr.bf16.gmra.mxu1 %v6220_v59 }
 0x4bc   : > { %v4737_v7 = vadd.f32 %v4716_v53, %v14609_v38  ;;  %12097 = vmatpush3.bf16.msra.mxu1 %v12855_v17  ;;  %12044 = vmatprep.mubr.msk.bf16.mxu1 %vm13010_vm1, %v14674_v26  ;;  %v14754_v38 = vld [vmem:[#allocation5 + $0x4a] sm:$0xff]  ;;  %v6707_v17 = vpack.c.bf16 %v6698_v48, %v6697_v44  ;;  %v6704_v44 = vld [vmem:[#allocation5 + $0x5b] sm:$0xff] }
 0x4bd   : > { %v11686_v6 = vpop.f32.mrf.mxu1  ;;  %v11723_v15 = vpop.f32.mrf.mxu0  ;;  %12098 = vmatprep.subr.bf16.mxu1 %v14674_v26  ;;  %12135 = vmatpush3.bf16.msra.mxu0 %v12858_v20  ;;  %v6221_v21 = vpack.c.bf16 %v14745_v8, %v14754_v38  ;;  %v12871_v48 = vld [vmem:[%s15677_s7 + $0x498] sm:$0xff]  }
 0x4be   : > { %12136 = vmatprep.subr.bf16.mxu0 %v14674_v26  ;;  %v14757_v36 = vadd.f32 %v4879_v13, %v4737_v7  ;;  %v12866_v7 = vld [vmem:[%s15677_s7 + $0x4f0] sm:$0xff]  }
 0x4bf   : > { %v4719_v56 = vpop.f32.mrf.mxu1  ;;  %v4887_v11 = vpop.f32.mrf.mxu0  ;;  %12081 = vmatmul.mubr.bf16.gmra.mxu0 %v6384_v5  ;;  %v6544_v5 = vpack.c.bf16 %v14684_v34, %v14653_v14  ;;  %v12864_v14 = vld [vmem:[%s15677_s7 + $0x4b0] sm:$0xff]  }
 0x4c0   : > { %v4738_v9 = vadd.f32 %v4719_v56, %v14625_v41  ;;  %12099 = vmatpush3.bf16.msra.mxu1 %v12857_v1  ;;  %12084 = vmatprep.mubr.msk.bf16.mxu0 %vm13010_vm1, %v14674_v26  ;;  %v6700_v1 = vld [vmem:[#allocation5 + $0x3b] sm:$0xff] }
 0x4c1   : > { %v11687_v46 = vpop.f32.mrf.mxu1  ;;  %v11726_v24 = vpop.f32.mrf.mxu0  ;;  %12100 = vmatprep.subr.bf16.mxu1 %v14674_v26  ;;  %12137 = vmatpush3.bf16.msra.mxu0 %v12859_v54 }
 0x4c2   : > { %12138 = vmatprep.subr.bf16.mxu0 %v14674_v26  ;;  %v14772_v41 = vadd.f32 %v4882_v0, %v4738_v9  ;;  %v12868_v9 = vld [vmem:[%s15677_s7 + $0x4e8] sm:$0xff]  }
 0x4c3   : > { %v4724_v27 = vpop.f32.mrf.mxu1  ;;  %v4890_v60 = vpop.f32.mrf.mxu0  ;;  %12045 = vmatmul.mubr.bf16.gmra.mxu1 %v6221_v21  ;;  %v12867_v46 = vld [vmem:[%s15677_s7 + $0x4a8] sm:$0xff]  }
 0x4c4   : > { %v4739_v19 = vadd.f32 %v4724_v27, %v14636_v52  ;;  %12101 = vmatpush3.bf16.msra.mxu1 %v12860_v16  ;;  %12048 = vmatprep.mubr.msk.bf16.mxu1 %vm13010_vm1, %v14674_v26  ;;  %v6545_v27 = vpack.c.bf16 %v14718_v2, %v14686_v25  ;;  %v12869_v25 = vld [vmem:[%s15677_s7 + $0x4a0] sm:$0xff]  }
 0x4c5   : > { %v11690_v10 = vpop.f32.mrf.mxu1  ;;  %v11727_v40 = vpop.f32.mrf.mxu0  ;;  %12139 = vmatpush3.bf16.msra.mxu0 %v12861_v28  ;;  %12102 = vmatprep.subr.bf16.mxu1 %v14674_v26 }
 0x4c6   : > { %12196 = vmatprep.subr.bf16.mxu0 %v14674_v26  ;;  %v14784_v12 = vadd.f32 %v4887_v11, %v4739_v19 }
 0x4c7   : > { %v4727_v52 = vpop.f32.mrf.mxu1  ;;  %v5181_v18 = vpop.f32.mrf.mxu0  ;;  %12085 = vmatmul.mubr.bf16.gmra.mxu0 %v6385_v4  ;;  %v6702_v4 = vld [vmem:[#allocation5 + $0x4b] sm:$0xff] }
 0x4c8   : > { %v4740_v29 = vadd.f32 %v4727_v52, %v14643_v63  ;;  %12103 = vmatpush3.bf16.msra.mxu1 %v12862_v33  ;;  %12140 = vmatprep.mubr.msk.bf16.mxu0 %vm13010_vm1, %v14674_v26  ;;  %v12865_v63 = vld [vmem:[%s15677_s7 + $0x4f8] sm:$0xff]  }
 0x4c9   : > { %v11691_v42 = vpop.f32.mrf.mxu1  ;;  %v11782_v43 = vpop.f32.mrf.mxu0  ;;  %12160 = vmatprep.subr.bf16.mxu1 %v14674_v26 }
 0x4ca   : > { %v14791_v45 = vadd.f32 %v4890_v60, %v4740_v29  ;;  %v6701_v60 = vld [vmem:[#allocation5 + $0x43] sm:$0xff]  ;;  %v6703_v43 = vld [vmem:[#allocation5 + $0x53] sm:$0xff] }
 0x4cb   : > { %v5018_v49 = vpop.f32.mrf.mxu1  ;;  %v5184_v3 = vpop.f32.mrf.mxu0  ;;  %12049 = vmatmul.mubr.bf16.gmra.mxu1 %v6222_v51  ;;  %v6709_v52 = vpack.c.bf16 %v6702_v4, %v6701_v60  ;;  %v7023_v60 = vld [vmem:[#allocation5 + $0x25] sm:$0xff]  ;;  %v14913_v4 = vld [vmem:[#allocation5 + $0x2d] sm:$0xff] }
 0x4cc   : > { %v5057_v62 = vadd.f32 %v5018_v49, %v14655_v61  ;;  %12104 = vmatprep.mubr.msk.bf16.mxu1 %vm13010_vm1, %v14674_v26  ;;  %v12863_v61 = vld [vmem:[%s15677_s7 + $0x4b8] sm:$0xff]  }
 0x4cd   : > { %v11746_v13 = vpop.f32.mrf.mxu1  ;;  %v11783_v50 = vpop.f32.mrf.mxu0 }
 0x4ce   : > { %v14799_v23 = vadd.f32 %v5181_v18, %v5057_v62  ;;  %v12872_v18 = vld [vmem:[%s15677_s7 + $0x4d8] sm:$0xff]   ;;  %v6546_v62 = vpack.c.bf16 %v14754_v38, %v14720_v55  ;;  %v12873_v55 = vld [vmem:[%s15677_s7 + $0x490] sm:$0xff]  }
 0x4cf   : > { %v5021_v31 = vpop.f32.mrf.mxu1  ;;  %v5189_v59 = vpop.f32.mrf.mxu0  ;;  %12141 = vmatmul.mubr.bf16.vlgmr.msra.gmra.mxu0 %v6707_v17  ;;  %v6710_v17 = vpack.c.bf16 %v6704_v44, %v6703_v43  ;;  %v12879_v44 = vld [vmem:[%s15677_s7 + $0x538] sm:$0xff]  }
 0x4d0   : > { %v5058_v20 = vadd.f32 %v5021_v31, %v14668_v22  ;;  %12144 = vmatprep.mubr.msk.bf16.mxu0 %vm13010_vm1, %v14674_v26  ;;  %12197 = vmatpush3.bf16.msra.mxu0 %v12865_v63  ;;  %v6699_v22 = vld [vmem:[#allocation5 + $0x33] sm:$0xff] }
 0x4d1   : > { %v11747_v53 = vpop.f32.mrf.mxu1  ;;  %v11786_v0 = vpop.f32.mrf.mxu0  ;;  %12198 = vmatprep.subr.bf16.mxu0 %v14674_v26  ;;  %v6708_v21 = vpack.c.bf16 %v6700_v1, %v6699_v22  ;;  %v6706_v22 = vld [vmem:[#allocation5 + $0x6b] sm:$0x1f]  ;;  %v12876_v1 = vld [vmem:[%s15677_s7 + $0x488] sm:$0xff]  }
 0x4d2   : > { %v14813_v6 = vadd.f32 %v5184_v3, %v5058_v20  ;;  %v12875_v20 = vld [vmem:[%s15677_s7 + $0x4c8] sm:$0xff]   ;;  %v6547_v0 = vpack.c.bf16 %v14777_v37, %v14745_v8  ;;  %v12877_v8 = vld [vmem:[%s15677_s7 + $0x4c0] sm:$0xff]  }
 0x4d3   : > { %v5026_v15 = vpop.f32.mrf.mxu1  ;;  %v5192_v54 = vpop.f32.mrf.mxu0  ;;  %12105 = vmatmul.mubr.bf16.vlgmr.msra.gmra.mxu1 %v6544_v5 }
 0x4d4   : > { %v5059_v56 = vadd.f32 %v5026_v15, %v14689_v35  ;;  %12161 = vmatpush3.bf16.msra.mxu1 %v12863_v61  ;;  %12108 = vmatprep.mubr.msk.bf16.mxu1 %vm13010_vm1, %v14674_v26 }
 0x4d5   : > { %v11750_v34 = vpop.f32.mrf.mxu1  ;;  %v11787_v11 = vpop.f32.mrf.mxu0  ;;  %12162 = vmatprep.subr.bf16.mxu1 %v14674_v26  ;;  %12199 = vmatpush3.bf16.msra.mxu0 %v12866_v7  ;;  %v6705_v7 = vld [vmem:[#allocation5 + $0x63] sm:$0xff] }
 0x4d6   : > { %12200 = vmatprep.subr.bf16.mxu0 %v14674_v26  ;;  %v14826_v35 = vadd.f32 %v5189_v59, %v5059_v56  ;;  %v6542_v11 = vld [vmem:[#allocation5 + $0x62] sm:$0xff] }
 0x4d7   : > { %v5029_v30 = vpop.f32.mrf.mxu1  ;;  %v5197_v57 = vpop.f32.mrf.mxu0  ;;  %12145 = vmatmul.mubr.bf16.gmra.mxu0 %v6708_v21  ;;  %v6543_v21 = vld [vmem:[#allocation5 + $0x6a] sm:$0x1f] }
 0x4d8   : > { %v5060_v16 = vadd.f32 %v5029_v30, %v14704_v47  ;;  %12163 = vmatpush3.bf16.msra.mxu1 %v12864_v14  ;;  %12148 = vmatprep.mubr.msk.bf16.mxu0 %vm13010_vm1, %v14674_v26  ;;  %v12870_v47 = vld [vmem:[%s15677_s7 + $0x4e0] sm:$0xff]   ;;  %v6711_v14 = vpack.c.bf16 %v6706_v22, %v6705_v7 }
 0x4d9   : > { %v11751_v24 = vpop.f32.mrf.mxu1  ;;  %v11790_v28 = vpop.f32.mrf.mxu0  ;;  %12164 = vmatprep.subr.bf16.mxu1 %v14674_v26  ;;  %12201 = vmatpush3.bf16.msra.mxu0 %v12868_v9  ;;  %v12878_v9 = vld [vmem:[%s15677_s7 + $0x480] sm:$0xff]  }
 0x4da   : > { %12202 = vmatprep.subr.bf16.mxu0 %v14674_v26  ;;  %v14841_v19 = vadd.f32 %v5192_v54, %v5060_v16  ;;  %v6548_v24 = vpack.c.bf16 %v6543_v21, %v6542_v11  ;;  %v14963_v22 = vld [vmem:[#allocation5 + $0x34] sm:$0xff] }
 0x4db   : > { %v5034_v39 = vpop.f32.mrf.mxu1  ;;  %v5200_v33 = vpop.f32.mrf.mxu0  ;;  %12109 = vmatmul.mubr.bf16.gmra.mxu1 %v6545_v27 }
 0x4dc   : > { %v5061_v10 = vadd.f32 %v5034_v39, %v14723_v58  ;;  %12165 = vmatpush3.bf16.msra.mxu1 %v12867_v46  ;;  %12112 = vmatprep.mubr.msk.bf16.mxu1 %vm13010_vm1, %v14674_v26 }
 0x4dd   : > { %v11754_v2 = vpop.f32.mrf.mxu1  ;;  %v11791_v40 = vpop.f32.mrf.mxu0  ;;  %12166 = vmatprep.subr.bf16.mxu1 %v14674_v26  ;;  %12203 = vmatpush3.bf16.msra.mxu0 %v12870_v47 }
 0x4de   : > { %12204 = vmatprep.subr.bf16.mxu0 %v14674_v26  ;;  %v14854_v58 = vadd.f32 %v5197_v57, %v5061_v10 }
 0x4df   : > { %v5037_v51 = vpop.f32.mrf.mxu1  ;;  %v5205_v29 = vpop.f32.mrf.mxu0  ;;  %12149 = vmatmul.mubr.bf16.gmra.mxu0 %v6709_v52  ;;  %v7033_v52 = vpack.c.bf16 %v14913_v4, %v7023_v60 }
 0x4e0   : > { %v5062_v42 = vadd.f32 %v5037_v51, %v14738_v32  ;;  %12167 = vmatpush3.bf16.msra.mxu1 %v12869_v25  ;;  %12152 = vmatprep.mubr.msk.bf16.mxu0 %vm13010_vm1, %v14674_v26  ;;  %v12874_v32 = vld [vmem:[%s15677_s7 + $0x4d0] sm:$0xff]  }
 0x4e1   : > { %v11755_v49 = vpop.f32.mrf.mxu1  ;;  %v11794_v3 = vpop.f32.mrf.mxu0  ;;  %12168 = vmatprep.subr.bf16.mxu1 %v14674_v26  ;;  %12205 = vmatpush3.bf16.msra.mxu0 %v12872_v18  ;;  %v6860_v18 = vld [vmem:[#allocation5 + $0x24] sm:$0xff]  ;;  %v14924_v51 = vld [vmem:[#allocation5 + $0x2c] sm:$0xff] }
 0x4e2   : > { %12206 = vmatprep.subr.bf16.mxu0 %v14674_v26  ;;  %v14869_v63 = vadd.f32 %v5200_v33, %v5062_v42  ;;  %v6870_v3 = vpack.c.bf16 %v14924_v51, %v6860_v18 }
 0x4e3   : > { %v5042_v13 = vpop.f32.mrf.mxu1  ;;  %v5208_v50 = vpop.f32.mrf.mxu0  ;;  %12113 = vmatmul.mubr.bf16.gmra.mxu1 %v6546_v62  ;;  %v12882_v62 = vld [vmem:[%s15677_s7 + $0x570] sm:$0xff]  }
 0x4e4   : > { %v5063_v31 = vadd.f32 %v5042_v13, %v14757_v36  ;;  %12169 = vmatpush3.bf16.msra.mxu1 %v12871_v48  ;;  %12116 = vmatprep.mubr.msk.bf16.mxu1 %vm13010_vm1, %v14674_v26 }
 0x4e5   : > { %v11758_v38 = vpop.f32.mrf.mxu1  ;;  %v11795_v59 = vpop.f32.mrf.mxu0  ;;  %12170 = vmatprep.subr.bf16.mxu1 %v14674_v26  ;;  %12207 = vmatpush3.bf16.msra.mxu0 %v12874_v32  ;;  %v14939_v32 = vld [vmem:[#allocation5 + $0x35] sm:$0xff] }
 0x4e6   : > { %12208 = vmatprep.subr.bf16.mxu0 %v14674_v26  ;;  %v14882_v36 = vadd.f32 %v5205_v29, %v5063_v31 }
 0x4e7   : > { %v5045_v61 = vpop.f32.mrf.mxu1  ;;  %v5213_v53 = vpop.f32.mrf.mxu0  ;;  %12153 = vmatmul.mubr.bf16.gmra.mxu0 %v6710_v17 }
 0x4e8   : > { %v5064_v5 = vadd.f32 %v5045_v61, %v14772_v41  ;;  %12171 = vmatpush3.bf16.msra.mxu1 %v12873_v55  ;;  %12156 = vmatprep.mubr.msk.bf16.mxu0 %vm13010_vm1, %v14674_v26  ;;  %v12880_v55 = vld [vmem:[%s15677_s7 + $0x530] sm:$0xff]   ;;  %v14957_v61 = vld [vmem:[#allocation5 + $0x3c] sm:$0xff] }
 0x4e9   : > { %v11759_v15 = vpop.f32.mrf.mxu1  ;;  %v11798_v54 = vpop.f32.mrf.mxu0  ;;  %12172 = vmatprep.subr.bf16.mxu1 %v14674_v26  ;;  %12209 = vmatpush3.bf16.msra.mxu0 %v12875_v20 }
 0x4ea   : > { %12210 = vmatprep.subr.bf16.mxu0 %v14674_v26  ;;  %v14897_v41 = vadd.f32 %v5208_v50, %v5064_v5 }
 0x4eb   : > { %v5050_v37 = vpop.f32.mrf.mxu1  ;;  %v5216_v56 = vpop.f32.mrf.mxu0  ;;  %12117 = vmatmul.mubr.bf16.gmra.mxu1 %v6547_v0 }
 0x4ec   : > { %v5065_v34 = vadd.f32 %v5050_v37, %v14784_v12  ;;  %12173 = vmatpush3.bf16.msra.mxu1 %v12876_v1  ;;  %12120 = vmatprep.mubr.msk.bf16.mxu1 %vm13010_vm1, %v14674_v26  ;;  %v12883_v1 = vld [vmem:[%s15677_s7 + $0x528] sm:$0xff]  }
 0x4ed   : > { %v11762_v30 = vpop.f32.mrf.mxu1  ;;  %v11799_v57 = vpop.f32.mrf.mxu0  ;;  %12211 = vmatpush3.bf16.msra.mxu0 %v12877_v8  ;;  %12174 = vmatprep.subr.bf16.mxu1 %v14674_v26  ;;  %v6871_v8 = vpack.c.bf16 %v14957_v61, %v14963_v22  ;;  %v14976_v37 = vld [vmem:[#allocation5 + $0x45] sm:$0xff] }
 0x4ee   : > { %12268 = vmatprep.subr.bf16.mxu0 %v14674_v26  ;;  %v14907_v16 = vadd.f32 %v5213_v53, %v5065_v34 }
 0x4ef   : > { %v5053_v12 = vpop.f32.mrf.mxu1  ;;  %v5507_v46 = vpop.f32.mrf.mxu0  ;;  %12157 = vmatmul.mubr.bf16.gmra.mxu0 %v6711_v14 }
 0x4f0   : > { %v5066_v28 = vadd.f32 %v5053_v12, %v14791_v45  ;;  %12175 = vmatpush3.bf16.msra.mxu1 %v12878_v9  ;;  %12212 = vmatprep.mubr.msk.bf16.mxu0 %vm13010_vm1, %v14674_v26  ;;  %v12881_v45 = vld [vmem:[%s15677_s7 + $0x578] sm:$0xff]   ;;  %v12885_v9 = vld [vmem:[%s15677_s7 + $0x520] sm:$0xff]  }
 0x4f1   : > { %v11763_v27 = vpop.f32.mrf.mxu1  ;;  %v11854_v47 = vpop.f32.mrf.mxu0  ;;  %12232 = vmatprep.subr.bf16.mxu1 %v14674_v26 }
 0x4f2   : > { %v14915_v39 = vadd.f32 %v5216_v56, %v5066_v28  ;;  %v14978_v56 = vld [vmem:[#allocation5 + $0x4d] sm:$0xff] }
 0x4f3   : > { %v5344_v33 = vpop.f32.mrf.mxu1  ;;  %v5510_v10 = vpop.f32.mrf.mxu0  ;;  %12121 = vmatmul.mubr.bf16.gmra.mxu1 %v6548_v24  ;;  %v7035_v12 = vpack.c.bf16 %v14978_v56, %v14976_v37  ;;  %v14997_v24 = vld [vmem:[#allocation5 + $0x4c] sm:$0xff] }
 0x4f4   : > { %v5383_v25 = vadd.f32 %v5344_v33, %v14799_v23  ;;  %12176 = vmatprep.mubr.msk.bf16.mxu1 %vm13010_vm1, %v14674_v26  ;;  %v15005_v33 = vld [vmem:[#allocation5 + $0x55] sm:$0xff] }
 0x4f5   : > { %v11818_v2 = vpop.f32.mrf.mxu1  ;;  %v11855_v40 = vpop.f32.mrf.mxu0 }
 0x4f6   : > { %v14926_v29 = vadd.f32 %v5507_v46, %v5383_v25  ;;  %v14995_v46 = vld [vmem:[#allocation5 + $0x44] sm:$0xff]  ;;  %v12887_v25 = vld [vmem:[%s15677_s7 + $0x518] sm:$0xff]  }
 0x4f7   : > { %v5347_v42 = vpop.f32.mrf.mxu1  ;;  %v5515_v43 = vpop.f32.mrf.mxu0  ;;  %12213 = vmatmul.mubr.bf16.vlgmr.msra.gmra.mxu0 %v7033_v52  ;;  %v6872_v40 = vpack.c.bf16 %v14997_v24, %v14995_v46 }
 0x4f8   : > { %v5384_v23 = vadd.f32 %v5347_v42, %v14813_v6  ;;  %12216 = vmatprep.mubr.msk.bf16.mxu0 %vm13010_vm1, %v14674_v26  ;;  %12269 = vmatpush3.bf16.msra.mxu0 %v12881_v45  ;;  %v14941_v6 = vld [vmem:[#allocation5 + $0x3d] sm:$0xff] }
 0x4f9   : > { %v11819_v48 = vpop.f32.mrf.mxu1  ;;  %v11858_v49 = vpop.f32.mrf.mxu0  ;;  %12270 = vmatprep.subr.bf16.mxu0 %v14674_v26  ;;  %v7034_v20 = vpack.c.bf16 %v14941_v6, %v14939_v32 }
 0x4fa   : > { %v14943_v13 = vadd.f32 %v5510_v10, %v5384_v23  ;;  %v15007_v10 = vld [vmem:[#allocation5 + $0x5d] sm:$0xff]  ;;  %v12889_v49 = vld [vmem:[%s15677_s7 + $0x510] sm:$0xff]  }
 0x4fb   : > { %v5352_v50 = vpop.f32.mrf.mxu1  ;;  %v5518_v17 = vpop.f32.mrf.mxu0  ;;  %12177 = vmatmul.mubr.bf16.vlgmr.msra.gmra.mxu1 %v6870_v3  ;;  %v15028_v48 = vld [vmem:[#allocation5 + $0x5c] sm:$0xff] }
 0x4fc   : > { %v5385_v31 = vadd.f32 %v5352_v50, %v14826_v35  ;;  %12233 = vmatpush3.bf16.msra.mxu1 %v12879_v44  ;;  %12180 = vmatprep.mubr.msk.bf16.mxu1 %vm13010_vm1, %v14674_v26  ;;  %v12884_v35 = vld [vmem:[%s15677_s7 + $0x568] sm:$0xff]   ;;  %v15026_v44 = vld [vmem:[#allocation5 + $0x54] sm:$0xff] }
 0x4fd   : > { %v11822_v38 = vpop.f32.mrf.mxu1  ;;  %v11859_v59 = vpop.f32.mrf.mxu0  ;;  %12234 = vmatprep.subr.bf16.mxu1 %v14674_v26  ;;  %12271 = vmatpush3.bf16.msra.mxu0 %v12882_v62 }
 0x4fe   : > { %12272 = vmatprep.subr.bf16.mxu0 %v14674_v26  ;;  %v14960_v53 = vadd.f32 %v5515_v43, %v5385_v31  ;;  %v7036_v43 = vpack.c.bf16 %v15007_v10, %v15005_v33  ;;  %v15045_v59 = vld [vmem:[#allocation5 + $0x65] sm:$0xff] }
 0x4ff   : > { %v5355_v0 = vpop.f32.mrf.mxu1  ;;  %v5523_v5 = vpop.f32.mrf.mxu0  ;;  %12217 = vmatmul.mubr.bf16.gmra.mxu0 %v7034_v20  ;;  %v7032_v20 = vld [vmem:[#allocation5 + $0x6d] sm:$0x1f] }
 0x500   : > { %v5386_v7 = vadd.f32 %v5355_v0, %v14841_v19  ;;  %12235 = vmatpush3.bf16.msra.mxu1 %v12880_v55  ;;  %12220 = vmatprep.mubr.msk.bf16.mxu0 %vm13010_vm1, %v14674_v26  ;;  %v12886_v19 = vld [vmem:[%s15677_s7 + $0x560] sm:$0xff]   ;;  %v6873_v55 = vpack.c.bf16 %v15028_v48, %v15026_v44 }
 0x501   : > { %v11823_v15 = vpop.f32.mrf.mxu1  ;;  %v11862_v54 = vpop.f32.mrf.mxu0  ;;  %12236 = vmatprep.subr.bf16.mxu1 %v14674_v26  ;;  %12273 = vmatpush3.bf16.msra.mxu0 %v12884_v35  ;;  %v12892_v35 = vld [vmem:[%s15677_s7 + $0x508] sm:$0xff]  }
 0x502   : > { %12274 = vmatprep.subr.bf16.mxu0 %v14674_v26  ;;  %v14981_v14 = vadd.f32 %v5518_v17, %v5386_v7  ;;  %v7037_v54 = vpack.c.bf16 %v7032_v20, %v15045_v59 }
 0x503   : > { %v5360_v34 = vpop.f32.mrf.mxu1  ;;  %v5526_v11 = vpop.f32.mrf.mxu0  ;;  %12181 = vmatmul.mubr.bf16.gmra.mxu1 %v6871_v8 }
 0x504   : > { %v5387_v21 = vadd.f32 %v5360_v34, %v14854_v58  ;;  %12237 = vmatpush3.bf16.msra.mxu1 %v12883_v1  ;;  %12184 = vmatprep.mubr.msk.bf16.mxu1 %vm13010_vm1, %v14674_v26  ;;  %v12888_v58 = vld [vmem:[%s15677_s7 + $0x558] sm:$0xff]  }
 0x505   : > { %v11826_v30 = vpop.f32.mrf.mxu1  ;;  %v11863_v57 = vpop.f32.mrf.mxu0  ;;  %12238 = vmatprep.subr.bf16.mxu1 %v14674_v26  ;;  %12275 = vmatpush3.bf16.msra.mxu0 %v12886_v19  ;;  %v15061_v19 = vld [vmem:[#allocation5 + $0x64] sm:$0xff]  ;;  %v6869_v34 = vld [vmem:[#allocation5 + $0x6c] sm:$0x1f] }
 0x506   : > { %12276 = vmatprep.subr.bf16.mxu0 %v14674_v26  ;;  %v15000_v28 = vadd.f32 %v5523_v5, %v5387_v21 }
 0x507   : > { %v5363_v27 = vpop.f32.mrf.mxu1  ;;  %v5531_v47 = vpop.f32.mrf.mxu0  ;;  %12221 = vmatmul.mubr.bf16.gmra.mxu0 %v7035_v12  ;;  %v6874_v12 = vpack.c.bf16 %v6869_v34, %v15061_v19  ;;  %v7361_v34 = vpack.c.bf16 %v15005_v33, %v14978_v56 }
 0x508   : > { %v5388_v60 = vadd.f32 %v5363_v27, %v14869_v63  ;;  %12239 = vmatpush3.bf16.msra.mxu1 %v12885_v9  ;;  %12224 = vmatprep.mubr.msk.bf16.mxu0 %vm13010_vm1, %v14674_v26  ;;  %v12890_v63 = vld [vmem:[%s15677_s7 + $0x550] sm:$0xff]  }
 0x509   : > { %v11827_v45 = vpop.f32.mrf.mxu1  ;;  %v11866_v2 = vpop.f32.mrf.mxu0  ;;  %12240 = vmatprep.subr.bf16.mxu1 %v14674_v26  ;;  %12277 = vmatpush3.bf16.msra.mxu0 %v12888_v58 }
 0x50a   : > { %12278 = vmatprep.subr.bf16.mxu0 %v14674_v26  ;;  %v15019_v52 = vadd.f32 %v5526_v11, %v5388_v60  ;;  %v12894_v11 = vld [vmem:[%s15677_s7 + $0x500] sm:$0xff]  }
 0x50b   : > { %v5368_v18 = vpop.f32.mrf.mxu1  ;;  %v5534_v42 = vpop.f32.mrf.mxu0  ;;  %12185 = vmatmul.mubr.bf16.gmra.mxu1 %v6872_v40 }
 0x50c   : > { %v5389_v23 = vadd.f32 %v5368_v18, %v14882_v36  ;;  %12241 = vmatpush3.bf16.msra.mxu1 %v12887_v25  ;;  %12188 = vmatprep.mubr.msk.bf16.mxu1 %vm13010_vm1, %v14674_v26  ;;  %v12891_v36 = vld [vmem:[%s15677_s7 + $0x548] sm:$0xff]   ;;  %v7359_v18 = vpack.c.bf16 %v14939_v32, %v14913_v4  ;;  %v7196_v4 = vpack.c.bf16 %v14963_v22, %v14924_v51  ;;  %v12898_v32 = vld [vmem:[%s15677_s7 + $0x5f0] sm:$0xff]  }
 0x50d   : > { %v11830_v3 = vpop.f32.mrf.mxu1  ;;  %v11867_v62 = vpop.f32.mrf.mxu0  ;;  %12242 = vmatprep.subr.bf16.mxu1 %v14674_v26  ;;  %12279 = vmatpush3.bf16.msra.mxu0 %v12890_v63 }
 0x50e   : > { %12280 = vmatprep.subr.bf16.mxu0 %v14674_v26  ;;  %v15038_v50 = vadd.f32 %v5531_v47, %v5389_v23 }
 0x50f   : > { %v5371_v17 = vpop.f32.mrf.mxu1  ;;  %v5539_v31 = vpop.f32.mrf.mxu0  ;;  %12225 = vmatmul.mubr.bf16.gmra.mxu0 %v7036_v43 }
 0x510   : > { %v5390_v38 = vadd.f32 %v5371_v17, %v14897_v41  ;;  %12243 = vmatpush3.bf16.msra.mxu1 %v12889_v49  ;;  %12228 = vmatprep.mubr.msk.bf16.mxu0 %vm13010_vm1, %v14674_v26  ;;  %v12893_v41 = vld [vmem:[%s15677_s7 + $0x540] sm:$0xff]  }
 0x511   : > { %v11831_v0 = vpop.f32.mrf.mxu1  ;;  %v11870_v5 = vpop.f32.mrf.mxu0  ;;  %12244 = vmatprep.subr.bf16.mxu1 %v14674_v26  ;;  %12281 = vmatpush3.bf16.msra.mxu0 %v12891_v36 }
 0x512   : > { %12282 = vmatprep.subr.bf16.mxu0 %v14674_v26  ;;  %v15055_v7 = vadd.f32 %v5534_v42, %v5390_v38  ;;  %v7360_v38 = vpack.c.bf16 %v14976_v37, %v14941_v6  ;;  %v12899_v6 = vld [vmem:[%s15677_s7 + $0x5a8] sm:$0xff]  }
 0x513   : > { %v5376_v1 = vpop.f32.mrf.mxu1  ;;  %v5542_v15 = vpop.f32.mrf.mxu0  ;;  %12189 = vmatmul.mubr.bf16.gmra.mxu1 %v6873_v55  ;;  %v12896_v55 = vld [vmem:[%s15677_s7 + $0x5b0] sm:$0xff]  }
 0x514   : > { %v5391_v8 = vadd.f32 %v5376_v1, %v14907_v16  ;;  %12245 = vmatpush3.bf16.msra.mxu1 %v12892_v35  ;;  %12192 = vmatprep.mubr.msk.bf16.mxu1 %vm13010_vm1, %v14674_v26  ;;  %v7197_v1 = vpack.c.bf16 %v14995_v46, %v14957_v61  ;;  %v12901_v61 = vld [vmem:[%s15677_s7 + $0x5a0] sm:$0xff]  }
 0x515   : > { %v11834_v21 = vpop.f32.mrf.mxu1  ;;  %v11871_v9 = vpop.f32.mrf.mxu0  ;;  %12283 = vmatpush3.bf16.msra.mxu0 %v12893_v41  ;;  %12246 = vmatprep.subr.bf16.mxu1 %v14674_v26 }
 0x516   : > { %12340 = vmatprep.subr.bf16.mxu0 %v14674_v26  ;;  %v15068_v30 = vadd.f32 %v5539_v31, %v5391_v8  ;;  %v12904_v9 = vld [vmem:[%s15677_s7 + $0x5d8] sm:$0xff]  }
 0x517   : > { %v5379_v16 = vpop.f32.mrf.mxu1  ;;  %v5833_v57 = vpop.f32.mrf.mxu0  ;;  %12229 = vmatmul.mubr.bf16.gmra.mxu0 %v7037_v54 }
 0x518   : > { %v5392_v58 = vadd.f32 %v5379_v16, %v14915_v39  ;;  %12247 = vmatpush3.bf16.msra.mxu1 %v12894_v11  ;;  %12284 = vmatprep.mubr.msk.bf16.mxu0 %vm13010_vm1, %v14674_v26  ;;  %v12897_v39 = vld [vmem:[%s15677_s7 + $0x5f8] sm:$0xff]   ;;  %v7198_v16 = vpack.c.bf16 %v15026_v44, %v14997_v24 }
 0x519   : > { %v11835_v27 = vpop.f32.mrf.mxu1  ;;  %v11926_v47 = vpop.f32.mrf.mxu0  ;;  %12304 = vmatprep.subr.bf16.mxu1 %v14674_v26 }
 0x51a   : > { %v15075_v60 = vadd.f32 %v5542_v15, %v5392_v58  ;;  %v12906_v47 = vld [vmem:[%s15677_s7 + $0x5d0] sm:$0xff]  }
 0x51b   : > { %v5670_v25 = vpop.f32.mrf.mxu1  ;;  %v5836_v45 = vpop.f32.mrf.mxu0  ;;  %12193 = vmatmul.mubr.bf16.gmra.mxu1 %v6874_v12  ;;  %v12903_v12 = vld [vmem:[%s15677_s7 + $0x598] sm:$0xff]  }
 0x51c   : > { %v5709_v2 = vadd.f32 %v5670_v25, %v14926_v29  ;;  %12248 = vmatprep.mubr.msk.bf16.mxu1 %vm13010_vm1, %v14674_v26  ;;  %v12895_v29 = vld [vmem:[%s15677_s7 + $0x5b8] sm:$0xff]   ;;  %v7362_v25 = vpack.c.bf16 %v15045_v59, %v15007_v10  ;;  %v12907_v10 = vld [vmem:[%s15677_s7 + $0x5c8] sm:$0xff]  }
 0x51d   : > { %v11890_v40 = vpop.f32.mrf.mxu1  ;;  %v11927_v63 = vpop.f32.mrf.mxu0 }
 0x51e   : > { %v15085_v42 = vadd.f32 %v5833_v57, %v5709_v2  ;;  %v15164_v2 = vld [vmem:[#allocation3] sm:$0xff] }
 0x51f   : > { %v5673_v43 = vpop.f32.mrf.mxu1  ;;  %v5841_v23 = vpop.f32.mrf.mxu0  ;;  %12285 = vmatmul.mubr.bf16.vlgmr.msra.gmra.mxu0 %v7359_v18  ;;  %v7199_v18 = vpack.c.bf16 %v15061_v19, %v15028_v48  ;;  %v12909_v48 = vld [vmem:[%s15677_s7 + $0x5c0] sm:$0xff]  }
 0x520   : > { %v5710_v49 = vadd.f32 %v5673_v43, %v14943_v13  ;;  %12288 = vmatprep.mubr.msk.bf16.mxu0 %vm13010_vm1, %v14674_v26  ;;  %12341 = vmatpush3.bf16.msra.mxu0 %v12897_v39 }
 0x521   : > { %v11891_v3 = vpop.f32.mrf.mxu1  ;;  %v11930_v62 = vpop.f32.mrf.mxu0  ;;  %12342 = vmatprep.subr.bf16.mxu0 %v14674_v26 }
 0x522   : > { %v15099_v13 = vadd.f32 %v5836_v45, %v5710_v49  ;;  %v7358_v49 = vld [vmem:[#allocation5 + $0x75] sm:$0x1f] }
 0x523   : > { %v5678_v36 = vpop.f32.mrf.mxu1  ;;  %v5844_v17 = vpop.f32.mrf.mxu0  ;;  %12249 = vmatmul.mubr.bf16.vlgmr.msra.gmra.mxu1 %v7196_v4 }
 0x524   : > { %v5711_v31 = vadd.f32 %v5678_v36, %v14960_v53  ;;  %12305 = vmatpush3.bf16.msra.mxu1 %v12895_v29  ;;  %12252 = vmatprep.mubr.msk.bf16.mxu1 %vm13010_vm1, %v14674_v26  ;;  %v12900_v53 = vld [vmem:[%s15677_s7 + $0x5e8] sm:$0xff]  }
 0x525   : > { %v11894_v51 = vpop.f32.mrf.mxu1  ;;  %v11931_v22 = vpop.f32.mrf.mxu0  ;;  %12306 = vmatprep.subr.bf16.mxu1 %v14674_v26  ;;  %12343 = vmatpush3.bf16.msra.mxu0 %v12898_v32  ;;  %v12908_v29 = vld [vmem:[%s15677_s7 + $0x588] sm:$0xff]  }
 0x526   : > { %12344 = vmatprep.subr.bf16.mxu0 %v14674_v26  ;;  %v15114_v20 = vadd.f32 %v5841_v23, %v5711_v31  ;;  %v7357_v23 = vld [vmem:[#allocation5 + $0x6d] sm:$0xff] }
 0x527   : > { %v5681_v35 = vpop.f32.mrf.mxu1  ;;  %v5849_v0 = vpop.f32.mrf.mxu0  ;;  %12289 = vmatmul.mubr.bf16.gmra.mxu0 %v7360_v38  ;;  %v7363_v32 = vpack.c.bf16 %v7358_v49, %v7357_v23  ;;  %v7195_v31 = vld [vmem:[#allocation5 + $0x74] sm:$0x1f] }
 0x528   : > { %v5712_v5 = vadd.f32 %v5681_v35, %v14981_v14  ;;  %12307 = vmatpush3.bf16.msra.mxu1 %v12896_v55  ;;  %12292 = vmatprep.mubr.msk.bf16.mxu0 %vm13010_vm1, %v14674_v26  ;;  %v12902_v14 = vld [vmem:[%s15677_s7 + $0x5e0] sm:$0xff]   ;;  %v7679_v23 = vld [vmem:[#allocation5 + $0x4f] sm:$0xff] }
 0x529   : > { %v11895_v37 = vpop.f32.mrf.mxu1  ;;  %v11934_v41 = vpop.f32.mrf.mxu0  ;;  %12308 = vmatprep.subr.bf16.mxu1 %v14674_v26  ;;  %12345 = vmatpush3.bf16.msra.mxu0 %v12900_v53  ;;  %v12910_v55 = vld [vmem:[%s15677_s7 + $0x580] sm:$0xff]  }
 0x52a   : > { %12346 = vmatprep.subr.bf16.mxu0 %v14674_v26  ;;  %v15129_v15 = vadd.f32 %v5844_v17, %v5712_v5  ;;  %v7194_v17 = vld [vmem:[#allocation5 + $0x6c] sm:$0xff]  ;;  %v7676_v37 = vld [vmem:[#allocation5 + $0x37] sm:$0xff] }
 0x52b   : > { %v5686_v54 = vpop.f32.mrf.mxu1  ;;  %v5852_v8 = vpop.f32.mrf.mxu0  ;;  %12253 = vmatmul.mubr.bf16.gmra.mxu1 %v7197_v1  ;;  %v7680_v49 = vld [vmem:[#allocation5 + $0x57] sm:$0xff] }
 0x52c   : > { %v5713_v11 = vadd.f32 %v5686_v54, %v15000_v28  ;;  %12309 = vmatpush3.bf16.msra.mxu1 %v12899_v6  ;;  %12256 = vmatprep.mubr.msk.bf16.mxu1 %vm13010_vm1, %v14674_v26 }
 0x52d   : > { %v11898_v46 = vpop.f32.mrf.mxu1  ;;  %v11935_v21 = vpop.f32.mrf.mxu0  ;;  %12310 = vmatprep.subr.bf16.mxu1 %v14674_v26  ;;  %12347 = vmatpush3.bf16.msra.mxu0 %v12902_v14 }
 0x52e   : > { %12348 = vmatprep.subr.bf16.mxu0 %v14674_v26  ;;  %v15144_v56 = vadd.f32 %v5849_v0, %v5713_v11 }
 0x52f   : > { %v5689_v28 = vpop.f32.mrf.mxu1  ;;  %v5857_v33 = vpop.f32.mrf.mxu0  ;;  %12293 = vmatmul.mubr.bf16.gmra.mxu0 %v7361_v34 }
 0x530   : > { %v5714_v57 = vadd.f32 %v5689_v28, %v15019_v52  ;;  %12311 = vmatpush3.bf16.msra.mxu1 %v12901_v61  ;;  %12296 = vmatprep.mubr.msk.bf16.mxu0 %vm13010_vm1, %v14674_v26  ;;  %v7513_v61 = vld [vmem:[#allocation5 + $0x36] sm:$0xff] }
 0x531   : > { %v11899_v58 = vpop.f32.mrf.mxu1  ;;  %v11938_v27 = vpop.f32.mrf.mxu0  ;;  %12312 = vmatprep.subr.bf16.mxu1 %v14674_v26  ;;  %12349 = vmatpush3.bf16.msra.mxu0 %v12904_v9 }
 0x532   : > { %12350 = vmatprep.subr.bf16.mxu0 %v14674_v26  ;;  %v15159_v24 = vadd.f32 %v5852_v8, %v5714_v57  ;;  %v12905_v26 = vld [vmem:[%s15677_s7 + $0x590] sm:$0xff]   ;;  %v7677_v58 = vld [vmem:[#allocation5 + $0x3f] sm:$0xff] }
 0x533   : > { %v5694_v52 = vpop.f32.mrf.mxu1  ;;  %v5860_v44 = vpop.f32.mrf.mxu0  ;;  %12257 = vmatmul.mubr.bf16.gmra.mxu1 %v7198_v16  ;;  %v7675_v8 = vld [vmem:[#allocation5 + $0x2f] sm:$0xff]  ;;  %v7678_v27 = vld [vmem:[#allocation5 + $0x47] sm:$0xff] }
 0x534   : > { %v5715_v45 = vadd.f32 %v5694_v52, %v15038_v50  ;;  %12313 = vmatpush3.bf16.msra.mxu1 %v12903_v12  ;;  %12260 = vmatprep.mubr.msk.bf16.mxu1 %vm13010_vm1, %v15164_v2  ;;  %v7685_v11 = vpack.c.bf16 %v7676_v37, %v7675_v8 }
 0x535   : > { %v11902_v39 = vpop.f32.mrf.mxu1  ;;  %v11939_v40 = vpop.f32.mrf.mxu0  ;;  %12314 = vmatprep.subr.bf16.mxu1 %v15164_v2  ;;  %12351 = vmatpush3.bf16.msra.mxu0 %v12906_v47 }
 0x536   : > { %12352 = vmatprep.subr.bf16.mxu0 %v15164_v2  ;;  %v15176_v50 = vadd.f32 %v5857_v33, %v5715_v45  ;;  %v7512_v33 = vld [vmem:[#allocation5 + $0x2e] sm:$0xff]  ;;  %v7686_v39 = vpack.c.bf16 %v7678_v27, %v7677_v58  ;;  %v7514_v40 = vld [vmem:[#allocation5 + $0x3e] sm:$0xff]  ;;  %v7684_v58 = vld [vmem:[#allocation5 + $0x77] sm:$0x1f] }
 0x537   : > { %v5697_v59 = vpop.f32.mrf.mxu1  ;;  %v5865_v63 = vpop.f32.mrf.mxu0  ;;  %12297 = vmatmul.mubr.bf16.gmra.mxu0 %v7362_v25  ;;  %v7522_v12 = vpack.c.bf16 %v7513_v61, %v7512_v33  ;;  %v12912_v25 = vld [vmem:[%s15677_s7 + $0x630] sm:$0xff]  }
 0x538   : > { %v5716_v43 = vadd.f32 %v5697_v59, %v15055_v7  ;;  %12315 = vmatpush3.bf16.msra.mxu1 %v12905_v26  ;;  %12300 = vmatprep.mubr.msk.bf16.mxu0 %vm13010_vm1, %v15164_v2  ;;  %v12916_v61 = vld [vmem:[%s15677_s7 + $0x610] sm:$0xff]  }
 0x539   : > { %v11903_v3 = vpop.f32.mrf.mxu1  ;;  %v11942_v62 = vpop.f32.mrf.mxu0  ;;  %12316 = vmatprep.subr.bf16.mxu1 %v15164_v2  ;;  %12353 = vmatpush3.bf16.msra.mxu0 %v12907_v10  ;;  %v7515_v10 = vld [vmem:[#allocation5 + $0x46] sm:$0xff] }
 0x53a   : > { %12354 = vmatprep.subr.bf16.mxu0 %v15164_v2  ;;  %v15191_v7 = vadd.f32 %v5860_v44, %v5716_v43  ;;  %v12913_v43 = vld [vmem:[%s15677_s7 + $0x628] sm:$0xff]   ;;  %v7523_v62 = vpack.c.bf16 %v7515_v10, %v7514_v40  ;;  %v12918_v40 = vld [vmem:[%s15677_s7 + $0x600] sm:$0xff]  }
 0x53b   : > { %v5702_v19 = vpop.f32.mrf.mxu1  ;;  %v5868_v4 = vpop.f32.mrf.mxu0  ;;  %12261 = vmatmul.mubr.bf16.gmra.mxu1 %v7199_v18 }
 0x53c   : > { %v5717_v36 = vadd.f32 %v5702_v19, %v15068_v30  ;;  %12317 = vmatpush3.bf16.msra.mxu1 %v12908_v29  ;;  %12264 = vmatprep.mubr.msk.bf16.mxu1 %vm13010_vm1, %v15164_v2  ;;  %v7200_v30 = vpack.c.bf16 %v7195_v31, %v7194_v17  ;;  %v7516_v17 = vld [vmem:[#allocation5 + $0x4e] sm:$0xff]  ;;  %v7517_v31 = vld [vmem:[#allocation5 + $0x56] sm:$0xff] }
 0x53d   : > { %v11906_v51 = vpop.f32.mrf.mxu1  ;;  %v11943_v22 = vpop.f32.mrf.mxu0  ;;  %12355 = vmatpush3.bf16.msra.mxu0 %v12909_v48  ;;  %12318 = vmatprep.subr.bf16.mxu1 %v15164_v2 }
 0x53e   : > { %v15200_v38 = vadd.f32 %v5865_v63, %v5717_v36  ;;  %v12914_v36 = vld [vmem:[%s15677_s7 + $0x620] sm:$0xff]  }
 0x53f   : > { %v5705_v53 = vpop.f32.mrf.mxu1  ;;  %v6159_v35 = vpop.f32.mrf.mxu0  ;;  %12301 = vmatmul.mubr.bf16.gmra.mxu0 %v7363_v32 }
 0x540   : > { %v5718_v0 = vadd.f32 %v5705_v53, %v15075_v60  ;;  %12319 = vmatpush3.bf16.msra.mxu1 %v12910_v55  ;;  %12356 = vmatprep.mubr.msk.bf16.mxu0 %vm13010_vm1, %v15164_v2 }
 0x541   : > { %v11907_v5 = vpop.f32.mrf.mxu1  ;;  %v11998_v6 = vpop.f32.mrf.mxu0  ;;  %12376 = vmatprep.subr.bf16.mxu1 %v15164_v2 }
 0x542   : > { %v15206_v41 = vadd.f32 %v5868_v4, %v5718_v0  ;;  %v12915_v0 = vld [vmem:[%s15677_s7 + $0x618] sm:$0xff]   ;;  %v7681_v5 = vld [vmem:[#allocation5 + $0x5f] sm:$0xff]  ;;  %v7682_v6 = vld [vmem:[#allocation5 + $0x67] sm:$0xff] }
 0x543   : > { %v5996_v1 = vpop.f32.mrf.mxu1  ;;  %v6162_v14 = vpop.f32.mrf.mxu0  ;;  %12265 = vmatmul.mubr.bf16.gmra.mxu1 %v7200_v30  ;;  %v7524_v30 = vpack.c.bf16 %v7517_v31, %v7516_v17 }
 0x544   : > { %v6035_v54 = vadd.f32 %v5996_v1, %v15085_v42  ;;  %12320 = vmatprep.mubr.msk.bf16.mxu1 %vm13010_vm1, %v15164_v2  ;;  %v12911_v42 = vld [vmem:[%s15677_s7 + $0x638] sm:$0xff]  }
 0x545   : > { %v11962_v60 = vpop.f32.mrf.mxu1  ;;  %v11999_v34 = vpop.f32.mrf.mxu0 }
 0x546   : > { %v15211_v46 = vadd.f32 %v6159_v35, %v6035_v54  ;;  %v7518_v34 = vld [vmem:[#allocation5 + $0x5e] sm:$0xff] }
 0x547   : > { %v5999_v21 = vpop.f32.mrf.mxu1  ;;  %v6167_v9 = vpop.f32.mrf.mxu0  ;;  %12357 = vmatmul.mubr.bf16.vlgmr.msra.gmra.mxu0 %v7685_v11  ;;  %v7519_v11 = vld [vmem:[#allocation5 + $0x66] sm:$0xff] }
 0x548   : > { %v6036_v28 = vadd.f32 %v5999_v21, %v15099_v13  ;;  %12360 = vmatprep.mubr.msk.bf16.mxu0 %vm13010_vm1, %v15164_v2 }
 0x549   : > { %v11963_v16 = vpop.f32.mrf.mxu1  ;;  %v12002_v57 = vpop.f32.mrf.mxu0 }
 0x54a   : > { %v15219_v47 = vadd.f32 %v6162_v14, %v6036_v28  ;;  %v7525_v16 = vpack.c.bf16 %v7519_v11, %v7518_v34  ;;  %v12917_v57 = vld [vmem:[%s15677_s7 + $0x608] sm:$0xff]  }
 0x54b   : > { %v6004_v52 = vpop.f32.mrf.mxu1  ;;  %v6170_v44 = vpop.f32.mrf.mxu0  ;;  %12321 = vmatmul.mubr.bf16.vlgmr.msra.gmra.mxu1 %v7522_v12  ;;  %v7683_v12 = vld [vmem:[#allocation5 + $0x6f] sm:$0xff] }
 0x54c   : > { %v6037_v13 = vadd.f32 %v6004_v52, %v15114_v20  ;;  %12377 = vmatpush3.bf16.msra.mxu1 %v12911_v42  ;;  %12324 = vmatprep.mubr.msk.bf16.mxu1 %vm13010_vm1, %v15164_v2 }
 0x54d   : > { %v11966_v45 = vpop.f32.mrf.mxu1  ;;  %v12003_v26 = vpop.f32.mrf.mxu0  ;;  %12378 = vmatprep.subr.bf16.mxu1 %v15164_v2 }
 0x54e   : > { %v15228_v59 = vadd.f32 %v6167_v9, %v6037_v13  ;;  %v7520_v26 = vld [vmem:[#allocation5 + $0x6e] sm:$0xff] }
 0x54f   : > { %v6007_v63 = vpop.f32.mrf.mxu1  ;;  %v6175_v18 = vpop.f32.mrf.mxu0  ;;  %12361 = vmatmul.mubr.bf16.gmra.mxu0 %v7686_v39  ;;  %v7521_v39 = vld [vmem:[#allocation5 + $0x76] sm:$0x1f] }
 0x550   : > { %v6038_v20 = vadd.f32 %v6007_v63, %v15129_v15  ;;  %12379 = vmatpush3.bf16.msra.mxu1 %v12912_v25  ;;  %12364 = vmatprep.mubr.msk.bf16.mxu0 %vm13010_vm1, %v15164_v2  ;;  %v7687_v15 = vpack.c.bf16 %v7680_v49, %v7679_v23  ;;  %v7526_v23 = vpack.c.bf16 %v7521_v39, %v7520_v26 }
 0x551   : > { %v11967_v29 = vpop.f32.mrf.mxu1  ;;  %v12006_v3 = vpop.f32.mrf.mxu0  ;;  %12380 = vmatprep.subr.bf16.mxu1 %v15164_v2 }
 0x552   : > { %v15237_v48 = vadd.f32 %v6170_v44, %v6038_v20 }
 0x553   : > { %v6012_v19 = vpop.f32.mrf.mxu1  ;;  %v6178_v4 = vpop.f32.mrf.mxu0  ;;  %12325 = vmatmul.mubr.bf16.gmra.mxu1 %v7523_v62 }
 0x554   : > { %v6039_v32 = vadd.f32 %v6012_v19, %v15144_v56  ;;  %12381 = vmatpush3.bf16.msra.mxu1 %v12913_v43  ;;  %12328 = vmatprep.mubr.msk.bf16.mxu1 %vm13010_vm1, %v15164_v2 }
 0x555   : > { %v11970_v55 = vpop.f32.mrf.mxu1  ;;  %v12007_v51 = vpop.f32.mrf.mxu0  ;;  %12382 = vmatprep.subr.bf16.mxu1 %v15164_v2 }
 0x556   : > { %v15246_v22 = vadd.f32 %v6175_v18, %v6039_v32  ;;  %v7838_v51 = vld [vmem:[#allocation5 + $0x30] sm:$0xff] }
 0x557   : > { %v6015_v53 = vpop.f32.mrf.mxu1  ;;  %v6183_v35 = vpop.f32.mrf.mxu0  ;;  %12365 = vmatmul.mubr.bf16.gmra.mxu0 %v7687_v15 }
 0x558   : > { %v6040_v56 = vadd.f32 %v6015_v53, %v15159_v24  ;;  %12383 = vmatpush3.bf16.msra.mxu1 %v12914_v36  ;;  %12368 = vmatprep.mubr.msk.bf16.mxu0 %vm13010_vm1, %v15164_v2  ;;  %v7688_v24 = vpack.c.bf16 %v7682_v6, %v7681_v5  ;;  %v7839_v36 = vld [vmem:[#allocation5 + $0x38] sm:$0xff] }
 0x559   : > { %v11971_v37 = vpop.f32.mrf.mxu1  ;;  %v12010_v1 = vpop.f32.mrf.mxu0  ;;  %12384 = vmatprep.subr.bf16.mxu1 %v15164_v2 }
 0x55a   : > { %v15255_v14 = vadd.f32 %v6178_v4, %v6040_v56  ;;  %v7840_v1 = vld [vmem:[#allocation5 + $0x40] sm:$0xff] }
 0x55b   : > { %v6020_v54 = vpop.f32.mrf.mxu1  ;;  %v6186_v8 = vpop.f32.mrf.mxu0  ;;  %12329 = vmatmul.mubr.bf16.gmra.mxu1 %v7524_v30  ;;  %v7848_v30 = vpack.c.bf16 %v7839_v36, %v7838_v51 }
 0x55c   : > { %v6041_v60 = vadd.f32 %v6020_v54, %v15176_v50  ;;  %12385 = vmatpush3.bf16.msra.mxu1 %v12915_v0  ;;  %12332 = vmatprep.mubr.msk.bf16.mxu1 %vm13010_vm1, %v15164_v2 }
 0x55d   : > { %v11974_v21 = vpop.f32.mrf.mxu1  ;;  %v12011_v9 = vpop.f32.mrf.mxu0  ;;  %12386 = vmatprep.subr.bf16.mxu1 %v15164_v2 }
 0x55e   : > { %v15264_v28 = vadd.f32 %v6183_v35, %v6041_v60  ;;  %v7841_v60 = vld [vmem:[#allocation5 + $0x48] sm:$0xff] }
 0x55f   : > { %v6023_v33 = vpop.f32.mrf.mxu1  ;;  %v6191_v42 = vpop.f32.mrf.mxu0  ;;  %12369 = vmatmul.mubr.bf16.gmra.mxu0 %v7688_v24 }
 0x560   : > { %v6042_v50 = vadd.f32 %v6023_v33, %v15191_v7  ;;  %12387 = vmatpush3.bf16.msra.mxu1 %v12916_v61  ;;  %12372 = vmatprep.mubr.msk.bf16.mxu0 %vm13010_vm1, %v15164_v2  ;;  %v7689_v7 = vpack.c.bf16 %v7684_v58, %v7683_v12  ;;  %v7849_v61 = vpack.c.bf16 %v7841_v60, %v7840_v1 }
 0x561   : > { %v11975_v27 = vpop.f32.mrf.mxu1  ;;  %v12014_v52 = vpop.f32.mrf.mxu0  ;;  %12388 = vmatprep.subr.bf16.mxu1 %v15164_v2  ;;  %v7850_v12 = vpack.c.bf16 %v15164_v2, %v15164_v2 }
 0x562   : > { %v15273_v44 = vadd.f32 %v6186_v8, %v6042_v50 }
 0x563   : > { %v6028_v13 = vpop.f32.mrf.mxu1  ;;  %v6194_v25 = vpop.f32.mrf.mxu0  ;;  %12333 = vmatmul.mubr.bf16.gmra.mxu1 %v7525_v16 }
 0x564   : > { %v6043_v45 = vadd.f32 %v6028_v13, %v15200_v38  ;;  %12389 = vmatpush3.bf16.msra.mxu1 %v12917_v57  ;;  %12336 = vmatprep.mubr.msk.bf16.mxu1 %vm13010_vm1, %v15164_v2 }
 0x565   : > { %v11978_v10 = vpop.f32.mrf.mxu1  ;;  %v12015_v63 = vpop.f32.mrf.mxu0  ;;  %12390 = vmatprep.subr.bf16.mxu1 %v15164_v2 }
 0x566   : > { %v15282_v18 = vadd.f32 %v6191_v42, %v6043_v45 }
 0x567   : > { %v6031_v20 = vpop.f32.mrf.mxu1  ;;  %v6485_v43 = vpop.f32.mrf.mxu0  ;;  %12373 = vmatmul.mubr.bf16.gmra.mxu0 %v7689_v7 }
 0x568   : > { %v6044_v38 = vadd.f32 %v6031_v20, %v15206_v41  ;;  %12391 = vmatpush3.bf16.msra.mxu1 %v12918_v40 }
 0x569   : > { %v11979_v49 = vpop.f32.mrf.mxu1  ;;  %v12070_v29 = vpop.f32.mrf.mxu0 }
 0x56a   : > { %v15285_v3 = vadd.f32 %v6194_v25, %v6044_v38 }
 0x56b   : > { %v6322_v62 = vpop.f32.mrf.mxu1  ;;  %v6488_v19 = vpop.f32.mrf.mxu0  ;;  %12337 = vmatmul.mubr.bf16.gmra.mxu1 %v7526_v23 }
 0x56c   : > { %v6361_v4 = vadd.f32 %v6322_v62, %v15211_v46  ;;  %12392 = vmatprep.mubr.msk.bf16.mxu1 %vm13010_vm1, %v15164_v2 }
 0x56d   : > { %v12034_v15 = vpop.f32.mrf.mxu1  ;;  %v12071_v32 = vpop.f32.mrf.mxu0 }
 0x56e   : > { %v15290_v17 = vadd.f32 %v6485_v43, %v6361_v4 }
 0x56f   : > { %v6325_v31 = vpop.f32.mrf.mxu1  ;;  %v6493_v41 = vpop.f32.mrf.mxu0 }
 0x570   : > { %v6362_v55 = vadd.f32 %v6325_v31, %v15219_v47 }
 0x571   : > { %v12035_v53 = vpop.f32.mrf.mxu1  ;;  %v12074_v35 = vpop.f32.mrf.mxu0 }
 0x572   : > { %v15293_v56 = vadd.f32 %v6488_v19, %v6362_v55 }
 0x573   : > { %v6330_v0 = vpop.f32.mrf.mxu1  ;;  %v6496_v46 = vpop.f32.mrf.mxu0  ;;  %12393 = vmatmul.mubr.bf16.vlgmr.msra.gmra.mxu1 %v7848_v30 }
 0x574   : > { %v6363_v5 = vadd.f32 %v6330_v0, %v15228_v59  ;;  %12396 = vmatprep.mubr.msk.bf16.mxu1 %vm13010_vm1, %v15164_v2 }
 0x575   : > { %v12038_v6 = vpop.f32.mrf.mxu1  ;;  %v12075_v37 = vpop.f32.mrf.mxu0 }
 0x576   : > { %v15298_v54 = vadd.f32 %v6493_v41, %v6363_v5 }
 0x577   : > { %v6333_v47 = vpop.f32.mrf.mxu1  ;;  %v6501_v8 = vpop.f32.mrf.mxu0 }
 0x578   : > { %v6364_v24 = vadd.f32 %v6333_v47, %v15237_v48 }
 0x579   : > { %v12039_v34 = vpop.f32.mrf.mxu1  ;;  %v12078_v11 = vpop.f32.mrf.mxu0 }
 0x57a   : > { %v15301_v21 = vadd.f32 %v6496_v46, %v6364_v24 }
 0x57b   : > { %v6338_v9 = vpop.f32.mrf.mxu1  ;;  %v6504_v59 = vpop.f32.mrf.mxu0  ;;  %12397 = vmatmul.mubr.bf16.gmra.mxu1 %v7849_v61 }
 0x57c   : > { %v6365_v33 = vadd.f32 %v6338_v9, %v15246_v22  ;;  %12400 = vmatprep.mubr.msk.bf16.mxu1 %vm13010_vm1, %v15164_v2 }
 0x57d   : > { %v12042_v42 = vpop.f32.mrf.mxu1  ;;  %v12079_v16 = vpop.f32.mrf.mxu0 }
 0x57e   : > { %v15306_v50 = vadd.f32 %v6501_v8, %v6365_v33 }
 0x57f   : > { %v6341_v57 = vpop.f32.mrf.mxu1  ;;  %v6509_v48 = vpop.f32.mrf.mxu0 }
 0x580   : > { %v6366_v58 = vadd.f32 %v6341_v57, %v15255_v14 }
 0x581   : > { %v12043_v27 = vpop.f32.mrf.mxu1  ;;  %v12082_v52 = vpop.f32.mrf.mxu0 }
 0x582   : > { %v15311_v13 = vadd.f32 %v6504_v59, %v6366_v58 }
 0x583   : > { %v6346_v25 = vpop.f32.mrf.mxu1  ;;  %v6512_v22 = vpop.f32.mrf.mxu0  ;;  %12401 = vmatmul.mubr.bf16.gmra.mxu1 %v7850_v12 }
 0x584   : > { %v6367_v7 = vadd.f32 %v6346_v25, %v15264_v28  ;;  %12404 = vmatprep.mubr.msk.bf16.mxu1 %vm13010_vm1, %v15164_v2  ;;  %v7847_v28 = vld [vmem:[#allocation5 + $0x78] sm:$0x1f] }
 0x585   : > { %v12046_v45 = vpop.f32.mrf.mxu1  ;;  %v12083_v26 = vpop.f32.mrf.mxu0  ;;  %v7852_v32 = vpack.c.bf16 %v7847_v28, %v15164_v2 }
 0x586   : > { %v6530_v39 = vadd.f32 %v6509_v48, %v6367_v7 }
 0x587   : > { %v6349_v40 = vpop.f32.mrf.mxu1  ;;  %v6517_v10 = vpop.f32.mrf.mxu0 }
 0x588   : > { %v6368_v63 = vadd.f32 %v6349_v40, %v15273_v44 }
 0x589   : > { %v12047_v14 = vpop.f32.mrf.mxu1  ;;  %v12086_v20 = vpop.f32.mrf.mxu0 }
 0x58a   : > { %v6531_v43 = vadd.f32 %v6512_v22, %v6368_v63 }
 0x58b   : > { %v6354_v23 = vpop.f32.mrf.mxu1  ;;  %v6520_v38 = vpop.f32.mrf.mxu0  ;;  %12405 = vmatmul.mubr.bf16.gmra.mxu1 %v7850_v12 }
 0x58c   : > { %v6369_v49 = vadd.f32 %v6354_v23, %v15282_v18  ;;  %12408 = vmatprep.mubr.msk.bf16.mxu1 %vm13010_vm1, %v15164_v2 }
 0x58d   : > { %v12050_v29 = vpop.f32.mrf.mxu1  ;;  %v12087_v62 = vpop.f32.mrf.mxu0 }
 0x58e   : > { %v6532_v19 = vadd.f32 %v6517_v10, %v6369_v49 }
 0x58f   : > { %v6357_v4 = vpop.f32.mrf.mxu1  ;;  %v6811_v15 = vpop.f32.mrf.mxu0 }
 0x590   : > { %v6370_v44 = vadd.f32 %v6357_v4, %v15285_v3 }
 0x591   : > { %v12051_v36 = vpop.f32.mrf.mxu1  ;;  %v12142_v31 = vpop.f32.mrf.mxu0 }
 0x592   : > { %v6533_v41 = vadd.f32 %v6520_v38, %v6370_v44 }
 0x593   : > { %v6648_v55 = vpop.f32.mrf.mxu1  ;;  %v6814_v51 = vpop.f32.mrf.mxu0  ;;  %12409 = vmatmul.mubr.bf16.gmra.mxu1 %v7852_v32 }
 0x594   : > { %v6687_v18 = vadd.f32 %v6648_v55, %v15290_v17 }
 0x595   : > { %v12106_v53 = vpop.f32.mrf.mxu1  ;;  %v12143_v35 = vpop.f32.mrf.mxu0 }
 0x596   : > { %v6850_v30 = vadd.f32 %v6811_v15, %v6687_v18 }
 0x597   : > { %v6651_v0 = vpop.f32.mrf.mxu1  ;;  %v6819_v46 = vpop.f32.mrf.mxu0 }
 0x598   : > { %v6688_v5 = vadd.f32 %v6651_v0, %v15293_v56 }
 0x599   : > { %v12107_v6 = vpop.f32.mrf.mxu1  ;;  %v12146_v37 = vpop.f32.mrf.mxu0 }
 0x59a   : > { %v6851_v2 = vadd.f32 %v6814_v51, %v6688_v5 }
 0x59b   : > { %v6656_v1 = vpop.f32.mrf.mxu1  ;;  %v6822_v3 = vpop.f32.mrf.mxu0 }
 0x59c   : > { %v6689_v47 = vadd.f32 %v6656_v1, %v15298_v54 }
 0x59d   : > { %v12110_v8 = vpop.f32.mrf.mxu1  ;;  %v12147_v24 = vpop.f32.mrf.mxu0 }
 0x59e   : > { %v6852_v60 = vadd.f32 %v6819_v46, %v6689_v47  ;;  %v12920_v24 = vld [vmem:[%s15679_s9 + $0x30] sm:$0xff]  }
 0x59f   : > { %v6659_v34 = vpop.f32.mrf.mxu1  ;;  %v6827_v11 = vpop.f32.mrf.mxu0 }
 0x5a0   : > { %v6690_v17 = vadd.f32 %v6659_v34, %v15301_v21 }
 0x5a1   : > { %v12111_v61 = vpop.f32.mrf.mxu1  ;;  %v12150_v9 = vpop.f32.mrf.mxu0 }
 0x5a2   : > { %v6853_v59 = vadd.f32 %v6822_v3, %v6690_v17 }
 0x5a3   : > { %v6664_v33 = vpop.f32.mrf.mxu1  ;;  %v6830_v42 = vpop.f32.mrf.mxu0 }
 0x5a4   : > { %v6691_v56 = vadd.f32 %v6664_v33, %v15306_v50 }
 0x5a5   : > { %v12114_v16 = vpop.f32.mrf.mxu1  ;;  %v12151_v57 = vpop.f32.mrf.mxu0 }
 0x5a6   : > { %v15327_v48 = vadd.f32 %v6827_v11, %v6691_v56 }
 0x5a7   : > { %v6667_v12 = vpop.f32.mrf.mxu1  ;;  %v6835_v54 = vpop.f32.mrf.mxu0 }
 0x5a8   : > { %v6692_v58 = vadd.f32 %v6667_v12, %v15311_v13 }
 0x5a9   : > { %v12115_v27 = vpop.f32.mrf.mxu1  ;;  %v12154_v52 = vpop.f32.mrf.mxu0 }
 0x5aa   : > { %v15330_v25 = vadd.f32 %v6830_v42, %v6692_v58 }
 0x5ab   : > { %v6672_v21 = vpop.f32.mrf.mxu1  ;;  %v6838_v22 = vpop.f32.mrf.mxu0 }
 0x5ac   : > { %v6693_v7 = vadd.f32 %v6672_v21, %v6530_v39  ;;  %v12921_v21 = vld [vmem:[%s15679_s9 + $0x28] sm:$0xff]  }
 0x5ad   : > { %v12118_v45 = vpop.f32.mrf.mxu1  ;;  %v12155_v26 = vpop.f32.mrf.mxu0 }
 0x5ae   : > { %v15332_v40 = vadd.f32 %v6835_v54, %v6693_v7 }
 0x5af   : > { %v6675_v50 = vpop.f32.mrf.mxu1  ;;  %v6843_v10 = vpop.f32.mrf.mxu0 }
 0x5b0   : > { %v6694_v63 = vadd.f32 %v6675_v50, %v6531_v43 }
 0x5b1   : > { %v12119_v14 = vpop.f32.mrf.mxu1  ;;  %v12158_v20 = vpop.f32.mrf.mxu0 }
 0x5b2   : > { %v15334_v23 = vadd.f32 %v6838_v22, %v6694_v63 }
 0x5b3   : > { %v6680_v38 = vpop.f32.mrf.mxu1  ;;  %v6846_v13 = vpop.f32.mrf.mxu0 }
 0x5b4   : > { %v6695_v49 = vadd.f32 %v6680_v38, %v6532_v19  ;;  %v12919_v19 = vld [vmem:[%s15679_s9 + $0x38] sm:$0xff]  }
 0x5b5   : > { %v12122_v28 = vpop.f32.mrf.mxu1  ;;  %v12159_v29 = vpop.f32.mrf.mxu0  ;;  %12412 = vmatprep.subr.bf16.mxu0 %v12919_v19 }
 0x5b6   : > { %v15336_v62 = vadd.f32 %v6843_v10, %v6695_v49  ;;  %12413 = vmatpush3.bf16.msra.mxu0 %v12919_v19  ;;  %v12923_v10 = vld [vmem:[%s15679_s9 + $0x50] sm:$0xff]   ;;  %v12924_v49 = vld [vmem:[%s15679_s9 + $0x20] sm:$0xff]   ;;  %v12925_v28 = vld [vmem:[%s15679_s9 + $0x48] sm:$0xff]  }
 0x5b7   : > { %v6683_v4 = vpop.f32.mrf.mxu1  ;;  %v7137_v39 = vpop.f32.mrf.mxu0  ;;  %12414 = vmatprep.subr.bf16.mxu0 %v12920_v24 }
 0x5b8   : > { %v6696_v15 = vadd.f32 %v6683_v4, %v6533_v41 }
 0x5b9   : > { %v12123_v32 = vpop.f32.mrf.mxu1  ;;  %v12214_v44 = vpop.f32.mrf.mxu0 }
 0x5ba   : > { %v15338_v36 = vadd.f32 %v6846_v13, %v6696_v15  ;;  %12415 = vmatpush3.bf16.msra.mxu0 %v12920_v24  ;;  %v12926_v44 = vld [vmem:[%s15679_s9 + $0x40] sm:$0xff]  }
 0x5bb   : > { %v6974_v31 = vpop.f32.mrf.mxu1  ;;  %v7140_v43 = vpop.f32.mrf.mxu0  ;;  %12416 = vmatprep.subr.bf16.mxu0 %v12921_v21 }
 0x5bc   : > { %v7013_v55 = vadd.f32 %v6974_v31, %v6850_v30  ;;  %v15388_v31 = vld [vmem:[%s15679_s9 + $0x18] sm:$0xff]  }
 0x5bd   : > { %v12178_v51 = vpop.f32.mrf.mxu1  ;;  %v12215_v18 = vpop.f32.mrf.mxu0 }
 0x5be   : > { %v15340_v53 = vadd.f32 %v7137_v39, %v7013_v55  ;;  %12417 = vmatpush3.bf16.msra.mxu0 %v12921_v21 }
 0x5bf   : > { %v6977_v35 = vpop.f32.mrf.mxu1  ;;  %v7145_v0 = vpop.f32.mrf.mxu0  ;;  %12418 = vmatprep.subr.bf16.mxu0 %v12924_v49 }
 0x5c0   : > { %v7014_v46 = vadd.f32 %v6977_v35, %v6851_v2 }
 0x5c1   : > { %v12179_v41 = vpop.f32.mrf.mxu1  ;;  %v12218_v5 = vpop.f32.mrf.mxu0 }
 0x5c2   : > { %v15345_v6 = vadd.f32 %v7140_v43, %v7014_v46  ;;  %12419 = vmatpush3.bf16.msra.mxu0 %v12924_v49 }
 0x5c3   : > { %v6982_v37 = vpop.f32.mrf.mxu1  ;;  %v7148_v1 = vpop.f32.mrf.mxu0  ;;  %12428 = vmatprep.subr.bf16.mxu0 %v15388_v31 }
 0x5c4   : > { %v7015_v30 = vadd.f32 %v6982_v37, %v6852_v60 }
 0x5c5   : > { %v12182_v3 = vpop.f32.mrf.mxu1  ;;  %v12219_v47 = vpop.f32.mrf.mxu0 }
 0x5c6   : > { %v15347_v8 = vadd.f32 %v7145_v0, %v7015_v30 }
 0x5c7   : > { %v6985_v34 = vpop.f32.mrf.mxu1  ;;  %v7153_v11 = vpop.f32.mrf.mxu0 }
 0x5c8   : > { %v7016_v2 = vadd.f32 %v6985_v34, %v6853_v59 }
 0x5c9   : > { %v12183_v17 = vpop.f32.mrf.mxu1  ;;  %v12222_v61 = vpop.f32.mrf.mxu0 }
 0x5ca   : > { %v15352_v9 = vadd.f32 %v7148_v1, %v7016_v2 }
 0x5cb   : > { %v6990_v33 = vpop.f32.mrf.mxu1  ;;  %v7156_v42 = vpop.f32.mrf.mxu0 }
 0x5cc   : > { %v7017_v60 = vadd.f32 %v6990_v33, %v15327_v48  ;;  %v12922_v48 = vld [vmem:[%s15679_s9 + $0x58] sm:$0xff]  }
 0x5cd   : > { %v12186_v56 = vpop.f32.mrf.mxu1  ;;  %v12223_v16 = vpop.f32.mrf.mxu0  ;;  %12444 = vmatprep.subr.bf16.mxu1 %v12922_v48 }
 0x5ce   : > { %v15355_v57 = vadd.f32 %v7153_v11, %v7017_v60  ;;  %12445 = vmatpush3.bf16.msra.mxu1 %v12922_v48 }
 0x5cf   : > { %v6993_v12 = vpop.f32.mrf.mxu1  ;;  %v7161_v54 = vpop.f32.mrf.mxu0  ;;  %12446 = vmatprep.subr.bf16.mxu1 %v12923_v10 }
 0x5d0   : > { %v7018_v58 = vadd.f32 %v6993_v12, %v15330_v25 }
 0x5d1   : > { %v12187_v27 = vpop.f32.mrf.mxu1  ;;  %v12226_v59 = vpop.f32.mrf.mxu0 }
 0x5d2   : > { %v15358_v52 = vadd.f32 %v7156_v42, %v7018_v58  ;;  %12447 = vmatpush3.bf16.msra.mxu1 %v12923_v10 }
 0x5d3   : > { %v6998_v22 = vpop.f32.mrf.mxu1  ;;  %v7164_v7 = vpop.f32.mrf.mxu0  ;;  %12448 = vmatprep.subr.bf16.mxu1 %v12925_v28 }
 0x5d4   : > { %v7019_v45 = vadd.f32 %v6998_v22, %v15332_v40 }
 0x5d5   : > { %v12190_v26 = vpop.f32.mrf.mxu1  ;;  %v12227_v25 = vpop.f32.mrf.mxu0 }
 0x5d6   : > { %v15367_v50 = vadd.f32 %v7161_v54, %v7019_v45  ;;  %12449 = vmatpush3.bf16.msra.mxu1 %v12925_v28 }
 0x5d7   : > { %v7001_v63 = vpop.f32.mrf.mxu1  ;;  %v7169_v14 = vpop.f32.mrf.mxu0  ;;  %12450 = vmatprep.subr.bf16.mxu1 %v12926_v44 }
 0x5d8   : > { %v7020_v20 = vadd.f32 %v7001_v63, %v15334_v23 }
 0x5d9   : > { %v12191_v38 = vpop.f32.mrf.mxu1  ;;  %v12230_v13 = vpop.f32.mrf.mxu0 }
 0x5da   : > { %v15373_v40 = vadd.f32 %v7164_v7, %v7020_v20  ;;  %12451 = vmatpush3.bf16.msra.mxu1 %v12926_v44 }
 0x5db   : > { %v7006_v29 = vpop.f32.mrf.mxu1  ;;  %v7172_v4 = vpop.f32.mrf.mxu0 }
 0x5dc   : > { %v7021_v39 = vadd.f32 %v7006_v29, %v15336_v62 }
 0x5dd   : > { %v12194_v23 = vpop.f32.mrf.mxu1  ;;  %v12231_v15 = vpop.f32.mrf.mxu0 }
 0x5de   : > { %v7184_v32 = vadd.f32 %v7169_v14, %v7021_v39 }
 0x5df   : > { %v7009_v43 = vpop.f32.mrf.mxu1  ;;  %v7463_v55 = vpop.f32.mrf.mxu0 }
 0x5e0   : > { %v7022_v62 = vadd.f32 %v7009_v43, %v15338_v36 }
 0x5e1   : > { %v12195_v51 = vpop.f32.mrf.mxu1  ;;  %v12286_v18 = vpop.f32.mrf.mxu0 }
 0x5e2   : > { %v7185_v19 = vadd.f32 %v7172_v4, %v7022_v62 }
 0x5e3   : > { %v7300_v35 = vpop.f32.mrf.mxu1  ;;  %v7466_v0 = vpop.f32.mrf.mxu0 }
 0x5e4   : > { %v7339_v46 = vadd.f32 %v7300_v35, %v15340_v53 }
 0x5e5   : > { %v12250_v41 = vpop.f32.mrf.mxu1  ;;  %v12287_v5 = vpop.f32.mrf.mxu0 }
 0x5e6   : > { %v15393_v37 = vadd.f32 %v7463_v55, %v7339_v46 }
 0x5e7   : > { %v7303_v1 = vpop.f32.mrf.mxu1  ;;  %v7471_v30 = vpop.f32.mrf.mxu0 }
 0x5e8   : > { %v7340_v3 = vadd.f32 %v7303_v1, %v15345_v6 }
 0x5e9   : > { %v12251_v36 = vpop.f32.mrf.mxu1  ;;  %v12290_v47 = vpop.f32.mrf.mxu0 }
 0x5ea   : > { %v15396_v24 = vadd.f32 %v7466_v0, %v7340_v3 }
 0x5eb   : > { %v7308_v34 = vpop.f32.mrf.mxu1  ;;  %v7474_v11 = vpop.f32.mrf.mxu0 }
 0x5ec   : > { %v7341_v2 = vadd.f32 %v7308_v34, %v15347_v8 }
 0x5ed   : > { %v12254_v17 = vpop.f32.mrf.mxu1  ;;  %v12291_v61 = vpop.f32.mrf.mxu0 }
 0x5ee   : > { %v15399_v33 = vadd.f32 %v7471_v30, %v7341_v2 }
 0x5ef   : > { %v7311_v53 = vpop.f32.mrf.mxu1  ;;  %v7479_v42 = vpop.f32.mrf.mxu0 }
 0x5f0   : > { %v7342_v60 = vadd.f32 %v7311_v53, %v15352_v9 }
 0x5f1   : > { %v12255_v56 = vpop.f32.mrf.mxu1  ;;  %v12294_v16 = vpop.f32.mrf.mxu0 }
 0x5f2   : > { %v15402_v12 = vadd.f32 %v7474_v11, %v7342_v60 }
 0x5f3   : > { %v7316_v6 = vpop.f32.mrf.mxu1  ;;  %v7482_v54 = vpop.f32.mrf.mxu0 }
 0x5f4   : > { %v7343_v58 = vadd.f32 %v7316_v6, %v15355_v57 }
 0x5f5   : > { %v12258_v27 = vpop.f32.mrf.mxu1  ;;  %v12295_v59 = vpop.f32.mrf.mxu0 }
 0x5f6   : > { %v15405_v21 = vadd.f32 %v7479_v42, %v7343_v58 }
 0x5f7   : > { %v7319_v8 = vpop.f32.mrf.mxu1  ;;  %v7487_v48 = vpop.f32.mrf.mxu0 }
 0x5f8   : > { %v7344_v22 = vadd.f32 %v7319_v8, %v15358_v52 }
 0x5f9   : > { %v12259_v7 = vpop.f32.mrf.mxu1  ;;  %v12298_v45 = vpop.f32.mrf.mxu0 }
 0x5fa   : > { %v15408_v26 = vadd.f32 %v7482_v54, %v7344_v22 }
 0x5fb   : > { %v7324_v9 = vpop.f32.mrf.mxu1  ;;  %v7490_v25 = vpop.f32.mrf.mxu0 }
 0x5fc   : > { %v7345_v10 = vadd.f32 %v7324_v9, %v15367_v50 }
 0x5fd   : > { %v12262_v63 = vpop.f32.mrf.mxu1  ;;  %v12299_v14 = vpop.f32.mrf.mxu0 }
 0x5fe   : > { %v15411_v20 = vadd.f32 %v7487_v48, %v7345_v10 }
 0x5ff   : > { %v7327_v57 = vpop.f32.mrf.mxu1  ;;  %v7495_v38 = vpop.f32.mrf.mxu0 }
 0x600   : > { %v7346_v13 = vadd.f32 %v7327_v57, %v15373_v40 }
 0x601   : > { %v12263_v49 = vpop.f32.mrf.mxu1  ;;  %v12302_v28 = vpop.f32.mrf.mxu0 }
 0x602   : > { %v15414_v29 = vadd.f32 %v7490_v25, %v7346_v13  ;;  %v15441_v28 = vld [vmem:[%s15678_s8] ss:$0 sm:$0xff] }
 0x603   : > { %v7332_v52 = vpop.f32.mrf.mxu1  ;;  %v7498_v4 = vpop.f32.mrf.mxu0 }
 0x604   : > { %v7347_v39 = vadd.f32 %v7332_v52, %v7184_v32 }
 0x605   : > { %v12266_v23 = vpop.f32.mrf.mxu1  ;;  %v12303_v15 = vpop.f32.mrf.mxu0 }
 0x606   : > { %v15416_v44 = vadd.f32 %v7495_v38, %v7347_v39 }
 0x607   : > { %v7335_v50 = vpop.f32.mrf.mxu1  ;;  %v7789_v43 = vpop.f32.mrf.mxu0 }
 0x608   : > { %v7348_v55 = vadd.f32 %v7335_v50, %v7185_v19 }
 0x609   : > { %v12267_v62 = vpop.f32.mrf.mxu1  ;;  %v12358_v51 = vpop.f32.mrf.mxu0 }
 0x60a   : > { %v15418_v18 = vadd.f32 %v7498_v4, %v7348_v55 }
 0x60b   : > { %v7626_v35 = vpop.f32.mrf.mxu1  ;;  %v7792_v40 = vpop.f32.mrf.mxu0 }
 0x60c   : > { %v7665_v63 = vadd.f32 %v7626_v35, %v15393_v37 }
 0x60d   : > { %v12322_v0 = vpop.f32.mrf.mxu1  ;;  %v12359_v46 = vpop.f32.mrf.mxu0 }
 0x60e   : > { %v7828_v13 = vadd.f32 %v7789_v43, %v7665_v63 }
 0x60f   : > { %v7629_v41 = vpop.f32.mrf.mxu1  ;;  %v7797_v5 = vpop.f32.mrf.mxu0 }
 0x610   : > { %v7666_v38 = vadd.f32 %v7629_v41, %v15396_v24 }
 0x611   : > { %v12323_v1 = vpop.f32.mrf.mxu1  ;;  %v12362_v30 = vpop.f32.mrf.mxu0 }
 0x612   : > { %v7829_v15 = vadd.f32 %v7792_v40, %v7666_v38 }
 0x613   : > { %v7634_v32 = vpop.f32.mrf.mxu1  ;;  %v7800_v3 = vpop.f32.mrf.mxu0 }
 0x614   : > { %v7667_v39 = vadd.f32 %v7634_v32, %v15399_v33 }
 0x615   : > { %v12326_v36 = vpop.f32.mrf.mxu1  ;;  %v12363_v47 = vpop.f32.mrf.mxu0 }
 0x616   : > { %v7830_v51 = vadd.f32 %v7797_v5, %v7667_v39 }
 0x617   : > { %v7637_v34 = vpop.f32.mrf.mxu1  ;;  %v7805_v11 = vpop.f32.mrf.mxu0 }
 0x618   : > { %v7668_v24 = vadd.f32 %v7637_v34, %v15402_v12 }
 0x619   : > { %v12327_v2 = vpop.f32.mrf.mxu1  ;;  %v12366_v19 = vpop.f32.mrf.mxu0 }
 0x61a   : > { %v7831_v1 = vadd.f32 %v7800_v3, %v7668_v24 }
 0x61b   : > { %v7642_v17 = vpop.f32.mrf.mxu1  ;;  %v15420_v61 = vpop.f32.mrf.mxu0 }
 0x61c   : > { %v7669_v33 = vadd.f32 %v7642_v17, %v15405_v21 }
 0x61d   : > { %v12330_v53 = vpop.f32.mrf.mxu1  ;;  %v12367_v42 = vpop.f32.mrf.mxu0 }
 0x61e   : > { %v7832_v47 = vadd.f32 %v7805_v11, %v7669_v33  ;;  %v12929_v33 = vld [vmem:[%s15679_s9 + $0x8] sm:$0xff]  }
 0x61f   : > { %v7645_v60 = vpop.f32.mrf.mxu1  ;;  %v15422_v56 = vpop.f32.mrf.mxu0 }
 0x620   : > { %v7670_v5 = vadd.f32 %v7645_v60, %v15408_v26 }
 0x621   : > { %v12331_v16 = vpop.f32.mrf.mxu1  ;;  %v12370_v6 = vpop.f32.mrf.mxu0 }
 0x622   : > { %v7833_v3 = vadd.f32 %v15420_v61, %v7670_v5 }
 0x623   : > { %v7650_v54 = vpop.f32.mrf.mxu1  ;;  %v15424_v58 = vpop.f32.mrf.mxu0 }
 0x624   : > { %v7671_v53 = vadd.f32 %v7650_v54, %v15411_v20 }
 0x625   : > { %v12334_v27 = vpop.f32.mrf.mxu1  ;;  %v12371_v59 = vpop.f32.mrf.mxu0 }
 0x626   : > { %v7834_v59 = vadd.f32 %v15422_v56, %v7671_v53  ;;  %v12932_v53 = vld [vmem:[%s15679_s9 + $0x70] sm:$0xff]  }
 0x627   : > { %v15426_v8 = vpop.f32.mrf.mxu1  ;;  %v15428_v48 = vpop.f32.mrf.mxu0 }
 0x629   : > { %v12335_v22 = vpop.f32.mrf.mxu1  ;;  %v12374_v7 = vpop.f32.mrf.mxu0 }
 0x62a   : > { %v7672_v22 = vadd.f32 %v15426_v8, %v15414_v29 }
 0x62b   : > { %v15430_v45 = vpop.f32.mrf.mxu1  ;;  %v15432_v9 = vpop.f32.mrf.mxu0 }
 0x62c   : > { %v7835_v56 = vadd.f32 %v15424_v58, %v7672_v22  ;;  %v7673_v29 = vadd.f32 %v15430_v45, %v15416_v44  ;;  %v8423_v22 = vld [vmem:[#allocation6 + $0x39] sm:$0xff] }
 0x62d   : > { %v12338_v25 = vpop.f32.mrf.mxu1  ;;  %v12375_v10 = vpop.f32.mrf.mxu0 }
 0x62e   : > { %v7836_v39 = vadd.f32 %v15428_v48, %v7673_v29  ;;  %v12944_v29 = vld [vmem:[%s15681_s11 + $0x58] sm:$0xff]  }
 0x62f   : > { %v15435_v14 = vpop.f32.mrf.mxu1 }
 0x630   : > { %v7674_v58 = vadd.f32 %v15435_v14, %v15418_v18  ;;  %v12928_v14 = vld [vmem:[%s15679_s9 + $0x10] sm:$0xff]  }
 0x631   : > { %v12339_v57 = vpop.f32.mrf.mxu1 }
 0x633   : > { %v7952_v49 = vpop.f32.mrf.mxu1 }
 0x634   : > { %v7991_v52 = vadd.f32 %v7952_v49, %v7828_v13 }
 0x635   : > { %v12394_v4 = vpop.f32.mrf.mxu1 }
 0x636   : > { %v8008_v23 = vadd.f32 %v15441_v28, %v7991_v52 }
 0x637   : > { %v7955_v37 = vpop.f32.mrf.mxu1 }
 0x638   : > { %v8018_v50 = vmax.f32 %v8008_v23, 0.0  ;;  %v7992_v55 = vadd.f32 %v7955_v37, %v7829_v15 }
 0x639   : > { %v12395_v62 = vpop.f32.mrf.mxu1 }
 0x63a   : > { %8028 = vst.msk [vmem:[#allocation6] sm:$0x7f] %vm1556_vm15, %v8018_v50  ;;  %v8009_v43 = vadd.f32 %v15441_v28, %v7992_v55  ;;  %v7837_v62 = vadd.f32 %v15432_v9, %v7674_v58  ;;  %v15585_v58 = vld [vmem:[%s15681_s11 + $0xb8] sm:$0xff]  }
 0x63b   : > { %v7960_v35 = vpop.f32.mrf.mxu1 }
 0x63c   : > { %v8019_v0 = vmax.f32 %v8009_v43, 0.0  ;;  %v7993_v46 = vadd.f32 %v7960_v35, %v7830_v51 }
 0x63d   : > { %v12398_v41 = vpop.f32.mrf.mxu1 }
 0x63e   : > { %8030 = vst.msk [vmem:[#allocation6 + $0x5] sm:$0xf8] %vm8029_vm2, %v8019_v0  ;;  %v8010_v40 = vadd.f32 %v15441_v28, %v7993_v46 }
 0x63f   : > { %v7963_v30 = vpop.f32.mrf.mxu1 }
 0x640   : > { %v8020_v12 = vmax.f32 %v8010_v40, 0.0  ;;  %v7994_v32 = vadd.f32 %v7963_v30, %v7831_v1 }
 0x641   : > { %v12399_v36 = vpop.f32.mrf.mxu1 }
 0x642   : > { %8032 = vst.msk [vmem:[#allocation6 + $0xd] sm:$0x3] %vm8031_vm3, %v8020_v12  ;;  %v8011_v34 = vadd.f32 %v15441_v28, %v7994_v32  ;;  %v8296_v32 = vld [vmem:[#allocation6 + $0x38] sm:$0xff] }
 0x643   : > { %8034 = vst.msk [vmem:[#allocation6 + $0xa] sm:$0xc0] %vm8033_vm4, %v8020_v12  ;;  %v7968_v2 = vpop.f32.mrf.mxu1  ;;  %v12931_v12 = vld [vmem:[%s15679_s9 + $0x78] sm:$0xff]  }
 0x644   : > { %v8021_v21 = vmax.f32 %v8011_v34, 0.0  ;;  %v7995_v19 = vadd.f32 %v7968_v2, %v7832_v47  ;;  %v8300_v34 = vpack.c.bf16 %v8296_v32, %v8296_v32 }
 0x645   : > { %v12402_v17 = vpop.f32.mrf.mxu1  ;;  %v8070_v6 = vld [vmem:[#allocation6 + $0x1] sm:$0xff] }
 0x646   : > { %8036 = vst.msk [vmem:[#allocation6 + $0x12] sm:$0x1f] %vm8035_vm5, %v8021_v21  ;;  %v8012_v42 = vadd.f32 %v15441_v28, %v7995_v19  ;;  %v8051_v19 = vld [vmem:[#allocation6] sm:$0xff] }
 0x647   : > { %v7971_v11 = vpop.f32.mrf.mxu1 }
 0x648   : > { %v8022_v16 = vmax.f32 %v8012_v42, 0.0  ;;  %v7996_v26 = vadd.f32 %v7971_v11, %v7833_v3  ;;  %v12933_v11 = vld [vmem:[%s15679_s9 + $0x68] sm:$0xff]  }
 0x649   : > { %v12403_v60 = vpop.f32.mrf.mxu1  ;;  %v15463_v63 = vld [vmem:[#allocation6 + $0x8] sm:$0xff] }
 0x64a   : > { %v15455_v27 = vld [vmem:[#allocation6 + $0x9] sm:$0xff]  ;;  %8038 = vst.msk [vmem:[#allocation6 + $0x17] sm:$0xfe] %vm8037_vm6, %v8022_v16  ;;  %v8013_v61 = vadd.f32 %v15441_v28, %v7996_v26  ;;  %v8058_v17 = vpack.c.bf16 %v15463_v63, %v8051_v19 }
 0x64b   : > { %v8077_v20 = vpack.c.bf16 %v15455_v27, %v8070_v6  ;;  %v7976_v54 = vpop.f32.mrf.mxu1  ;;  %v12934_v26 = vld [vmem:[%s15679_s9 + $0x60] sm:$0xff]  }
 0x64c   : > { %v8023_v7 = vmax.f32 %v8013_v61, 0.0  ;;  %v7997_v25 = vadd.f32 %v7976_v54, %v7834_v59  ;;  %v8427_v61 = vpack.c.bf16 %v8423_v22, %v8423_v22  ;;  %v12937_v54 = vld [vmem:[%s15681_s11 + $0x30] sm:$0xff]  }
 0x64d   : > { %12420 = vmatprep.mubr.msk.bf16.mxu0 %vm461_vm14, %v8077_v20  ;;  %v12406_v10 = vpop.f32.mrf.mxu1  ;;  %v15465_v57 = vld [vmem:[#allocation6 + $0x10] sm:$0xff]  ;;  %v12936_v20 = vld [vmem:[%s15681_s11 + $0x78] sm:$0xff]  }
 0x64e   : > { %8040 = vst.msk [vmem:[#allocation6 + $0x1c] sm:$0xf0] %vm8039_vm7, %v8023_v7  ;;  %v8014_v8 = vadd.f32 %v15441_v28, %v7997_v25  ;;  %v8297_v38 = vpack.c.bf16 %v15465_v57, %v15463_v63  ;;  %12476 = vmatprep.subr.bf16.mxu1 %v12936_v20  ;;  %v12938_v7 = vld [vmem:[%s15681_s11 + $0x70] sm:$0xff]   ;;  %v12939_v25 = vld [vmem:[%s15681_s11 + $0x28] sm:$0xff]   ;;  %v12941_v63 = vld [vmem:[%s15681_s11 + $0x20] sm:$0xff]  }
 0x64f   : > { %v7979_v13 = vpop.f32.mrf.mxu1  ;;  %v12940_v10 = vld [vmem:[%s15681_s11 + $0x68] sm:$0xff]  }
 0x650   : > { %v8024_v49 = vmax.f32 %v8014_v8, 0.0  ;;  %v7998_v52 = vadd.f32 %v7979_v13, %v7835_v56  ;;  %12452 = vmatprep.mubr.msk.bf16.mxu1 %vm461_vm14, %v8297_v38  ;;  %v12943_v56 = vld [vmem:[%s15681_s11 + $0x18] sm:$0xff]   ;;  %v12945_v8 = vld [vmem:[%s15681_s11 + $0x10] sm:$0xff]   ;;  %v12947_v13 = vld [vmem:[%s15681_s11 + $0x8] sm:$0xff]  }
 0x651   : > { %v12407_v4 = vpop.f32.mrf.mxu1  ;;  %v15478_v50 = vld [vmem:[#allocation6 + $0x11] sm:$0xff]  ;;  %v12946_v38 = vld [vmem:[%s15681_s11 + $0x50] sm:$0xff]  }
 0x652   : > { %8042 = vst.msk [vmem:[#allocation6 + $0x24] sm:$0x7] %vm8041_vm8, %v8024_v49  ;;  %v8015_v44 = vadd.f32 %v15441_v28, %v7998_v52  ;;  %v8292_v0 = vld [vmem:[#allocation6 + $0x18] sm:$0xff]  ;;  %v8424_v60 = vpack.c.bf16 %v15478_v50, %v15455_v27  ;;  %v12935_v27 = vld [vmem:[%s15681_s11 + $0x38] sm:$0xff]   ;;  %v12949_v52 = vld [vmem:[%s15681_s11] sm:$0xff]  }
 0x653   : > { %8044 = vst.msk [vmem:[#allocation6 + $0x21] sm:$0x80] %vm8043_vm9, %v8024_v49  ;;  %v7984_v45 = vpop.f32.mrf.mxu1  ;;  %v8059_v3 = vpack.c.bf16 %v8292_v0, %v15465_v57  ;;  %v12942_v57 = vld [vmem:[%s15681_s11 + $0x60] sm:$0xff]   ;;  %v12948_v49 = vld [vmem:[%s15681_s11 + $0x48] sm:$0xff]  }
 0x654   : > { %v8025_v23 = vmax.f32 %v8015_v44, 0.0  ;;  %v7999_v15 = vadd.f32 %v7984_v45, %v7836_v39  ;;  %v12950_v4 = vld [vmem:[%s15681_s11 + $0x40] sm:$0xff]   ;;  %v15579_v39 = vld [vmem:[%s15681_s11 + $0xf8] sm:$0xff]  }
 0x655   : > { %v12410_v37 = vpop.f32.mrf.mxu1  ;;  %v15480_v55 = vld [vmem:[#allocation6 + $0x19] sm:$0xff] }
 0x656   : > { %8046 = vst.msk [vmem:[#allocation6 + $0x29] sm:$0x3f] %vm8045_vm10, %v8025_v23  ;;  %v8016_v48 = vadd.f32 %v15441_v28, %v7999_v15  ;;  %v8078_v18 = vpack.c.bf16 %v15480_v55, %v15478_v50 }
 0x657   : > { %v7987_v24 = vpop.f32.mrf.mxu1 }
 0x658   : > { %v8026_v43 = vmax.f32 %v8016_v48, 0.0  ;;  %v8000_v51 = vadd.f32 %v7987_v24, %v7837_v62  ;;  %12421 = vmatmul.mubr.msk.bf16.vlgmr.msra.gmra.mxu0 %vm461_vm14, %v8078_v18 }
 0x659   : > { %v12411_v35 = vpop.f32.mrf.mxu1  ;;  %v8293_v46 = vld [vmem:[#allocation6 + $0x20] sm:$0xff]  ;;  %12429 = vmatpush3.bf16.msra.mxu0 %v15388_v31  ;;  %v12930_v31 = vld [vmem:[%s15679_s9] sm:$0xff]  }
 0x65a   : > { %8048 = vst.msk [vmem:[#allocation6 + $0x2e] sm:$0xfc] %vm8047_vm11, %v8026_v43  ;;  %v8017_v9 = vadd.f32 %v15441_v28, %v8000_v51  ;;  %v8298_v41 = vpack.c.bf16 %v8293_v46, %v8292_v0  ;;  %12430 = vmatprep.subr.bf16.mxu0 %v12928_v14  ;;  %v8074_v1 = vld [vmem:[#allocation6 + $0x21] sm:$0xff] }
 0x65b   : > { %v8425_v6 = vpack.c.bf16 %v8074_v1, %v15480_v55 }
 0x65c   : > { %v8027_v40 = vmax.f32 %v8017_v9, 0.0  ;;  %12453 = vmatmul.mubr.msk.bf16.vlgmr.msra.gmra.mxu1 %vm461_vm14, %v8298_v41 }
 0x65d   : > { %12431 = vmatpush3.bf16.msra.mxu0 %v12928_v14  ;;  %v8294_v47 = vld [vmem:[#allocation6 + $0x28] sm:$0xff]  ;;  %12477 = vmatpush3.bf16.msra.mxu1 %v12936_v20 }
 0x65e   : > { %8050 = vst.msk [vmem:[#allocation6 + $0x36] sm:$0x1] %vm8049_vm12, %v8027_v40  ;;  %12432 = vmatprep.subr.bf16.mxu0 %v12929_v33  ;;  %v8060_v42 = vpack.c.bf16 %v8294_v47, %v8293_v46  ;;  %12478 = vmatprep.subr.bf16.mxu1 %v12938_v7 }
 0x661   : > { %v8075_v30 = vld [vmem:[#allocation6 + $0x29] sm:$0xff]  ;;  %12433 = vmatpush3.bf16.msra.mxu0 %v12929_v33  ;;  %12479 = vmatpush3.bf16.msra.mxu1 %v12938_v7 }
 0x662   : > { %v8079_v28 = vpack.c.bf16 %v8075_v30, %v8074_v1  ;;  %12434 = vmatprep.subr.bf16.mxu0 %v12930_v31  ;;  %12480 = vmatprep.subr.bf16.mxu1 %v12940_v10 }
 0x664   : > { %12424 = vmatprep.mubr.msk.bf16.mxu0 %vm461_vm14, %v8079_v28 }
 0x665   : > { %v8076_v36 = vld [vmem:[#allocation6 + $0x31] sm:$0xff]  ;;  %12435 = vmatpush3.bf16.msra.mxu0 %v12930_v31  ;;  %12481 = vmatpush3.bf16.msra.mxu1 %v12940_v10 }
 0x666   : > { %v8295_v5 = vld [vmem:[#allocation6 + $0x30] sm:$0xff]  ;;  %v8080_v2 = vpack.c.bf16 %v8076_v36, %v8076_v36  ;;  %12460 = vmatprep.subr.bf16.mxu0 %v12931_v12  ;;  %v8426_v59 = vpack.c.bf16 %v8076_v36, %v8075_v30  ;;  %12482 = vmatprep.subr.bf16.mxu1 %v12942_v57 }
 0x667   : > { %v8299_v21 = vpack.c.bf16 %v8295_v5, %v8294_v47  ;;  %v8061_v16 = vpack.c.bf16 %v8295_v5, %v8295_v5  ;;  %v10362_v47 = vld [vmem:[%s15680_s10] ss:$0 sm:$0xff] }
 0x668   : > { %12425 = vmatmul.mubr.msk.bf16.gmra.mxu0 %vm461_vm14, %v8080_v2 }
 0x669   : > { %12456 = vmatprep.mubr.msk.bf16.mxu1 %vm461_vm14, %v8299_v21  ;;  %12436 = vmatprep.mubr.msk.bf16.mxu0 %vm461_vm14, %v8058_v17 }
 0x66a   : > { %12457 = vmatmul.mubr.msk.bf16.gmra.mxu1 %vm461_vm14, %v8300_v34 }
 0x66b   : > { %12483 = vmatpush3.bf16.msra.mxu1 %v12942_v57 }
 0x66c   : > { %12484 = vmatprep.subr.bf16.mxu1 %v12944_v29 }
 0x66f   : > { %12485 = vmatpush3.bf16.msra.mxu1 %v12944_v29 }
 0x670   : > { %12437 = vmatmul.mubr.msk.bf16.vlgmr.msra.gmra.mxu0 %vm461_vm14, %v8059_v3  ;;  %12486 = vmatprep.subr.bf16.mxu1 %v12946_v38 }
 0x671   : > { %12461 = vmatpush3.bf16.msra.mxu0 %v12931_v12  ;;  %12440 = vmatprep.mubr.msk.bf16.mxu0 %vm461_vm14, %v8060_v42 }
 0x672   : > { %12462 = vmatprep.subr.bf16.mxu0 %v12932_v53 }
 0x673   : > { %12487 = vmatpush3.bf16.msra.mxu1 %v12946_v38 }
 0x674   : > { %12488 = vmatprep.subr.bf16.mxu1 %v12948_v49 }
 0x675   : > { %12463 = vmatpush3.bf16.msra.mxu0 %v12932_v53 }
 0x676   : > { %12464 = vmatprep.subr.bf16.mxu0 %v12933_v11 }
 0x677   : > { %12489 = vmatpush3.bf16.msra.mxu1 %v12948_v49 }
 0x678   : > { %12441 = vmatmul.mubr.msk.bf16.gmra.mxu0 %vm461_vm14, %v8061_v16  ;;  %12490 = vmatprep.subr.bf16.mxu1 %v12950_v4 }
 0x679   : > { %12465 = vmatpush3.bf16.msra.mxu0 %v12933_v11  ;;  %12468 = vmatprep.mubr.msk.bf16.mxu0 %vm461_vm14, %v8424_v60 }
 0x67a   : > { %12466 = vmatprep.subr.bf16.mxu0 %v12934_v26 }
 0x67b   : > { %12491 = vmatpush3.bf16.msra.mxu1 %v12950_v4 }
 0x67c   : > { %12524 = vmatprep.subr.bf16.mxu1 %v15585_v58 }
 0x67d   : > { %12467 = vmatpush3.bf16.msra.mxu0 %v12934_v26 }
 0x67e   : > { %12500 = vmatprep.subr.bf16.mxu0 %v12935_v27 }
 0x680   : > { %12469 = vmatmul.mubr.msk.bf16.vlgmr.msra.gmra.mxu0 %vm461_vm14, %v8425_v6 }
 0x681   : > { %12472 = vmatprep.mubr.msk.bf16.mxu0 %vm461_vm14, %v8426_v59  ;;  %12501 = vmatpush3.bf16.msra.mxu0 %v12935_v27 }
 0x682   : > { %12502 = vmatprep.subr.bf16.mxu0 %v12937_v54 }
 0x685   : > { %12503 = vmatpush3.bf16.msra.mxu0 %v12937_v54 }
 0x686   : > { %12504 = vmatprep.subr.bf16.mxu0 %v12939_v25 }
 0x688   : > { %12473 = vmatmul.mubr.msk.bf16.gmra.mxu0 %vm461_vm14, %v8427_v61 }
 0x689   : > { %12505 = vmatpush3.bf16.msra.mxu0 %v12939_v25 }
 0x68a   : > { %12506 = vmatprep.subr.bf16.mxu0 %v12941_v63 }
 0x68d   : > { %12507 = vmatpush3.bf16.msra.mxu0 %v12941_v63 }
 0x68e   : > { %12508 = vmatprep.subr.bf16.mxu0 %v12943_v56 }
 0x691   : > { %12509 = vmatpush3.bf16.msra.mxu0 %v12943_v56 }
 0x692   : > { %12510 = vmatprep.subr.bf16.mxu0 %v12945_v8 }
 0x695   : > { %12511 = vmatpush3.bf16.msra.mxu0 %v12945_v8 }
 0x696   : > { %12512 = vmatprep.subr.bf16.mxu0 %v12947_v13 }
 0x699   : > { %12513 = vmatpush3.bf16.msra.mxu0 %v12947_v13 }
 0x69a   : > { %12514 = vmatprep.subr.bf16.mxu0 %v12949_v52 }
 0x69d   : > { %12515 = vmatpush3.bf16.msra.mxu0 %v12949_v52 }
 0x69e   : > { %12548 = vmatprep.subr.bf16.mxu0 %v15579_v39 }
 0x718   : > { %v12422_v44 = vpop.f32.mrf.mxu0 }
 0x71a   : > { %v8160_v23 = vpop.f32.mrf.mxu0 }
 0x71c   : > { %v12454_v45 = vpop.f32.mrf.mxu1  ;;  %v12423_v37 = vpop.f32.mrf.mxu0 }
 0x71e   : > { %v8380_v15 = vpop.f32.mrf.mxu1  ;;  %v8163_v55 = vpop.f32.mrf.mxu0 }
 0x720   : > { %v12455_v50 = vpop.f32.mrf.mxu1 }
 0x722   : > { %v8383_v62 = vpop.f32.mrf.mxu1 }
 0x728   : > { %v12426_v48 = vpop.f32.mrf.mxu0 }
 0x72a   : > { %v12458_v18 = vpop.f32.mrf.mxu1  ;;  %v8176_v14 = vpop.f32.mrf.mxu0 }
 0x72c   : > { %v8396_v24 = vpop.f32.mrf.mxu1  ;;  %v12427_v43 = vpop.f32.mrf.mxu0 }
 0x72e   : > { %v12459_v51 = vpop.f32.mrf.mxu1  ;;  %v8179_v35 = vpop.f32.mrf.mxu0 }
 0x730   : > { %v12438_v0 = vpop.f32.mrf.mxu0  ;;  %v8399_v56 = vpop.f32.mrf.mxu1 }
 0x731   : > { %v8269_v31 = vadd.f32 %v12438_v0, %v12422_v44  ;;  %v12953_v0 = vld [vmem:[%s15681_s11 + $0xf0] sm:$0xff]  }
 0x732   : > { %v8260_v46 = vpop.f32.mrf.mxu0 }
 0x733   : > { %v8261_v30 = vadd.f32 %v8260_v46, %v8160_v23  ;;  %v8412_v32 = vadd.f32 %v12454_v45, %v8269_v31 }
 0x734   : > { %v12439_v9 = vpop.f32.mrf.mxu0 }
 0x735   : > { %v8272_v12 = vadd.f32 %v12439_v9, %v12423_v37  ;;  %v8410_v2 = vadd.f32 %v8380_v15, %v8261_v30 }
 0x736   : > { %v8263_v41 = vpop.f32.mrf.mxu0 }
 0x737   : > { %v8264_v5 = vadd.f32 %v8263_v41, %v8163_v55  ;;  %v8413_v53 = vadd.f32 %v12455_v50, %v8272_v12 }
 0x738   : > { %v12442_v33 = vpop.f32.mrf.mxu0 }
 0x739   : > { %v8285_v19 = vadd.f32 %v12442_v33, %v12426_v48  ;;  %v8411_v6 = vadd.f32 %v8383_v62, %v8264_v5  ;;  %v12954_v33 = vld [vmem:[%s15681_s11 + $0xb0] sm:$0xff]  }
 0x73a   : > { %v8276_v40 = vpop.f32.mrf.mxu0 }
 0x73b   : > { %v8277_v42 = vadd.f32 %v8276_v40, %v8176_v14  ;;  %v8416_v22 = vadd.f32 %v12458_v18, %v8285_v19  ;;  %v12955_v40 = vld [vmem:[%s15681_s11 + $0xe8] sm:$0xff]  }
 0x73c   : > { %v12443_v1 = vpop.f32.mrf.mxu0 }
 0x73d   : > { %v8414_v54 = vadd.f32 %v8396_v24, %v8277_v42  ;;  %v12962_v42 = vld [vmem:[%s15681_s11 + $0x90] sm:$0xff]  }
 0x73e   : > { %v8279_v28 = vpop.f32.mrf.mxu0 }
 0x73f   : > { %v8280_v25 = vadd.f32 %v8279_v28, %v8179_v35 }
 0x740   : > { %v12470_v36 = vpop.f32.mrf.mxu0 }
 0x741   : > { %v8539_v34 = vadd.f32 %v12470_v36, %v8412_v32  ;;  %v8415_v52 = vadd.f32 %v8399_v56, %v8280_v25 }
 0x742   : > { %v8507_v21 = vpop.f32.mrf.mxu0 }
 0x743   : > { %v8553_v17 = vadd.f32 %v10362_v47, %v8539_v34  ;;  %v8537_v3 = vadd.f32 %v8507_v21, %v8410_v2  ;;  %v12958_v21 = vld [vmem:[%s15681_s11 + $0xa0] sm:$0xff]  }
 0x744   : > { %v12471_v11 = vpop.f32.mrf.mxu0 }
 0x745   : > { %v8560_v16 = vmax.f32 %v8553_v17, 0.0  ;;  %v8551_v26 = vadd.f32 %v10362_v47, %v8537_v3  ;;  %v8540_v60 = vadd.f32 %v12471_v11, %v8413_v53  ;;  %v12959_v17 = vld [vmem:[%s15681_s11 + $0xd8] sm:$0xff]   ;;  %v12961_v53 = vld [vmem:[%s15681_s11 + $0xd0] sm:$0xff]   ;;  %v12963_v11 = vld [vmem:[%s15681_s11 + $0xc8] sm:$0xff]  }
 0x746   : > { %v8510_v59 = vpop.f32.mrf.mxu0  ;;  %v12960_v3 = vld [vmem:[%s15681_s11 + $0x98] sm:$0xff]  }
 0x747   : > { %8567 = vst [vmem:[#allocation7 + $0x10] sm:$0x7f] %v8560_v16  ;;  %v8558_v61 = vmax.f32 %v8551_v26, 0.0  ;;  %v8554_v27 = vadd.f32 %v10362_v47, %v8540_v60  ;;  %v8538_v20 = vadd.f32 %v8510_v59, %v8411_v6  ;;  %v12964_v16 = vld [vmem:[%s15681_s11 + $0x88] sm:$0xff]   ;;  %v12965_v26 = vld [vmem:[%s15681_s11 + $0xc0] sm:$0xff]  }
 0x748   : > { %v12474_v7 = vpop.f32.mrf.mxu0  ;;  %v12966_v60 = vld [vmem:[%s15681_s11 + $0x80] sm:$0xff]  }
 0x749   : > { %8565 = vst [vmem:[#allocation7] sm:$0x7f] %v8558_v61  ;;  %v8561_v10 = vmax.f32 %v8554_v27, 0.0  ;;  %v8552_v63 = vadd.f32 %v10362_v47, %v8538_v20  ;;  %v8543_v57 = vadd.f32 %v12474_v7, %v8416_v22  ;;  %v9004_v61 = vld [vmem:[#allocation7 + $0x39] sm:$0xff] }
 0x74a   : > { %v8523_v29 = vpop.f32.mrf.mxu0  ;;  %v9008_v20 = vpack.c.bf16 %v9004_v61, %v9004_v61 }
 0x74b   : > { %8568 = vst [vmem:[#allocation7 + $0x18] sm:$0x7f] %v8561_v10  ;;  %v8559_v8 = vmax.f32 %v8552_v63, 0.0  ;;  %v8557_v38 = vadd.f32 %v10362_v47, %v8543_v57  ;;  %v8541_v13 = vadd.f32 %v8523_v29, %v8414_v54  ;;  %v13000_v54 = vld [vmem:[#allocation3] sm:$0xff] }
 0x74c   : > { %v12475_v49 = vpop.f32.mrf.mxu0  ;;  %v8861_v7 = vpack.c.bf16 %v13000_v54, %v13000_v54 }
 0x74d   : > { %8566 = vst [vmem:[#allocation7 + $0x8] sm:$0x7f] %v8559_v8  ;;  %v8564_v4 = vmax.f32 %v8557_v38, 0.0  ;;  %v8555_v44 = vadd.f32 %v10362_v47, %v8541_v13 }
 0x74e   : > { %v8526_v45 = vpop.f32.mrf.mxu0  ;;  %v8574_v51 = vld [vmem:[#allocation7 + $0x10] sm:$0xff] }
 0x74f   : > { %8571 = vst [vmem:[#allocation7 + $0x30] sm:$0x7f] %v8564_v4  ;;  %v8562_v23 = vmax.f32 %v8555_v44, 0.0  ;;  %v8542_v15 = vadd.f32 %v8526_v45, %v8415_v52 }
 0x750   : > { %v8572_v55 = vld [vmem:[#allocation7] sm:$0xff] }
 0x751   : > { %8569 = vst [vmem:[#allocation7 + $0x20] sm:$0x7f] %v8562_v23  ;;  %v8556_v37 = vadd.f32 %v10362_v47, %v8542_v15  ;;  %v12956_v47 = vld [vmem:[%s15681_s11 + $0xa8] sm:$0xff]  }
 0x752   : > { %v15591_v62 = vld [vmem:[#allocation7 + $0x18] sm:$0xff] }
 0x753   : > { %v8563_v50 = vmax.f32 %v8556_v37, 0.0  ;;  %v8580_v35 = vpack.c.bf16 %v15591_v62, %v8574_v51  ;;  %v8601_v46 = vld [vmem:[#allocation7 + $0x11] sm:$0xff] }
 0x754   : > { %v8599_v48 = vld [vmem:[#allocation7 + $0x1] sm:$0xff]  ;;  %v8600_v18 = vld [vmem:[#allocation7 + $0x9] sm:$0xff] }
 0x755   : > { %v8573_v14 = vld [vmem:[#allocation7 + $0x8] sm:$0xff]  ;;  %8570 = vst [vmem:[#allocation7 + $0x28] sm:$0x7f] %v8563_v50  ;;  %v8606_v24 = vpack.c.bf16 %v8600_v18, %v8599_v48  ;;  %v9005_v34 = vpack.c.bf16 %v8601_v46, %v8600_v18 }
 0x756   : > { %v8579_v43 = vpack.c.bf16 %v8573_v14, %v8572_v55  ;;  %v15609_v1 = vld [vmem:[#allocation7 + $0x30] sm:$0xff]  ;;  %v8858_v19 = vpack.c.bf16 %v8574_v51, %v8573_v14 }
 0x757   : > { %12492 = vmatprep.mubr.bf16.mxu1 %v8606_v24  ;;  %v8582_v36 = vpack.c.bf16 %v15609_v1, %v15609_v1  ;;  %v8605_v5 = vld [vmem:[#allocation7 + $0x31] sm:$0xff]  ;;  %v10443_v24 = vld [vmem:[%s15682_s12] ss:$0 sm:$0xff] }
 0x758   : > { %12516 = vmatprep.mubr.bf16.mxu0 %v8579_v43  ;;  %v15597_v9 = vld [vmem:[#allocation7 + $0x19] sm:$0xff]  ;;  %v8609_v2 = vpack.c.bf16 %v8605_v5, %v8605_v5 }
 0x759   : > { %12517 = vmatmul.mubr.bf16.vlgmr.msra.gmra.mxu0 %v8580_v35  ;;  %v8607_v41 = vpack.c.bf16 %v15597_v9, %v8601_v46  ;;  %v15607_v31 = vld [vmem:[#allocation7 + $0x20] sm:$0xff] }
 0x75a   : > { %12549 = vmatpush3.bf16.msra.mxu0 %v15579_v39  ;;  %v8859_v22 = vpack.c.bf16 %v15607_v31, %v15591_v62 }
 0x75b   : > { %12550 = vmatprep.subr.bf16.mxu0 %v12953_v0  ;;  %12493 = vmatmul.mubr.bf16.vlgmr.msra.gmra.mxu1 %v8607_v41 }
 0x75c   : > { %12525 = vmatpush3.bf16.msra.mxu1 %v15585_v58  ;;  %v8603_v30 = vld [vmem:[#allocation7 + $0x21] sm:$0xff]  ;;  %v8604_v39 = vld [vmem:[#allocation7 + $0x29] sm:$0xff] }
 0x75d   : > { %v8577_v28 = vld [vmem:[#allocation7 + $0x28] sm:$0xff]  ;;  %12526 = vmatprep.subr.bf16.mxu1 %v12954_v33  ;;  %v8608_v12 = vpack.c.bf16 %v8604_v39, %v8603_v30  ;;  %v9006_v6 = vpack.c.bf16 %v8603_v30, %v15597_v9  ;;  %v9007_v59 = vpack.c.bf16 %v8605_v5, %v8604_v39 }
 0x75e   : > { %12551 = vmatpush3.bf16.msra.mxu0 %v12953_v0  ;;  %v8581_v32 = vpack.c.bf16 %v8577_v28, %v15607_v31  ;;  %v12957_v58 = vld [vmem:[%s15681_s11 + $0xe0] sm:$0xff]   ;;  %v8860_v27 = vpack.c.bf16 %v15609_v1, %v8577_v28 }
 0x75f   : > { %12552 = vmatprep.subr.bf16.mxu0 %v12955_v40  ;;  %12496 = vmatprep.mubr.bf16.mxu1 %v8608_v12 }
 0x760   : > { %12520 = vmatprep.mubr.bf16.mxu0 %v8581_v32  ;;  %12527 = vmatpush3.bf16.msra.mxu1 %v12954_v33 }
 0x761   : > { %12521 = vmatmul.mubr.bf16.gmra.mxu0 %v8582_v36  ;;  %12528 = vmatprep.subr.bf16.mxu1 %v12956_v47 }
 0x762   : > { %12553 = vmatpush3.bf16.msra.mxu0 %v12955_v40  ;;  %12564 = vmatprep.mubr.bf16.mxu0 %v9005_v34 }
 0x763   : > { %12554 = vmatprep.subr.bf16.mxu0 %v12957_v58  ;;  %12497 = vmatmul.mubr.bf16.gmra.mxu1 %v8609_v2 }
 0x764   : > { %12529 = vmatpush3.bf16.msra.mxu1 %v12956_v47  ;;  %12540 = vmatprep.mubr.bf16.mxu1 %v8858_v19 }
 0x765   : > { %12530 = vmatprep.subr.bf16.mxu1 %v12958_v21 }
 0x766   : > { %12555 = vmatpush3.bf16.msra.mxu0 %v12957_v58 }
 0x767   : > { %12556 = vmatprep.subr.bf16.mxu0 %v12959_v17 }
 0x768   : > { %12531 = vmatpush3.bf16.msra.mxu1 %v12958_v21 }
 0x769   : > { %12532 = vmatprep.subr.bf16.mxu1 %v12960_v3 }
 0x76a   : > { %12557 = vmatpush3.bf16.msra.mxu0 %v12959_v17 }
 0x76b   : > { %12558 = vmatprep.subr.bf16.mxu0 %v12961_v53 }
 0x76c   : > { %12533 = vmatpush3.bf16.msra.mxu1 %v12960_v3 }
 0x76d   : > { %12534 = vmatprep.subr.bf16.mxu1 %v12962_v42 }
 0x76e   : > { %12559 = vmatpush3.bf16.msra.mxu0 %v12961_v53 }
 0x76f   : > { %12560 = vmatprep.subr.bf16.mxu0 %v12963_v11 }
 0x770   : > { %12535 = vmatpush3.bf16.msra.mxu1 %v12962_v42 }
 0x771   : > { %12536 = vmatprep.subr.bf16.mxu1 %v12964_v16 }
 0x772   : > { %12561 = vmatpush3.bf16.msra.mxu0 %v12963_v11 }
 0x773   : > { %12562 = vmatprep.subr.bf16.mxu0 %v12965_v26 }
 0x774   : > { %12537 = vmatpush3.bf16.msra.mxu1 %v12964_v16 }
 0x775   : > { %12538 = vmatprep.subr.bf16.mxu1 %v12966_v60 }
 0x776   : > { %12563 = vmatpush3.bf16.msra.mxu0 %v12965_v26 }
 0x778   : > { %12539 = vmatpush3.bf16.msra.mxu1 %v12966_v60 }
 0x779   : > { %12565 = vmatmul.mubr.bf16.vlgmr.msra.gmra.mxu0 %v9006_v6 }
 0x77a   : > { %12568 = vmatprep.mubr.bf16.mxu0 %v9007_v59 }
 0x77b   : > { %12541 = vmatmul.mubr.bf16.vlgmr.msra.gmra.mxu1 %v8859_v22 }
 0x77c   : > { %12544 = vmatprep.mubr.bf16.mxu1 %v8860_v27 }
 0x781   : > { %12569 = vmatmul.mubr.bf16.gmra.mxu0 %v9008_v20 }
 0x783   : > { %12545 = vmatmul.mubr.bf16.gmra.mxu1 %v8861_v7 }
 0x819   : > { %v12518_v25 = vpop.f32.mrf.mxu0 }
 0x81b   : > { %v8821_v10 = vpop.f32.mrf.mxu0  ;;  %v12494_v63 = vpop.f32.mrf.mxu1 }
 0x81c   : > { %v8830_v50 = vadd.f32 %v12518_v25, %v12494_v63 }
 0x81d   : > { %v12519_v57 = vpop.f32.mrf.mxu0  ;;  %v8709_v56 = vpop.f32.mrf.mxu1 }
 0x81e   : > { %v8822_v48 = vadd.f32 %v8821_v10, %v8709_v56 }
 0x81f   : > { %v8824_v29 = vpop.f32.mrf.mxu0  ;;  %v12495_v8 = vpop.f32.mrf.mxu1 }
 0x820   : > { %v8833_v51 = vadd.f32 %v12519_v57, %v12495_v8 }
 0x821   : > { %v12522_v38 = vpop.f32.mrf.mxu0  ;;  %v8712_v13 = vpop.f32.mrf.mxu1 }
 0x822   : > { %v8825_v41 = vadd.f32 %v8824_v29, %v8712_v13 }
 0x823   : > { %v8837_v49 = vpop.f32.mrf.mxu0  ;;  %v12498_v52 = vpop.f32.mrf.mxu1 }
 0x824   : > { %v8846_v47 = vadd.f32 %v12522_v38, %v12498_v52 }
 0x825   : > { %v12523_v4 = vpop.f32.mrf.mxu0  ;;  %v8725_v44 = vpop.f32.mrf.mxu1 }
 0x826   : > { %v8838_v5 = vadd.f32 %v8837_v49, %v8725_v44 }
 0x827   : > { %v12499_v45 = vpop.f32.mrf.mxu1  ;;  %v8840_v23 = vpop.f32.mrf.mxu0 }
 0x829   : > { %v8728_v37 = vpop.f32.mrf.mxu1 }
 0x82a   : > { %v8841_v60 = vadd.f32 %v8840_v23, %v8728_v37 }
 0x839   : > { %v12566_v15 = vpop.f32.mrf.mxu0 }
 0x83b   : > { %v9108_v55 = vpop.f32.mrf.mxu0  ;;  %v12542_v62 = vpop.f32.mrf.mxu1 }
 0x83c   : > { %v8993_v18 = vadd.f32 %v12542_v62, %v8830_v50 }
 0x83d   : > { %v12567_v14 = vpop.f32.mrf.mxu0  ;;  %v8961_v43 = vpop.f32.mrf.mxu1 }
 0x83e   : > { %v9140_v35 = vadd.f32 %v12566_v15, %v8993_v18  ;;  %v8991_v0 = vadd.f32 %v8961_v43, %v8822_v48 }
 0x83f   : > { %v9111_v46 = vpop.f32.mrf.mxu0  ;;  %v12543_v9 = vpop.f32.mrf.mxu1 }
 0x840   : > { %v9154_v33 = vadd.f32 %v10443_v24, %v9140_v35  ;;  %v9138_v40 = vadd.f32 %v9108_v55, %v8991_v0  ;;  %v8994_v31 = vadd.f32 %v12543_v9, %v8833_v51 }
 0x841   : > { %v12570_v1 = vpop.f32.mrf.mxu0  ;;  %v8964_v30 = vpop.f32.mrf.mxu1 }
 0x842   : > { %v10446_v39 = vmul.f32 -1.442695, %v9154_v33  ;;  %v9152_v28 = vadd.f32 %v10443_v24, %v9138_v40  ;;  %v9141_v12 = vadd.f32 %v12567_v14, %v8994_v31  ;;  %v8992_v32 = vadd.f32 %v8964_v30, %v8825_v41 }
 0x843   : > { %v9124_v36 = vpop.f32.mrf.mxu0  ;;  %v12546_v58 = vpop.f32.mrf.mxu1 }
 0x844   : > { %12967 = vpow2.f32 %v10446_v39  ;;  %v10444_v34 = vmul.f32 -1.442695, %v9152_v28  ;;  %v9155_v2 = vadd.f32 %v10443_v24, %v9141_v12  ;;  %v9139_v21 = vadd.f32 %v9111_v46, %v8992_v32 }
 0x845   : > { %v12571_v19 = vpop.f32.mrf.mxu0  ;;  %v8997_v17 = vadd.f32 %v12546_v58, %v8846_v47  ;;  %v8977_v3 = vpop.f32.mrf.mxu1 }
 0x846   : > { %12969 = vpow2.f32 %v10444_v34  ;;  %v10447_v53 = vmul.f32 -1.442695, %v9155_v2  ;;  %v9153_v42 = vadd.f32 %v10443_v24, %v9139_v21  ;;  %v8995_v11 = vadd.f32 %v8977_v3, %v8838_v5 }
 0x847   : > { %v9144_v16 = vadd.f32 %v12570_v1, %v8997_v17  ;;  %v12547_v26 = vpop.f32.mrf.mxu1  ;;  %v9127_v7 = vpop.f32.mrf.mxu0 }
 0x848   : > { %12971 = vpow2.f32 %v10447_v53  ;;  %v10445_v6 = vmul.f32 -1.442695, %v9153_v42  ;;  %v9142_v59 = vadd.f32 %v9124_v36, %v8995_v11 }
 0x849   : > { %v9158_v22 = vadd.f32 %v10443_v24, %v9144_v16  ;;  %v8980_v61 = vpop.f32.mrf.mxu1 }
 0x84a   : > { %12973 = vpow2.f32 %v10445_v6  ;;  %v9156_v27 = vadd.f32 %v10443_v24, %v9142_v59  ;;  %v8996_v20 = vadd.f32 %v8980_v61, %v8841_v60 }
 0x84b   : > { %v10450_v54 = vmul.f32 -1.442695, %v9158_v22 }
 0x84c   : > { %v10448_v25 = vmul.f32 -1.442695, %v9156_v27  ;;  %v9143_v10 = vadd.f32 %v9127_v7, %v8996_v20 }
 0x84d   : > { %12975 = vpow2.f32 %v10450_v54 }
 0x84e   : > { %12977 = vpow2.f32 %v10448_v25  ;;  %v9157_v63 = vadd.f32 %v10443_v24, %v9143_v10 }
 0x850   : > { %v10449_v57 = vmul.f32 -1.442695, %v9157_v63 }
 0x851   : > { %v12968_v56 = vpop.eup %12967 }
 0x852   : > { %v9182_v29 = vadd.f32 1.0, %v12968_v56  ;;  %12979 = vpow2.f32 %v10449_v57 }
 0x853   : > { %v12970_v8 = vpop.eup %12969 }
 0x854   : > { %12981 = vrcp.f32 %v9182_v29  ;;  %v9180_v38 = vadd.f32 1.0, %v12970_v8 }
 0x855   : > { %v12972_v13 = vpop.eup %12971 }
 0x856   : > { %12983 = vrcp.f32 %v9180_v38  ;;  %v9183_v49 = vadd.f32 1.0, %v12972_v13 }
 0x857   : > { %v12974_v52 = vpop.eup %12973 }
 0x858   : > { %12985 = vrcp.f32 %v9183_v49  ;;  %v9181_v4 = vadd.f32 1.0, %v12974_v52 }
 0x85a   : > { %v12976_v44 = vpop.eup %12975  ;;  %12987 = vrcp.f32 %v9181_v4 }
 0x85b   : > { %v12978_v45 = vpop.eup %12977  ;;  %v9186_v23 = vadd.f32 1.0, %v12976_v44 }
 0x85c   : > { %v9184_v15 = vadd.f32 1.0, %v12978_v45 }
 0x85d   : > { %12989 = vrcp.f32 %v9186_v23 }
 0x85e   : > { %12991 = vrcp.f32 %v9184_v15 }
 0x85f   : > { %v12980_v37 = vpop.eup %12979 }
 0x860   : > { %v9185_v50 = vadd.f32 1.0, %v12980_v37 }
 0x861   : > { %v12982_v55 = vpop.eup %12981 }
 0x862   : > { %9203 = vst.msk [vmem:[%s440_s28 + $0x10] sm:$0xff] %vm442_vm0, %v12982_v55  ;;  %12993 = vrcp.f32 %v9185_v50 }
 0x863   : > { %v12984_v62 = vpop.eup %12983 }
 0x864   : > { %9201 = vst.msk [vmem:[%s440_s28] sm:$0xff] %vm442_vm0, %v12984_v62 }
 0x865   : > { %v12986_v48 = vpop.eup %12985 }
 0x866   : > { %9204 = vst.msk [vmem:[%s440_s28 + $0x18] sm:$0xff] %vm442_vm0, %v12986_v48 }
 0x867   : > { %v12988_v18 = vpop.eup %12987 }
 0x868   : > { %9202 = vst.msk [vmem:[%s440_s28 + $0x8] sm:$0xff] %vm442_vm0, %v12988_v18 }
 0x86a   : > { %v12990_v14 = vpop.eup %12989 }
 0x86b   : > { %v12992_v24 = vpop.eup %12991  ;;  %9207 = vst.msk [vmem:[%s440_s28 + $0x30] sm:$0xff] %vm442_vm0, %v12990_v14 }
 0x86c   : > { %9205 = vst.msk [vmem:[%s440_s28 + $0x20] sm:$0xff] %vm442_vm0, %v12992_v24 }
 0x86f   : > { %v12994_v43 = vpop.eup %12993 }
 0x870   : > { %9206 = vst.msk [vmem:[%s440_s28 + $0x28] sm:$0xff] %vm442_vm0, %v12994_v43 }
 0x871 PF: > { %s23_s25 = sadd.s32 1, %s13007_s25  }
 0x872   : > { %p20_p4 = scmp.ge.s32.totalorder %s23_s25, 4  }
 0x874   :  { %22 = sbr.rel (!%p20_p4) target bundleno = 1 (0x1), region = 162 }

</bundles_post_ra>
